<compile_context>
chip_gen: v7x
topology: tpu7x:2x2x1
jax: 0.10.0
libtpu: 0.0.40
codegen_flags: <defaults>
</compile_context>

<pallas_src>
import jax
import jax.numpy as jnp
from jax.experimental import pallas as pl
from jax.experimental.pallas import tpu as pltpu

_H1 = 2048
_H2 = 512
_LANE = 128
_BF16_SUBLANE = 16


def _round_up(n, m):
    return ((n + m - 1) // m) * m


def _mlp_kernel(x_ref, w1_ref, b1_ref, w2_ref, b2_ref, w3_ref, b3_ref,
                o_ref, h1_ref, h2_ref):
    # fc1 + bias + ReLU (dropout1 = identity in eval mode).
    # bf16 MXU operands, f32 accumulation; bias/ReLU in f32 on the VPU
    # (v5e has no bf16 VPU). Result stored directly as bf16 in VMEM scratch
    # so only one (TB, 2048) activation slab hits the store slot.
    h1 = jnp.dot(x_ref[...], w1_ref[...], preferred_element_type=jnp.float32)
    h1_ref[...] = jnp.maximum(h1 + b1_ref[...], 0.0).astype(jnp.bfloat16)

    # fc2 + bias + ReLU (dropout2 = identity in eval mode).
    h2 = jnp.dot(h1_ref[...], w2_ref[...], preferred_element_type=jnp.float32)
    h2_ref[...] = jnp.maximum(h2 + b2_ref[...], 0.0).astype(jnp.bfloat16)

    # fc3 logits (no activation).
    out = jnp.dot(h2_ref[...], w3_ref[...], preferred_element_type=jnp.float32)
    o_ref[...] = (out + b3_ref[...]).astype(o_ref.dtype)


def _choose_batch_tiling(B):
    """Return (tile_rows, padded_batch)."""
    if B <= 128:
        # Single tile, rounded to the bf16-native 16-row sublane tile.
        tb = _round_up(max(B, _BF16_SUBLANE), _BF16_SUBLANE)
        return tb, tb
    best = None
    for tb in (512, 256, 128):
        b_pad = _round_up(B, tb)
        steps = b_pad // tb
        waste = b_pad - B
        # priority: least padding waste, then >=2 steps (v7x dual-TC sharding),
        # then fewest steps (amortize per-step pipeline overhead).
        key = (waste, 0 if steps >= 2 else 1, steps)
        if best is None or key < best[0]:
            best = (key, tb, b_pad)
    return best[1], best[2]


def prepare_params(params):
    """One-time preparation of kernel-ready weights (call once, reuse per forward).

    Pads signals_dim and num_classes up to lane (128) multiples with zeros,
    casts weights to bf16 (MXU operands / halved HBM bytes), keeps biases f32.
    """
    w1, b1 = params["w1"], params["b1"]   # (D, 2048), (1, 2048)
    w2, b2 = params["w2"], params["b2"]   # (2048, 512), (1, 512)
    w3, b3 = params["w3"], params["b3"]   # (512, C), (1, C)

    D = w1.shape[0]
    C = w3.shape[1]
    D_pad = _round_up(max(D, _LANE), _LANE)
    C_pad = _round_up(max(C, _LANE), _LANE)

    if D_pad != D:
        w1 = jnp.pad(w1, ((0, D_pad - D), (0, 0)))
    if C_pad != C:
        w3 = jnp.pad(w3, ((0, 0), (0, C_pad - C)))
        b3 = jnp.pad(b3, ((0, 0), (0, C_pad - C)))

    return {
        "w1": w1.astype(jnp.bfloat16), "b1": b1.astype(jnp.float32),
        "w2": w2.astype(jnp.bfloat16), "b2": b2.astype(jnp.float32),
        "w3": w3.astype(jnp.bfloat16), "b3": b3.astype(jnp.float32),
        "signals_dim": D, "num_classes": C, "d_pad": D_pad, "c_pad": C_pad,
    }


def _vmem_limit_bytes(needed):
    try:
        phys = int(getattr(pltpu.get_tpu_info(), "vmem_capacity_bytes", 0))
    except Exception:
        phys = 0
    if phys <= 0:
        phys = 64 << 20                       # conservative: v7x per-TC VMEM
    cap = (phys * 3) // 4                     # ~25% headroom for compiler scratch
    return int(min(max(needed, 16 << 20), cap))


def signals_classifier_forward(x, prep):
    """x: (B, signals_dim) f32. prep: output of prepare_params()."""
    w1, b1 = prep["w1"], prep["b1"]
    w2, b2 = prep["w2"], prep["b2"]
    w3, b3 = prep["w3"], prep["b3"]
    D_pad, C_pad = prep["d_pad"], prep["c_pad"]
    D, C = prep["signals_dim"], prep["num_classes"]

    B, Din = x.shape
    assert Din == D, f"expected signals_dim={D}, got {Din}"

    TB, B_pad = _choose_batch_tiling(B)
    if B_pad != B or D_pad != D:
        x = jnp.pad(x, ((0, B_pad - B), (0, D_pad - D)))
    x_b = x.astype(jnp.bfloat16)              # activation cast only (cheap, per-call)

    grid = (B_pad // TB,)

    # VMEM budget: resident weights (budget x2 in case of the default-buffering
    # fallback), double-buffered x/out tiles, bf16 h1/h2 scratch, f32 fc1 temp.
    def nbytes(a):
        return a.size * a.dtype.itemsize

    weight_bytes = sum(nbytes(a) for a in (w1, w2, w3, b1, b2, b3))
    act_bytes = 2 * TB * D_pad * 2 + 2 * TB * C_pad * 4
    scratch_bytes = TB * _H1 * 2 + TB * _H2 * 2
    work_bytes = TB * _H1 * 4
    needed = 2 * weight_bytes + act_bytes + scratch_bytes + work_bytes + (4 << 20)
    vmem_bytes = _vmem_limit_bytes(needed)

    def run(single_buffer_weights):
        def resident(a):
            idx = lambda i: (0, 0)
            if single_buffer_weights:
                # Grid-invariant blocks: one buffer is enough.
                return pl.BlockSpec(a.shape, idx, pipeline_mode=pl.Buffered(1))
            return pl.BlockSpec(a.shape, idx)

        return pl.pallas_call(
            _mlp_kernel,
            out_shape=jax.ShapeDtypeStruct((B_pad, C_pad), jnp.float32),
            grid=grid,
            in_specs=[
                pl.BlockSpec((TB, D_pad), lambda i: (i, 0)),
                resident(w1), resident(b1),
                resident(w2), resident(b2),
                resident(w3), resident(b3),
            ],
            out_specs=pl.BlockSpec((TB, C_pad), lambda i: (i, 0)),
            scratch_shapes=[
                pltpu.VMEM((TB, _H1), jnp.bfloat16),   # h1 (bf16 only)
                pltpu.VMEM((TB, _H2), jnp.bfloat16),   # h2 (bf16 only)
            ],
            compiler_params=pltpu.CompilerParams(
                dimension_semantics=("parallel",),
                vmem_limit_bytes=vmem_bytes,
            ),
        )(x_b, w1, b1, w2, b2, w3, b3)

    try:
        out = run(single_buffer_weights=True)
    except Exception:
        # Fallback if pipeline_mode=pl.Buffered(1) is not supported by this JAX.
        out = run(single_buffer_weights=False)

    return out[:B, :C]


def init_params(key, signals_dim, num_classes):
    """Deterministic synthetic init (PyTorch-Linear-like uniform fan-in scaling)."""
    ks = jax.random.split(key, 6)

    def linear(kw, kb, fan_in, fan_out):
        bound = 1.0 / jnp.sqrt(fan_in)
        # stored pre-transposed: (in_features, out_features)
        w = jax.random.uniform(kw, (fan_in, fan_out), jnp.float32, -bound, bound)
        b = jax.random.uniform(kb, (1, fan_out), jnp.float32, -bound, bound)
        return w, b

    w1, b1 = linear(ks[0], ks[1], signals_dim, _H1)
    w2, b2 = linear(ks[2], ks[3], _H1, _H2)
    w3, b3 = linear(ks[4], ks[5], _H2, num_classes)
    return {"w1": w1, "b1": b1, "w2": w2, "b2": b2, "w3": w3, "b3": b3}


def _reference_forward(x, p):
    # Mirrors the kernel numerics: bf16 MXU operands, f32 accumulation.
    f = lambda a: a.astype(jnp.bfloat16).astype(jnp.float32)
    h1 = jnp.maximum(f(x) @ f(p["w1"]) + p["b1"], 0.0)
    h2 = jnp.maximum(f(h1) @ f(p["w2"]) + p["b2"], 0.0)
    return f(h2) @ f(p["w3"]) + p["b3"]


if __name__ == "__main__":
    key = jax.random.PRNGKey(0)
    k_param, k_x = jax.random.split(key)

    batch = 2
    signals_dim = 32
    num_classes = 10

    params = init_params(k_param, signals_dim, num_classes)
    prep = prepare_params(params)          # one-time weight prep (bf16 + padding)
    x = jax.random.normal(k_x, (batch, signals_dim), jnp.float32)

    out = signals_classifier_forward(x, prep)
    out = jax.block_until_ready(out)

    ref = _reference_forward(x, params)
    assert out.shape == (batch, num_classes)
    assert jnp.allclose(out, ref, atol=2e-3, rtol=2e-3), "mismatch vs reference"

    print("KERNEL_OK")
</pallas_src>

<mosaic_0001>
module attributes {stable_mosaic.version = 11 : i64} {
  func.func @_mlp_kernel(%arg0: i32, %arg1: memref<16x128xbf16, #tpu.memory_space<vmem>>, %arg2: memref<128x2048xbf16, #tpu.memory_space<vmem>>, %arg3: memref<1x2048xf32, #tpu.memory_space<vmem>>, %arg4: memref<2048x512xbf16, #tpu.memory_space<vmem>>, %arg5: memref<1x512xf32, #tpu.memory_space<vmem>>, %arg6: memref<512x128xbf16, #tpu.memory_space<vmem>>, %arg7: memref<1x128xf32, #tpu.memory_space<vmem>>, %arg8: memref<16x128xf32, #tpu.memory_space<vmem>>, %arg9: memref<16x2048xbf16, #tpu.memory_space<vmem>>, %arg10: memref<16x512xbf16, #tpu.memory_space<vmem>>) attributes {dimension_semantics = [#tpu.dimension_semantics<parallel>], iteration_bounds = array<i64: 1>, scalar_prefetch = 0 : i64, scratch_operands = 2 : i64, tpu.core_type = #tpu.core_type<tc>, window_params = [{transform_indices = @transform_0, window_bounds = array<i64: 16, 128>}, {pipeline_mode = #tpu.pipeline_mode<synchronous>, transform_indices = @transform_1, window_bounds = array<i64: 128, 2048>}, {pipeline_mode = #tpu.pipeline_mode<synchronous>, transform_indices = @transform_2, window_bounds = array<i64: 1, 2048>}, {pipeline_mode = #tpu.pipeline_mode<synchronous>, transform_indices = @transform_3, window_bounds = array<i64: 2048, 512>}, {pipeline_mode = #tpu.pipeline_mode<synchronous>, transform_indices = @transform_4, window_bounds = array<i64: 1, 512>}, {pipeline_mode = #tpu.pipeline_mode<synchronous>, transform_indices = @transform_5, window_bounds = array<i64: 512, 128>}, {pipeline_mode = #tpu.pipeline_mode<synchronous>, transform_indices = @transform_6, window_bounds = array<i64: 1, 128>}, {transform_indices = @transform_7, window_bounds = array<i64: 16, 128>}]} {
    %c0 = arith.constant 0 : index
    %c0_0 = arith.constant 0 : index
    %0 = vector.load %arg1[%c0, %c0_0] : memref<16x128xbf16, #tpu.memory_space<vmem>>, vector<16x128xbf16>
    %c0_1 = arith.constant 0 : index
    %c0_2 = arith.constant 0 : index
    %1 = vector.load %arg2[%c0_1, %c0_2] : memref<128x2048xbf16, #tpu.memory_space<vmem>>, vector<128x2048xbf16>
    %cst = arith.constant dense<0.000000e+00> : vector<16x2048xf32>
    %2 = tpu.matmul %0, %1, %cst {dimension_numbers = #tpu.dot_dimension_numbers<[1], [0], [0], [1], [0, 0, 1, 1], [], []>} : vector<16x128xbf16>, vector<128x2048xbf16>, vector<16x2048xf32> -> vector<16x2048xf32>
    %c0_3 = arith.constant 0 : index
    %c0_4 = arith.constant 0 : index
    %3 = vector.load %arg3[%c0_3, %c0_4] : memref<1x2048xf32, #tpu.memory_space<vmem>>, vector<1x2048xf32>
    %4 = vector.broadcast %3 : vector<1x2048xf32> to vector<16x2048xf32>
    %5 = arith.addf %2, %4 : vector<16x2048xf32>
    %cst_5 = arith.constant 0.000000e+00 : f32
    %6 = vector.broadcast %cst_5 : f32 to vector<16x2048xf32>
    %7 = arith.maximumf %5, %6 : vector<16x2048xf32>
    %8 = arith.truncf %7 : vector<16x2048xf32> to vector<16x2048xbf16>
    %c0_6 = arith.constant 0 : index
    %c0_7 = arith.constant 0 : index
    %9 = vector.load %arg9[%c0_6, %c0_7] : memref<16x2048xbf16, #tpu.memory_space<vmem>>, vector<16x2048xbf16>
    tpu.vector_store %arg9[%c0_6, %c0_7], %8 {strides = array<i32>} : memref<16x2048xbf16, #tpu.memory_space<vmem>>, vector<16x2048xbf16>,
    %c0_8 = arith.constant 0 : index
    %c0_9 = arith.constant 0 : index
    %10 = vector.load %arg9[%c0_8, %c0_9] : memref<16x2048xbf16, #tpu.memory_space<vmem>>, vector<16x2048xbf16>
    %c0_10 = arith.constant 0 : index
    %c0_11 = arith.constant 0 : index
    %11 = vector.load %arg4[%c0_10, %c0_11] : memref<2048x512xbf16, #tpu.memory_space<vmem>>, vector<2048x512xbf16>
    %cst_12 = arith.constant dense<0.000000e+00> : vector<16x512xf32>
    %12 = tpu.matmul %10, %11, %cst_12 {dimension_numbers = #tpu.dot_dimension_numbers<[1], [0], [0], [1], [0, 0, 1, 1], [], []>} : vector<16x2048xbf16>, vector<2048x512xbf16>, vector<16x512xf32> -> vector<16x512xf32>
    %c0_13 = arith.constant 0 : index
    %c0_14 = arith.constant 0 : index
    %13 = vector.load %arg5[%c0_13, %c0_14] : memref<1x512xf32, #tpu.memory_space<vmem>>, vector<1x512xf32>
    %14 = vector.broadcast %13 : vector<1x512xf32> to vector<16x512xf32>
    %15 = arith.addf %12, %14 : vector<16x512xf32>
    %cst_15 = arith.constant 0.000000e+00 : f32
    %16 = vector.broadcast %cst_15 : f32 to vector<16x512xf32>
    %17 = arith.maximumf %15, %16 : vector<16x512xf32>
    %18 = arith.truncf %17 : vector<16x512xf32> to vector<16x512xbf16>
    %c0_16 = arith.constant 0 : index
    %c0_17 = arith.constant 0 : index
    %19 = vector.load %arg10[%c0_16, %c0_17] : memref<16x512xbf16, #tpu.memory_space<vmem>>, vector<16x512xbf16>
    tpu.vector_store %arg10[%c0_16, %c0_17], %18 {strides = array<i32>} : memref<16x512xbf16, #tpu.memory_space<vmem>>, vector<16x512xbf16>,
    %c0_18 = arith.constant 0 : index
    %c0_19 = arith.constant 0 : index
    %20 = vector.load %arg10[%c0_18, %c0_19] : memref<16x512xbf16, #tpu.memory_space<vmem>>, vector<16x512xbf16>
    %c0_20 = arith.constant 0 : index
    %c0_21 = arith.constant 0 : index
    %21 = vector.load %arg6[%c0_20, %c0_21] : memref<512x128xbf16, #tpu.memory_space<vmem>>, vector<512x128xbf16>
    %cst_22 = arith.constant dense<0.000000e+00> : vector<16x128xf32>
    %22 = tpu.matmul %20, %21, %cst_22 {dimension_numbers = #tpu.dot_dimension_numbers<[1], [0], [0], [1], [0, 0, 1, 1], [], []>} : vector<16x512xbf16>, vector<512x128xbf16>, vector<16x128xf32> -> vector<16x128xf32>
    %c0_23 = arith.constant 0 : index
    %c0_24 = arith.constant 0 : index
    %23 = vector.load %arg7[%c0_23, %c0_24] : memref<1x128xf32, #tpu.memory_space<vmem>>, vector<1x128xf32>
    %24 = vector.broadcast %23 : vector<1x128xf32> to vector<16x128xf32>
    %25 = arith.addf %22, %24 : vector<16x128xf32>
    %c0_25 = arith.constant 0 : index
    %c0_26 = arith.constant 0 : index
    %26 = vector.load %arg8[%c0_25, %c0_26] : memref<16x128xf32, #tpu.memory_space<vmem>>, vector<16x128xf32>
    tpu.vector_store %arg8[%c0_25, %c0_26], %25 {strides = array<i32>} : memref<16x128xf32, #tpu.memory_space<vmem>>, vector<16x128xf32>,
    return
  }
  func.func @transform_0(%arg0: i32) -> (i32, i32) {
    %c0_i32 = arith.constant 0 : i32
    %c0_i32_0 = arith.constant 0 : i32
    return %arg0, %c0_i32 : i32, i32
  }
  func.func @transform_1(%arg0: i32) -> (i32, i32) {
    %c0_i32 = arith.constant 0 : i32
    %c0_i32_0 = arith.constant 0 : i32
    %c0_i32_1 = arith.constant 0 : i32
    return %c0_i32, %c0_i32_0 : i32, i32
  }
  func.func @transform_2(%arg0: i32) -> (i32, i32) {
    %c0_i32 = arith.constant 0 : i32
    %c0_i32_0 = arith.constant 0 : i32
    %c0_i32_1 = arith.constant 0 : i32
    return %c0_i32, %c0_i32_0 : i32, i32
  }
  func.func @transform_3(%arg0: i32) -> (i32, i32) {
    %c0_i32 = arith.constant 0 : i32
    %c0_i32_0 = arith.constant 0 : i32
    %c0_i32_1 = arith.constant 0 : i32
    return %c0_i32, %c0_i32_0 : i32, i32
  }
  func.func @transform_4(%arg0: i32) -> (i32, i32) {
    %c0_i32 = arith.constant 0 : i32
    %c0_i32_0 = arith.constant 0 : i32
    %c0_i32_1 = arith.constant 0 : i32
    return %c0_i32, %c0_i32_0 : i32, i32
  }
  func.func @transform_5(%arg0: i32) -> (i32, i32) {
    %c0_i32 = arith.constant 0 : i32
    %c0_i32_0 = arith.constant 0 : i32
    %c0_i32_1 = arith.constant 0 : i32
    return %c0_i32, %c0_i32_0 : i32, i32
  }
  func.func @transform_6(%arg0: i32) -> (i32, i32) {
    %c0_i32 = arith.constant 0 : i32
    %c0_i32_0 = arith.constant 0 : i32
    %c0_i32_1 = arith.constant 0 : i32
    return %c0_i32, %c0_i32_0 : i32, i32
  }
  func.func @transform_7(%arg0: i32) -> (i32, i32) {
    %c0_i32 = arith.constant 0 : i32
    %c0_i32_0 = arith.constant 0 : i32
    return %arg0, %c0_i32 : i32, i32
  }
}

module attributes {stable_mosaic.version = 11 : i64} {
  func.func @_mlp_kernel(%arg0: i32, %arg1: memref<16x128xbf16, #tpu.memory_space<vmem>>, %arg2: memref<128x2048xbf16, #tpu.memory_space<vmem>>, %arg3: memref<1x2048xf32, #tpu.memory_space<vmem>>, %arg4: memref<2048x512xbf16, #tpu.memory_space<vmem>>, %arg5: memref<1x512xf32, #tpu.memory_space<vmem>>, %arg6: memref<512x128xbf16, #tpu.memory_space<vmem>>, %arg7: memref<1x128xf32, #tpu.memory_space<vmem>>, %arg8: memref<16x128xf32, #tpu.memory_space<vmem>>, %arg9: memref<16x2048xbf16, #tpu.memory_space<vmem>>, %arg10: memref<16x512xbf16, #tpu.memory_space<vmem>>) attributes {dimension_semantics = [#tpu.dimension_semantics<parallel>], iteration_bounds = array<i64: 1>, scalar_prefetch = 0 : i64, scratch_operands = 2 : i64, tpu.core_type = #tpu.core_type<tc>, window_params = [{transform_indices = @transform_0, window_bounds = array<i64: 16, 128>}, {pipeline_mode = #tpu.pipeline_mode<synchronous>, transform_indices = @transform_1, window_bounds = array<i64: 128, 2048>}, {pipeline_mode = #tpu.pipeline_mode<synchronous>, transform_indices = @transform_2, window_bounds = array<i64: 1, 2048>}, {pipeline_mode = #tpu.pipeline_mode<synchronous>, transform_indices = @transform_3, window_bounds = array<i64: 2048, 512>}, {pipeline_mode = #tpu.pipeline_mode<synchronous>, transform_indices = @transform_4, window_bounds = array<i64: 1, 512>}, {pipeline_mode = #tpu.pipeline_mode<synchronous>, transform_indices = @transform_5, window_bounds = array<i64: 512, 128>}, {pipeline_mode = #tpu.pipeline_mode<synchronous>, transform_indices = @transform_6, window_bounds = array<i64: 1, 128>}, {transform_indices = @transform_7, window_bounds = array<i64: 16, 128>}]} {
    %c0 = arith.constant 0 : index
    %c0_0 = arith.constant 0 : index
    %0 = vector.load %arg1[%c0, %c0_0] : memref<16x128xbf16, #tpu.memory_space<vmem>>, vector<16x128xbf16>
    %c0_1 = arith.constant 0 : index
    %c0_2 = arith.constant 0 : index
    %1 = vector.load %arg2[%c0_1, %c0_2] : memref<128x2048xbf16, #tpu.memory_space<vmem>>, vector<128x2048xbf16>
    %cst = arith.constant dense<0.000000e+00> : vector<16x2048xf32>
    %2 = tpu.matmul %0, %1, %cst {dimension_numbers = #tpu.dot_dimension_numbers<[1], [0], [0], [1], [0, 0, 1, 1], [], []>} : vector<16x128xbf16>, vector<128x2048xbf16>, vector<16x2048xf32> -> vector<16x2048xf32>
    %c0_3 = arith.constant 0 : index
    %c0_4 = arith.constant 0 : index
    %3 = vector.load %arg3[%c0_3, %c0_4] : memref<1x2048xf32, #tpu.memory_space<vmem>>, vector<1x2048xf32>
    %4 = vector.broadcast %3 : vector<1x2048xf32> to vector<16x2048xf32>
    %5 = arith.addf %2, %4 : vector<16x2048xf32>
    %cst_5 = arith.constant 0.000000e+00 : f32
    %6 = vector.broadcast %cst_5 : f32 to vector<16x2048xf32>
    %7 = arith.maximumf %5, %6 : vector<16x2048xf32>
    %8 = arith.truncf %7 : vector<16x2048xf32> to vector<16x2048xbf16>
    %c0_6 = arith.constant 0 : index
    %c0_7 = arith.constant 0 : index
    %9 = vector.load %arg9[%c0_6, %c0_7] : memref<16x2048xbf16, #tpu.memory_space<vmem>>, vector<16x2048xbf16>
    tpu.vector_store %arg9[%c0_6, %c0_7], %8 {strides = array<i32>} : memref<16x2048xbf16, #tpu.memory_space<vmem>>, vector<16x2048xbf16>,
    %c0_8 = arith.constant 0 : index
    %c0_9 = arith.constant 0 : index
    %10 = vector.load %arg9[%c0_8, %c0_9] : memref<16x2048xbf16, #tpu.memory_space<vmem>>, vector<16x2048xbf16>
    %c0_10 = arith.constant 0 : index
    %c0_11 = arith.constant 0 : index
    %11 = vector.load %arg4[%c0_10, %c0_11] : memref<2048x512xbf16, #tpu.memory_space<vmem>>, vector<2048x512xbf16>
    %cst_12 = arith.constant dense<0.000000e+00> : vector<16x512xf32>
    %12 = tpu.matmul %10, %11, %cst_12 {dimension_numbers = #tpu.dot_dimension_numbers<[1], [0], [0], [1], [0, 0, 1, 1], [], []>} : vector<16x2048xbf16>, vector<2048x512xbf16>, vector<16x512xf32> -> vector<16x512xf32>
    %c0_13 = arith.constant 0 : index
    %c0_14 = arith.constant 0 : index
    %13 = vector.load %arg5[%c0_13, %c0_14] : memref<1x512xf32, #tpu.memory_space<vmem>>, vector<1x512xf32>
    %14 = vector.broadcast %13 : vector<1x512xf32> to vector<16x512xf32>
    %15 = arith.addf %12, %14 : vector<16x512xf32>
    %cst_15 = arith.constant 0.000000e+00 : f32
    %16 = vector.broadcast %cst_15 : f32 to vector<16x512xf32>
    %17 = arith.maximumf %15, %16 : vector<16x512xf32>
    %18 = arith.truncf %17 : vector<16x512xf32> to vector<16x512xbf16>
    %c0_16 = arith.constant 0 : index
    %c0_17 = arith.constant 0 : index
    %19 = vector.load %arg10[%c0_16, %c0_17] : memref<16x512xbf16, #tpu.memory_space<vmem>>, vector<16x512xbf16>
    tpu.vector_store %arg10[%c0_16, %c0_17], %18 {strides = array<i32>} : memref<16x512xbf16, #tpu.memory_space<vmem>>, vector<16x512xbf16>,
    %c0_18 = arith.constant 0 : index
    %c0_19 = arith.constant 0 : index
    %20 = vector.load %arg10[%c0_18, %c0_19] : memref<16x512xbf16, #tpu.memory_space<vmem>>, vector<16x512xbf16>
    %c0_20 = arith.constant 0 : index
    %c0_21 = arith.constant 0 : index
    %21 = vector.load %arg6[%c0_20, %c0_21] : memref<512x128xbf16, #tpu.memory_space<vmem>>, vector<512x128xbf16>
    %cst_22 = arith.constant dense<0.000000e+00> : vector<16x128xf32>
    %22 = tpu.matmul %20, %21, %cst_22 {dimension_numbers = #tpu.dot_dimension_numbers<[1], [0], [0], [1], [0, 0, 1, 1], [], []>} : vector<16x512xbf16>, vector<512x128xbf16>, vector<16x128xf32> -> vector<16x128xf32>
    %c0_23 = arith.constant 0 : index
    %c0_24 = arith.constant 0 : index
    %23 = vector.load %arg7[%c0_23, %c0_24] : memref<1x128xf32, #tpu.memory_space<vmem>>, vector<1x128xf32>
    %24 = vector.broadcast %23 : vector<1x128xf32> to vector<16x128xf32>
    %25 = arith.addf %22, %24 : vector<16x128xf32>
    %c0_25 = arith.constant 0 : index
    %c0_26 = arith.constant 0 : index
    %26 = vector.load %arg8[%c0_25, %c0_26] : memref<16x128xf32, #tpu.memory_space<vmem>>, vector<16x128xf32>
    tpu.vector_store %arg8[%c0_25, %c0_26], %25 {strides = array<i32>} : memref<16x128xf32, #tpu.memory_space<vmem>>, vector<16x128xf32>,
    return
  }
  func.func @transform_0(%arg0: i32) -> (i32, i32) {
    %c0_i32 = arith.constant 0 : i32
    %c0_i32_0 = arith.constant 0 : i32
    return %arg0, %c0_i32 : i32, i32
  }
  func.func @transform_1(%arg0: i32) -> (i32, i32) {
    %c0_i32 = arith.constant 0 : i32
    %c0_i32_0 = arith.constant 0 : i32
    %c0_i32_1 = arith.constant 0 : i32
    return %c0_i32, %c0_i32_0 : i32, i32
  }
  func.func @transform_2(%arg0: i32) -> (i32, i32) {
    %c0_i32 = arith.constant 0 : i32
    %c0_i32_0 = arith.constant 0 : i32
    %c0_i32_1 = arith.constant 0 : i32
    return %c0_i32, %c0_i32_0 : i32, i32
  }
  func.func @transform_3(%arg0: i32) -> (i32, i32) {
    %c0_i32 = arith.constant 0 : i32
    %c0_i32_0 = arith.constant 0 : i32
    %c0_i32_1 = arith.constant 0 : i32
    return %c0_i32, %c0_i32_0 : i32, i32
  }
  func.func @transform_4(%arg0: i32) -> (i32, i32) {
    %c0_i32 = arith.constant 0 : i32
    %c0_i32_0 = arith.constant 0 : i32
    %c0_i32_1 = arith.constant 0 : i32
    return %c0_i32, %c0_i32_0 : i32, i32
  }
  func.func @transform_5(%arg0: i32) -> (i32, i32) {
    %c0_i32 = arith.constant 0 : i32
    %c0_i32_0 = arith.constant 0 : i32
    %c0_i32_1 = arith.constant 0 : i32
    return %c0_i32, %c0_i32_0 : i32, i32
  }
  func.func @transform_6(%arg0: i32) -> (i32, i32) {
    %c0_i32 = arith.constant 0 : i32
    %c0_i32_0 = arith.constant 0 : i32
    %c0_i32_1 = arith.constant 0 : i32
    return %c0_i32, %c0_i32_0 : i32, i32
  }
  func.func @transform_7(%arg0: i32) -> (i32, i32) {
    %c0_i32 = arith.constant 0 : i32
    %c0_i32_0 = arith.constant 0 : i32
    return %arg0, %c0_i32 : i32, i32
  }
}

</mosaic_0001>

<bundles_post_ra>
// kernel: tpu_custom_call.1
= control target key start
LH: loop header
LB: loop body
LE: loop exit
PB: predicated region body
PF: predicated region fallthrough
CT: control target
= control target key end

     0   :  { %12 = vsyncpa [#allocation5], 0  ;;  %s7648_s0 = inlined_call_operand.hbm [shape: bf16[16,128], index: 0, kind: input, shape index: {}]   ;;  %s7649_s1 = inlined_call_operand.hbm [shape: bf16[128,2048], index: 1, kind: input, shape index: {}]   ;;  %s7650_s2 = inlined_call_operand.hbm [shape: f32[1,2048], index: 2, kind: input, shape index: {}]   ;;  %s7651_s3 = inlined_call_operand.hbm [shape: bf16[2048,512], index: 3, kind: input, shape index: {}]   ;;  %s7652_s4 = inlined_call_operand.hbm [shape: f32[1,512], index: 4, kind: input, shape index: {}]   ;;  %s7653_s5 = inlined_call_operand.hbm [shape: bf16[512,128], index: 5, kind: input, shape index: {}]   ;;  %s7654_s6 = inlined_call_operand.hbm [shape: f32[1,128], index: 6, kind: input, shape index: {}]   ;;  %s7655_s7 = inlined_call_operand.hbm [shape: f32[16,128], index: 7, kind: output, shape index: {}]  }
   0x1   :  { %13 = vsyncpa [#allocation8], 0 }
   0x2   :  { %14 = vsyncpa [#allocation11], 0 }
   0x3   :  { %15 = vsyncpa [#allocation14], 0 }
   0x4   :  { %16 = vsyncpa [#allocation6], 0  ;;  %s7356_s24 = smov [#allocation7]   ;;  %s7170_s28 = scalar_lea.hbm %s7649_s1, 16384 }
   0x5   :  { %s34_s25 = sshll.u32 %s7356_s24, 4  ;;  %p7171_p0 = scmp.ne.s32.totalorder %s7649_s1, %s7170_s28  ;;  %s35_s25 = int_to_ptr.vmem [resolvable:$true] %s34_s25 }
   0x6   :  { %p7174_p1 = scmp.lt.u32.totalorder %s7170_s28, %s7649_s1 }
   0x8   :  { %p7176_p2 = pnand %p7174_p1, %p7171_p0 }
   0xa   :  { %7179 = shalt.err (!%p7176_p2)
}
   0xb   :  { %s7180_s10 = scalar_lea.vmem %s35_s25, 16384  ;;  %p7185_p4 = scmp.lt.s32.totalorder %s35_s25, %s35_s25 }
   0xc   :  { %p7181_p3 = scmp.ne.s32.totalorder %s35_s25, %s7180_s10  ;;  %p7186_p5 = scmp.lt.s32.totalorder %s7180_s10, %s7180_s10 }
   0xe   :  { %p7187_p6 = por %p7186_p5, %p7185_p4 }
  0x10   :  { %p7188_p7 = pnand %p7187_p6, %p7181_p3 }
  0x12   :  { %7191 = shalt.err (!%p7188_p7)
}
  0x13   :  { %s7357_s11 = smov 1024   ;;  %s7358_s12 = smov 64  }
  0x14   :  { %40 = dma.hbm_to_vmem [thread:$0]  %s7649_s1, 16384, %s35_s25, [#allocation8], %s7357_s11, %s7357_s11, %s7358_s12  }
  0x15   :  { %s7359_s15 = smov [#allocation10]   ;;  %s7192_s19 = scalar_lea.hbm %s7651_s3, 65536 }
  0x16   :  { %s56_s16 = sshll.u32 %s7359_s15, 4  ;;  %p7193_p8 = scmp.ne.s32.totalorder %s7651_s3, %s7192_s19  ;;  %s57_s16 = int_to_ptr.vmem [resolvable:$true] %s56_s16 }
  0x17   :  { %p7196_p9 = scmp.lt.u32.totalorder %s7192_s19, %s7651_s3 }
  0x19   :  { %p7198_p10 = pnand %p7196_p9, %p7193_p8 }
  0x1b   :  { %7201 = shalt.err (!%p7198_p10)
}
  0x1c   :  { %s7202_s24 = scalar_lea.vmem %s57_s16, 65536  ;;  %p7207_p12 = scmp.lt.s32.totalorder %s57_s16, %s57_s16 }
  0x1d   :  { %p7203_p11 = scmp.ne.s32.totalorder %s57_s16, %s7202_s24  ;;  %p7208_p13 = scmp.lt.s32.totalorder %s7202_s24, %s7202_s24 }
  0x1f   :  { %p7209_p0 = por %p7208_p13, %p7207_p12 }
  0x21   :  { %p7210_p1 = pnand %p7209_p0, %p7203_p11 }
  0x23   :  { %7213 = shalt.err (!%p7210_p1)
}
  0x24   :  { %s7360_s1 = smov 256   ;;  %s7361_s25 = smov 16  }
  0x25   :  { %62 = dma.hbm_to_vmem [thread:$0]  %s7651_s3, 65536, %s57_s16, [#allocation11], %s7360_s1, %s7360_s1, %s7361_s25  }
  0x26   :  { %s7362_s28 = smov [#allocation13]   ;;  %s7363_s30 = smov [#allocation4]  }
  0x27   :  { %s78_s29 = sshll.u32 %s7362_s28, 4  ;;  %s22_s8 = sshll.u32 %s7363_s30, 4  ;;  %s79_s29 = int_to_ptr.vmem [resolvable:$true] %s78_s29  ;;  %s23_s8 = int_to_ptr.vmem [resolvable:$true] %s22_s8 }
  0x28   :  { %s7214_s11 = scalar_lea.hbm %s7653_s5, 4096 }
  0x29   :  { %p7215_p2 = scmp.ne.s32.totalorder %s7653_s5, %s7214_s11  ;;  %p7218_p3 = scmp.lt.u32.totalorder %s7214_s11, %s7653_s5 }
  0x2b   :  { %p7220_p4 = pnand %p7218_p3, %p7215_p2 }
  0x2d   :  { %7223 = shalt.err (!%p7220_p4)
}
  0x2e   :  { %s7224_s3 = scalar_lea.vmem %s79_s29, 4096  ;;  %p7229_p6 = scmp.lt.s32.totalorder %s79_s29, %s79_s29 }
  0x2f   :  { %p7225_p5 = scmp.ne.s32.totalorder %s79_s29, %s7224_s3  ;;  %p7230_p7 = scmp.lt.s32.totalorder %s7224_s3, %s7224_s3 }
  0x31   :  { %p7231_p8 = por %p7230_p7, %p7229_p6 }
  0x33   :  { %p7232_p9 = pnand %p7231_p8, %p7225_p5 }
  0x35   :  { %7235 = shalt.err (!%p7232_p9)
}
  0x36   :  { %s7364_s16 = smov 4   ;;  %s7236_s22 = scalar_lea.hbm %s7648_s0, 128 }
  0x37   :  { %84 = dma.hbm_to_vmem [thread:$0]  %s7653_s5, 4096, %s79_s29, [#allocation14], %s7358_s12, %s7358_s12, %s7364_s16  }
  0x38   :  { %p7237_p10 = scmp.ne.s32.totalorder %s7648_s0, %s7236_s22  ;;  %p7240_p11 = scmp.lt.u32.totalorder %s7236_s22, %s7648_s0 }
  0x3a   :  { %p7242_p12 = pnand %p7240_p11, %p7237_p10 }
  0x3c   :  { %7245 = shalt.err (!%p7242_p12)
}
  0x3d   :  { %s7246_s26 = scalar_lea.vmem %s23_s8, 128  ;;  %p7251_p0 = scmp.lt.s32.totalorder %s23_s8, %s23_s8 }
  0x3e   :  { %p7247_p13 = scmp.ne.s32.totalorder %s23_s8, %s7246_s26  ;;  %p7252_p1 = scmp.lt.s32.totalorder %s7246_s26, %s7246_s26 }
  0x40   :  { %p7253_p2 = por %p7252_p1, %p7251_p0 }
  0x42   :  { %p7254_p3 = pnand %p7253_p2, %p7247_p13 }
  0x44   :  { %7257 = shalt.err (!%p7254_p3)
}
  0x45   :  { %28 = dma.hbm_to_vmem [thread:$0]  %s7648_s0, 128, %s23_s8, [#allocation5], %s7358_s12, %s7358_s12, %s7364_s16  }
  0x46   :  { %s7365_s28 = smov [#allocation9]   ;;  %s7366_s30 = smov [#allocation12]  }
  0x47   :  { %s47_s29 = sshll.u32 %s7365_s28, 4  ;;  %s69_s9 = sshll.u32 %s7366_s30, 4  ;;  %s48_s29 = int_to_ptr.vmem [resolvable:$true] %s47_s29  ;;  %s70_s9 = int_to_ptr.vmem [resolvable:$true] %s69_s9 }
  0x48   :  { %s7258_s13 = scalar_lea.hbm %s7650_s2, 256 }
  0x49   :  { %p7259_p4 = scmp.ne.s32.totalorder %s7650_s2, %s7258_s13  ;;  %p7262_p5 = scmp.lt.u32.totalorder %s7258_s13, %s7650_s2 }
  0x4b   :  { %p7264_p6 = pnand %p7262_p5, %p7259_p4 }
  0x4d   :  { %7267 = shalt.err (!%p7264_p6)
}
  0x4e   :  { %s7268_s0 = scalar_lea.vmem %s48_s29, 256  ;;  %p7273_p8 = scmp.lt.s32.totalorder %s48_s29, %s48_s29 }
  0x4f   :  { %p7269_p7 = scmp.ne.s32.totalorder %s48_s29, %s7268_s0  ;;  %p7274_p9 = scmp.lt.s32.totalorder %s7268_s0, %s7268_s0 }
  0x51   :  { %p7275_p10 = por %p7274_p9, %p7273_p8 }
  0x53   :  { %p7276_p11 = pnand %p7275_p10, %p7269_p7 }
  0x55   :  { %7279 = shalt.err (!%p7276_p11)
}
  0x56   :  { %50 = dma.hbm_to_vmem [thread:$0]  %s7650_s2, 256, %s48_s29, [#allocation8]  }
  0x57   :  { %s7280_s19 = scalar_lea.hbm %s7652_s4, 64 }
  0x58   :  { %p7281_p12 = scmp.ne.s32.totalorder %s7652_s4, %s7280_s19  ;;  %p7284_p13 = scmp.lt.u32.totalorder %s7280_s19, %s7652_s4 }
  0x5a   :  { %p7286_p0 = pnand %p7284_p13, %p7281_p12 }
  0x5c   :  { %7289 = shalt.err (!%p7286_p0)
}
  0x5d   :  { %s7290_s24 = scalar_lea.vmem %s70_s9, 64  ;;  %p7295_p2 = scmp.lt.s32.totalorder %s70_s9, %s70_s9 }
  0x5e   :  { %p7291_p1 = scmp.ne.s32.totalorder %s70_s9, %s7290_s24  ;;  %p7296_p3 = scmp.lt.s32.totalorder %s7290_s24, %s7290_s24 }
  0x60   :  { %p7297_p4 = por %p7296_p3, %p7295_p2 }
  0x62   :  { %p7298_p5 = pnand %p7297_p4, %p7291_p1 }
  0x64   :  { %7301 = shalt.err (!%p7298_p5)
}
  0x65   :  { %72 = dma.hbm_to_vmem [thread:$0]  %s7652_s4, 64, %s70_s9, [#allocation11]  }
  0x66   :  { %s7367_s25 = smov [#allocation15]   ;;  %s7302_s28 = scalar_lea.hbm %s7654_s6, 16 }
  0x67   :  { %s91_s26 = sshll.u32 %s7367_s25, 4  ;;  %p7303_p6 = scmp.ne.s32.totalorder %s7654_s6, %s7302_s28  ;;  %s92_s26 = int_to_ptr.vmem [resolvable:$true] %s91_s26 }
  0x68   :  { %p7306_p7 = scmp.lt.u32.totalorder %s7302_s28, %s7654_s6 }
  0x6a   :  { %p7308_p8 = pnand %p7306_p7, %p7303_p6 }
  0x6c   :  { %7311 = shalt.err (!%p7308_p8)
}
  0x6d   :  { %s7312_s13 = scalar_lea.vmem %s92_s26, 16  ;;  %s7316_s4 = scalar_lea.vmem %s92_s26, 32 }
  0x6e   :  { %p7313_p9 = scmp.ne.s32.totalorder %s92_s26, %s7312_s13  ;;  %p7317_p10 = scmp.lt.s32.totalorder %s92_s26, %s92_s26 }
  0x6f   :  { %p7318_p11 = scmp.lt.s32.totalorder %s7316_s4, %s7312_s13 }
  0x71   :  { %p7319_p12 = por %p7318_p11, %p7317_p10 }
  0x73   :  { %p7320_p13 = pnand %p7319_p12, %p7313_p9 }
  0x75   :  { %7323 = shalt.err (!%p7320_p13)
}
  0x76   :  { %94 = dma.hbm_to_vmem [thread:$0]  %s7654_s6, 16, %s92_s26, [#allocation14]  }
  0x77   :  { %7346 = dma.done.wait [#allocation5], 128  }
  0x78   :  { %7347 = vsyncadd [#allocation5], 4294967168 }
  0x79   :  { %7348 = dma.done.wait [#allocation8], 16640  }
  0x7a   :  { %7349 = vsyncadd [#allocation8], 4294950656 }
  0x7b   :  { %7350 = dma.done.wait [#allocation11], 65600  }
  0x7c   :  { %7351 = vsyncadd [#allocation11], 4294901696 }
  0x7d   :  { %7352 = dma.done.wait [#allocation14], 4112  }
  0x7e   :  { %7353 = vsyncadd [#allocation14], 4294963184  ;;  %v7368_v0 = vmov 0   ;;  %v119_v1 = vld [vmem:[#allocation7] sm:$0xff]  ;;  %v120_v14 = vld [vmem:[#allocation7 + $0x8] sm:$0xff]  ;;  %s7369_s6 = smov [#allocation16]  }
  0x7f   :  { %1009 = vmatprep.mubr.bf16.mxu0 %v7368_v0  ;;  %1052 = vmatprep.mubr.bf16.mxu1 %v7368_v0  ;;  %v127_v2 = vld [vmem:[#allocation7 + $0x40] sm:$0xff]  ;;  %v128_v15 = vld [vmem:[#allocation7 + $0x48] sm:$0xff]  ;;  %v121_v58 = vld [vmem:[#allocation7 + $0x10] sm:$0xff]  ;;  %s5555_s15 = sshll.u32 %s7369_s6, 4  ;;  %s5556_s15 = int_to_ptr.vmem [resolvable:$true] %s5555_s15 }
  0x80   :  { %v135_v3 = vld [vmem:[#allocation7 + $0x80] sm:$0xff]  ;;  %v5572_v4 = vcombine.high %v119_v1, %v127_v2  ;;  %v5571_v5 = vcombine.low %v119_v1, %v127_v2  ;;  %v5574_v16 = vcombine.high %v120_v14, %v128_v15  ;;  %v5573_v17 = vcombine.low %v120_v14, %v128_v15  ;;  %v136_v18 = vld [vmem:[#allocation7 + $0x88] sm:$0xff]  ;;  %v129_v59 = vld [vmem:[#allocation7 + $0x50] sm:$0xff]  ;;  %s7324_s17 = scalar_lea.vmem %s5556_s15, 256  ;;  %p7329_p1 = scmp.lt.s32.totalorder %s5556_s15, %s5556_s15 }
  0x81   :  { %v143_v6 = vld [vmem:[#allocation7 + $0xc0] sm:$0xff]  ;;  %v144_v19 = vld [vmem:[#allocation7 + $0xc8] sm:$0xff]  ;;  %v5576_v1 = vcombine.high %v121_v58, %v129_v59  ;;  %p7325_p0 = scmp.ne.s32.totalorder %s5556_s15, %s7324_s17  ;;  %p7330_p2 = scmp.lt.s32.totalorder %s7324_s17, %s7324_s17 }
  0x82   :  { %v5588_v7 = vcombine.high %v135_v3, %v143_v6  ;;  %v151_v8 = vld [vmem:[#allocation7 + $0x100] sm:$0xff]  ;;  %977 = vmatprep.subr.bf16.mxu0 %v5572_v4  ;;  %v5587_v10 = vcombine.low %v135_v3, %v143_v6  ;;  %v5590_v21 = vcombine.high %v136_v18, %v144_v19  ;;  %v152_v22 = vld [vmem:[#allocation7 + $0x108] sm:$0xff]  ;;  %1020 = vmatprep.subr.bf16.mxu1 %v5574_v16  ;;  %v137_v3 = vld [vmem:[#allocation7 + $0x90] sm:$0xff] }
  0x83   :  { %v159_v9 = vld [vmem:[#allocation7 + $0x140] sm:$0xff]  ;;  %978 = vmatpush1.bf16.msra.mxu0 %v5571_v5  ;;  %v160_v23 = vld [vmem:[#allocation7 + $0x148] sm:$0xff]  ;;  %1021 = vmatpush1.bf16.msra.mxu1 %v5573_v17  ;;  %v5589_v27 = vcombine.low %v136_v18, %v144_v19  ;;  %v145_v4 = vld [vmem:[#allocation7 + $0xd0] sm:$0xff]  ;;  %p7331_p3 = por %p7330_p2, %p7329_p1 }
  0x84   :  { %979 = vmatprep.subr.bf16.mxu0 %v5588_v7  ;;  %v5604_v11 = vcombine.high %v151_v8, %v159_v9  ;;  %v167_v12 = vld [vmem:[#allocation7 + $0x180] sm:$0xff]  ;;  %v5603_v20 = vcombine.low %v151_v8, %v159_v9  ;;  %1022 = vmatprep.subr.bf16.mxu1 %v5590_v21  ;;  %v5606_v28 = vcombine.high %v152_v22, %v160_v23  ;;  %v168_v30 = vld [vmem:[#allocation7 + $0x188] sm:$0xff]  ;;  %v7503_v5 = vld [vmem:[#allocation4] sm:$0xff]  }
  0x85   :  { %v175_v13 = vld [vmem:[#allocation7 + $0x1c0] sm:$0xff]  ;;  %v176_v31 = vld [vmem:[#allocation7 + $0x1c8] sm:$0xff]  ;;  %v5605_v35 = vcombine.low %v152_v22, %v160_v23  ;;  %v5575_v7 = vcombine.low %v121_v58, %v129_v59  ;;  %v122_v8 = vld [vmem:[#allocation7 + $0x18] sm:$0xff]  ;;  %v5591_v15 = vcombine.low %v137_v3, %v145_v4  ;;  %p7332_p4 = pnand %p7331_p3, %p7325_p0 }
  0x86   :  { %v5620_v24 = vcombine.high %v167_v12, %v175_v13  ;;  %v183_v25 = vld [vmem:[#allocation7 + $0x200] sm:$0xff]  ;;  %v5619_v29 = vcombine.low %v167_v12, %v175_v13  ;;  %v5622_v36 = vcombine.high %v168_v30, %v176_v31  ;;  %v184_v38 = vld [vmem:[#allocation7 + $0x208] sm:$0xff]  ;;  %v5621_v43 = vcombine.low %v168_v30, %v176_v31  ;;  %v130_v9 = vld [vmem:[#allocation7 + $0x58] sm:$0xff] }
  0x87   :  { %980 = vmatpush1.bf16.msra.mxu0 %v5587_v10  ;;  %v191_v26 = vld [vmem:[#allocation7 + $0x240] sm:$0xff]  ;;  %1023 = vmatpush1.bf16.msra.mxu1 %v5589_v27  ;;  %v192_v39 = vld [vmem:[#allocation7 + $0x248] sm:$0xff]  ;;  %v5592_v10 = vcombine.high %v137_v3, %v145_v4  ;;  %v153_v12 = vld [vmem:[#allocation7 + $0x110] sm:$0xff]  ;;  %v5578_v14 = vcombine.high %v122_v8, %v130_v9  ;;  %v5577_v19 = vcombine.low %v122_v8, %v130_v9 }
  0x88   :  { %981 = vmatprep.subr.bf16.mxu0 %v5604_v11  ;;  %v5636_v32 = vcombine.high %v183_v25, %v191_v26  ;;  %v199_v33 = vld [vmem:[#allocation7 + $0x280] sm:$0xff]  ;;  %1024 = vmatprep.subr.bf16.mxu1 %v5606_v28  ;;  %v5635_v37 = vcombine.low %v183_v25, %v191_v26  ;;  %v5638_v44 = vcombine.high %v184_v38, %v192_v39  ;;  %v200_v46 = vld [vmem:[#allocation7 + $0x288] sm:$0xff]  ;;  %v161_v13 = vld [vmem:[#allocation7 + $0x150] sm:$0xff] }
  0x89   :  { %v207_v34 = vld [vmem:[#allocation7 + $0x2c0] sm:$0xff]  ;;  %v208_v47 = vld [vmem:[#allocation7 + $0x2c8] sm:$0xff]  ;;  %v5637_v51 = vcombine.low %v184_v38, %v192_v39  ;;  %v138_v16 = vld [vmem:[#allocation7 + $0x98] sm:$0xff]  ;;  %v5608_v18 = vcombine.high %v153_v12, %v161_v13  ;;  %v5607_v23 = vcombine.low %v153_v12, %v161_v13 }
  0x8a   :  { %v5652_v40 = vcombine.high %v199_v33, %v207_v34  ;;  %v215_v41 = vld [vmem:[#allocation7 + $0x300] sm:$0xff]  ;;  %v5651_v45 = vcombine.low %v199_v33, %v207_v34  ;;  %v5654_v52 = vcombine.high %v200_v46, %v208_v47  ;;  %v216_v54 = vld [vmem:[#allocation7 + $0x308] sm:$0xff]  ;;  %v5653_v57 = vcombine.low %v200_v46, %v208_v47  ;;  %v146_v17 = vld [vmem:[#allocation7 + $0xd8] sm:$0xff] }
  0x8b   :  { %982 = vmatpush1.bf16.msra.mxu0 %v5603_v20  ;;  %v223_v42 = vld [vmem:[#allocation7 + $0x340] sm:$0xff]  ;;  %1025 = vmatpush1.bf16.msra.mxu1 %v5605_v35  ;;  %v224_v55 = vld [vmem:[#allocation7 + $0x348] sm:$0xff]  ;;  %v169_v20 = vld [vmem:[#allocation7 + $0x190] sm:$0xff]  ;;  %v5594_v22 = vcombine.high %v138_v16, %v146_v17  ;;  %v5593_v27 = vcombine.low %v138_v16, %v146_v17 }
  0x8c   :  { %983 = vmatprep.subr.bf16.mxu0 %v5620_v24  ;;  %1026 = vmatprep.subr.bf16.mxu1 %v5622_v36  ;;  %v5668_v48 = vcombine.high %v215_v41, %v223_v42  ;;  %v231_v49 = vld [vmem:[#allocation7 + $0x380] sm:$0xff]  ;;  %v5667_v53 = vcombine.low %v215_v41, %v223_v42  ;;  %v5670_v60 = vcombine.high %v216_v54, %v224_v55  ;;  %v232_v62 = vld [vmem:[#allocation7 + $0x388] sm:$0xff]  ;;  %v177_v21 = vld [vmem:[#allocation7 + $0x1d0] sm:$0xff] }
  0x8d   :  { %v239_v50 = vld [vmem:[#allocation7 + $0x3c0] sm:$0xff]  ;;  %v240_v63 = vld [vmem:[#allocation7 + $0x3c8] sm:$0xff]  ;;  %v5669_v2 = vcombine.low %v216_v54, %v224_v55  ;;  %v154_v24 = vld [vmem:[#allocation7 + $0x118] sm:$0xff]  ;;  %v5624_v26 = vcombine.high %v169_v20, %v177_v21  ;;  %v5623_v31 = vcombine.low %v169_v20, %v177_v21 }
  0x8e   :  { %v5684_v56 = vcombine.high %v231_v49, %v239_v50  ;;  %v5683_v61 = vcombine.low %v231_v49, %v239_v50  ;;  %v5686_v6 = vcombine.high %v232_v62, %v240_v63  ;;  %v5685_v11 = vcombine.low %v232_v62, %v240_v63  ;;  %v162_v25 = vld [vmem:[#allocation7 + $0x158] sm:$0xff]  ;;  %v185_v28 = vld [vmem:[#allocation7 + $0x210] sm:$0xff]  ;;  %v123_v59 = vld [vmem:[#allocation7 + $0x20] sm:$0xff] }
  0x8f   :  { %984 = vmatpush1.bf16.msra.mxu0 %v5619_v29  ;;  %1027 = vmatpush1.bf16.msra.mxu1 %v5621_v43  ;;  %v193_v29 = vld [vmem:[#allocation7 + $0x250] sm:$0xff]  ;;  %v5610_v30 = vcombine.high %v154_v24, %v162_v25  ;;  %v178_v33 = vld [vmem:[#allocation7 + $0x1d8] sm:$0xff]  ;;  %v5609_v36 = vcombine.low %v154_v24, %v162_v25  ;;  %v139_v4 = vld [vmem:[#allocation7 + $0xa0] sm:$0xff] }
  0x90   :  { %985 = vmatprep.subr.bf16.mxu0 %v5636_v32  ;;  %1028 = vmatprep.subr.bf16.mxu1 %v5638_v44  ;;  %v170_v32 = vld [vmem:[#allocation7 + $0x198] sm:$0xff]  ;;  %v5640_v34 = vcombine.high %v185_v28, %v193_v29  ;;  %v201_v35 = vld [vmem:[#allocation7 + $0x290] sm:$0xff]  ;;  %v5639_v39 = vcombine.low %v185_v28, %v193_v29  ;;  %v155_v13 = vld [vmem:[#allocation7 + $0x120] sm:$0xff] }
  0x91   :  { %v5626_v38 = vcombine.high %v170_v32, %v178_v33  ;;  %v194_v41 = vld [vmem:[#allocation7 + $0x258] sm:$0xff]  ;;  %v217_v43 = vld [vmem:[#allocation7 + $0x310] sm:$0xff]  ;;  %v5625_v44 = vcombine.low %v170_v32, %v178_v33  ;;  %v171_v21 = vld [vmem:[#allocation7 + $0x1a0] sm:$0xff] }
  0x92   :  { %v210_v49 = vld [vmem:[#allocation7 + $0x2d8] sm:$0xff]  ;;  %v187_v29 = vld [vmem:[#allocation7 + $0x220] sm:$0xff] }
  0x93   :  { %986 = vmatpush1.bf16.msra.mxu0 %v5635_v37  ;;  %1029 = vmatpush1.bf16.msra.mxu1 %v5637_v51  ;;  %v209_v37 = vld [vmem:[#allocation7 + $0x2d0] sm:$0xff] }
  0x94   :  { %987 = vmatprep.subr.bf16.mxu0 %v5652_v40  ;;  %1030 = vmatprep.subr.bf16.mxu1 %v5654_v52  ;;  %v186_v40 = vld [vmem:[#allocation7 + $0x218] sm:$0xff]  ;;  %v5656_v42 = vcombine.high %v201_v35, %v209_v37  ;;  %v5655_v47 = vcombine.low %v201_v35, %v209_v37  ;;  %v233_v51 = vld [vmem:[#allocation7 + $0x390] sm:$0xff]  ;;  %v180_v35 = vld [vmem:[#allocation7 + $0x1e8] sm:$0xff] }
  0x95   :  { %v5642_v46 = vcombine.high %v186_v40, %v194_v41  ;;  %v5641_v52 = vcombine.low %v186_v40, %v194_v41  ;;  %v203_v37 = vld [vmem:[#allocation7 + $0x2a0] sm:$0xff]  ;;  %v188_v41 = vld [vmem:[#allocation7 + $0x228] sm:$0xff] }
  0x97   :  { %988 = vmatpush1.bf16.msra.mxu0 %v5651_v45  ;;  %1031 = vmatpush1.bf16.msra.mxu1 %v5653_v57  ;;  %v225_v45 = vld [vmem:[#allocation7 + $0x350] sm:$0xff]  ;;  %v226_v57 = vld [vmem:[#allocation7 + $0x358] sm:$0xff] }
  0x98   :  { %989 = vmatprep.subr.bf16.mxu0 %v5668_v48  ;;  %1032 = vmatprep.subr.bf16.mxu1 %v5670_v60  ;;  %v202_v48 = vld [vmem:[#allocation7 + $0x298] sm:$0xff]  ;;  %v5672_v50 = vcombine.high %v217_v43, %v225_v45  ;;  %v5671_v55 = vcombine.low %v217_v43, %v225_v45  ;;  %v196_v43 = vld [vmem:[#allocation7 + $0x268] sm:$0xff] }
  0x99   :  { %v5658_v54 = vcombine.high %v202_v48, %v210_v49  ;;  %v5657_v60 = vcombine.low %v202_v48, %v210_v49  ;;  %v204_v48 = vld [vmem:[#allocation7 + $0x2a8] sm:$0xff] }
  0x9a   :  { %v212_v49 = vld [vmem:[#allocation7 + $0x2e8] sm:$0xff] }
  0x9b   :  { %990 = vmatpush1.bf16.msra.mxu0 %v5667_v53  ;;  %1033 = vmatpush1.bf16.msra.mxu1 %v5669_v2  ;;  %v241_v53 = vld [vmem:[#allocation7 + $0x3d0] sm:$0xff]  ;;  %v242_v2 = vld [vmem:[#allocation7 + $0x3d8] sm:$0xff] }
  0x9c   :  { %991 = vmatprep.subr.bf16.mxu0 %v5684_v56  ;;  %1034 = vmatprep.subr.bf16.mxu1 %v5686_v6  ;;  %v218_v56 = vld [vmem:[#allocation7 + $0x318] sm:$0xff]  ;;  %v5688_v58 = vcombine.high %v233_v51, %v241_v53  ;;  %v5687_v63 = vcombine.low %v233_v51, %v241_v53  ;;  %v243_v53 = vld [vmem:[#allocation7 + $0x3e0] sm:$0xff] }
  0x9d   :  { %v5674_v62 = vcombine.high %v218_v56, %v226_v57  ;;  %v5673_v6 = vcombine.low %v218_v56, %v226_v57  ;;  %v220_v56 = vld [vmem:[#allocation7 + $0x328] sm:$0xff] }
  0x9e   :  { %v228_v57 = vld [vmem:[#allocation7 + $0x368] sm:$0xff] }
  0x9f   :  { %992 = vmatpush1.bf16.msra.mxu0 %v5683_v61  ;;  %1035 = vmatpush1.bf16.msra.mxu1 %v5685_v11  ;;  %v131_v61 = vld [vmem:[#allocation7 + $0x60] sm:$0xff]  ;;  %v132_v11 = vld [vmem:[#allocation7 + $0x68] sm:$0xff] }
  0xa0   :  { %1063 = vmatprep.subr.bf16.mxu0 %v5576_v1  ;;  %1106 = vmatprep.subr.bf16.mxu1 %v5578_v14  ;;  %v234_v1 = vld [vmem:[#allocation7 + $0x398] sm:$0xff]  ;;  %v5580_v3 = vcombine.high %v123_v59, %v131_v61  ;;  %v5579_v9 = vcombine.low %v123_v59, %v131_v61  ;;  %v133_v61 = vld [vmem:[#allocation7 + $0x70] sm:$0xff] }
  0xa1   :  { %v5690_v8 = vcombine.high %v234_v1, %v242_v2  ;;  %v5689_v14 = vcombine.low %v234_v1, %v242_v2  ;;  %v236_v1 = vld [vmem:[#allocation7 + $0x3a8] sm:$0xff] }
  0xa2   :  { %1010 = vmatmul.mubr.bf16.vlgmr.msra.gmra.mrb[0].mxu0 %v7503_v5  ;;  %1053 = vmatmul.mubr.bf16.vlgmr.msra.gmra.mrb[0].mxu1 %v7503_v5  ;;  %v244_v2 = vld [vmem:[#allocation7 + $0x3e8] sm:$0xff] }
  0xa3   :  { %1064 = vmatpush1.bf16.msra.mxu0 %v5575_v7  ;;  %1095 = vmatprep.mubr.bf16.mxu0 %v7368_v0  ;;  %v147_v7 = vld [vmem:[#allocation7 + $0xe0] sm:$0xff] }
  0xa4   :  { %1065 = vmatprep.subr.bf16.mxu0 %v5592_v10  ;;  %1107 = vmatpush1.bf16.msra.mxu1 %v5577_v19  ;;  %v124_v10 = vld [vmem:[#allocation7 + $0x28] sm:$0xff]  ;;  %v5596_v12 = vcombine.high %v139_v4, %v147_v7  ;;  %v5595_v17 = vcombine.low %v139_v4, %v147_v7  ;;  %v149_v7 = vld [vmem:[#allocation7 + $0xf0] sm:$0xff] }
  0xa5   :  { %1138 = vmatprep.mubr.bf16.mxu1 %v7368_v0  ;;  %1108 = vmatprep.subr.bf16.mxu1 %v5594_v22  ;;  %v5582_v16 = vcombine.high %v124_v10, %v132_v11  ;;  %v148_v19 = vld [vmem:[#allocation7 + $0xe8] sm:$0xff]  ;;  %v5581_v22 = vcombine.low %v124_v10, %v132_v11  ;;  %v126_v10 = vld [vmem:[#allocation7 + $0x38] sm:$0xff] }
  0xa6   :  { %v134_v11 = vld [vmem:[#allocation7 + $0x78] sm:$0xff] }
  0xa7   :  { %1066 = vmatpush1.bf16.msra.mxu0 %v5591_v15  ;;  %v163_v15 = vld [vmem:[#allocation7 + $0x160] sm:$0xff] }
  0xa8   :  { %1067 = vmatprep.subr.bf16.mxu0 %v5608_v18  ;;  %1109 = vmatpush1.bf16.msra.mxu1 %v5593_v27  ;;  %v140_v18 = vld [vmem:[#allocation7 + $0xa8] sm:$0xff]  ;;  %v5612_v20 = vcombine.high %v155_v13, %v163_v15  ;;  %v5611_v25 = vcombine.low %v155_v13, %v163_v15  ;;  %v165_v15 = vld [vmem:[#allocation7 + $0x170] sm:$0xff] }
  0xa9   :  { %1110 = vmatprep.subr.bf16.mxu1 %v5610_v30  ;;  %v5598_v24 = vcombine.high %v140_v18, %v148_v19  ;;  %v164_v27 = vld [vmem:[#allocation7 + $0x168] sm:$0xff]  ;;  %v5597_v30 = vcombine.low %v140_v18, %v148_v19  ;;  %v142_v18 = vld [vmem:[#allocation7 + $0xb8] sm:$0xff] }
  0xaa   :  { %v150_v19 = vld [vmem:[#allocation7 + $0xf8] sm:$0xff] }
  0xab   :  { %1068 = vmatpush1.bf16.msra.mxu0 %v5607_v23  ;;  %v179_v23 = vld [vmem:[#allocation7 + $0x1e0] sm:$0xff] }
  0xac   :  { %1069 = vmatprep.subr.bf16.mxu0 %v5624_v26  ;;  %1111 = vmatpush1.bf16.msra.mxu1 %v5609_v36  ;;  %v156_v26 = vld [vmem:[#allocation7 + $0x128] sm:$0xff]  ;;  %v5628_v28 = vcombine.high %v171_v21, %v179_v23  ;;  %v5627_v33 = vcombine.low %v171_v21, %v179_v23  ;;  %v181_v23 = vld [vmem:[#allocation7 + $0x1f0] sm:$0xff] }
  0xad   :  { %1112 = vmatprep.subr.bf16.mxu1 %v5626_v38  ;;  %v5614_v32 = vcombine.high %v156_v26, %v164_v27  ;;  %v5613_v38 = vcombine.low %v156_v26, %v164_v27  ;;  %v158_v26 = vld [vmem:[#allocation7 + $0x138] sm:$0xff] }
  0xae   :  { %v166_v27 = vld [vmem:[#allocation7 + $0x178] sm:$0xff] }
  0xaf   :  { %1070 = vmatpush1.bf16.msra.mxu0 %v5623_v31  ;;  %v195_v31 = vld [vmem:[#allocation7 + $0x260] sm:$0xff] }
  0xb0   :  { %1071 = vmatprep.subr.bf16.mxu0 %v5640_v34  ;;  %1113 = vmatpush1.bf16.msra.mxu1 %v5625_v44  ;;  %v172_v34 = vld [vmem:[#allocation7 + $0x1a8] sm:$0xff]  ;;  %v5644_v36 = vcombine.high %v187_v29, %v195_v31  ;;  %v219_v44 = vld [vmem:[#allocation7 + $0x320] sm:$0xff] }
  0xb1   :  { %1114 = vmatprep.subr.bf16.mxu1 %v5642_v46  ;;  %v5630_v40 = vcombine.high %v172_v34, %v180_v35  ;;  %v227_v46 = vld [vmem:[#allocation7 + $0x360] sm:$0xff] }
  0xb2   :  { %v5675_v59 = vcombine.low %v219_v44, %v227_v46 }
  0xb3   :  { %1072 = vmatpush1.bf16.msra.mxu0 %v5639_v39  ;;  %v211_v39 = vld [vmem:[#allocation7 + $0x2e0] sm:$0xff] }
  0xb4   :  { %1073 = vmatprep.subr.bf16.mxu0 %v5656_v42  ;;  %1115 = vmatpush1.bf16.msra.mxu1 %v5641_v52  ;;  %v5643_v42 = vcombine.low %v187_v29, %v195_v31  ;;  %v5660_v45 = vcombine.high %v203_v37, %v211_v39  ;;  %v5659_v51 = vcombine.low %v203_v37, %v211_v39  ;;  %v235_v52 = vld [vmem:[#allocation7 + $0x3a0] sm:$0xff]  ;;  %v197_v31 = vld [vmem:[#allocation7 + $0x270] sm:$0xff] }
  0xb5   :  { %1116 = vmatprep.subr.bf16.mxu1 %v5658_v54  ;;  %v5676_v54 = vcombine.high %v219_v44, %v227_v46  ;;  %v5691_v4 = vcombine.low %v235_v52, %v243_v53  ;;  %v213_v39 = vld [vmem:[#allocation7 + $0x2f0] sm:$0xff] }
  0xb6   :  { %v221_v46 = vld [vmem:[#allocation7 + $0x330] sm:$0xff] }
  0xb7   :  { %1074 = vmatpush1.bf16.msra.mxu0 %v5655_v47  ;;  %v5629_v47 = vcombine.low %v172_v34, %v180_v35  ;;  %v174_v34 = vld [vmem:[#allocation7 + $0x1b8] sm:$0xff] }
  0xb8   :  { %1075 = vmatprep.subr.bf16.mxu0 %v5672_v50  ;;  %1117 = vmatpush1.bf16.msra.mxu1 %v5657_v60  ;;  %v5646_v50 = vcombine.high %v188_v41, %v196_v43  ;;  %v125_v60 = vld [vmem:[#allocation7 + $0x30] sm:$0xff]  ;;  %v182_v35 = vld [vmem:[#allocation7 + $0x1f8] sm:$0xff] }
  0xb9   :  { %1118 = vmatprep.subr.bf16.mxu1 %v5674_v62  ;;  %v5692_v62 = vcombine.high %v235_v52, %v243_v53  ;;  %v5583_v13 = vcombine.low %v125_v60, %v133_v61  ;;  %v5634_v44 = vcombine.high %v174_v34, %v182_v35 }
  0xbb   :  { %1076 = vmatpush1.bf16.msra.mxu0 %v5671_v55  ;;  %v5645_v55 = vcombine.low %v188_v41, %v196_v43  ;;  %v5617_v41 = vcombine.low %v158_v26, %v166_v27  ;;  %v198_v43 = vld [vmem:[#allocation7 + $0x278] sm:$0xff] }
  0xbc   :  { %1077 = vmatprep.subr.bf16.mxu0 %v5688_v58  ;;  %1119 = vmatpush1.bf16.msra.mxu1 %v5673_v6  ;;  %v5662_v58 = vcombine.high %v204_v48, %v212_v49  ;;  %v141_v6 = vld [vmem:[#allocation7 + $0xb0] sm:$0xff] }
  0xbd   :  { %1120 = vmatprep.subr.bf16.mxu1 %v5690_v8  ;;  %v5584_v8 = vcombine.high %v125_v60, %v133_v61  ;;  %v5599_v21 = vcombine.low %v141_v6, %v149_v7 }
  0xbf   :  { %1078 = vmatpush1.bf16.msra.mxu0 %v5687_v63  ;;  %v5661_v63 = vcombine.low %v204_v48, %v212_v49  ;;  %v5633_v48 = vcombine.low %v174_v34, %v182_v35  ;;  %v206_v49 = vld [vmem:[#allocation7 + $0x2b8] sm:$0xff] }
  0xc0   :  { %1149 = vmatprep.subr.bf16.mxu0 %v5580_v3  ;;  %1121 = vmatpush1.bf16.msra.mxu1 %v5689_v14  ;;  %v5678_v3 = vcombine.high %v220_v56, %v228_v57  ;;  %v157_v14 = vld [vmem:[#allocation7 + $0x130] sm:$0xff]  ;;  %v6402_v34 = vld [vmem:[#allocation10 + $0xa8] ss:$16 sps:$4 sm:$0xff]   ;;  %v6410_v35 = vld [vmem:[#allocation10 + $0xcc] ss:$16 sps:$4 sm:$0xff]  }
  0xc1   :  { %1192 = vmatprep.subr.bf16.mxu1 %v5582_v16  ;;  %v5600_v16 = vcombine.high %v141_v6, %v149_v7  ;;  %v5615_v29 = vcombine.low %v157_v14, %v165_v15 }
  0xc2   :  { %1096 = vmatmul.mubr.bf16.vlgmr.msra.gmra.mrb[4].mxu0 %v7503_v5 }
  0xc3   :  { %1150 = vmatpush1.bf16.msra.mxu0 %v5579_v9  ;;  %1181 = vmatprep.mubr.bf16.mxu0 %v7368_v0  ;;  %v5677_v9 = vcombine.low %v220_v56, %v228_v57  ;;  %v245_v56 = vld [vmem:[#allocation7 + $0x3f0] sm:$0xff] }
  0xc4   :  { %1151 = vmatprep.subr.bf16.mxu0 %v5596_v12  ;;  %1139 = vmatmul.mubr.bf16.vlgmr.msra.gmra.mrb[4].mxu1 %v7503_v5  ;;  %v5694_v12 = vcombine.high %v236_v1, %v244_v2 }
  0xc5   :  { %1193 = vmatpush1.bf16.msra.mxu1 %v5581_v22  ;;  %1224 = vmatprep.mubr.bf16.mxu1 %v7368_v0  ;;  %v173_v22 = vld [vmem:[#allocation7 + $0x1b0] sm:$0xff] }
  0xc6   :  { %1194 = vmatprep.subr.bf16.mxu1 %v5598_v24  ;;  %v5616_v24 = vcombine.high %v157_v14, %v165_v15  ;;  %v5631_v37 = vcombine.low %v173_v22, %v181_v23  ;;  %v6372_v14 = vld [vmem:[#allocation10 + $0x8] ss:$16 sps:$4 sm:$0xff]   ;;  %v6380_v15 = vld [vmem:[#allocation10 + $0x2c] ss:$16 sps:$4 sm:$0xff]  }
  0xc7   :  { %1152 = vmatpush1.bf16.msra.mxu0 %v5595_v17  ;;  %v5693_v17 = vcombine.low %v236_v1, %v244_v2  ;;  %v246_v2 = vld [vmem:[#allocation7 + $0x3f8] sm:$0xff] }
  0xc8   :  { %1153 = vmatprep.subr.bf16.mxu0 %v5612_v20  ;;  %v5586_v20 = vcombine.high %v126_v10, %v134_v11 }
  0xc9   :  { %1195 = vmatpush1.bf16.msra.mxu1 %v5597_v30  ;;  %v189_v30 = vld [vmem:[#allocation7 + $0x230] sm:$0xff] }
  0xca   :  { %1196 = vmatprep.subr.bf16.mxu1 %v5614_v32  ;;  %v5632_v32 = vcombine.high %v173_v22, %v181_v23  ;;  %v6384_v22 = vld [vmem:[#allocation10 + $0x48] ss:$16 sps:$4 sm:$0xff]   ;;  %v6392_v23 = vld [vmem:[#allocation10 + $0x6c] ss:$16 sps:$4 sm:$0xff]  }
  0xcb   :  { %1154 = vmatpush1.bf16.msra.mxu0 %v5611_v25  ;;  %v5585_v25 = vcombine.low %v126_v10, %v134_v11  ;;  %v6374_v11 = vld [vmem:[#allocation10 + $0xc] ss:$16 sps:$4 sm:$0xff]  }
  0xcc   :  { %1155 = vmatprep.subr.bf16.mxu0 %v5628_v28  ;;  %v5602_v28 = vcombine.high %v142_v18, %v150_v19 }
  0xcd   :  { %1197 = vmatpush1.bf16.msra.mxu1 %v5613_v38  ;;  %v205_v38 = vld [vmem:[#allocation7 + $0x2b0] sm:$0xff] }
  0xce   :  { %1198 = vmatprep.subr.bf16.mxu1 %v5630_v40  ;;  %v5648_v40 = vcombine.high %v189_v30, %v197_v31  ;;  %v5663_v52 = vcombine.low %v205_v38, %v213_v39 }
  0xcf   :  { %1156 = vmatpush1.bf16.msra.mxu0 %v5627_v33  ;;  %v5601_v33 = vcombine.low %v142_v18, %v150_v19  ;;  %v7169_v18 = vld [vmem:[#allocation4] sm:$0xff]  }
  0xd0   :  { %1157 = vmatprep.subr.bf16.mxu0 %v5644_v36  ;;  %v5618_v36 = vcombine.high %v158_v26, %v166_v27  ;;  %v6378_v19 = vld [vmem:[#allocation10 + $0x28] ss:$16 sps:$4 sm:$0xff]   ;;  %v6398_v27 = vld [vmem:[#allocation10 + $0x8c] ss:$16 sps:$4 sm:$0xff]  }
  0xd1   :  { %1199 = vmatpush1.bf16.msra.mxu1 %v5629_v47  ;;  %v229_v47 = vld [vmem:[#allocation7 + $0x370] sm:$0xff]  ;;  %v6390_v26 = vld [vmem:[#allocation10 + $0x68] ss:$16 sps:$4 sm:$0xff]  }
  0xd2   :  { %1200 = vmatprep.subr.bf16.mxu1 %v5646_v50  ;;  %v214_v50 = vld [vmem:[#allocation7 + $0x2f8] sm:$0xff]  ;;  %v5680_v53 = vcombine.high %v221_v46, %v229_v47  ;;  %v5679_v60 = vcombine.low %v221_v46, %v229_v47 }
  0xd3   :  { %1158 = vmatpush1.bf16.msra.mxu0 %v5643_v42  ;;  %v190_v42 = vld [vmem:[#allocation7 + $0x238] sm:$0xff]  ;;  %v5666_v57 = vcombine.high %v206_v49, %v214_v50 }
  0xd4   :  { %1159 = vmatprep.subr.bf16.mxu0 %v5660_v45  ;;  %v5647_v45 = vcombine.low %v189_v30, %v197_v31  ;;  %v6396_v30 = vld [vmem:[#allocation10 + $0x88] ss:$16 sps:$4 sm:$0xff]   ;;  %v6404_v31 = vld [vmem:[#allocation10 + $0xac] ss:$16 sps:$4 sm:$0xff]  }
  0xd5   :  { %1201 = vmatpush1.bf16.msra.mxu1 %v5645_v55  ;;  %v237_v55 = vld [vmem:[#allocation7 + $0x3b0] sm:$0xff]  ;;  %v6420_v46 = vld [vmem:[#allocation10 + $0x108] ss:$16 sps:$4 sm:$0xff]   ;;  %v6428_v47 = vld [vmem:[#allocation10 + $0x12c] ss:$16 sps:$4 sm:$0xff]  }
  0xd6   :  { %1202 = vmatprep.subr.bf16.mxu1 %v5662_v58  ;;  %v222_v58 = vld [vmem:[#allocation7 + $0x338] sm:$0xff]  ;;  %v5696_v61 = vcombine.high %v237_v55, %v245_v56 }
  0xd7   :  { %1160 = vmatpush1.bf16.msra.mxu0 %v5659_v51  ;;  %v5650_v51 = vcombine.high %v190_v42, %v198_v43 }
  0xd8   :  { %1161 = vmatprep.subr.bf16.mxu0 %v5676_v54  ;;  %v5649_v54 = vcombine.low %v190_v42, %v198_v43  ;;  %v6414_v42 = vld [vmem:[#allocation10 + $0xe8] ss:$16 sps:$4 sm:$0xff]   ;;  %v6422_v43 = vld [vmem:[#allocation10 + $0x10c] ss:$16 sps:$4 sm:$0xff]  }
  0xd9   :  { %1203 = vmatpush1.bf16.msra.mxu1 %v5661_v63  ;;  %v238_v63 = vld [vmem:[#allocation7 + $0x3b8] sm:$0xff] }
  0xda   :  { %1204 = vmatprep.subr.bf16.mxu1 %v5678_v3  ;;  %v6371_v3 = vld [vmem:[#allocation10 + $0x4] ss:$16 sps:$4 sm:$0xff]   ;;  %v5698_v7 = vcombine.high %v238_v63, %v246_v2  ;;  %v5697_v10 = vcombine.low %v238_v63, %v246_v2  ;;  %v6453_v63 = vld [vmem:[#allocation10 + $0x1c0] ss:$16 sps:$4 sm:$0xff]   ;;  %v6450_v2 = vld [vmem:[#allocation10 + $0x1a8] ss:$16 sps:$4 sm:$0xff]  }
  0xdb   :  { %1162 = vmatpush1.bf16.msra.mxu0 %v5675_v59  ;;  %v230_v59 = vld [vmem:[#allocation7 + $0x378] sm:$0xff] }
  0xdc   :  { %1163 = vmatprep.subr.bf16.mxu0 %v5692_v62  ;;  %v5665_v62 = vcombine.low %v206_v49, %v214_v50  ;;  %v5682_v1 = vcombine.high %v222_v58, %v230_v59  ;;  %v5681_v6 = vcombine.low %v222_v58, %v230_v59  ;;  %v6426_v49 = vld [vmem:[#allocation10 + $0x128] ss:$16 sps:$4 sm:$0xff]   ;;  %v6434_v50 = vld [vmem:[#allocation10 + $0x14c] ss:$16 sps:$4 sm:$0xff]   ;;  %v6447_v59 = vld [vmem:[#allocation10 + $0x1a0] ss:$16 sps:$4 sm:$0xff]  }
  0xdd   :  { %1205 = vmatpush1.bf16.msra.mxu1 %v5677_v9  ;;  %v6377_v9 = vld [vmem:[#allocation10 + $0x24] ss:$16 sps:$4 sm:$0xff]   ;;  %v6446_v58 = vld [vmem:[#allocation10 + $0x18c] ss:$16 sps:$4 sm:$0xff]  }
  0xde   :  { %1206 = vmatprep.subr.bf16.mxu1 %v5694_v12  ;;  %v6375_v12 = vld [vmem:[#allocation10 + $0x20] ss:$16 sps:$4 sm:$0xff]  }
  0xdf   :  { %1164 = vmatpush1.bf16.msra.mxu0 %v5691_v4  ;;  %v5695_v4 = vcombine.low %v237_v55, %v245_v56  ;;  %v6441_v55 = vld [vmem:[#allocation10 + $0x180] ss:$16 sps:$4 sm:$0xff]   ;;  %v6449_v56 = vld [vmem:[#allocation10 + $0x1a4] ss:$16 sps:$4 sm:$0xff]  }
  0xe0   :  { %1235 = vmatprep.subr.bf16.mxu0 %v5584_v8  ;;  %v6369_v8 = vld [vmem:[#allocation10] ss:$16 sps:$4 sm:$0xff]  }
  0xe1   :  { %1207 = vmatpush1.bf16.msra.mxu1 %v5693_v17  ;;  %v6389_v17 = vld [vmem:[#allocation10 + $0x64] ss:$16 sps:$4 sm:$0xff]  }
  0xe2   :  { %1182 = vmatmul.mubr.bf16.vlgmr.msra.gmra.mrb[8].mxu0 %v7503_v5  ;;  %1278 = vmatprep.subr.bf16.mxu1 %v5586_v20  ;;  %v6386_v20 = vld [vmem:[#allocation10 + $0x4c] ss:$16 sps:$4 sm:$0xff]  }
  0xe3   :  { %1236 = vmatpush1.bf16.msra.mxu0 %v5583_v13  ;;  %1267 = vmatprep.mubr.bf16.mxu0 %v7368_v0  ;;  %v6383_v13 = vld [vmem:[#allocation10 + $0x44] ss:$16 sps:$4 sm:$0xff]  }
  0xe4   :  { %1237 = vmatprep.subr.bf16.mxu0 %v5600_v16  ;;  %1225 = vmatmul.mubr.bf16.vlgmr.msra.gmra.mrb[8].mxu1 %v7503_v5  ;;  %v6381_v16 = vld [vmem:[#allocation10 + $0x40] ss:$16 sps:$4 sm:$0xff]  }
  0xe5   :  { %1279 = vmatpush1.bf16.msra.mxu1 %v5585_v25  ;;  %1310 = vmatprep.mubr.bf16.mxu1 %v7368_v0  ;;  %v5664_v0 = vcombine.high %v205_v38, %v213_v39  ;;  %v6401_v25 = vld [vmem:[#allocation10 + $0xa4] ss:$16 sps:$4 sm:$0xff]   ;;  %v6408_v38 = vld [vmem:[#allocation10 + $0xc8] ss:$16 sps:$4 sm:$0xff]   ;;  %v6416_v39 = vld [vmem:[#allocation10 + $0xec] ss:$16 sps:$4 sm:$0xff]  }
  0xe6   :  { %1280 = vmatprep.subr.bf16.mxu1 %v5602_v28  ;;  %v6399_v28 = vld [vmem:[#allocation10 + $0xa0] ss:$16 sps:$4 sm:$0xff]  }
  0xe7   :  { %1238 = vmatpush1.bf16.msra.mxu0 %v5599_v21  ;;  %v6387_v21 = vld [vmem:[#allocation10 + $0x60] ss:$16 sps:$4 sm:$0xff]  }
  0xe8   :  { %1239 = vmatprep.subr.bf16.mxu0 %v5616_v24  ;;  %v6393_v24 = vld [vmem:[#allocation10 + $0x80] ss:$16 sps:$4 sm:$0xff]  }
  0xe9   :  { %1281 = vmatpush1.bf16.msra.mxu1 %v5601_v33  ;;  %v6413_v33 = vld [vmem:[#allocation10 + $0xe4] ss:$16 sps:$4 sm:$0xff]  }
  0xea   :  { %1282 = vmatprep.subr.bf16.mxu1 %v5618_v36  ;;  %v6411_v36 = vld [vmem:[#allocation10 + $0xe0] ss:$16 sps:$4 sm:$0xff]  }
  0xeb   :  { %1240 = vmatpush1.bf16.msra.mxu0 %v5615_v29  ;;  %v6407_v29 = vld [vmem:[#allocation10 + $0xc4] ss:$16 sps:$4 sm:$0xff]  }
  0xec   :  { %1241 = vmatprep.subr.bf16.mxu0 %v5632_v32  ;;  %v6405_v32 = vld [vmem:[#allocation10 + $0xc0] ss:$16 sps:$4 sm:$0xff]  }
  0xed   :  { %1283 = vmatpush1.bf16.msra.mxu1 %v5617_v41  ;;  %v6425_v41 = vld [vmem:[#allocation10 + $0x124] ss:$16 sps:$4 sm:$0xff]  }
  0xee   :  { %1284 = vmatprep.subr.bf16.mxu1 %v5634_v44  ;;  %v6423_v44 = vld [vmem:[#allocation10 + $0x120] ss:$16 sps:$4 sm:$0xff]  }
  0xef   :  { %1242 = vmatpush1.bf16.msra.mxu0 %v5631_v37  ;;  %v6419_v37 = vld [vmem:[#allocation10 + $0x104] ss:$16 sps:$4 sm:$0xff]  }
  0xf0   :  { %1243 = vmatprep.subr.bf16.mxu0 %v5648_v40  ;;  %v6417_v40 = vld [vmem:[#allocation10 + $0x100] ss:$16 sps:$4 sm:$0xff]  }
  0xf1   :  { %1285 = vmatpush1.bf16.msra.mxu1 %v5633_v48  ;;  %v6437_v48 = vld [vmem:[#allocation10 + $0x164] ss:$16 sps:$4 sm:$0xff]  }
  0xf2   :  { %1286 = vmatprep.subr.bf16.mxu1 %v5650_v51  ;;  %v6435_v51 = vld [vmem:[#allocation10 + $0x160] ss:$16 sps:$4 sm:$0xff]  }
  0xf3   :  { %1244 = vmatpush1.bf16.msra.mxu0 %v5647_v45  ;;  %v6431_v45 = vld [vmem:[#allocation10 + $0x144] ss:$16 sps:$4 sm:$0xff]  }
  0xf4   :  { %1245 = vmatprep.subr.bf16.mxu0 %v5664_v0  ;;  %v6429_v0 = vld [vmem:[#allocation10 + $0x140] ss:$16 sps:$4 sm:$0xff]  }
  0xf5   :  { %1287 = vmatpush1.bf16.msra.mxu1 %v5649_v54  ;;  %v6440_v54 = vld [vmem:[#allocation10 + $0x16c] ss:$16 sps:$4 sm:$0xff]  }
  0xf6   :  { %1288 = vmatprep.subr.bf16.mxu1 %v5666_v57  ;;  %v6438_v57 = vld [vmem:[#allocation10 + $0x168] ss:$16 sps:$4 sm:$0xff]  }
  0xf7   :  { %1246 = vmatpush1.bf16.msra.mxu0 %v5663_v52  ;;  %v6443_v52 = vld [vmem:[#allocation10 + $0x184] ss:$16 sps:$4 sm:$0xff]  }
  0xf8   :  { %1247 = vmatprep.subr.bf16.mxu0 %v5680_v53  ;;  %v6432_v53 = vld [vmem:[#allocation10 + $0x148] ss:$16 sps:$4 sm:$0xff]  }
  0xf9   :  { %1289 = vmatpush1.bf16.msra.mxu1 %v5665_v62  ;;  %v6452_v62 = vld [vmem:[#allocation10 + $0x1ac] ss:$16 sps:$4 sm:$0xff]  }
  0xfa   :  { %1290 = vmatprep.subr.bf16.mxu1 %v5682_v1  ;;  %v6461_v1 = vld [vmem:[#allocation10 + $0x1e4] ss:$16 sps:$4 sm:$0xff]  }
  0xfb   :  { %1248 = vmatpush1.bf16.msra.mxu0 %v5679_v60  ;;  %v6455_v60 = vld [vmem:[#allocation10 + $0x1c4] ss:$16 sps:$4 sm:$0xff]  }
  0xfc   :  { %1249 = vmatprep.subr.bf16.mxu0 %v5696_v61  ;;  %v6444_v61 = vld [vmem:[#allocation10 + $0x188] ss:$16 sps:$4 sm:$0xff]  }
  0xfd   :  { %1291 = vmatpush1.bf16.msra.mxu1 %v5681_v6  ;;  %v6467_v6 = vld [vmem:[#allocation10 + $0x204] ss:$16 sps:$4 sm:$0xff]  }
  0xfe   :  { %1292 = vmatprep.subr.bf16.mxu1 %v5698_v7  ;;  %v6456_v7 = vld [vmem:[#allocation10 + $0x1c8] ss:$16 sps:$4 sm:$0xff]  }
  0xff   :  { %1250 = vmatpush1.bf16.msra.mxu0 %v5695_v4  ;;  %v6459_v4 = vld [vmem:[#allocation10 + $0x1e0] ss:$16 sps:$4 sm:$0xff]  }
 0x100   :  { %4495 = vmatprep.subr.bf16.mxu0 %v6371_v3  ;;  %v6458_v3 = vld [vmem:[#allocation10 + $0x1cc] ss:$16 sps:$4 sm:$0xff]  }
 0x101   :  { %1293 = vmatpush1.bf16.msra.mxu1 %v5697_v10  ;;  %v6470_v10 = vld [vmem:[#allocation10 + $0x20c] ss:$16 sps:$4 sm:$0xff]  }
 0x102   :  { %1268 = vmatmul.mubr.bf16.vlgmr.msra.gmra.mrb[12].mxu0 %v7503_v5  ;;  %4839 = vmatprep.subr.bf16.mxu1 %v6374_v11  ;;  %v6395_v5 = vld [vmem:[#allocation10 + $0x84] ss:$16 sps:$4 sm:$0xff]   ;;  %v251_v11 = vlaneseq }
 0x103   :  { %4496 = vmatpush1.bf16.msra.mxu0 %v6369_v8  ;;  %v6464_v8 = vld [vmem:[#allocation10 + $0x1ec] ss:$16 sps:$4 sm:$0xff]  }
 0x104   :  { %4497 = vmatprep.subr.bf16.mxu0 %v6377_v9  ;;  %1311 = vmatmul.mubr.bf16.vlgmr.msra.gmra.mrb[12].mxu1 %v7169_v18  ;;  %v6462_v9 = vld [vmem:[#allocation10 + $0x1e8] ss:$16 sps:$4 sm:$0xff]  }
 0x105   :  { %4840 = vmatpush1.bf16.msra.mxu1 %v6372_v14 }
 0x106   :  { %4841 = vmatprep.subr.bf16.mxu1 %v6380_v15 }
 0x107   :  { %4498 = vmatpush1.bf16.msra.mxu0 %v6375_v12  ;;  %v7518_v12 = vshrl.u32 %v251_v11, 7 }
 0x108   :  { %4499 = vmatprep.subr.bf16.mxu0 %v6383_v13  ;;  %v7520_v13 = vld [vmem:[#allocation9] sm:$0xff] }
 0x109   :  { %4842 = vmatpush1.bf16.msra.mxu1 %v6378_v19  ;;  %v7523_v14 = vsub.s32 0, %v7518_v12  ;;  %v7526_v15 = vsub.s32 1, %v7518_v12  ;;  %v7533_v18 = vsub.s32 2, %v7518_v12 }
 0x10a   :  { %4843 = vmatprep.subr.bf16.mxu1 %v6386_v20  ;;  %v7536_v20 = vsub.s32 3, %v7518_v12 }
 0x10b   :  { %4500 = vmatpush1.bf16.msra.mxu0 %v6381_v16  ;;  %v254_v16 = vrot.slane %v7520_v13, %v7523_v14 }
 0x10c   :  { %4501 = vmatprep.subr.bf16.mxu0 %v6389_v17  ;;  %v258_v17 = vrot.slane %v7520_v13, %v7526_v15 }
 0x10d   :  { %4844 = vmatpush1.bf16.msra.mxu1 %v6384_v22 }
 0x10e   :  { %4845 = vmatprep.subr.bf16.mxu1 %v6392_v23 }
 0x10f   :  { %4502 = vmatpush1.bf16.msra.mxu0 %v6387_v21 }
 0x110   :  { %4503 = vmatprep.subr.bf16.mxu0 %v6395_v5 }
 0x111   :  { %4846 = vmatpush1.bf16.msra.mxu1 %v6390_v26  ;;  %v262_v26 = vrot.slane %v7520_v13, %v7533_v18 }
 0x112   :  { %4847 = vmatprep.subr.bf16.mxu1 %v6398_v27 }
 0x113   :  { %4504 = vmatpush1.bf16.msra.mxu0 %v6393_v24 }
 0x114   :  { %4505 = vmatprep.subr.bf16.mxu0 %v6401_v25 }
 0x115   :  { %4848 = vmatpush1.bf16.msra.mxu1 %v6396_v30 }
 0x116   :  { %4849 = vmatprep.subr.bf16.mxu1 %v6404_v31 }
 0x117   :  { %4506 = vmatpush1.bf16.msra.mxu0 %v6399_v28  ;;  %v266_v28 = vrot.slane %v7520_v13, %v7536_v20 }
 0x118   :  { %4507 = vmatprep.subr.bf16.mxu0 %v6407_v29 }
 0x119   :  { %4850 = vmatpush1.bf16.msra.mxu1 %v6402_v34  ;;  %v6468_v34 = vld [vmem:[#allocation10 + $0x208] ss:$16 sps:$4 sm:$0xff]  }
 0x11a   :  { %4851 = vmatprep.subr.bf16.mxu1 %v6410_v35 }
 0x11b   :  { %4508 = vmatpush1.bf16.msra.mxu0 %v6405_v32 }
 0x11c   :  { %4509 = vmatprep.subr.bf16.mxu0 %v6413_v33  ;;  %v6465_v33 = vld [vmem:[#allocation10 + $0x200] ss:$16 sps:$4 sm:$0xff]  }
 0x11d   :  { %4852 = vmatpush1.bf16.msra.mxu1 %v6408_v38 }
 0x11e   :  { %4853 = vmatprep.subr.bf16.mxu1 %v6416_v39 }
 0x11f   :  { %4510 = vmatpush1.bf16.msra.mxu0 %v6411_v36 }
 0x120   :  { %4511 = vmatprep.subr.bf16.mxu0 %v6419_v37 }
 0x121   :  { %4854 = vmatpush1.bf16.msra.mxu1 %v6414_v42  ;;  %v6473_v42 = vld [vmem:[#allocation10 + $0x224] ss:$16 sps:$4 sm:$0xff]  }
 0x122   :  { %4855 = vmatprep.subr.bf16.mxu1 %v6422_v43  ;;  %v6476_v43 = vld [vmem:[#allocation10 + $0x22c] ss:$16 sps:$4 sm:$0xff]  }
 0x123   :  { %4512 = vmatpush1.bf16.msra.mxu0 %v6417_v40 }
 0x124   :  { %4513 = vmatprep.subr.bf16.mxu0 %v6425_v41 }
 0x125   :  { %4856 = vmatpush1.bf16.msra.mxu1 %v6420_v46 }
 0x126   :  { %4857 = vmatprep.subr.bf16.mxu1 %v6428_v47  ;;  %v6471_v47 = vld [vmem:[#allocation10 + $0x220] ss:$16 sps:$4 sm:$0xff]  }
 0x127   :  { %4514 = vmatpush1.bf16.msra.mxu0 %v6423_v44 }
 0x128   :  { %4515 = vmatprep.subr.bf16.mxu0 %v6431_v45 }
 0x129   :  { %4858 = vmatpush1.bf16.msra.mxu1 %v6426_v49 }
 0x12a   :  { %4859 = vmatprep.subr.bf16.mxu1 %v6434_v50 }
 0x12b   :  { %4516 = vmatpush1.bf16.msra.mxu0 %v6429_v0  ;;  %v6474_v0 = vld [vmem:[#allocation10 + $0x228] ss:$16 sps:$4 sm:$0xff]  }
 0x12c   :  { %4517 = vmatprep.subr.bf16.mxu0 %v6437_v48 }
 0x12d   :  { %4860 = vmatpush1.bf16.msra.mxu1 %v6432_v53  ;;  %v6482_v53 = vld [vmem:[#allocation10 + $0x24c] ss:$16 sps:$4 sm:$0xff]  }
 0x12e   :  { %4861 = vmatprep.subr.bf16.mxu1 %v6440_v54 }
 0x12f   :  { %4518 = vmatpush1.bf16.msra.mxu0 %v6435_v51 }
 0x130   :  { %4519 = vmatprep.subr.bf16.mxu0 %v6443_v52  ;;  %v6479_v52 = vld [vmem:[#allocation10 + $0x244] ss:$16 sps:$4 sm:$0xff]  }
 0x131   :  { %4862 = vmatpush1.bf16.msra.mxu1 %v6438_v57 }
 0x132   :  { %4863 = vmatprep.subr.bf16.mxu1 %v6446_v58  ;;  %v6485_v58 = vld [vmem:[#allocation10 + $0x264] ss:$16 sps:$4 sm:$0xff]  }
 0x133   :  { %4520 = vmatpush1.bf16.msra.mxu0 %v6441_v55  ;;  %v6477_v55 = vld [vmem:[#allocation10 + $0x240] ss:$16 sps:$4 sm:$0xff]  }
 0x134   :  { %4521 = vmatprep.subr.bf16.mxu0 %v6449_v56  ;;  %v6480_v56 = vld [vmem:[#allocation10 + $0x248] ss:$16 sps:$4 sm:$0xff]  }
 0x135   :  { %4864 = vmatpush1.bf16.msra.mxu1 %v6444_v61  ;;  %v6486_v61 = vld [vmem:[#allocation10 + $0x268] ss:$16 sps:$4 sm:$0xff]  }
 0x136   :  { %4865 = vmatprep.subr.bf16.mxu1 %v6452_v62  ;;  %v6491_v62 = vld [vmem:[#allocation10 + $0x284] ss:$16 sps:$4 sm:$0xff]  }
 0x137   :  { %4522 = vmatpush1.bf16.msra.mxu0 %v6447_v59  ;;  %v6488_v59 = vld [vmem:[#allocation10 + $0x26c] ss:$16 sps:$4 sm:$0xff]  }
 0x138   :  { %4523 = vmatprep.subr.bf16.mxu0 %v6455_v60  ;;  %v6483_v60 = vld [vmem:[#allocation10 + $0x260] ss:$16 sps:$4 sm:$0xff]  }
 0x139   :  { %4866 = vmatpush1.bf16.msra.mxu1 %v6450_v2  ;;  %v6492_v2 = vld [vmem:[#allocation10 + $0x288] ss:$16 sps:$4 sm:$0xff]  }
 0x13a   :  { %4867 = vmatprep.subr.bf16.mxu1 %v6458_v3  ;;  %v269_v3 = vsub.s32 4, %v7518_v12 }
 0x13b   :  { %4524 = vmatpush1.bf16.msra.mxu0 %v6453_v63  ;;  %v6494_v63 = vld [vmem:[#allocation10 + $0x28c] ss:$16 sps:$4 sm:$0xff]  }
 0x13c   :  { %4525 = vmatprep.subr.bf16.mxu0 %v6461_v1  ;;  %v6489_v1 = vld [vmem:[#allocation10 + $0x280] ss:$16 sps:$4 sm:$0xff]  }
 0x13d   :  { %4868 = vmatpush1.bf16.msra.mxu1 %v6456_v7  ;;  %v7545_v7 = vld [vmem:[#allocation9 + $0x8] sm:$0xff] }
 0x13e   :  { %4869 = vmatprep.subr.bf16.mxu1 %v6464_v8  ;;  %v6495_v8 = vld [vmem:[#allocation10 + $0x2a0] ss:$16 sps:$4 sm:$0xff]   ;;  %v7549_v11 = vrot.slane %v7545_v7, %v269_v3 }
 0x13f   :  { %4526 = vmatpush1.bf16.msra.mxu0 %v6459_v4  ;;  %v6497_v4 = vld [vmem:[#allocation10 + $0x2a4] ss:$16 sps:$4 sm:$0xff]  }
 0x140   :  { %4538 = vmatprep.subr.bf16.mxu0 %v6467_v6  ;;  %v6500_v6 = vld [vmem:[#allocation10 + $0x2ac] ss:$16 sps:$4 sm:$0xff]  }
 0x141   :  { %4870 = vmatpush1.bf16.msra.mxu1 %v6462_v9  ;;  %v6498_v9 = vld [vmem:[#allocation10 + $0x2a8] ss:$16 sps:$4 sm:$0xff]  }
 0x142   :  { %4882 = vmatprep.subr.bf16.mxu1 %v6470_v10  ;;  %v273_v10 = vsub.s32 5, %v7518_v12 }
 0x175   :  { %v1011_v19 = vpop.f32.mrb[0].mxu0  ;;  %v1054_v35 = vpop.f32.mrb[0].mxu1 }
 0x176   :  { %v1012_v21 = vadd.f32 %v1011_v19, %v254_v16  ;;  %v1013_v5 = vpop.f32.mrb[1].mxu0  ;;  %v1055_v37 = vadd.f32 %v1054_v35, %v262_v26  ;;  %v1056_v38 = vpop.f32.mrb[1].mxu1  ;;  %v270_v19 = vrot.slane %v7520_v13, %v269_v3  ;;  %v6527_v3 = vld [vmem:[#allocation10 + $0x344] ss:$16 sps:$4 sm:$0xff]  }
 0x177   :  { %v1014_v22 = vadd.f32 %v1013_v5, %v258_v17  ;;  %v1015_v23 = vpop.f32.mrb[2].mxu0  ;;  %v1057_v40 = vadd.f32 %v1056_v38, %v266_v28  ;;  %v1058_v41 = vpop.f32.mrb[2].mxu1  ;;  %v6506_v5 = vld [vmem:[#allocation10 + $0x2cc] ss:$16 sps:$4 sm:$0xff]  }
 0x178   :  { %v1016_v24 = vadd.f32 %v1015_v23, %v254_v16  ;;  %v1017_v25 = vpop.f32.mrb[3].mxu0  ;;  %v1321_v29 = vmax.f32 %v1012_v21, 0.0  ;;  %v1323_v44 = vmax.f32 %v1055_v37, 0.0  ;;  %v1059_v45 = vadd.f32 %v1058_v41, %v262_v26  ;;  %v1060_v46 = vpop.f32.mrb[3].mxu1  ;;  %v6503_v21 = vld [vmem:[#allocation10 + $0x2c4] ss:$16 sps:$4 sm:$0xff]  }
 0x179   :  { %v1018_v27 = vadd.f32 %v1017_v25, %v258_v17  ;;  %v1322_v31 = vmax.f32 %v1014_v22, 0.0  ;;  %v1324_v48 = vmax.f32 %v1057_v40, 0.0  ;;  %v1061_v49 = vadd.f32 %v1060_v46, %v266_v28  ;;  %v6501_v25 = vld [vmem:[#allocation10 + $0x2c0] ss:$16 sps:$4 sm:$0xff]   ;;  %v6504_v26 = vld [vmem:[#allocation10 + $0x2c8] ss:$16 sps:$4 sm:$0xff]  }
 0x17a   :  { %v1337_v30 = vmax.f32 %v1016_v24, 0.0  ;;  %v1339_v50 = vmax.f32 %v1059_v45, 0.0  ;;  %v277_v16 = vsub.s32 6, %v7518_v12  ;;  %v281_v17 = vsub.s32 7, %v7518_v12  ;;  %v6509_v28 = vld [vmem:[#allocation10 + $0x2e4] ss:$16 sps:$4 sm:$0xff]  }
 0x17b   :  { %v1338_v32 = vmax.f32 %v1018_v27, 0.0  ;;  %v1340_v51 = vmax.f32 %v1061_v49, 0.0  ;;  %v7555_v22 = vrot.slane %v7545_v7, %v273_v10  ;;  %v274_v12 = vrot.slane %v7520_v13, %v273_v10  ;;  %v6513_v46 = vld [vmem:[#allocation10 + $0x300] ss:$16 sps:$4 sm:$0xff]  }
 0x17c   :  { %v1353_v36 = vpack.c.bf16 %v1337_v30, %v1321_v29  ;;  %v7542_v54 = vpack.c.bf16 %v1339_v50, %v1323_v44  ;;  %v7558_v23 = vrot.slane %v7545_v7, %v277_v16  ;;  %v7561_v24 = vrot.slane %v7545_v7, %v281_v17  ;;  %v6512_v29 = vld [vmem:[#allocation10 + $0x2ec] ss:$16 sps:$4 sm:$0xff]  }
 0x17d   :  { %v1354_v39 = vpack.c.bf16 %v1338_v32, %v1322_v31  ;;  %v1356_v57 = vpack.c.bf16 %v1340_v51, %v1324_v48  ;;  %v6507_v32 = vld [vmem:[#allocation10 + $0x2e0] ss:$16 sps:$4 sm:$0xff]   ;;  %v278_v38 = vrot.slane %v7520_v13, %v277_v16  ;;  %v6518_v44 = vld [vmem:[#allocation10 + $0x30c] ss:$16 sps:$4 sm:$0xff]   ;;  %v6533_v16 = vld [vmem:[#allocation10 + $0x364] ss:$16 sps:$4 sm:$0xff]  }
 0x17f   :  { %4527 = vmatprep.mubr.bf16.mxu0 %v1354_v39  ;;  %4871 = vmatprep.mubr.bf16.mxu1 %v1354_v39 }
 0x180   :  { %4528 = vmatmul.mubr.bf16.vlgmr.msra.gmra.mrb[16].mxu0 %v1353_v36  ;;  %4872 = vmatmul.mubr.bf16.vlgmr.msra.gmra.mrb[16].mxu1 %v1353_v36 }
 0x181   :  { %4539 = vmatpush1.bf16.msra.mxu0 %v6465_v33  ;;  %4883 = vmatpush1.bf16.msra.mxu1 %v6468_v34  ;;  %v6510_v33 = vld [vmem:[#allocation10 + $0x2e8] ss:$16 sps:$4 sm:$0xff]  }
 0x182   :  { %4540 = vmatprep.subr.bf16.mxu0 %v6473_v42  ;;  %4884 = vmatprep.subr.bf16.mxu1 %v6476_v43  ;;  %v282_v42 = vrot.slane %v7520_v13, %v281_v17  ;;  %v6515_v43 = vld [vmem:[#allocation10 + $0x304] ss:$16 sps:$4 sm:$0xff]   ;;  %v6536_v17 = vld [vmem:[#allocation10 + $0x36c] ss:$16 sps:$4 sm:$0xff]  }
 0x183   :  { %4570 = vmatprep.mubr.bf16.mxu0 %v1356_v57  ;;  %4914 = vmatprep.mubr.bf16.mxu1 %v1356_v57  ;;  %v6521_v13 = vld [vmem:[#allocation10 + $0x324] ss:$16 sps:$4 sm:$0xff]  }
 0x185   :  { %4541 = vmatpush1.bf16.msra.mxu0 %v6471_v47  ;;  %4885 = vmatpush1.bf16.msra.mxu1 %v6474_v0  ;;  %v6516_v47 = vld [vmem:[#allocation10 + $0x308] ss:$16 sps:$4 sm:$0xff]  }
 0x186   :  { %4542 = vmatprep.subr.bf16.mxu0 %v6479_v52  ;;  %4886 = vmatprep.subr.bf16.mxu1 %v6482_v53 }
 0x189   :  { %4543 = vmatpush1.bf16.msra.mxu0 %v6477_v55  ;;  %4887 = vmatpush1.bf16.msra.mxu1 %v6480_v56  ;;  %v6524_v56 = vld [vmem:[#allocation10 + $0x32c] ss:$16 sps:$4 sm:$0xff]  }
 0x18a   :  { %4544 = vmatprep.subr.bf16.mxu0 %v6485_v58  ;;  %4888 = vmatprep.subr.bf16.mxu1 %v6488_v59 }
 0x18d   :  { %4545 = vmatpush1.bf16.msra.mxu0 %v6483_v60  ;;  %4889 = vmatpush1.bf16.msra.mxu1 %v6486_v61  ;;  %v6519_v60 = vld [vmem:[#allocation10 + $0x320] ss:$16 sps:$4 sm:$0xff]   ;;  %v6522_v61 = vld [vmem:[#allocation10 + $0x328] ss:$16 sps:$4 sm:$0xff]  }
 0x18e   :  { %4546 = vmatprep.subr.bf16.mxu0 %v6491_v62  ;;  %4890 = vmatprep.subr.bf16.mxu1 %v6494_v63 }
 0x191   :  { %4547 = vmatpush1.bf16.msra.mxu0 %v6489_v1  ;;  %4891 = vmatpush1.bf16.msra.mxu1 %v6492_v2 }
 0x192   :  { %4548 = vmatprep.subr.bf16.mxu0 %v6497_v4  ;;  %4892 = vmatprep.subr.bf16.mxu1 %v6500_v6  ;;  %v6530_v4 = vld [vmem:[#allocation10 + $0x34c] ss:$16 sps:$4 sm:$0xff]  }
 0x195   :  { %4549 = vmatpush1.bf16.msra.mxu0 %v6495_v8  ;;  %4893 = vmatpush1.bf16.msra.mxu1 %v6498_v9  ;;  %v1097_v27 = vpop.f32.mrb[4].mxu0  ;;  %v6525_v8 = vld [vmem:[#allocation10 + $0x340] ss:$16 sps:$4 sm:$0xff]   ;;  %v6528_v9 = vld [vmem:[#allocation10 + $0x348] ss:$16 sps:$4 sm:$0xff]  }
 0x196   :  { %4550 = vmatprep.subr.bf16.mxu0 %v6503_v21  ;;  %4894 = vmatprep.subr.bf16.mxu1 %v6506_v5  ;;  %v1098_v30 = vadd.f32 %v1097_v27, %v270_v19  ;;  %v1099_v31 = vpop.f32.mrb[5].mxu0  ;;  %v6534_v21 = vld [vmem:[#allocation10 + $0x368] ss:$16 sps:$4 sm:$0xff]   ;;  %v6539_v5 = vld [vmem:[#allocation10 + $0x384] ss:$16 sps:$4 sm:$0xff]  }
 0x197   :  { %v1100_v34 = vadd.f32 %v1099_v31, %v274_v12  ;;  %v1101_v35 = vpop.f32.mrb[6].mxu0  ;;  %v1140_v0 = vpop.f32.mrb[4].mxu1  ;;  %v6545_v27 = vld [vmem:[#allocation10 + $0x3a4] ss:$16 sps:$4 sm:$0xff]  }
 0x198   :  { %v1325_v36 = vmax.f32 %v1098_v30, 0.0  ;;  %v1102_v37 = vadd.f32 %v1101_v35, %v270_v19  ;;  %v1103_v39 = vpop.f32.mrb[7].mxu0  ;;  %v1141_v50 = vadd.f32 %v1140_v0, %v278_v38  ;;  %v1142_v51 = vpop.f32.mrb[5].mxu1  ;;  %v6531_v19 = vld [vmem:[#allocation10 + $0x360] ss:$16 sps:$4 sm:$0xff]   ;;  %v294_v0 = vrot.slane %v7545_v7, %v7533_v18 }
 0x199   :  { %4551 = vmatpush1.bf16.msra.mxu0 %v6501_v25  ;;  %4895 = vmatpush1.bf16.msra.mxu1 %v6504_v26  ;;  %v1326_v40 = vmax.f32 %v1100_v34, 0.0  ;;  %v1104_v41 = vadd.f32 %v1103_v39, %v274_v12  ;;  %v1143_v53 = vadd.f32 %v1142_v51, %v282_v42  ;;  %v1144_v55 = vpop.f32.mrb[6].mxu1  ;;  %v6542_v25 = vld [vmem:[#allocation10 + $0x38c] ss:$16 sps:$4 sm:$0xff]   ;;  %v6537_v26 = vld [vmem:[#allocation10 + $0x380] ss:$16 sps:$4 sm:$0xff]  }
 0x19a   :  { %4552 = vmatprep.subr.bf16.mxu0 %v6509_v28  ;;  %4896 = vmatprep.subr.bf16.mxu1 %v6512_v29  ;;  %v1341_v45 = vmax.f32 %v1102_v37, 0.0  ;;  %v1327_v57 = vmax.f32 %v1141_v50, 0.0  ;;  %v1145_v58 = vadd.f32 %v1144_v55, %v278_v38  ;;  %v1146_v59 = vpop.f32.mrb[7].mxu1  ;;  %v6540_v12 = vld [vmem:[#allocation10 + $0x388] ss:$16 sps:$4 sm:$0xff]  }
 0x19b   :  { %v1342_v48 = vmax.f32 %v1104_v41, 0.0  ;;  %v1328_v62 = vmax.f32 %v1143_v53, 0.0  ;;  %v1147_v63 = vadd.f32 %v1146_v59, %v282_v42  ;;  %v6548_v28 = vld [vmem:[#allocation10 + $0x3ac] ss:$16 sps:$4 sm:$0xff]   ;;  %v6543_v29 = vld [vmem:[#allocation10 + $0x3a0] ss:$16 sps:$4 sm:$0xff]   ;;  %v298_v53 = vrot.slane %v7545_v7, %v7536_v20 }
 0x19c   :  { %v7566_v49 = vpack.c.bf16 %v1341_v45, %v1325_v36  ;;  %v1343_v1 = vmax.f32 %v1145_v58, 0.0  ;;  %v6546_v30 = vld [vmem:[#allocation10 + $0x3a8] ss:$16 sps:$4 sm:$0xff]   ;;  %v6551_v31 = vld [vmem:[#allocation10 + $0x3c4] ss:$16 sps:$4 sm:$0xff]   ;;  %v290_v36 = vrot.slane %v7545_v7, %v7526_v15 }
 0x19d   :  { %4553 = vmatpush1.bf16.msra.mxu0 %v6507_v32  ;;  %4897 = vmatpush1.bf16.msra.mxu1 %v6510_v33  ;;  %v7568_v52 = vpack.c.bf16 %v1342_v48, %v1326_v40  ;;  %v1344_v2 = vmax.f32 %v1147_v63, 0.0  ;;  %v6554_v32 = vld [vmem:[#allocation10 + $0x3cc] ss:$16 sps:$4 sm:$0xff]   ;;  %v286_v33 = vrot.slane %v7545_v7, %v7523_v14  ;;  %v6549_v34 = vld [vmem:[#allocation10 + $0x3c0] ss:$16 sps:$4 sm:$0xff]  }
 0x19e   :  { %4554 = vmatprep.subr.bf16.mxu0 %v6515_v43  ;;  %4898 = vmatprep.subr.bf16.mxu1 %v6518_v44  ;;  %v7570_v6 = vpack.c.bf16 %v1343_v1, %v1327_v57  ;;  %v6552_v35 = vld [vmem:[#allocation10 + $0x3c8] ss:$16 sps:$4 sm:$0xff]   ;;  %v6557_v38 = vld [vmem:[#allocation10 + $0x3e4] ss:$16 sps:$4 sm:$0xff]   ;;  %v6560_v39 = vld [vmem:[#allocation10 + $0x3ec] ss:$16 sps:$4 sm:$0xff]  }
 0x19f   :  { %v7572_v10 = vpack.c.bf16 %v1344_v2, %v1328_v62  ;;  %v6555_v42 = vld [vmem:[#allocation10 + $0x3e0] ss:$16 sps:$4 sm:$0xff]   ;;  %v6558_v43 = vld [vmem:[#allocation10 + $0x3e8] ss:$16 sps:$4 sm:$0xff]   ;;  %v6563_v55 = vld [vmem:[#allocation10 + $0x404] ss:$16 sps:$4 sm:$0xff]  }
 0x1a0   :  { %v6561_v57 = vld [vmem:[#allocation10 + $0x400] ss:$16 sps:$4 sm:$0xff]   ;;  %v6564_v58 = vld [vmem:[#allocation10 + $0x408] ss:$16 sps:$4 sm:$0xff]   ;;  %v6572_v62 = vld [vmem:[#allocation10 + $0x42c] ss:$16 sps:$4 sm:$0xff]  }
 0x1a1   :  { %4555 = vmatpush1.bf16.msra.mxu0 %v6513_v46  ;;  %4899 = vmatpush1.bf16.msra.mxu1 %v6516_v47 }
 0x1a2   :  { %4556 = vmatprep.subr.bf16.mxu0 %v6521_v13  ;;  %4900 = vmatprep.subr.bf16.mxu1 %v6524_v56  ;;  %v6566_v13 = vld [vmem:[#allocation10 + $0x40c] ss:$16 sps:$4 sm:$0xff]  }
 0x1a5   :  { %4557 = vmatpush1.bf16.msra.mxu0 %v6519_v60  ;;  %4901 = vmatpush1.bf16.msra.mxu1 %v6522_v61  ;;  %v6569_v61 = vld [vmem:[#allocation10 + $0x424] ss:$16 sps:$4 sm:$0xff]  }
 0x1a6   :  { %4558 = vmatprep.subr.bf16.mxu0 %v6527_v3  ;;  %4902 = vmatprep.subr.bf16.mxu1 %v6530_v4 }
 0x1a9   :  { %4559 = vmatpush1.bf16.msra.mxu0 %v6525_v8  ;;  %4903 = vmatpush1.bf16.msra.mxu1 %v6528_v9 }
 0x1aa   :  { %4560 = vmatprep.subr.bf16.mxu0 %v6533_v16  ;;  %4904 = vmatprep.subr.bf16.mxu1 %v6536_v17  ;;  %v6567_v17 = vld [vmem:[#allocation10 + $0x420] ss:$16 sps:$4 sm:$0xff]  }
 0x1ad   :  { %4561 = vmatpush1.bf16.msra.mxu0 %v6531_v19  ;;  %4905 = vmatpush1.bf16.msra.mxu1 %v6534_v21  ;;  %v6570_v19 = vld [vmem:[#allocation10 + $0x428] ss:$16 sps:$4 sm:$0xff]  }
 0x1ae   :  { %4562 = vmatprep.subr.bf16.mxu0 %v6539_v5  ;;  %4906 = vmatprep.subr.bf16.mxu1 %v6542_v25  ;;  %v6575_v25 = vld [vmem:[#allocation10 + $0x444] ss:$16 sps:$4 sm:$0xff]  }
 0x1b1   :  { %4563 = vmatpush1.bf16.msra.mxu0 %v6537_v26  ;;  %4907 = vmatpush1.bf16.msra.mxu1 %v6540_v12  ;;  %v6578_v26 = vld [vmem:[#allocation10 + $0x44c] ss:$16 sps:$4 sm:$0xff]  }
 0x1b2   :  { %4564 = vmatprep.subr.bf16.mxu0 %v6545_v27  ;;  %4908 = vmatprep.subr.bf16.mxu1 %v6548_v28 }
 0x1b5   :  { %4565 = vmatpush1.bf16.msra.mxu0 %v6543_v29  ;;  %4909 = vmatpush1.bf16.msra.mxu1 %v6546_v30  ;;  %v1183_v37 = vpop.f32.mrb[8].mxu0  ;;  %v6573_v29 = vld [vmem:[#allocation10 + $0x440] ss:$16 sps:$4 sm:$0xff]  }
 0x1b6   :  { %4566 = vmatprep.subr.bf16.mxu0 %v6551_v31  ;;  %4910 = vmatprep.subr.bf16.mxu1 %v6554_v32  ;;  %v1184_v40 = vadd.f32 %v1183_v37, %v286_v33  ;;  %v1185_v41 = vpop.f32.mrb[9].mxu0  ;;  %v6576_v31 = vld [vmem:[#allocation10 + $0x448] ss:$16 sps:$4 sm:$0xff]   ;;  %v6584_v32 = vld [vmem:[#allocation10 + $0x46c] ss:$16 sps:$4 sm:$0xff]  }
 0x1b7   :  { %v1186_v44 = vadd.f32 %v1185_v41, %v290_v36  ;;  %v1187_v45 = vpop.f32.mrb[10].mxu0  ;;  %v1226_v59 = vpop.f32.mrb[8].mxu1  ;;  %v6588_v37 = vld [vmem:[#allocation10 + $0x488] ss:$16 sps:$4 sm:$0xff]  }
 0x1b8   :  { %v1329_v46 = vmax.f32 %v1184_v40, 0.0  ;;  %v1188_v47 = vadd.f32 %v1187_v45, %v286_v33  ;;  %v1189_v48 = vpop.f32.mrb[11].mxu0  ;;  %v1227_v1 = vadd.f32 %v1226_v59, %v294_v0  ;;  %v1228_v2 = vpop.f32.mrb[9].mxu1  ;;  %v6579_v33 = vld [vmem:[#allocation10 + $0x460] ss:$16 sps:$4 sm:$0xff]  }
 0x1b9   :  { %4567 = vmatpush1.bf16.msra.mxu0 %v6549_v34  ;;  %4911 = vmatpush1.bf16.msra.mxu1 %v6552_v35  ;;  %v1330_v50 = vmax.f32 %v1186_v44, 0.0  ;;  %v1190_v51 = vadd.f32 %v1189_v48, %v290_v36  ;;  %v1229_v7 = vadd.f32 %v1228_v2, %v298_v53  ;;  %v1230_v4 = vpop.f32.mrb[10].mxu1  ;;  %v6582_v34 = vld [vmem:[#allocation10 + $0x468] ss:$16 sps:$4 sm:$0xff]   ;;  %v6587_v35 = vld [vmem:[#allocation10 + $0x484] ss:$16 sps:$4 sm:$0xff]  }
 0x1ba   :  { %4568 = vmatprep.subr.bf16.mxu0 %v6557_v38  ;;  %4912 = vmatprep.subr.bf16.mxu1 %v6560_v39  ;;  %v1345_v56 = vmax.f32 %v1188_v47, 0.0  ;;  %v1331_v8 = vmax.f32 %v1227_v1, 0.0  ;;  %v1231_v9 = vadd.f32 %v1230_v4, %v294_v0  ;;  %v1232_v16 = vpop.f32.mrb[11].mxu1  ;;  %v6590_v36 = vld [vmem:[#allocation10 + $0x48c] ss:$16 sps:$4 sm:$0xff]  }
 0x1bb   :  { %v1346_v60 = vmax.f32 %v1190_v51, 0.0  ;;  %v1332_v21 = vmax.f32 %v1229_v7, 0.0  ;;  %v1233_v5 = vadd.f32 %v1232_v16, %v298_v53  ;;  %v6593_v38 = vld [vmem:[#allocation10 + $0x4a4] ss:$16 sps:$4 sm:$0xff]   ;;  %v6596_v39 = vld [vmem:[#allocation10 + $0x4ac] ss:$16 sps:$4 sm:$0xff]  }
 0x1bc   :  { %v7582_v63 = vpack.c.bf16 %v1345_v56, %v1329_v46  ;;  %v1347_v12 = vmax.f32 %v1231_v9, 0.0  ;;  %v6591_v40 = vld [vmem:[#allocation10 + $0x4a0] ss:$16 sps:$4 sm:$0xff]   ;;  %v6594_v41 = vld [vmem:[#allocation10 + $0x4a8] ss:$16 sps:$4 sm:$0xff]  }
 0x1bd   :  { %4569 = vmatpush1.bf16.msra.mxu0 %v6555_v42  ;;  %4913 = vmatpush1.bf16.msra.mxu1 %v6558_v43  ;;  %v7584_v3 = vpack.c.bf16 %v1346_v60, %v1330_v50  ;;  %v1348_v27 = vmax.f32 %v1233_v5, 0.0  ;;  %v6599_v42 = vld [vmem:[#allocation10 + $0x4c4] ss:$16 sps:$4 sm:$0xff]   ;;  %v6602_v43 = vld [vmem:[#allocation10 + $0x4cc] ss:$16 sps:$4 sm:$0xff]  }
 0x1be   :  { %4581 = vmatprep.subr.bf16.mxu0 %v6563_v55  ;;  %4925 = vmatprep.subr.bf16.mxu1 %v6566_v13  ;;  %v7588_v28 = vpack.c.bf16 %v1347_v12, %v1331_v8  ;;  %v6597_v44 = vld [vmem:[#allocation10 + $0x4c0] ss:$16 sps:$4 sm:$0xff]   ;;  %v6600_v45 = vld [vmem:[#allocation10 + $0x4c8] ss:$16 sps:$4 sm:$0xff]   ;;  %v6605_v47 = vld [vmem:[#allocation10 + $0x4e4] ss:$16 sps:$4 sm:$0xff]  }
 0x1bf   :  { %v7592_v30 = vpack.c.bf16 %v1348_v27, %v1332_v21  ;;  %v6608_v0 = vld [vmem:[#allocation10 + $0x4ec] ss:$16 sps:$4 sm:$0xff]   ;;  %v6609_v9 = vld [vmem:[#allocation10 + $0x500] ss:$16 sps:$4 sm:$0xff]   ;;  %v6612_v16 = vld [vmem:[#allocation10 + $0x508] ss:$16 sps:$4 sm:$0xff]  }
 0x1c0   :  { %4571 = vmatmul.mubr.bf16.vlgmr.msra.gmra.mrb[16].mxu0 %v7542_v54  ;;  %4915 = vmatmul.mubr.bf16.vlgmr.msra.gmra.mrb[16].mxu1 %v7542_v54  ;;  %v6581_v54 = vld [vmem:[#allocation10 + $0x464] ss:$16 sps:$4 sm:$0xff]   ;;  %v6620_v5 = vld [vmem:[#allocation10 + $0x52c] ss:$16 sps:$4 sm:$0xff]  }
 0x1c1   :  { %4582 = vmatpush1.bf16.msra.mxu0 %v6561_v57  ;;  %4926 = vmatpush1.bf16.msra.mxu1 %v6564_v58  ;;  %v6603_v57 = vld [vmem:[#allocation10 + $0x4e0] ss:$16 sps:$4 sm:$0xff]   ;;  %v6606_v58 = vld [vmem:[#allocation10 + $0x4e8] ss:$16 sps:$4 sm:$0xff]   ;;  %v6617_v21 = vld [vmem:[#allocation10 + $0x524] ss:$16 sps:$4 sm:$0xff]  }
 0x1c2   :  { %4583 = vmatprep.subr.bf16.mxu0 %v6569_v61  ;;  %4927 = vmatprep.subr.bf16.mxu1 %v6572_v62  ;;  %v6611_v61 = vld [vmem:[#allocation10 + $0x504] ss:$16 sps:$4 sm:$0xff]   ;;  %v6614_v62 = vld [vmem:[#allocation10 + $0x50c] ss:$16 sps:$4 sm:$0xff]  }
 0x1c3   :  { %4613 = vmatprep.mubr.bf16.mxu0 %v7568_v52  ;;  %4957 = vmatprep.mubr.bf16.mxu1 %v7568_v52  ;;  %v6585_v52 = vld [vmem:[#allocation10 + $0x480] ss:$16 sps:$4 sm:$0xff]  }
 0x1c5   :  { %4584 = vmatpush1.bf16.msra.mxu0 %v6567_v17  ;;  %4928 = vmatpush1.bf16.msra.mxu1 %v6570_v19 }
 0x1c6   :  { %4585 = vmatprep.subr.bf16.mxu0 %v6575_v25  ;;  %4929 = vmatprep.subr.bf16.mxu1 %v6578_v26 }
 0x1c9   :  { %4586 = vmatpush1.bf16.msra.mxu0 %v6573_v29  ;;  %4930 = vmatpush1.bf16.msra.mxu1 %v6576_v31 }
 0x1ca   :  { %4587 = vmatprep.subr.bf16.mxu0 %v6581_v54  ;;  %4931 = vmatprep.subr.bf16.mxu1 %v6584_v32  ;;  %v6615_v54 = vld [vmem:[#allocation10 + $0x520] ss:$16 sps:$4 sm:$0xff]   ;;  %v6618_v32 = vld [vmem:[#allocation10 + $0x528] ss:$16 sps:$4 sm:$0xff]  }
 0x1cd   :  { %4588 = vmatpush1.bf16.msra.mxu0 %v6579_v33  ;;  %4932 = vmatpush1.bf16.msra.mxu1 %v6582_v34  ;;  %v6623_v34 = vld [vmem:[#allocation10 + $0x544] ss:$16 sps:$4 sm:$0xff]  }
 0x1ce   :  { %4589 = vmatprep.subr.bf16.mxu0 %v6587_v35  ;;  %4933 = vmatprep.subr.bf16.mxu1 %v6590_v36  ;;  %v6626_v35 = vld [vmem:[#allocation10 + $0x54c] ss:$16 sps:$4 sm:$0xff]  }
 0x1d1   :  { %4590 = vmatpush1.bf16.msra.mxu0 %v6585_v52  ;;  %4934 = vmatpush1.bf16.msra.mxu1 %v6588_v37  ;;  %v6624_v37 = vld [vmem:[#allocation10 + $0x548] ss:$16 sps:$4 sm:$0xff]  }
 0x1d2   :  { %4591 = vmatprep.subr.bf16.mxu0 %v6593_v38  ;;  %4935 = vmatprep.subr.bf16.mxu1 %v6596_v39  ;;  %v6632_v38 = vld [vmem:[#allocation10 + $0x56c] ss:$16 sps:$4 sm:$0xff]   ;;  %v6627_v39 = vld [vmem:[#allocation10 + $0x560] ss:$16 sps:$4 sm:$0xff]  }
 0x1d5   :  { %4592 = vmatpush1.bf16.msra.mxu0 %v6591_v40  ;;  %4936 = vmatpush1.bf16.msra.mxu1 %v6594_v41  ;;  %v1269_v46 = vpop.f32.mrb[12].mxu0  ;;  %v6630_v40 = vld [vmem:[#allocation10 + $0x568] ss:$16 sps:$4 sm:$0xff]   ;;  %v6635_v41 = vld [vmem:[#allocation10 + $0x584] ss:$16 sps:$4 sm:$0xff]  }
 0x1d6   :  { %4593 = vmatprep.subr.bf16.mxu0 %v6599_v42  ;;  %4937 = vmatprep.subr.bf16.mxu1 %v6602_v43  ;;  %v1270_v48 = vadd.f32 %v1269_v46, %v7549_v11  ;;  %v1271_v50 = vpop.f32.mrb[13].mxu0  ;;  %v6638_v42 = vld [vmem:[#allocation10 + $0x58c] ss:$16 sps:$4 sm:$0xff]   ;;  %v6633_v43 = vld [vmem:[#allocation10 + $0x580] ss:$16 sps:$4 sm:$0xff]  }
 0x1d7   :  { %v1272_v51 = vadd.f32 %v1271_v50, %v7555_v22  ;;  %v1273_v53 = vpop.f32.mrb[14].mxu0  ;;  %v1312_v2 = vpop.f32.mrb[12].mxu1  ;;  %v6644_v46 = vld [vmem:[#allocation10 + $0x5ac] ss:$16 sps:$4 sm:$0xff]  }
 0x1d8   :  { %v1333_v55 = vmax.f32 %v1270_v48, 0.0  ;;  %v1274_v13 = vadd.f32 %v1273_v53, %v7549_v11  ;;  %v1275_v56 = vpop.f32.mrb[15].mxu0  ;;  %v1313_v8 = vadd.f32 %v1312_v2, %v7558_v23  ;;  %v1314_v11 = vpop.f32.mrb[13].mxu1  ;;  %v6647_v48 = vld [vmem:[#allocation10 + $0x5c4] ss:$16 sps:$4 sm:$0xff]  }
 0x1d9   :  { %4594 = vmatpush1.bf16.msra.mxu0 %v6597_v44  ;;  %4938 = vmatpush1.bf16.msra.mxu1 %v6600_v45  ;;  %v1334_v59 = vmax.f32 %v1272_v51, 0.0  ;;  %v1276_v60 = vadd.f32 %v1275_v56, %v7555_v22  ;;  %v1315_v22 = vadd.f32 %v1314_v11, %v7561_v24  ;;  %v1316_v19 = vpop.f32.mrb[14].mxu1  ;;  %v6636_v44 = vld [vmem:[#allocation10 + $0x588] ss:$16 sps:$4 sm:$0xff]   ;;  %v6641_v45 = vld [vmem:[#allocation10 + $0x5a4] ss:$16 sps:$4 sm:$0xff]  }
 0x1da   :  { %4595 = vmatprep.subr.bf16.mxu0 %v6605_v47  ;;  %4939 = vmatprep.subr.bf16.mxu1 %v6608_v0  ;;  %v1349_v1 = vmax.f32 %v1274_v13, 0.0  ;;  %v1335_v25 = vmax.f32 %v1313_v8, 0.0  ;;  %v1317_v26 = vadd.f32 %v1316_v19, %v7558_v23  ;;  %v1318_v12 = vpop.f32.mrb[15].mxu1  ;;  %v6621_v23 = vld [vmem:[#allocation10 + $0x540] ss:$16 sps:$4 sm:$0xff]  }
 0x1db   :  { %v1350_v7 = vmax.f32 %v1276_v60, 0.0  ;;  %v1336_v27 = vmax.f32 %v1315_v22, 0.0  ;;  %v1319_v29 = vadd.f32 %v1318_v12, %v7561_v24  ;;  %v6629_v24 = vld [vmem:[#allocation10 + $0x564] ss:$16 sps:$4 sm:$0xff]   ;;  %v6639_v47 = vld [vmem:[#allocation10 + $0x5a0] ss:$16 sps:$4 sm:$0xff]  }
 0x1dc   :  { %v7598_v4 = vpack.c.bf16 %v1349_v1, %v1333_v55  ;;  %v1351_v31 = vmax.f32 %v1317_v26, 0.0  ;;  %v6642_v0 = vld [vmem:[#allocation10 + $0x5a8] ss:$16 sps:$4 sm:$0xff]   ;;  %v6650_v50 = vld [vmem:[#allocation10 + $0x5cc] ss:$16 sps:$4 sm:$0xff]  }
 0x1dd   :  { %4596 = vmatpush1.bf16.msra.mxu0 %v6603_v57  ;;  %4940 = vmatpush1.bf16.msra.mxu1 %v6606_v58  ;;  %v7601_v17 = vpack.c.bf16 %v1350_v7, %v1334_v59  ;;  %v1352_v33 = vmax.f32 %v1319_v29, 0.0  ;;  %v6645_v51 = vld [vmem:[#allocation10 + $0x5c0] ss:$16 sps:$4 sm:$0xff]   ;;  %v6648_v53 = vld [vmem:[#allocation10 + $0x5c8] ss:$16 sps:$4 sm:$0xff]  }
 0x1de   :  { %4597 = vmatprep.subr.bf16.mxu0 %v6611_v61  ;;  %4941 = vmatprep.subr.bf16.mxu1 %v6614_v62  ;;  %v7606_v36 = vpack.c.bf16 %v1351_v31, %v1335_v25  ;;  %v6653_v55 = vld [vmem:[#allocation10 + $0x5e4] ss:$16 sps:$4 sm:$0xff]   ;;  %v6656_v13 = vld [vmem:[#allocation10 + $0x5ec] ss:$16 sps:$4 sm:$0xff]   ;;  %v6651_v56 = vld [vmem:[#allocation10 + $0x5e0] ss:$16 sps:$4 sm:$0xff]  }
 0x1df   :  { %v7608_v52 = vpack.c.bf16 %v1352_v33, %v1336_v27  ;;  %v6654_v57 = vld [vmem:[#allocation10 + $0x5e8] ss:$16 sps:$4 sm:$0xff]   ;;  %v6659_v58 = vld [vmem:[#allocation10 + $0x604] ss:$16 sps:$4 sm:$0xff]   ;;  %v6662_v59 = vld [vmem:[#allocation10 + $0x60c] ss:$16 sps:$4 sm:$0xff]  }
 0x1e0   :  { %v6657_v60 = vld [vmem:[#allocation10 + $0x600] ss:$16 sps:$4 sm:$0xff]   ;;  %v6660_v61 = vld [vmem:[#allocation10 + $0x608] ss:$16 sps:$4 sm:$0xff]   ;;  %v6665_v62 = vld [vmem:[#allocation10 + $0x624] ss:$16 sps:$4 sm:$0xff]  }
 0x1e1   :  { %4598 = vmatpush1.bf16.msra.mxu0 %v6609_v9  ;;  %4942 = vmatpush1.bf16.msra.mxu1 %v6612_v16  ;;  %v6668_v1 = vld [vmem:[#allocation10 + $0x62c] ss:$16 sps:$4 sm:$0xff]   ;;  %v6663_v2 = vld [vmem:[#allocation10 + $0x620] ss:$16 sps:$4 sm:$0xff]   ;;  %v6666_v7 = vld [vmem:[#allocation10 + $0x628] ss:$16 sps:$4 sm:$0xff]  }
 0x1e2   :  { %4599 = vmatprep.subr.bf16.mxu0 %v6617_v21  ;;  %4943 = vmatprep.subr.bf16.mxu1 %v6620_v5  ;;  %v6671_v8 = vld [vmem:[#allocation10 + $0x644] ss:$16 sps:$4 sm:$0xff]   ;;  %v6674_v11 = vld [vmem:[#allocation10 + $0x64c] ss:$16 sps:$4 sm:$0xff]   ;;  %v6669_v9 = vld [vmem:[#allocation10 + $0x640] ss:$16 sps:$4 sm:$0xff]  }
 0x1e3   :  { %v6672_v16 = vld [vmem:[#allocation10 + $0x648] ss:$16 sps:$4 sm:$0xff]   ;;  %v6677_v22 = vld [vmem:[#allocation10 + $0x664] ss:$16 sps:$4 sm:$0xff]   ;;  %v6675_v19 = vld [vmem:[#allocation10 + $0x660] ss:$16 sps:$4 sm:$0xff]  }
 0x1e4   :  { %v6678_v21 = vld [vmem:[#allocation10 + $0x668] ss:$16 sps:$4 sm:$0xff]   ;;  %v6683_v5 = vld [vmem:[#allocation10 + $0x684] ss:$16 sps:$4 sm:$0xff]   ;;  %v6681_v25 = vld [vmem:[#allocation10 + $0x680] ss:$16 sps:$4 sm:$0xff]  }
 0x1e5   :  { %4600 = vmatpush1.bf16.msra.mxu0 %v6615_v54  ;;  %4944 = vmatpush1.bf16.msra.mxu1 %v6618_v32  ;;  %v6684_v26 = vld [vmem:[#allocation10 + $0x688] ss:$16 sps:$4 sm:$0xff]   ;;  %v6689_v12 = vld [vmem:[#allocation10 + $0x6a4] ss:$16 sps:$4 sm:$0xff]   ;;  %v6692_v27 = vld [vmem:[#allocation10 + $0x6ac] ss:$16 sps:$4 sm:$0xff]  }
 0x1e6   :  { %4601 = vmatprep.subr.bf16.mxu0 %v6623_v34  ;;  %4945 = vmatprep.subr.bf16.mxu1 %v6626_v35  ;;  %v6687_v29 = vld [vmem:[#allocation10 + $0x6a0] ss:$16 sps:$4 sm:$0xff]   ;;  %v6690_v31 = vld [vmem:[#allocation10 + $0x6a8] ss:$16 sps:$4 sm:$0xff]   ;;  %v6695_v54 = vld [vmem:[#allocation10 + $0x6c4] ss:$16 sps:$4 sm:$0xff]  }
 0x1e7   :  { %v6698_v32 = vld [vmem:[#allocation10 + $0x6cc] ss:$16 sps:$4 sm:$0xff]   ;;  %v6693_v33 = vld [vmem:[#allocation10 + $0x6c0] ss:$16 sps:$4 sm:$0xff]   ;;  %v6696_v34 = vld [vmem:[#allocation10 + $0x6c8] ss:$16 sps:$4 sm:$0xff]  }
 0x1e8   :  { %v6701_v35 = vld [vmem:[#allocation10 + $0x6e4] ss:$16 sps:$4 sm:$0xff]  }
 0x1e9   :  { %4602 = vmatpush1.bf16.msra.mxu0 %v6621_v23  ;;  %4946 = vmatpush1.bf16.msra.mxu1 %v6624_v37  ;;  %v6704_v23 = vld [vmem:[#allocation10 + $0x6ec] ss:$16 sps:$4 sm:$0xff]   ;;  %v6699_v37 = vld [vmem:[#allocation10 + $0x6e0] ss:$16 sps:$4 sm:$0xff]  }
 0x1ea   :  { %4603 = vmatprep.subr.bf16.mxu0 %v6629_v24  ;;  %4947 = vmatprep.subr.bf16.mxu1 %v6632_v38  ;;  %v6702_v24 = vld [vmem:[#allocation10 + $0x6e8] ss:$16 sps:$4 sm:$0xff]   ;;  %v6707_v38 = vld [vmem:[#allocation10 + $0x704] ss:$16 sps:$4 sm:$0xff]  }
 0x1ed   :  { %4604 = vmatpush1.bf16.msra.mxu0 %v6627_v39  ;;  %4948 = vmatpush1.bf16.msra.mxu1 %v6630_v40  ;;  %v6710_v39 = vld [vmem:[#allocation10 + $0x70c] ss:$16 sps:$4 sm:$0xff]   ;;  %v6705_v40 = vld [vmem:[#allocation10 + $0x700] ss:$16 sps:$4 sm:$0xff]  }
 0x1ee   :  { %4605 = vmatprep.subr.bf16.mxu0 %v6635_v41  ;;  %4949 = vmatprep.subr.bf16.mxu1 %v6638_v42  ;;  %v6708_v41 = vld [vmem:[#allocation10 + $0x708] ss:$16 sps:$4 sm:$0xff]   ;;  %v6713_v42 = vld [vmem:[#allocation10 + $0x724] ss:$16 sps:$4 sm:$0xff]  }
 0x1f1   :  { %4606 = vmatpush1.bf16.msra.mxu0 %v6633_v43  ;;  %4950 = vmatpush1.bf16.msra.mxu1 %v6636_v44  ;;  %v6716_v43 = vld [vmem:[#allocation10 + $0x72c] ss:$16 sps:$4 sm:$0xff]   ;;  %v6711_v44 = vld [vmem:[#allocation10 + $0x720] ss:$16 sps:$4 sm:$0xff]  }
 0x1f2   :  { %4607 = vmatprep.subr.bf16.mxu0 %v6641_v45  ;;  %4951 = vmatprep.subr.bf16.mxu1 %v6644_v46  ;;  %v6714_v45 = vld [vmem:[#allocation10 + $0x728] ss:$16 sps:$4 sm:$0xff]   ;;  %v6719_v46 = vld [vmem:[#allocation10 + $0x744] ss:$16 sps:$4 sm:$0xff]  }
 0x1f5   :  { %4608 = vmatpush1.bf16.msra.mxu0 %v6639_v47  ;;  %4952 = vmatpush1.bf16.msra.mxu1 %v6642_v0  ;;  %v6722_v47 = vld [vmem:[#allocation10 + $0x74c] ss:$16 sps:$4 sm:$0xff]   ;;  %v6717_v0 = vld [vmem:[#allocation10 + $0x740] ss:$16 sps:$4 sm:$0xff]  }
 0x1f6   :  { %4609 = vmatprep.subr.bf16.mxu0 %v6647_v48  ;;  %4953 = vmatprep.subr.bf16.mxu1 %v6650_v50  ;;  %v6720_v48 = vld [vmem:[#allocation10 + $0x748] ss:$16 sps:$4 sm:$0xff]   ;;  %v6725_v50 = vld [vmem:[#allocation10 + $0x764] ss:$16 sps:$4 sm:$0xff]  }
 0x1f9   :  { %4610 = vmatpush1.bf16.msra.mxu0 %v6645_v51  ;;  %4954 = vmatpush1.bf16.msra.mxu1 %v6648_v53  ;;  %v6728_v51 = vld [vmem:[#allocation10 + $0x76c] ss:$16 sps:$4 sm:$0xff]   ;;  %v6723_v53 = vld [vmem:[#allocation10 + $0x760] ss:$16 sps:$4 sm:$0xff]  }
 0x1fa   :  { %4611 = vmatprep.subr.bf16.mxu0 %v6653_v55  ;;  %4955 = vmatprep.subr.bf16.mxu1 %v6656_v13  ;;  %v6726_v55 = vld [vmem:[#allocation10 + $0x768] ss:$16 sps:$4 sm:$0xff]   ;;  %v6731_v13 = vld [vmem:[#allocation10 + $0x784] ss:$16 sps:$4 sm:$0xff]  }
 0x1fd   :  { %4612 = vmatpush1.bf16.msra.mxu0 %v6651_v56  ;;  %4956 = vmatpush1.bf16.msra.mxu1 %v6654_v57  ;;  %v6734_v56 = vld [vmem:[#allocation10 + $0x78c] ss:$16 sps:$4 sm:$0xff]   ;;  %v6729_v57 = vld [vmem:[#allocation10 + $0x780] ss:$16 sps:$4 sm:$0xff]  }
 0x1fe   :  { %4624 = vmatprep.subr.bf16.mxu0 %v6659_v58  ;;  %4968 = vmatprep.subr.bf16.mxu1 %v6662_v59  ;;  %v6732_v58 = vld [vmem:[#allocation10 + $0x788] ss:$16 sps:$4 sm:$0xff]   ;;  %v6737_v59 = vld [vmem:[#allocation10 + $0x7a4] ss:$16 sps:$4 sm:$0xff]  }
 0x200   :  { %4614 = vmatmul.mubr.bf16.vlgmr.msra.gmra.mrb[16].mxu0 %v7566_v49  ;;  %4958 = vmatmul.mubr.bf16.vlgmr.msra.gmra.mrb[16].mxu1 %v7566_v49  ;;  %v6680_v49 = vld [vmem:[#allocation10 + $0x66c] ss:$16 sps:$4 sm:$0xff]  }
 0x201   :  { %4625 = vmatpush1.bf16.msra.mxu0 %v6657_v60  ;;  %4656 = vmatprep.mubr.bf16.mxu0 %v7572_v10  ;;  %v6740_v60 = vld [vmem:[#allocation10 + $0x7ac] ss:$16 sps:$4 sm:$0xff]  }
 0x202   :  { %4969 = vmatpush1.bf16.msra.mxu1 %v6660_v61  ;;  %5000 = vmatprep.mubr.bf16.mxu1 %v7572_v10  ;;  %v6686_v10 = vld [vmem:[#allocation10 + $0x68c] ss:$16 sps:$4 sm:$0xff]   ;;  %v6735_v61 = vld [vmem:[#allocation10 + $0x7a0] ss:$16 sps:$4 sm:$0xff]  }
 0x203   :  { %4626 = vmatprep.subr.bf16.mxu0 %v6665_v62  ;;  %4970 = vmatprep.subr.bf16.mxu1 %v6668_v1  ;;  %v6738_v62 = vld [vmem:[#allocation10 + $0x7a8] ss:$16 sps:$4 sm:$0xff]   ;;  %v6743_v1 = vld [vmem:[#allocation10 + $0x7c4] ss:$16 sps:$4 sm:$0xff]  }
 0x205   :  { %4627 = vmatpush1.bf16.msra.mxu0 %v6663_v2  ;;  %v6746_v2 = vld [vmem:[#allocation10 + $0x7cc] ss:$16 sps:$4 sm:$0xff]  }
 0x206   :  { %4971 = vmatpush1.bf16.msra.mxu1 %v6666_v7  ;;  %4628 = vmatprep.subr.bf16.mxu0 %v6671_v8  ;;  %v6741_v7 = vld [vmem:[#allocation10 + $0x7c0] ss:$16 sps:$4 sm:$0xff]   ;;  %v6744_v8 = vld [vmem:[#allocation10 + $0x7c8] ss:$16 sps:$4 sm:$0xff]  }
 0x207   :  { %4972 = vmatprep.subr.bf16.mxu1 %v6674_v11  ;;  %v6749_v11 = vld [vmem:[#allocation10 + $0x7e4] ss:$16 sps:$4 sm:$0xff]  }
 0x209   :  { %4629 = vmatpush1.bf16.msra.mxu0 %v6669_v9  ;;  %v6752_v9 = vld [vmem:[#allocation10 + $0x7ec] ss:$16 sps:$4 sm:$0xff]  }
 0x20a   :  { %4973 = vmatpush1.bf16.msra.mxu1 %v6672_v16  ;;  %4630 = vmatprep.subr.bf16.mxu0 %v6677_v22  ;;  %v6747_v16 = vld [vmem:[#allocation10 + $0x7e0] ss:$16 sps:$4 sm:$0xff]   ;;  %v6750_v22 = vld [vmem:[#allocation10 + $0x7e8] ss:$16 sps:$4 sm:$0xff]  }
 0x20b   :  { %4974 = vmatprep.subr.bf16.mxu1 %v6680_v49  ;;  %v6755_v49 = vld [vmem:[#allocation10 + $0x804] ss:$16 sps:$4 sm:$0xff]  }
 0x20d   :  { %4631 = vmatpush1.bf16.msra.mxu0 %v6675_v19  ;;  %v6758_v19 = vld [vmem:[#allocation10 + $0x80c] ss:$16 sps:$4 sm:$0xff]  }
 0x20e   :  { %4975 = vmatpush1.bf16.msra.mxu1 %v6678_v21  ;;  %4632 = vmatprep.subr.bf16.mxu0 %v6683_v5  ;;  %v6753_v21 = vld [vmem:[#allocation10 + $0x800] ss:$16 sps:$4 sm:$0xff]   ;;  %v6756_v5 = vld [vmem:[#allocation10 + $0x808] ss:$16 sps:$4 sm:$0xff]  }
 0x20f   :  { %4976 = vmatprep.subr.bf16.mxu1 %v6686_v10  ;;  %v6761_v10 = vld [vmem:[#allocation10 + $0x824] ss:$16 sps:$4 sm:$0xff]  }
 0x211   :  { %4633 = vmatpush1.bf16.msra.mxu0 %v6681_v25  ;;  %v6764_v25 = vld [vmem:[#allocation10 + $0x82c] ss:$16 sps:$4 sm:$0xff]  }
 0x212   :  { %4977 = vmatpush1.bf16.msra.mxu1 %v6684_v26  ;;  %4634 = vmatprep.subr.bf16.mxu0 %v6689_v12  ;;  %v6759_v26 = vld [vmem:[#allocation10 + $0x820] ss:$16 sps:$4 sm:$0xff]   ;;  %v6762_v12 = vld [vmem:[#allocation10 + $0x828] ss:$16 sps:$4 sm:$0xff]  }
 0x213   :  { %4978 = vmatprep.subr.bf16.mxu1 %v6692_v27  ;;  %v6767_v27 = vld [vmem:[#allocation10 + $0x844] ss:$16 sps:$4 sm:$0xff]  }
 0x215   :  { %4635 = vmatpush1.bf16.msra.mxu0 %v6687_v29  ;;  %v6770_v29 = vld [vmem:[#allocation10 + $0x84c] ss:$16 sps:$4 sm:$0xff]  }
 0x216   :  { %4979 = vmatpush1.bf16.msra.mxu1 %v6690_v31  ;;  %4636 = vmatprep.subr.bf16.mxu0 %v6695_v54  ;;  %v6765_v31 = vld [vmem:[#allocation10 + $0x840] ss:$16 sps:$4 sm:$0xff]   ;;  %v6768_v54 = vld [vmem:[#allocation10 + $0x848] ss:$16 sps:$4 sm:$0xff]  }
 0x217   :  { %4980 = vmatprep.subr.bf16.mxu1 %v6698_v32  ;;  %v6773_v32 = vld [vmem:[#allocation10 + $0x864] ss:$16 sps:$4 sm:$0xff]  }
 0x219   :  { %4637 = vmatpush1.bf16.msra.mxu0 %v6693_v33  ;;  %v6771_v33 = vld [vmem:[#allocation10 + $0x860] ss:$16 sps:$4 sm:$0xff]  }
 0x21a   :  { %4981 = vmatpush1.bf16.msra.mxu1 %v6696_v34  ;;  %4638 = vmatprep.subr.bf16.mxu0 %v6701_v35  ;;  %v6774_v34 = vld [vmem:[#allocation10 + $0x868] ss:$16 sps:$4 sm:$0xff]   ;;  %v6779_v35 = vld [vmem:[#allocation10 + $0x884] ss:$16 sps:$4 sm:$0xff]  }
 0x21b   :  { %4982 = vmatprep.subr.bf16.mxu1 %v6704_v23  ;;  %v6782_v23 = vld [vmem:[#allocation10 + $0x88c] ss:$16 sps:$4 sm:$0xff]  }
 0x21d   :  { %4639 = vmatpush1.bf16.msra.mxu0 %v6699_v37  ;;  %v6780_v37 = vld [vmem:[#allocation10 + $0x888] ss:$16 sps:$4 sm:$0xff]  }
 0x21e   :  { %4983 = vmatpush1.bf16.msra.mxu1 %v6702_v24  ;;  %4640 = vmatprep.subr.bf16.mxu0 %v6707_v38  ;;  %v6785_v24 = vld [vmem:[#allocation10 + $0x8a4] ss:$16 sps:$4 sm:$0xff]   ;;  %v6788_v38 = vld [vmem:[#allocation10 + $0x8ac] ss:$16 sps:$4 sm:$0xff]  }
 0x21f   :  { %4984 = vmatprep.subr.bf16.mxu1 %v6710_v39  ;;  %v6783_v39 = vld [vmem:[#allocation10 + $0x8a0] ss:$16 sps:$4 sm:$0xff]  }
 0x221   :  { %4641 = vmatpush1.bf16.msra.mxu0 %v6705_v40  ;;  %v6786_v40 = vld [vmem:[#allocation10 + $0x8a8] ss:$16 sps:$4 sm:$0xff]  }
 0x222   :  { %4985 = vmatpush1.bf16.msra.mxu1 %v6708_v41  ;;  %4642 = vmatprep.subr.bf16.mxu0 %v6713_v42  ;;  %v6791_v41 = vld [vmem:[#allocation10 + $0x8c4] ss:$16 sps:$4 sm:$0xff]   ;;  %v6794_v42 = vld [vmem:[#allocation10 + $0x8cc] ss:$16 sps:$4 sm:$0xff]  }
 0x223   :  { %4986 = vmatprep.subr.bf16.mxu1 %v6716_v43  ;;  %v6789_v43 = vld [vmem:[#allocation10 + $0x8c0] ss:$16 sps:$4 sm:$0xff]  }
 0x225   :  { %4643 = vmatpush1.bf16.msra.mxu0 %v6711_v44  ;;  %v6792_v44 = vld [vmem:[#allocation10 + $0x8c8] ss:$16 sps:$4 sm:$0xff]  }
 0x226   :  { %4987 = vmatpush1.bf16.msra.mxu1 %v6714_v45  ;;  %4644 = vmatprep.subr.bf16.mxu0 %v6719_v46  ;;  %v6797_v45 = vld [vmem:[#allocation10 + $0x8e4] ss:$16 sps:$4 sm:$0xff]   ;;  %v6800_v46 = vld [vmem:[#allocation10 + $0x8ec] ss:$16 sps:$4 sm:$0xff]  }
 0x227   :  { %4988 = vmatprep.subr.bf16.mxu1 %v6722_v47  ;;  %v6795_v47 = vld [vmem:[#allocation10 + $0x8e0] ss:$16 sps:$4 sm:$0xff]  }
 0x229   :  { %4645 = vmatpush1.bf16.msra.mxu0 %v6717_v0  ;;  %v6798_v0 = vld [vmem:[#allocation10 + $0x8e8] ss:$16 sps:$4 sm:$0xff]  }
 0x22a   :  { %4989 = vmatpush1.bf16.msra.mxu1 %v6720_v48  ;;  %4646 = vmatprep.subr.bf16.mxu0 %v6725_v50  ;;  %v6803_v48 = vld [vmem:[#allocation10 + $0x904] ss:$16 sps:$4 sm:$0xff]   ;;  %v6806_v50 = vld [vmem:[#allocation10 + $0x90c] ss:$16 sps:$4 sm:$0xff]  }
 0x22b   :  { %4990 = vmatprep.subr.bf16.mxu1 %v6728_v51  ;;  %v6801_v51 = vld [vmem:[#allocation10 + $0x900] ss:$16 sps:$4 sm:$0xff]  }
 0x22d   :  { %4647 = vmatpush1.bf16.msra.mxu0 %v6723_v53  ;;  %v6804_v53 = vld [vmem:[#allocation10 + $0x908] ss:$16 sps:$4 sm:$0xff]  }
 0x22e   :  { %4991 = vmatpush1.bf16.msra.mxu1 %v6726_v55  ;;  %4648 = vmatprep.subr.bf16.mxu0 %v6731_v13  ;;  %v6809_v55 = vld [vmem:[#allocation10 + $0x924] ss:$16 sps:$4 sm:$0xff]   ;;  %v6812_v13 = vld [vmem:[#allocation10 + $0x92c] ss:$16 sps:$4 sm:$0xff]  }
 0x22f   :  { %4992 = vmatprep.subr.bf16.mxu1 %v6734_v56  ;;  %v6807_v56 = vld [vmem:[#allocation10 + $0x920] ss:$16 sps:$4 sm:$0xff]  }
 0x231   :  { %4649 = vmatpush1.bf16.msra.mxu0 %v6729_v57  ;;  %v6810_v57 = vld [vmem:[#allocation10 + $0x928] ss:$16 sps:$4 sm:$0xff]  }
 0x232   :  { %4993 = vmatpush1.bf16.msra.mxu1 %v6732_v58  ;;  %4650 = vmatprep.subr.bf16.mxu0 %v6737_v59  ;;  %v6815_v58 = vld [vmem:[#allocation10 + $0x944] ss:$16 sps:$4 sm:$0xff]   ;;  %v6818_v59 = vld [vmem:[#allocation10 + $0x94c] ss:$16 sps:$4 sm:$0xff]  }
 0x233   :  { %4994 = vmatprep.subr.bf16.mxu1 %v6740_v60  ;;  %v6813_v60 = vld [vmem:[#allocation10 + $0x940] ss:$16 sps:$4 sm:$0xff]  }
 0x235   :  { %4651 = vmatpush1.bf16.msra.mxu0 %v6735_v61  ;;  %v6816_v61 = vld [vmem:[#allocation10 + $0x948] ss:$16 sps:$4 sm:$0xff]  }
 0x236   :  { %4995 = vmatpush1.bf16.msra.mxu1 %v6738_v62  ;;  %4652 = vmatprep.subr.bf16.mxu0 %v6743_v1  ;;  %v6821_v62 = vld [vmem:[#allocation10 + $0x964] ss:$16 sps:$4 sm:$0xff]   ;;  %v6824_v1 = vld [vmem:[#allocation10 + $0x96c] ss:$16 sps:$4 sm:$0xff]  }
 0x237   :  { %4996 = vmatprep.subr.bf16.mxu1 %v6746_v2  ;;  %v6819_v2 = vld [vmem:[#allocation10 + $0x960] ss:$16 sps:$4 sm:$0xff]  }
 0x239   :  { %4653 = vmatpush1.bf16.msra.mxu0 %v6741_v7  ;;  %v6822_v7 = vld [vmem:[#allocation10 + $0x968] ss:$16 sps:$4 sm:$0xff]  }
 0x23a   :  { %4997 = vmatpush1.bf16.msra.mxu1 %v6744_v8  ;;  %4654 = vmatprep.subr.bf16.mxu0 %v6749_v11  ;;  %v6827_v8 = vld [vmem:[#allocation10 + $0x984] ss:$16 sps:$4 sm:$0xff]   ;;  %v6830_v11 = vld [vmem:[#allocation10 + $0x98c] ss:$16 sps:$4 sm:$0xff]  }
 0x23b   :  { %4998 = vmatprep.subr.bf16.mxu1 %v6752_v9  ;;  %v6825_v9 = vld [vmem:[#allocation10 + $0x980] ss:$16 sps:$4 sm:$0xff]  }
 0x23d   :  { %4655 = vmatpush1.bf16.msra.mxu0 %v6747_v16  ;;  %v6828_v16 = vld [vmem:[#allocation10 + $0x988] ss:$16 sps:$4 sm:$0xff]  }
 0x23e   :  { %4999 = vmatpush1.bf16.msra.mxu1 %v6750_v22  ;;  %4667 = vmatprep.subr.bf16.mxu0 %v6755_v49  ;;  %v6833_v22 = vld [vmem:[#allocation10 + $0x9a4] ss:$16 sps:$4 sm:$0xff]   ;;  %v6836_v49 = vld [vmem:[#allocation10 + $0x9ac] ss:$16 sps:$4 sm:$0xff]  }
 0x23f   :  { %5011 = vmatprep.subr.bf16.mxu1 %v6758_v19  ;;  %v6831_v19 = vld [vmem:[#allocation10 + $0x9a0] ss:$16 sps:$4 sm:$0xff]  }
 0x240   :  { %4657 = vmatmul.mubr.bf16.vlgmr.msra.gmra.mrb[16].mxu0 %v7570_v6 }
 0x241   :  { %5001 = vmatmul.mubr.bf16.vlgmr.msra.gmra.mrb[16].mxu1 %v7570_v6  ;;  %4668 = vmatpush1.bf16.msra.mxu0 %v6753_v21  ;;  %v6776_v6 = vld [vmem:[#allocation10 + $0x86c] ss:$16 sps:$4 sm:$0xff]   ;;  %v6834_v21 = vld [vmem:[#allocation10 + $0x9a8] ss:$16 sps:$4 sm:$0xff]  }
 0x242   :  { %4699 = vmatprep.mubr.bf16.mxu0 %v7584_v3  ;;  %5012 = vmatpush1.bf16.msra.mxu1 %v6756_v5  ;;  %v6839_v5 = vld [vmem:[#allocation10 + $0x9c4] ss:$16 sps:$4 sm:$0xff]  }
 0x243   :  { %5043 = vmatprep.mubr.bf16.mxu1 %v7584_v3  ;;  %4669 = vmatprep.subr.bf16.mxu0 %v6761_v10  ;;  %v6777_v3 = vld [vmem:[#allocation10 + $0x880] ss:$16 sps:$4 sm:$0xff]   ;;  %v6842_v10 = vld [vmem:[#allocation10 + $0x9cc] ss:$16 sps:$4 sm:$0xff]  }
 0x244   :  { %5013 = vmatprep.subr.bf16.mxu1 %v6764_v25  ;;  %v6837_v25 = vld [vmem:[#allocation10 + $0x9c0] ss:$16 sps:$4 sm:$0xff]  }
 0x245   :  { %4670 = vmatpush1.bf16.msra.mxu0 %v6759_v26  ;;  %v6840_v26 = vld [vmem:[#allocation10 + $0x9c8] ss:$16 sps:$4 sm:$0xff]  }
 0x246   :  { %5014 = vmatpush1.bf16.msra.mxu1 %v6762_v12  ;;  %4671 = vmatprep.subr.bf16.mxu0 %v6767_v27  ;;  %v6845_v12 = vld [vmem:[#allocation10 + $0x9e4] ss:$16 sps:$4 sm:$0xff]   ;;  %v6848_v27 = vld [vmem:[#allocation10 + $0x9ec] ss:$16 sps:$4 sm:$0xff]  }
 0x247   :  { %5015 = vmatprep.subr.bf16.mxu1 %v6770_v29  ;;  %v6843_v29 = vld [vmem:[#allocation10 + $0x9e0] ss:$16 sps:$4 sm:$0xff]  }
 0x249   :  { %4672 = vmatpush1.bf16.msra.mxu0 %v6765_v31  ;;  %v6846_v31 = vld [vmem:[#allocation10 + $0x9e8] ss:$16 sps:$4 sm:$0xff]  }
 0x24a   :  { %5016 = vmatpush1.bf16.msra.mxu1 %v6768_v54  ;;  %4673 = vmatprep.subr.bf16.mxu0 %v6773_v32  ;;  %v6851_v54 = vld [vmem:[#allocation10 + $0xa04] ss:$16 sps:$4 sm:$0xff]   ;;  %v6854_v32 = vld [vmem:[#allocation10 + $0xa0c] ss:$16 sps:$4 sm:$0xff]  }
 0x24b   :  { %5017 = vmatprep.subr.bf16.mxu1 %v6776_v6  ;;  %v6849_v6 = vld [vmem:[#allocation10 + $0xa00] ss:$16 sps:$4 sm:$0xff]  }
 0x24d   :  { %4674 = vmatpush1.bf16.msra.mxu0 %v6771_v33  ;;  %v6852_v33 = vld [vmem:[#allocation10 + $0xa08] ss:$16 sps:$4 sm:$0xff]  }
 0x24e   :  { %5018 = vmatpush1.bf16.msra.mxu1 %v6774_v34  ;;  %4675 = vmatprep.subr.bf16.mxu0 %v6779_v35  ;;  %v6857_v34 = vld [vmem:[#allocation10 + $0xa24] ss:$16 sps:$4 sm:$0xff]   ;;  %v6860_v35 = vld [vmem:[#allocation10 + $0xa2c] ss:$16 sps:$4 sm:$0xff]  }
 0x24f   :  { %5019 = vmatprep.subr.bf16.mxu1 %v6782_v23  ;;  %v6855_v23 = vld [vmem:[#allocation10 + $0xa20] ss:$16 sps:$4 sm:$0xff]  }
 0x251   :  { %4676 = vmatpush1.bf16.msra.mxu0 %v6777_v3  ;;  %v6858_v3 = vld [vmem:[#allocation10 + $0xa28] ss:$16 sps:$4 sm:$0xff]  }
 0x252   :  { %5020 = vmatpush1.bf16.msra.mxu1 %v6780_v37  ;;  %4677 = vmatprep.subr.bf16.mxu0 %v6785_v24  ;;  %v6863_v37 = vld [vmem:[#allocation10 + $0xa44] ss:$16 sps:$4 sm:$0xff]   ;;  %v6866_v24 = vld [vmem:[#allocation10 + $0xa4c] ss:$16 sps:$4 sm:$0xff]  }
 0x253   :  { %5021 = vmatprep.subr.bf16.mxu1 %v6788_v38  ;;  %v6861_v38 = vld [vmem:[#allocation10 + $0xa40] ss:$16 sps:$4 sm:$0xff]  }
 0x255   :  { %4678 = vmatpush1.bf16.msra.mxu0 %v6783_v39  ;;  %v6864_v39 = vld [vmem:[#allocation10 + $0xa48] ss:$16 sps:$4 sm:$0xff]  }
 0x256   :  { %5022 = vmatpush1.bf16.msra.mxu1 %v6786_v40  ;;  %4679 = vmatprep.subr.bf16.mxu0 %v6791_v41  ;;  %v6869_v40 = vld [vmem:[#allocation10 + $0xa64] ss:$16 sps:$4 sm:$0xff]   ;;  %v6867_v41 = vld [vmem:[#allocation10 + $0xa60] ss:$16 sps:$4 sm:$0xff]  }
 0x257   :  { %5023 = vmatprep.subr.bf16.mxu1 %v6794_v42  ;;  %v6870_v42 = vld [vmem:[#allocation10 + $0xa68] ss:$16 sps:$4 sm:$0xff]  }
 0x259   :  { %4680 = vmatpush1.bf16.msra.mxu0 %v6789_v43  ;;  %v6875_v43 = vld [vmem:[#allocation10 + $0xa84] ss:$16 sps:$4 sm:$0xff]  }
 0x25a   :  { %5024 = vmatpush1.bf16.msra.mxu1 %v6792_v44  ;;  %4681 = vmatprep.subr.bf16.mxu0 %v6797_v45  ;;  %v6878_v44 = vld [vmem:[#allocation10 + $0xa8c] ss:$16 sps:$4 sm:$0xff]   ;;  %v6876_v45 = vld [vmem:[#allocation10 + $0xa88] ss:$16 sps:$4 sm:$0xff]  }
 0x25b   :  { %5025 = vmatprep.subr.bf16.mxu1 %v6800_v46  ;;  %v6881_v46 = vld [vmem:[#allocation10 + $0xaa4] ss:$16 sps:$4 sm:$0xff]  }
 0x25d   :  { %4682 = vmatpush1.bf16.msra.mxu0 %v6795_v47  ;;  %v6884_v47 = vld [vmem:[#allocation10 + $0xaac] ss:$16 sps:$4 sm:$0xff]  }
 0x25e   :  { %5026 = vmatpush1.bf16.msra.mxu1 %v6798_v0  ;;  %4683 = vmatprep.subr.bf16.mxu0 %v6803_v48  ;;  %v6879_v0 = vld [vmem:[#allocation10 + $0xaa0] ss:$16 sps:$4 sm:$0xff]   ;;  %v6882_v48 = vld [vmem:[#allocation10 + $0xaa8] ss:$16 sps:$4 sm:$0xff]  }
 0x25f   :  { %5027 = vmatprep.subr.bf16.mxu1 %v6806_v50  ;;  %v6887_v50 = vld [vmem:[#allocation10 + $0xac4] ss:$16 sps:$4 sm:$0xff]  }
 0x261   :  { %4684 = vmatpush1.bf16.msra.mxu0 %v6801_v51  ;;  %v6890_v51 = vld [vmem:[#allocation10 + $0xacc] ss:$16 sps:$4 sm:$0xff]  }
 0x262   :  { %5028 = vmatpush1.bf16.msra.mxu1 %v6804_v53  ;;  %4685 = vmatprep.subr.bf16.mxu0 %v6809_v55  ;;  %v6885_v53 = vld [vmem:[#allocation10 + $0xac0] ss:$16 sps:$4 sm:$0xff]   ;;  %v6888_v55 = vld [vmem:[#allocation10 + $0xac8] ss:$16 sps:$4 sm:$0xff]  }
 0x263   :  { %5029 = vmatprep.subr.bf16.mxu1 %v6812_v13  ;;  %v6893_v13 = vld [vmem:[#allocation10 + $0xae4] ss:$16 sps:$4 sm:$0xff]  }
 0x265   :  { %4686 = vmatpush1.bf16.msra.mxu0 %v6807_v56  ;;  %v6896_v56 = vld [vmem:[#allocation10 + $0xaec] ss:$16 sps:$4 sm:$0xff]  }
 0x266   :  { %5030 = vmatpush1.bf16.msra.mxu1 %v6810_v57  ;;  %4687 = vmatprep.subr.bf16.mxu0 %v6815_v58  ;;  %v6891_v57 = vld [vmem:[#allocation10 + $0xae0] ss:$16 sps:$4 sm:$0xff]   ;;  %v6894_v58 = vld [vmem:[#allocation10 + $0xae8] ss:$16 sps:$4 sm:$0xff]  }
 0x267   :  { %5031 = vmatprep.subr.bf16.mxu1 %v6818_v59  ;;  %v6899_v59 = vld [vmem:[#allocation10 + $0xb04] ss:$16 sps:$4 sm:$0xff]  }
 0x269   :  { %4688 = vmatpush1.bf16.msra.mxu0 %v6813_v60  ;;  %v6902_v60 = vld [vmem:[#allocation10 + $0xb0c] ss:$16 sps:$4 sm:$0xff]  }
 0x26a   :  { %5032 = vmatpush1.bf16.msra.mxu1 %v6816_v61  ;;  %4689 = vmatprep.subr.bf16.mxu0 %v6821_v62  ;;  %v6897_v61 = vld [vmem:[#allocation10 + $0xb00] ss:$16 sps:$4 sm:$0xff]   ;;  %v6900_v62 = vld [vmem:[#allocation10 + $0xb08] ss:$16 sps:$4 sm:$0xff]  }
 0x26b   :  { %5033 = vmatprep.subr.bf16.mxu1 %v6824_v1  ;;  %v6905_v1 = vld [vmem:[#allocation10 + $0xb24] ss:$16 sps:$4 sm:$0xff]  }
 0x26d   :  { %4690 = vmatpush1.bf16.msra.mxu0 %v6819_v2  ;;  %v6908_v2 = vld [vmem:[#allocation10 + $0xb2c] ss:$16 sps:$4 sm:$0xff]  }
 0x26e   :  { %5034 = vmatpush1.bf16.msra.mxu1 %v6822_v7  ;;  %4691 = vmatprep.subr.bf16.mxu0 %v6827_v8  ;;  %v6903_v7 = vld [vmem:[#allocation10 + $0xb20] ss:$16 sps:$4 sm:$0xff]   ;;  %v6906_v8 = vld [vmem:[#allocation10 + $0xb28] ss:$16 sps:$4 sm:$0xff]  }
 0x26f   :  { %5035 = vmatprep.subr.bf16.mxu1 %v6830_v11  ;;  %v6911_v11 = vld [vmem:[#allocation10 + $0xb44] ss:$16 sps:$4 sm:$0xff]  }
 0x271   :  { %4692 = vmatpush1.bf16.msra.mxu0 %v6825_v9  ;;  %v6914_v9 = vld [vmem:[#allocation10 + $0xb4c] ss:$16 sps:$4 sm:$0xff]  }
 0x272   :  { %5036 = vmatpush1.bf16.msra.mxu1 %v6828_v16  ;;  %4693 = vmatprep.subr.bf16.mxu0 %v6833_v22  ;;  %v6909_v16 = vld [vmem:[#allocation10 + $0xb40] ss:$16 sps:$4 sm:$0xff]   ;;  %v6912_v22 = vld [vmem:[#allocation10 + $0xb48] ss:$16 sps:$4 sm:$0xff]  }
 0x273   :  { %5037 = vmatprep.subr.bf16.mxu1 %v6836_v49  ;;  %v6917_v49 = vld [vmem:[#allocation10 + $0xb64] ss:$16 sps:$4 sm:$0xff]  }
 0x275   :  { %4694 = vmatpush1.bf16.msra.mxu0 %v6831_v19  ;;  %v6920_v19 = vld [vmem:[#allocation10 + $0xb6c] ss:$16 sps:$4 sm:$0xff]  }
 0x276   :  { %5038 = vmatpush1.bf16.msra.mxu1 %v6834_v21  ;;  %4695 = vmatprep.subr.bf16.mxu0 %v6839_v5  ;;  %v6915_v21 = vld [vmem:[#allocation10 + $0xb60] ss:$16 sps:$4 sm:$0xff]   ;;  %v6918_v5 = vld [vmem:[#allocation10 + $0xb68] ss:$16 sps:$4 sm:$0xff]  }
 0x277   :  { %5039 = vmatprep.subr.bf16.mxu1 %v6842_v10  ;;  %v6923_v10 = vld [vmem:[#allocation10 + $0xb84] ss:$16 sps:$4 sm:$0xff]  }
 0x279   :  { %4696 = vmatpush1.bf16.msra.mxu0 %v6837_v25  ;;  %v6926_v25 = vld [vmem:[#allocation10 + $0xb8c] ss:$16 sps:$4 sm:$0xff]  }
 0x27a   :  { %5040 = vmatpush1.bf16.msra.mxu1 %v6840_v26  ;;  %4697 = vmatprep.subr.bf16.mxu0 %v6845_v12  ;;  %v6921_v26 = vld [vmem:[#allocation10 + $0xb80] ss:$16 sps:$4 sm:$0xff]   ;;  %v6924_v12 = vld [vmem:[#allocation10 + $0xb88] ss:$16 sps:$4 sm:$0xff]  }
 0x27b   :  { %5041 = vmatprep.subr.bf16.mxu1 %v6848_v27  ;;  %v6929_v27 = vld [vmem:[#allocation10 + $0xba4] ss:$16 sps:$4 sm:$0xff]  }
 0x27d   :  { %4698 = vmatpush1.bf16.msra.mxu0 %v6843_v29  ;;  %v6932_v29 = vld [vmem:[#allocation10 + $0xbac] ss:$16 sps:$4 sm:$0xff]  }
 0x27e   :  { %5042 = vmatpush1.bf16.msra.mxu1 %v6846_v31  ;;  %4710 = vmatprep.subr.bf16.mxu0 %v6851_v54  ;;  %v6927_v31 = vld [vmem:[#allocation10 + $0xba0] ss:$16 sps:$4 sm:$0xff]   ;;  %v6930_v54 = vld [vmem:[#allocation10 + $0xba8] ss:$16 sps:$4 sm:$0xff]  }
 0x27f   :  { %5054 = vmatprep.subr.bf16.mxu1 %v6854_v32  ;;  %v6935_v32 = vld [vmem:[#allocation10 + $0xbc4] ss:$16 sps:$4 sm:$0xff]  }
 0x280   :  { %4700 = vmatmul.mubr.bf16.vlgmr.msra.gmra.mrb[16].mxu0 %v7582_v63 }
 0x281   :  { %5044 = vmatmul.mubr.bf16.vlgmr.msra.gmra.mrb[16].mxu1 %v7582_v63  ;;  %4711 = vmatpush1.bf16.msra.mxu0 %v6849_v6  ;;  %v6872_v63 = vld [vmem:[#allocation10 + $0xa6c] ss:$16 sps:$4 sm:$0xff]  }
 0x282   :  { %4742 = vmatprep.mubr.bf16.mxu0 %v7592_v30  ;;  %5055 = vmatpush1.bf16.msra.mxu1 %v6852_v33  ;;  %v6938_v6 = vld [vmem:[#allocation10 + $0xbcc] ss:$16 sps:$4 sm:$0xff]   ;;  %v6933_v33 = vld [vmem:[#allocation10 + $0xbc0] ss:$16 sps:$4 sm:$0xff]  }
 0x283   :  { %5086 = vmatprep.mubr.bf16.mxu1 %v7592_v30  ;;  %4712 = vmatprep.subr.bf16.mxu0 %v6857_v34  ;;  %v6873_v30 = vld [vmem:[#allocation10 + $0xa80] ss:$16 sps:$4 sm:$0xff]   ;;  %v6936_v34 = vld [vmem:[#allocation10 + $0xbc8] ss:$16 sps:$4 sm:$0xff]  }
 0x284   :  { %5056 = vmatprep.subr.bf16.mxu1 %v6860_v35  ;;  %v6941_v35 = vld [vmem:[#allocation10 + $0xbe4] ss:$16 sps:$4 sm:$0xff]  }
 0x285   :  { %4713 = vmatpush1.bf16.msra.mxu0 %v6855_v23  ;;  %v6944_v23 = vld [vmem:[#allocation10 + $0xbec] ss:$16 sps:$4 sm:$0xff]  }
 0x286   :  { %5057 = vmatpush1.bf16.msra.mxu1 %v6858_v3  ;;  %4714 = vmatprep.subr.bf16.mxu0 %v6863_v37  ;;  %v6939_v3 = vld [vmem:[#allocation10 + $0xbe0] ss:$16 sps:$4 sm:$0xff]   ;;  %v6942_v37 = vld [vmem:[#allocation10 + $0xbe8] ss:$16 sps:$4 sm:$0xff]  }
 0x287   :  { %5058 = vmatprep.subr.bf16.mxu1 %v6866_v24  ;;  %v6947_v24 = vld [vmem:[#allocation10 + $0xc04] ss:$16 sps:$4 sm:$0xff]  }
 0x289   :  { %4715 = vmatpush1.bf16.msra.mxu0 %v6861_v38  ;;  %v6950_v38 = vld [vmem:[#allocation10 + $0xc0c] ss:$16 sps:$4 sm:$0xff]  }
 0x28a   :  { %5059 = vmatpush1.bf16.msra.mxu1 %v6864_v39  ;;  %4716 = vmatprep.subr.bf16.mxu0 %v6869_v40  ;;  %v6945_v39 = vld [vmem:[#allocation10 + $0xc00] ss:$16 sps:$4 sm:$0xff]   ;;  %v6948_v40 = vld [vmem:[#allocation10 + $0xc08] ss:$16 sps:$4 sm:$0xff]  }
 0x28b   :  { %5060 = vmatprep.subr.bf16.mxu1 %v6872_v63  ;;  %v6953_v63 = vld [vmem:[#allocation10 + $0xc24] ss:$16 sps:$4 sm:$0xff]  }
 0x28d   :  { %4717 = vmatpush1.bf16.msra.mxu0 %v6867_v41  ;;  %v6956_v41 = vld [vmem:[#allocation10 + $0xc2c] ss:$16 sps:$4 sm:$0xff]  }
 0x28e   :  { %5061 = vmatpush1.bf16.msra.mxu1 %v6870_v42  ;;  %4718 = vmatprep.subr.bf16.mxu0 %v6875_v43  ;;  %v6951_v42 = vld [vmem:[#allocation10 + $0xc20] ss:$16 sps:$4 sm:$0xff]   ;;  %v6954_v43 = vld [vmem:[#allocation10 + $0xc28] ss:$16 sps:$4 sm:$0xff]  }
 0x28f   :  { %5062 = vmatprep.subr.bf16.mxu1 %v6878_v44  ;;  %v6959_v44 = vld [vmem:[#allocation10 + $0xc44] ss:$16 sps:$4 sm:$0xff]  }
 0x291   :  { %4719 = vmatpush1.bf16.msra.mxu0 %v6873_v30  ;;  %v6962_v30 = vld [vmem:[#allocation10 + $0xc4c] ss:$16 sps:$4 sm:$0xff]  }
 0x292   :  { %5063 = vmatpush1.bf16.msra.mxu1 %v6876_v45  ;;  %4720 = vmatprep.subr.bf16.mxu0 %v6881_v46  ;;  %v6957_v45 = vld [vmem:[#allocation10 + $0xc40] ss:$16 sps:$4 sm:$0xff]   ;;  %v6960_v46 = vld [vmem:[#allocation10 + $0xc48] ss:$16 sps:$4 sm:$0xff]  }
 0x293   :  { %5064 = vmatprep.subr.bf16.mxu1 %v6884_v47  ;;  %v6965_v47 = vld [vmem:[#allocation10 + $0xc64] ss:$16 sps:$4 sm:$0xff]  }
 0x295   :  { %4721 = vmatpush1.bf16.msra.mxu0 %v6879_v0  ;;  %v6963_v0 = vld [vmem:[#allocation10 + $0xc60] ss:$16 sps:$4 sm:$0xff]  }
 0x296   :  { %5065 = vmatpush1.bf16.msra.mxu1 %v6882_v48  ;;  %4722 = vmatprep.subr.bf16.mxu0 %v6887_v50  ;;  %v6966_v48 = vld [vmem:[#allocation10 + $0xc68] ss:$16 sps:$4 sm:$0xff]   ;;  %v6971_v50 = vld [vmem:[#allocation10 + $0xc84] ss:$16 sps:$4 sm:$0xff]  }
 0x297   :  { %5066 = vmatprep.subr.bf16.mxu1 %v6890_v51  ;;  %v6974_v51 = vld [vmem:[#allocation10 + $0xc8c] ss:$16 sps:$4 sm:$0xff]  }
 0x299   :  { %4723 = vmatpush1.bf16.msra.mxu0 %v6885_v53  ;;  %v6972_v53 = vld [vmem:[#allocation10 + $0xc88] ss:$16 sps:$4 sm:$0xff]  }
 0x29a   :  { %5067 = vmatpush1.bf16.msra.mxu1 %v6888_v55  ;;  %4724 = vmatprep.subr.bf16.mxu0 %v6893_v13  ;;  %v6977_v55 = vld [vmem:[#allocation10 + $0xca4] ss:$16 sps:$4 sm:$0xff]   ;;  %v6980_v13 = vld [vmem:[#allocation10 + $0xcac] ss:$16 sps:$4 sm:$0xff]  }
 0x29b   :  { %5068 = vmatprep.subr.bf16.mxu1 %v6896_v56  ;;  %v6975_v56 = vld [vmem:[#allocation10 + $0xca0] ss:$16 sps:$4 sm:$0xff]  }
 0x29d   :  { %4725 = vmatpush1.bf16.msra.mxu0 %v6891_v57  ;;  %v6978_v57 = vld [vmem:[#allocation10 + $0xca8] ss:$16 sps:$4 sm:$0xff]  }
 0x29e   :  { %5069 = vmatpush1.bf16.msra.mxu1 %v6894_v58  ;;  %4726 = vmatprep.subr.bf16.mxu0 %v6899_v59  ;;  %v6983_v58 = vld [vmem:[#allocation10 + $0xcc4] ss:$16 sps:$4 sm:$0xff]   ;;  %v6986_v59 = vld [vmem:[#allocation10 + $0xccc] ss:$16 sps:$4 sm:$0xff]  }
 0x29f   :  { %5070 = vmatprep.subr.bf16.mxu1 %v6902_v60  ;;  %v6981_v60 = vld [vmem:[#allocation10 + $0xcc0] ss:$16 sps:$4 sm:$0xff]  }
 0x2a1   :  { %4727 = vmatpush1.bf16.msra.mxu0 %v6897_v61  ;;  %v6984_v61 = vld [vmem:[#allocation10 + $0xcc8] ss:$16 sps:$4 sm:$0xff]  }
 0x2a2   :  { %5071 = vmatpush1.bf16.msra.mxu1 %v6900_v62  ;;  %4728 = vmatprep.subr.bf16.mxu0 %v6905_v1  ;;  %v6989_v62 = vld [vmem:[#allocation10 + $0xce4] ss:$16 sps:$4 sm:$0xff]   ;;  %v6992_v1 = vld [vmem:[#allocation10 + $0xcec] ss:$16 sps:$4 sm:$0xff]  }
 0x2a3   :  { %5072 = vmatprep.subr.bf16.mxu1 %v6908_v2  ;;  %v6987_v2 = vld [vmem:[#allocation10 + $0xce0] ss:$16 sps:$4 sm:$0xff]  }
 0x2a5   :  { %4729 = vmatpush1.bf16.msra.mxu0 %v6903_v7  ;;  %v6990_v7 = vld [vmem:[#allocation10 + $0xce8] ss:$16 sps:$4 sm:$0xff]  }
 0x2a6   :  { %5073 = vmatpush1.bf16.msra.mxu1 %v6906_v8  ;;  %4730 = vmatprep.subr.bf16.mxu0 %v6911_v11  ;;  %v6995_v8 = vld [vmem:[#allocation10 + $0xd04] ss:$16 sps:$4 sm:$0xff]   ;;  %v6998_v11 = vld [vmem:[#allocation10 + $0xd0c] ss:$16 sps:$4 sm:$0xff]  }
 0x2a7   :  { %5074 = vmatprep.subr.bf16.mxu1 %v6914_v9  ;;  %v6993_v9 = vld [vmem:[#allocation10 + $0xd00] ss:$16 sps:$4 sm:$0xff]  }
 0x2a9   :  { %4731 = vmatpush1.bf16.msra.mxu0 %v6909_v16  ;;  %v6996_v16 = vld [vmem:[#allocation10 + $0xd08] ss:$16 sps:$4 sm:$0xff]  }
 0x2aa   :  { %5075 = vmatpush1.bf16.msra.mxu1 %v6912_v22  ;;  %4732 = vmatprep.subr.bf16.mxu0 %v6917_v49  ;;  %v7001_v22 = vld [vmem:[#allocation10 + $0xd24] ss:$16 sps:$4 sm:$0xff]   ;;  %v7004_v49 = vld [vmem:[#allocation10 + $0xd2c] ss:$16 sps:$4 sm:$0xff]  }
 0x2ab   :  { %5076 = vmatprep.subr.bf16.mxu1 %v6920_v19  ;;  %v6999_v19 = vld [vmem:[#allocation10 + $0xd20] ss:$16 sps:$4 sm:$0xff]  }
 0x2ad   :  { %4733 = vmatpush1.bf16.msra.mxu0 %v6915_v21  ;;  %v7002_v21 = vld [vmem:[#allocation10 + $0xd28] ss:$16 sps:$4 sm:$0xff]  }
 0x2ae   :  { %5077 = vmatpush1.bf16.msra.mxu1 %v6918_v5  ;;  %4734 = vmatprep.subr.bf16.mxu0 %v6923_v10  ;;  %v7007_v5 = vld [vmem:[#allocation10 + $0xd44] ss:$16 sps:$4 sm:$0xff]   ;;  %v7010_v10 = vld [vmem:[#allocation10 + $0xd4c] ss:$16 sps:$4 sm:$0xff]  }
 0x2af   :  { %5078 = vmatprep.subr.bf16.mxu1 %v6926_v25  ;;  %v7005_v25 = vld [vmem:[#allocation10 + $0xd40] ss:$16 sps:$4 sm:$0xff]  }
 0x2b1   :  { %4735 = vmatpush1.bf16.msra.mxu0 %v6921_v26  ;;  %v7008_v26 = vld [vmem:[#allocation10 + $0xd48] ss:$16 sps:$4 sm:$0xff]  }
 0x2b2   :  { %5079 = vmatpush1.bf16.msra.mxu1 %v6924_v12  ;;  %4736 = vmatprep.subr.bf16.mxu0 %v6929_v27  ;;  %v7013_v12 = vld [vmem:[#allocation10 + $0xd64] ss:$16 sps:$4 sm:$0xff]   ;;  %v7016_v27 = vld [vmem:[#allocation10 + $0xd6c] ss:$16 sps:$4 sm:$0xff]  }
 0x2b3   :  { %5080 = vmatprep.subr.bf16.mxu1 %v6932_v29  ;;  %v7011_v29 = vld [vmem:[#allocation10 + $0xd60] ss:$16 sps:$4 sm:$0xff]  }
 0x2b5   :  { %4737 = vmatpush1.bf16.msra.mxu0 %v6927_v31  ;;  %v7014_v31 = vld [vmem:[#allocation10 + $0xd68] ss:$16 sps:$4 sm:$0xff]  }
 0x2b6   :  { %5081 = vmatpush1.bf16.msra.mxu1 %v6930_v54  ;;  %4738 = vmatprep.subr.bf16.mxu0 %v6935_v32  ;;  %v7019_v54 = vld [vmem:[#allocation10 + $0xd84] ss:$16 sps:$4 sm:$0xff]   ;;  %v7022_v32 = vld [vmem:[#allocation10 + $0xd8c] ss:$16 sps:$4 sm:$0xff]  }
 0x2b7   :  { %5082 = vmatprep.subr.bf16.mxu1 %v6938_v6  ;;  %v7017_v6 = vld [vmem:[#allocation10 + $0xd80] ss:$16 sps:$4 sm:$0xff]  }
 0x2b9   :  { %4739 = vmatpush1.bf16.msra.mxu0 %v6933_v33  ;;  %v7020_v33 = vld [vmem:[#allocation10 + $0xd88] ss:$16 sps:$4 sm:$0xff]  }
 0x2ba   :  { %5083 = vmatpush1.bf16.msra.mxu1 %v6936_v34  ;;  %4740 = vmatprep.subr.bf16.mxu0 %v6941_v35  ;;  %v7025_v34 = vld [vmem:[#allocation10 + $0xda4] ss:$16 sps:$4 sm:$0xff]   ;;  %v7028_v35 = vld [vmem:[#allocation10 + $0xdac] ss:$16 sps:$4 sm:$0xff]  }
 0x2bb   :  { %5084 = vmatprep.subr.bf16.mxu1 %v6944_v23  ;;  %v7023_v23 = vld [vmem:[#allocation10 + $0xda0] ss:$16 sps:$4 sm:$0xff]  }
 0x2bd   :  { %4741 = vmatpush1.bf16.msra.mxu0 %v6939_v3  ;;  %v7026_v3 = vld [vmem:[#allocation10 + $0xda8] ss:$16 sps:$4 sm:$0xff]  }
 0x2be   :  { %5085 = vmatpush1.bf16.msra.mxu1 %v6942_v37  ;;  %4753 = vmatprep.subr.bf16.mxu0 %v6947_v24  ;;  %v7031_v37 = vld [vmem:[#allocation10 + $0xdc4] ss:$16 sps:$4 sm:$0xff]   ;;  %v7034_v24 = vld [vmem:[#allocation10 + $0xdcc] ss:$16 sps:$4 sm:$0xff]  }
 0x2bf   :  { %5097 = vmatprep.subr.bf16.mxu1 %v6950_v38  ;;  %v7029_v38 = vld [vmem:[#allocation10 + $0xdc0] ss:$16 sps:$4 sm:$0xff]  }
 0x2c0   :  { %4743 = vmatmul.mubr.bf16.vlgmr.msra.gmra.mrb[16].mxu0 %v7588_v28 }
 0x2c1   :  { %5087 = vmatmul.mubr.bf16.vlgmr.msra.gmra.mrb[16].mxu1 %v7588_v28  ;;  %4754 = vmatpush1.bf16.msra.mxu0 %v6945_v39  ;;  %v6968_v28 = vld [vmem:[#allocation10 + $0xc6c] ss:$16 sps:$4 sm:$0xff]   ;;  %v7032_v39 = vld [vmem:[#allocation10 + $0xdc8] ss:$16 sps:$4 sm:$0xff]  }
 0x2c2   :  { %4785 = vmatprep.mubr.bf16.mxu0 %v7601_v17  ;;  %5098 = vmatpush1.bf16.msra.mxu1 %v6948_v40  ;;  %v7037_v40 = vld [vmem:[#allocation10 + $0xde4] ss:$16 sps:$4 sm:$0xff]  }
 0x2c3   :  { %5129 = vmatprep.mubr.bf16.mxu1 %v7601_v17  ;;  %4755 = vmatprep.subr.bf16.mxu0 %v6953_v63  ;;  %v6969_v17 = vld [vmem:[#allocation10 + $0xc80] ss:$16 sps:$4 sm:$0xff]   ;;  %v7040_v63 = vld [vmem:[#allocation10 + $0xdec] ss:$16 sps:$4 sm:$0xff]  }
 0x2c4   :  { %5099 = vmatprep.subr.bf16.mxu1 %v6956_v41  ;;  %v7035_v41 = vld [vmem:[#allocation10 + $0xde0] ss:$16 sps:$4 sm:$0xff]  }
 0x2c5   :  { %4756 = vmatpush1.bf16.msra.mxu0 %v6951_v42  ;;  %v7038_v42 = vld [vmem:[#allocation10 + $0xde8] ss:$16 sps:$4 sm:$0xff]  }
 0x2c6   :  { %5100 = vmatpush1.bf16.msra.mxu1 %v6954_v43  ;;  %4757 = vmatprep.subr.bf16.mxu0 %v6959_v44  ;;  %v7043_v43 = vld [vmem:[#allocation10 + $0xe04] ss:$16 sps:$4 sm:$0xff]   ;;  %v7046_v44 = vld [vmem:[#allocation10 + $0xe0c] ss:$16 sps:$4 sm:$0xff]  }
 0x2c7   :  { %5101 = vmatprep.subr.bf16.mxu1 %v6962_v30  ;;  %v7041_v30 = vld [vmem:[#allocation10 + $0xe00] ss:$16 sps:$4 sm:$0xff]  }
 0x2c9   :  { %4758 = vmatpush1.bf16.msra.mxu0 %v6957_v45  ;;  %v7044_v45 = vld [vmem:[#allocation10 + $0xe08] ss:$16 sps:$4 sm:$0xff]  }
 0x2ca   :  { %5102 = vmatpush1.bf16.msra.mxu1 %v6960_v46  ;;  %4759 = vmatprep.subr.bf16.mxu0 %v6965_v47  ;;  %v7049_v46 = vld [vmem:[#allocation10 + $0xe24] ss:$16 sps:$4 sm:$0xff]   ;;  %v7052_v47 = vld [vmem:[#allocation10 + $0xe2c] ss:$16 sps:$4 sm:$0xff]  }
 0x2cb   :  { %5103 = vmatprep.subr.bf16.mxu1 %v6968_v28  ;;  %v7047_v28 = vld [vmem:[#allocation10 + $0xe20] ss:$16 sps:$4 sm:$0xff]  }
 0x2cd   :  { %4760 = vmatpush1.bf16.msra.mxu0 %v6963_v0  ;;  %v7050_v0 = vld [vmem:[#allocation10 + $0xe28] ss:$16 sps:$4 sm:$0xff]  }
 0x2ce   :  { %5104 = vmatpush1.bf16.msra.mxu1 %v6966_v48  ;;  %4761 = vmatprep.subr.bf16.mxu0 %v6971_v50  ;;  %v7055_v48 = vld [vmem:[#allocation10 + $0xe44] ss:$16 sps:$4 sm:$0xff]   ;;  %v7058_v50 = vld [vmem:[#allocation10 + $0xe4c] ss:$16 sps:$4 sm:$0xff]  }
 0x2cf   :  { %5105 = vmatprep.subr.bf16.mxu1 %v6974_v51  ;;  %v7053_v51 = vld [vmem:[#allocation10 + $0xe40] ss:$16 sps:$4 sm:$0xff]  }
 0x2d1   :  { %4762 = vmatpush1.bf16.msra.mxu0 %v6969_v17  ;;  %v7056_v17 = vld [vmem:[#allocation10 + $0xe48] ss:$16 sps:$4 sm:$0xff]  }
 0x2d2   :  { %5106 = vmatpush1.bf16.msra.mxu1 %v6972_v53  ;;  %4763 = vmatprep.subr.bf16.mxu0 %v6977_v55  ;;  %v7061_v53 = vld [vmem:[#allocation10 + $0xe64] ss:$16 sps:$4 sm:$0xff]   ;;  %v7059_v55 = vld [vmem:[#allocation10 + $0xe60] ss:$16 sps:$4 sm:$0xff]  }
 0x2d3   :  { %5107 = vmatprep.subr.bf16.mxu1 %v6980_v13  ;;  %v7062_v13 = vld [vmem:[#allocation10 + $0xe68] ss:$16 sps:$4 sm:$0xff]  }
 0x2d5   :  { %4764 = vmatpush1.bf16.msra.mxu0 %v6975_v56  ;;  %v7067_v56 = vld [vmem:[#allocation10 + $0xe84] ss:$16 sps:$4 sm:$0xff]  }
 0x2d6   :  { %5108 = vmatpush1.bf16.msra.mxu1 %v6978_v57  ;;  %4765 = vmatprep.subr.bf16.mxu0 %v6983_v58  ;;  %v7070_v57 = vld [vmem:[#allocation10 + $0xe8c] ss:$16 sps:$4 sm:$0xff]   ;;  %v7068_v58 = vld [vmem:[#allocation10 + $0xe88] ss:$16 sps:$4 sm:$0xff]  }
 0x2d7   :  { %5109 = vmatprep.subr.bf16.mxu1 %v6986_v59  ;;  %v7073_v59 = vld [vmem:[#allocation10 + $0xea4] ss:$16 sps:$4 sm:$0xff]  }
 0x2d9   :  { %4766 = vmatpush1.bf16.msra.mxu0 %v6981_v60  ;;  %v7076_v60 = vld [vmem:[#allocation10 + $0xeac] ss:$16 sps:$4 sm:$0xff]  }
 0x2da   :  { %5110 = vmatpush1.bf16.msra.mxu1 %v6984_v61  ;;  %4767 = vmatprep.subr.bf16.mxu0 %v6989_v62  ;;  %v7071_v61 = vld [vmem:[#allocation10 + $0xea0] ss:$16 sps:$4 sm:$0xff]   ;;  %v7074_v62 = vld [vmem:[#allocation10 + $0xea8] ss:$16 sps:$4 sm:$0xff]  }
 0x2db   :  { %5111 = vmatprep.subr.bf16.mxu1 %v6992_v1  ;;  %v7079_v1 = vld [vmem:[#allocation10 + $0xec4] ss:$16 sps:$4 sm:$0xff]  }
 0x2dd   :  { %4768 = vmatpush1.bf16.msra.mxu0 %v6987_v2  ;;  %v7082_v2 = vld [vmem:[#allocation10 + $0xecc] ss:$16 sps:$4 sm:$0xff]  }
 0x2de   :  { %5112 = vmatpush1.bf16.msra.mxu1 %v6990_v7  ;;  %4769 = vmatprep.subr.bf16.mxu0 %v6995_v8  ;;  %v7077_v7 = vld [vmem:[#allocation10 + $0xec0] ss:$16 sps:$4 sm:$0xff]   ;;  %v7080_v8 = vld [vmem:[#allocation10 + $0xec8] ss:$16 sps:$4 sm:$0xff]  }
 0x2df   :  { %5113 = vmatprep.subr.bf16.mxu1 %v6998_v11  ;;  %v7085_v11 = vld [vmem:[#allocation10 + $0xee4] ss:$16 sps:$4 sm:$0xff]  }
 0x2e1   :  { %4770 = vmatpush1.bf16.msra.mxu0 %v6993_v9  ;;  %v7088_v9 = vld [vmem:[#allocation10 + $0xeec] ss:$16 sps:$4 sm:$0xff]  }
 0x2e2   :  { %5114 = vmatpush1.bf16.msra.mxu1 %v6996_v16  ;;  %4771 = vmatprep.subr.bf16.mxu0 %v7001_v22  ;;  %v7083_v16 = vld [vmem:[#allocation10 + $0xee0] ss:$16 sps:$4 sm:$0xff]   ;;  %v7086_v22 = vld [vmem:[#allocation10 + $0xee8] ss:$16 sps:$4 sm:$0xff]  }
 0x2e3   :  { %5115 = vmatprep.subr.bf16.mxu1 %v7004_v49  ;;  %v7091_v49 = vld [vmem:[#allocation10 + $0xf04] ss:$16 sps:$4 sm:$0xff]  }
 0x2e5   :  { %4772 = vmatpush1.bf16.msra.mxu0 %v6999_v19  ;;  %v7094_v19 = vld [vmem:[#allocation10 + $0xf0c] ss:$16 sps:$4 sm:$0xff]  }
 0x2e6   :  { %5116 = vmatpush1.bf16.msra.mxu1 %v7002_v21  ;;  %4773 = vmatprep.subr.bf16.mxu0 %v7007_v5  ;;  %v7089_v21 = vld [vmem:[#allocation10 + $0xf00] ss:$16 sps:$4 sm:$0xff]   ;;  %v7092_v5 = vld [vmem:[#allocation10 + $0xf08] ss:$16 sps:$4 sm:$0xff]  }
 0x2e7   :  { %5117 = vmatprep.subr.bf16.mxu1 %v7010_v10  ;;  %v7097_v10 = vld [vmem:[#allocation10 + $0xf24] ss:$16 sps:$4 sm:$0xff]  }
 0x2e9   :  { %4774 = vmatpush1.bf16.msra.mxu0 %v7005_v25  ;;  %v7100_v25 = vld [vmem:[#allocation10 + $0xf2c] ss:$16 sps:$4 sm:$0xff]  }
 0x2ea   :  { %5118 = vmatpush1.bf16.msra.mxu1 %v7008_v26  ;;  %4775 = vmatprep.subr.bf16.mxu0 %v7013_v12  ;;  %v7095_v26 = vld [vmem:[#allocation10 + $0xf20] ss:$16 sps:$4 sm:$0xff]   ;;  %v7098_v12 = vld [vmem:[#allocation10 + $0xf28] ss:$16 sps:$4 sm:$0xff]  }
 0x2eb   :  { %5119 = vmatprep.subr.bf16.mxu1 %v7016_v27  ;;  %v7103_v27 = vld [vmem:[#allocation10 + $0xf44] ss:$16 sps:$4 sm:$0xff]  }
 0x2ed   :  { %4776 = vmatpush1.bf16.msra.mxu0 %v7011_v29  ;;  %v7106_v29 = vld [vmem:[#allocation10 + $0xf4c] ss:$16 sps:$4 sm:$0xff]  }
 0x2ee   :  { %5120 = vmatpush1.bf16.msra.mxu1 %v7014_v31  ;;  %4777 = vmatprep.subr.bf16.mxu0 %v7019_v54  ;;  %v7101_v31 = vld [vmem:[#allocation10 + $0xf40] ss:$16 sps:$4 sm:$0xff]   ;;  %v7104_v54 = vld [vmem:[#allocation10 + $0xf48] ss:$16 sps:$4 sm:$0xff]  }
 0x2ef   :  { %5121 = vmatprep.subr.bf16.mxu1 %v7022_v32  ;;  %v7109_v32 = vld [vmem:[#allocation10 + $0xf64] ss:$16 sps:$4 sm:$0xff]  }
 0x2f1   :  { %4778 = vmatpush1.bf16.msra.mxu0 %v7017_v6  ;;  %v7112_v6 = vld [vmem:[#allocation10 + $0xf6c] ss:$16 sps:$4 sm:$0xff]  }
 0x2f2   :  { %5122 = vmatpush1.bf16.msra.mxu1 %v7020_v33  ;;  %4779 = vmatprep.subr.bf16.mxu0 %v7025_v34  ;;  %v7107_v33 = vld [vmem:[#allocation10 + $0xf60] ss:$16 sps:$4 sm:$0xff]   ;;  %v7110_v34 = vld [vmem:[#allocation10 + $0xf68] ss:$16 sps:$4 sm:$0xff]  }
 0x2f3   :  { %5123 = vmatprep.subr.bf16.mxu1 %v7028_v35  ;;  %v7115_v35 = vld [vmem:[#allocation10 + $0xf84] ss:$16 sps:$4 sm:$0xff]  }
 0x2f5   :  { %4780 = vmatpush1.bf16.msra.mxu0 %v7023_v23  ;;  %v7118_v23 = vld [vmem:[#allocation10 + $0xf8c] ss:$16 sps:$4 sm:$0xff]  }
 0x2f6   :  { %5124 = vmatpush1.bf16.msra.mxu1 %v7026_v3  ;;  %4781 = vmatprep.subr.bf16.mxu0 %v7031_v37  ;;  %v7113_v3 = vld [vmem:[#allocation10 + $0xf80] ss:$16 sps:$4 sm:$0xff]   ;;  %v7116_v37 = vld [vmem:[#allocation10 + $0xf88] ss:$16 sps:$4 sm:$0xff]  }
 0x2f7   :  { %5125 = vmatprep.subr.bf16.mxu1 %v7034_v24  ;;  %v7121_v24 = vld [vmem:[#allocation10 + $0xfa4] ss:$16 sps:$4 sm:$0xff]  }
 0x2f9   :  { %4782 = vmatpush1.bf16.msra.mxu0 %v7029_v38  ;;  %v7124_v38 = vld [vmem:[#allocation10 + $0xfac] ss:$16 sps:$4 sm:$0xff]  }
 0x2fa   :  { %5126 = vmatpush1.bf16.msra.mxu1 %v7032_v39  ;;  %4783 = vmatprep.subr.bf16.mxu0 %v7037_v40  ;;  %v7119_v39 = vld [vmem:[#allocation10 + $0xfa0] ss:$16 sps:$4 sm:$0xff]   ;;  %v7122_v40 = vld [vmem:[#allocation10 + $0xfa8] ss:$16 sps:$4 sm:$0xff]  }
 0x2fb   :  { %5127 = vmatprep.subr.bf16.mxu1 %v7040_v63  ;;  %v7127_v63 = vld [vmem:[#allocation10 + $0xfc4] ss:$16 sps:$4 sm:$0xff]  }
 0x2fd   :  { %4784 = vmatpush1.bf16.msra.mxu0 %v7035_v41  ;;  %v7130_v41 = vld [vmem:[#allocation10 + $0xfcc] ss:$16 sps:$4 sm:$0xff]  }
 0x2fe   :  { %5128 = vmatpush1.bf16.msra.mxu1 %v7038_v42  ;;  %4796 = vmatprep.subr.bf16.mxu0 %v7043_v43  ;;  %v7125_v42 = vld [vmem:[#allocation10 + $0xfc0] ss:$16 sps:$4 sm:$0xff]   ;;  %v7128_v43 = vld [vmem:[#allocation10 + $0xfc8] ss:$16 sps:$4 sm:$0xff]  }
 0x2ff   :  { %5140 = vmatprep.subr.bf16.mxu1 %v7046_v44  ;;  %v7133_v44 = vld [vmem:[#allocation10 + $0xfe4] ss:$16 sps:$4 sm:$0xff]  }
 0x300   :  { %4786 = vmatmul.mubr.bf16.vlgmr.msra.gmra.mrb[16].mxu0 %v7598_v4 }
 0x301   :  { %5130 = vmatmul.mubr.bf16.vlgmr.msra.gmra.mrb[16].mxu1 %v7598_v4  ;;  %4797 = vmatpush1.bf16.msra.mxu0 %v7041_v30  ;;  %v7064_v4 = vld [vmem:[#allocation10 + $0xe6c] ss:$16 sps:$4 sm:$0xff]  }
 0x302   :  { %4828 = vmatprep.mubr.bf16.mxu0 %v7608_v52  ;;  %5141 = vmatpush1.bf16.msra.mxu1 %v7044_v45  ;;  %v7136_v30 = vld [vmem:[#allocation10 + $0xfec] ss:$16 sps:$4 sm:$0xff]   ;;  %v7131_v45 = vld [vmem:[#allocation10 + $0xfe0] ss:$16 sps:$4 sm:$0xff]  }
 0x303   :  { %5172 = vmatprep.mubr.bf16.mxu1 %v7608_v52  ;;  %4798 = vmatprep.subr.bf16.mxu0 %v7049_v46  ;;  %v7065_v52 = vld [vmem:[#allocation10 + $0xe80] ss:$16 sps:$4 sm:$0xff]   ;;  %v7134_v46 = vld [vmem:[#allocation10 + $0xfe8] ss:$16 sps:$4 sm:$0xff]  }
 0x304   :  { %5142 = vmatprep.subr.bf16.mxu1 %v7052_v47  ;;  %v7137_v47 = vld [vmem:[#allocation13 + $0x40] sm:$0xff]  }
 0x305   :  { %4799 = vmatpush1.bf16.msra.mxu0 %v7047_v28  ;;  %v7138_v28 = vld [vmem:[#allocation13 + $0xc0] sm:$0xff]  }
 0x306   :  { %5143 = vmatpush1.bf16.msra.mxu1 %v7050_v0  ;;  %4800 = vmatprep.subr.bf16.mxu0 %v7055_v48  ;;  %v7139_v0 = vld [vmem:[#allocation13] sm:$0xff]  }
 0x307   :  { %5144 = vmatprep.subr.bf16.mxu1 %v7058_v50  ;;  %v7140_v48 = vld [vmem:[#allocation13 + $0x80] sm:$0xff]   ;;  %v7141_v50 = vld [vmem:[#allocation13 + $0x48] sm:$0xff]  }
 0x309   :  { %4801 = vmatpush1.bf16.msra.mxu0 %v7053_v51  ;;  %v7142_v51 = vld [vmem:[#allocation13 + $0xc8] sm:$0xff]  }
 0x30a   :  { %5145 = vmatpush1.bf16.msra.mxu1 %v7056_v17  ;;  %4802 = vmatprep.subr.bf16.mxu0 %v7061_v53  ;;  %v7143_v17 = vld [vmem:[#allocation13 + $0x8] sm:$0xff]  }
 0x30b   :  { %5146 = vmatprep.subr.bf16.mxu1 %v7064_v4  ;;  %v7144_v53 = vld [vmem:[#allocation13 + $0x88] sm:$0xff]   ;;  %v7145_v4 = vld [vmem:[#allocation13 + $0x50] sm:$0xff]  }
 0x30d   :  { %4803 = vmatpush1.bf16.msra.mxu0 %v7059_v55  ;;  %v7146_v55 = vld [vmem:[#allocation13 + $0xd0] sm:$0xff]  }
 0x30e   :  { %5147 = vmatpush1.bf16.msra.mxu1 %v7062_v13  ;;  %4804 = vmatprep.subr.bf16.mxu0 %v7067_v56  ;;  %v7147_v13 = vld [vmem:[#allocation13 + $0x10] sm:$0xff]  }
 0x30f   :  { %5148 = vmatprep.subr.bf16.mxu1 %v7070_v57  ;;  %v7148_v56 = vld [vmem:[#allocation13 + $0x90] sm:$0xff]   ;;  %v7149_v57 = vld [vmem:[#allocation13 + $0x58] sm:$0xff]  }
 0x311   :  { %4805 = vmatpush1.bf16.msra.mxu0 %v7065_v52  ;;  %v7150_v52 = vld [vmem:[#allocation13 + $0xd8] sm:$0xff]  }
 0x312   :  { %5149 = vmatpush1.bf16.msra.mxu1 %v7068_v58  ;;  %4806 = vmatprep.subr.bf16.mxu0 %v7073_v59  ;;  %v7151_v58 = vld [vmem:[#allocation13 + $0x18] sm:$0xff]   ;;  %v7153_v59 = vld [vmem:[#allocation13 + $0x60] sm:$0xff]  }
 0x313   :  { %5150 = vmatprep.subr.bf16.mxu1 %v7076_v60  ;;  %v7154_v60 = vld [vmem:[#allocation13 + $0xe0] sm:$0xff]  }
 0x315   :  { %4807 = vmatpush1.bf16.msra.mxu0 %v7071_v61  ;;  %v7155_v61 = vld [vmem:[#allocation13 + $0x20] sm:$0xff]  }
 0x316   :  { %5151 = vmatpush1.bf16.msra.mxu1 %v7074_v62  ;;  %4808 = vmatprep.subr.bf16.mxu0 %v7079_v1  ;;  %v7156_v62 = vld [vmem:[#allocation13 + $0xa0] sm:$0xff]   ;;  %v7157_v1 = vld [vmem:[#allocation13 + $0x68] sm:$0xff]  }
 0x317   :  { %5152 = vmatprep.subr.bf16.mxu1 %v7082_v2  ;;  %v7158_v2 = vld [vmem:[#allocation13 + $0xe8] sm:$0xff]  }
 0x319   :  { %4809 = vmatpush1.bf16.msra.mxu0 %v7077_v7  ;;  %v7159_v7 = vld [vmem:[#allocation13 + $0x28] sm:$0xff]  }
 0x31a   :  { %5153 = vmatpush1.bf16.msra.mxu1 %v7080_v8  ;;  %4810 = vmatprep.subr.bf16.mxu0 %v7085_v11  ;;  %v7160_v8 = vld [vmem:[#allocation13 + $0xa8] sm:$0xff]   ;;  %v7161_v11 = vld [vmem:[#allocation13 + $0x70] sm:$0xff]  }
 0x31b   :  { %5154 = vmatprep.subr.bf16.mxu1 %v7088_v9  ;;  %v7162_v9 = vld [vmem:[#allocation13 + $0xf0] sm:$0xff]  }
 0x31d   :  { %4811 = vmatpush1.bf16.msra.mxu0 %v7083_v16  ;;  %v7163_v16 = vld [vmem:[#allocation13 + $0x30] sm:$0xff]  }
 0x31e   :  { %5155 = vmatpush1.bf16.msra.mxu1 %v7086_v22  ;;  %4812 = vmatprep.subr.bf16.mxu0 %v7091_v49  ;;  %v7164_v22 = vld [vmem:[#allocation13 + $0xb0] sm:$0xff]   ;;  %v7165_v49 = vld [vmem:[#allocation13 + $0x78] sm:$0xff]  }
 0x31f   :  { %5156 = vmatprep.subr.bf16.mxu1 %v7094_v19  ;;  %v7166_v19 = vld [vmem:[#allocation13 + $0xf8] sm:$0xff]  }
 0x321   :  { %4813 = vmatpush1.bf16.msra.mxu0 %v7089_v21  ;;  %v7167_v21 = vld [vmem:[#allocation13 + $0x38] sm:$0xff]  }
 0x322   :  { %5157 = vmatpush1.bf16.msra.mxu1 %v7092_v5  ;;  %4814 = vmatprep.subr.bf16.mxu0 %v7097_v10  ;;  %v7168_v5 = vld [vmem:[#allocation13 + $0xb8] sm:$0xff]  }
 0x323   :  { %5158 = vmatprep.subr.bf16.mxu1 %v7100_v25  ;;  %v1913_v10 = vld [vmem:[#allocation12] sm:$0xf] }
 0x324   :  { %v1918_v25 = vrot.slane %v1913_v10, %v7523_v14 }
 0x325   :  { %4815 = vmatpush1.bf16.msra.mxu0 %v7095_v26  ;;  %v1926_v26 = vrot.slane %v1913_v10, %v7533_v18 }
 0x326   :  { %5159 = vmatpush1.bf16.msra.mxu1 %v7098_v12  ;;  %4816 = vmatprep.subr.bf16.mxu0 %v7103_v27  ;;  %v1922_v12 = vrot.slane %v1913_v10, %v7526_v15  ;;  %v1930_v27 = vrot.slane %v1913_v10, %v7536_v20 }
 0x327   :  { %5160 = vmatprep.subr.bf16.mxu1 %v7106_v29 }
 0x329   :  { %4817 = vmatpush1.bf16.msra.mxu0 %v7101_v31 }
 0x32a   :  { %5161 = vmatpush1.bf16.msra.mxu1 %v7104_v54  ;;  %4818 = vmatprep.subr.bf16.mxu0 %v7109_v32 }
 0x32b   :  { %5162 = vmatprep.subr.bf16.mxu1 %v7112_v6 }
 0x32d   :  { %4819 = vmatpush1.bf16.msra.mxu0 %v7107_v33 }
 0x32e   :  { %5163 = vmatpush1.bf16.msra.mxu1 %v7110_v34  ;;  %4820 = vmatprep.subr.bf16.mxu0 %v7115_v35 }
 0x32f   :  { %5164 = vmatprep.subr.bf16.mxu1 %v7118_v23 }
 0x331   :  { %4821 = vmatpush1.bf16.msra.mxu0 %v7113_v3 }
 0x332   :  { %5165 = vmatpush1.bf16.msra.mxu1 %v7116_v37  ;;  %4822 = vmatprep.subr.bf16.mxu0 %v7121_v24 }
 0x333   :  { %5166 = vmatprep.subr.bf16.mxu1 %v7124_v38 }
 0x335   :  { %4823 = vmatpush1.bf16.msra.mxu0 %v7119_v39 }
 0x336   :  { %5167 = vmatpush1.bf16.msra.mxu1 %v7122_v40  ;;  %4824 = vmatprep.subr.bf16.mxu0 %v7127_v63 }
 0x337   :  { %5168 = vmatprep.subr.bf16.mxu1 %v7130_v41 }
 0x339   :  { %4825 = vmatpush1.bf16.msra.mxu0 %v7125_v42 }
 0x33a   :  { %5169 = vmatpush1.bf16.msra.mxu1 %v7128_v43  ;;  %4826 = vmatprep.subr.bf16.mxu0 %v7133_v44 }
 0x33b   :  { %5170 = vmatprep.subr.bf16.mxu1 %v7136_v30 }
 0x33d   :  { %4827 = vmatpush1.bf16.msra.mxu0 %v7131_v45 }
 0x33e   :  { %5171 = vmatpush1.bf16.msra.mxu1 %v7134_v46  ;;  %6244 = vmatprep.subr.bf16.mxu0 %v7137_v47 }
 0x33f   :  { %6266 = vmatprep.subr.bf16.mxu1 %v7138_v28 }
 0x340   :  { %4829 = vmatmul.mubr.bf16.vlgmr.msra.gmra.mrb[16].mxu0 %v7606_v36 }
 0x341   :  { %5173 = vmatmul.mubr.bf16.vlgmr.msra.gmra.mrb[16].mxu1 %v7606_v36  ;;  %6245 = vmatpush3.bf16.msra.mxu0 %v7139_v0  ;;  %v7152_v36 = vld [vmem:[#allocation13 + $0x98] sm:$0xff]  }
 0x342   :  { %6267 = vmatpush3.bf16.msra.mxu1 %v7140_v48  ;;  %6246 = vmatprep.subr.bf16.mxu0 %v7141_v50  ;;  %v6211_v48 = vld [vmem:[#allocation15] ss:$0 sm:$0xff] }
 0x343   :  { %6268 = vmatprep.subr.bf16.mxu1 %v7142_v51 }
 0x345   :  { %6247 = vmatpush3.bf16.msra.mxu0 %v7143_v17 }
 0x346   :  { %6269 = vmatpush3.bf16.msra.mxu1 %v7144_v53  ;;  %6248 = vmatprep.subr.bf16.mxu0 %v7145_v4 }
 0x347   :  { %6270 = vmatprep.subr.bf16.mxu1 %v7146_v55 }
 0x349   :  { %6249 = vmatpush3.bf16.msra.mxu0 %v7147_v13 }
 0x34a   :  { %6271 = vmatpush3.bf16.msra.mxu1 %v7148_v56  ;;  %6250 = vmatprep.subr.bf16.mxu0 %v7149_v57 }
 0x34b   :  { %6272 = vmatprep.subr.bf16.mxu1 %v7150_v52 }
 0x34d   :  { %6251 = vmatpush3.bf16.msra.mxu0 %v7151_v58 }
 0x34e   :  { %6273 = vmatpush3.bf16.msra.mxu1 %v7152_v36  ;;  %6252 = vmatprep.subr.bf16.mxu0 %v7153_v59 }
 0x34f   :  { %6274 = vmatprep.subr.bf16.mxu1 %v7154_v60 }
 0x351   :  { %6253 = vmatpush3.bf16.msra.mxu0 %v7155_v61 }
 0x352   :  { %6275 = vmatpush3.bf16.msra.mxu1 %v7156_v62  ;;  %6254 = vmatprep.subr.bf16.mxu0 %v7157_v1 }
 0x353   :  { %6276 = vmatprep.subr.bf16.mxu1 %v7158_v2 }
 0x355   :  { %6255 = vmatpush3.bf16.msra.mxu0 %v7159_v7 }
 0x356   :  { %6277 = vmatpush3.bf16.msra.mxu1 %v7160_v8  ;;  %6256 = vmatprep.subr.bf16.mxu0 %v7161_v11 }
 0x357   :  { %6278 = vmatprep.subr.bf16.mxu1 %v7162_v9 }
 0x359   :  { %6257 = vmatpush3.bf16.msra.mxu0 %v7163_v16 }
 0x35a   :  { %6279 = vmatpush3.bf16.msra.mxu1 %v7164_v22  ;;  %6258 = vmatprep.subr.bf16.mxu0 %v7165_v49 }
 0x35b   :  { %6280 = vmatprep.subr.bf16.mxu1 %v7166_v19 }
 0x35d   :  { %6259 = vmatpush3.bf16.msra.mxu0 %v7167_v21 }
 0x35e   :  { %6281 = vmatpush3.bf16.msra.mxu1 %v7168_v5 }
 0x413   :  { %v4830_v29 = vpop.f32.mrb[16].mxu0 }
 0x414   :  { %v6288_v31 = vadd.f32 %v4830_v29, %v1918_v25  ;;  %v5174_v54 = vpop.f32.mrb[16].mxu1  ;;  %v4832_v32 = vpop.f32.mrb[17].mxu0 }
 0x415   :  { %v6292_v6 = vadd.f32 %v5174_v54, %v1926_v26  ;;  %v6289_v33 = vadd.f32 %v4832_v32, %v1922_v12  ;;  %v5176_v34 = vpop.f32.mrb[17].mxu1  ;;  %v4834_v35 = vpop.f32.mrb[18].mxu0 }
 0x416   :  { %v6293_v23 = vadd.f32 %v5176_v34, %v1930_v27  ;;  %v6290_v3 = vadd.f32 %v4834_v35, %v1918_v25  ;;  %v5178_v37 = vpop.f32.mrb[18].mxu1  ;;  %v4836_v24 = vpop.f32.mrb[19].mxu0  ;;  %v5183_v18 = vmax.f32 %v6288_v31, 0.0 }
 0x417   :  { %v6294_v38 = vadd.f32 %v5178_v37, %v1926_v26  ;;  %v6291_v14 = vadd.f32 %v4836_v24, %v1922_v12  ;;  %v5180_v39 = vpop.f32.mrb[19].mxu1  ;;  %v5185_v63 = vmax.f32 %v6292_v6, 0.0  ;;  %v5184_v20 = vmax.f32 %v6289_v33, 0.0 }
 0x418   :  { %v5187_v40 = vmax.f32 %v6290_v3, 0.0  ;;  %v6295_v15 = vadd.f32 %v5180_v39, %v1930_v27  ;;  %v5186_v43 = vmax.f32 %v6293_v23, 0.0 }
 0x419   :  { %v5189_v41 = vmax.f32 %v6294_v38, 0.0  ;;  %v5188_v42 = vmax.f32 %v6291_v14, 0.0 }
 0x41a   :  { %v5191_v44 = vpack.c.bf16 %v5187_v40, %v5183_v18  ;;  %v5190_v30 = vmax.f32 %v6295_v15, 0.0 }
 0x41b   :  { %v5193_v45 = vpack.c.bf16 %v5189_v41, %v5185_v63  ;;  %v5192_v46 = vpack.c.bf16 %v5188_v42, %v5184_v20 }
 0x41c   :  { %v5194_v47 = vpack.c.bf16 %v5190_v30, %v5186_v43 }
 0x41d   :  { %5498 = vmatprep.mubr.bf16.mxu0 %v5192_v46 }
 0x41e   :  { %5539 = vmatprep.mubr.bf16.mxu1 %v5194_v47  ;;  %5499 = vmatmul.mubr.bf16.vlgmr.msra.gmra.mrb[20].mxu0 %v5191_v44 }
 0x41f   :  { %5540 = vmatmul.mubr.bf16.vlgmr.msra.gmra.mrb[20].mxu1 %v5193_v45 }
 0x4f1   :  { %v6260_v28 = vpop.f32.mrb[20].mxu0 }
 0x4f2   :  { %v6282_v0 = vpop.f32.mrb[20].mxu1  ;;  %v6261_v50 = vpop.f32.mrb[21].mxu0 }
 0x4f3   :  { %v6262_v51 = vadd.f32 %v6261_v50, %v6260_v28  ;;  %v6283_v17 = vpop.f32.mrb[21].mxu1  ;;  %v6263_v53 = vpop.f32.mrb[22].mxu0 }
 0x4f4   :  { %v6284_v4 = vadd.f32 %v6283_v17, %v6282_v0  ;;  %v6285_v55 = vpop.f32.mrb[22].mxu1  ;;  %v6264_v13 = vpop.f32.mrb[23].mxu0 }
 0x4f5   :  { %v5501_v56 = vadd.f32 %v6262_v51, %v6211_v48  ;;  %v6265_v57 = vadd.f32 %v6264_v13, %v6263_v53  ;;  %v6286_v52 = vpop.f32.mrb[23].mxu1 }
 0x4f6   :  { %v6287_v58 = vadd.f32 %v6286_v52, %v6285_v55 }
 0x4f7   :  { %v5542_v36 = vadd.f32 %v6284_v4, %v5501_v56  ;;  %v5504_v59 = vadd.f32 %v6265_v57, %v6211_v48 }
 0x4f9   :  { %5548 = vst [vmem:[#allocation16] sm:$0xff] %v5542_v36  ;;  %v5545_v60 = vadd.f32 %v6287_v58, %v5504_v59 }
 0x4fb   :  { %5549 = vst [vmem:[#allocation16 + $0x8] sm:$0xff] %v5545_v60 }
 0x4fc   :  { %7335 = shalt.err (!%p7332_p4)
}
 0x4fd   :  { %s7336_s12 = scalar_lea.hbm %s7655_s7, 256 }
 0x4fe   :  { %p7337_p5 = scmp.ne.s32.totalorder %s7655_s7, %s7336_s12  ;;  %p7340_p6 = scmp.lt.u32.totalorder %s7336_s12, %s7655_s7 }
 0x500   :  { %p7342_p7 = pnand %p7340_p6, %p7337_p5 }
 0x502   :  { %7345 = shalt.err (!%p7342_p7)
}
 0x503   :  { %s7370_s20 = smov 128   ;;  %s7371_s21 = smov 8  }
 0x504   :  { %5561 = dma.vmem_to_hbm [thread:$0]  %s5556_s15, 256, %s7655_s7, [#allocation6], %s7370_s20, %s7370_s20, %s7371_s21  }
 0x505   :  { %7354 = dma.done.wait [#allocation6], 256  }
 0x506   :  { %7355 = vsyncadd [#allocation6], 4294967040 }
 0x507   :  { %5565 = vsyncpa [#allocation5], 1 }
 0x508   :  { %5566 = vsyncpa [#allocation8], 1 }
 0x509   :  { %5567 = vsyncpa [#allocation11], 1 }
 0x50a   :  { %5568 = vsyncpa [#allocation14], 1 }
 0x50b   :  { %5569 = vsyncpa [#allocation6], 1 }

// kernel: tpu_custom_call.1
= control target key start
LH: loop header
LB: loop body
LE: loop exit
PB: predicated region body
PF: predicated region fallthrough
CT: control target
= control target key end

     0   :  { %12 = vsyncpa [#allocation5], 0  ;;  %s7648_s0 = inlined_call_operand.hbm [shape: bf16[16,128], index: 0, kind: input, shape index: {}]   ;;  %s7649_s1 = inlined_call_operand.hbm [shape: bf16[128,2048], index: 1, kind: input, shape index: {}]   ;;  %s7650_s2 = inlined_call_operand.hbm [shape: f32[1,2048], index: 2, kind: input, shape index: {}]   ;;  %s7651_s3 = inlined_call_operand.hbm [shape: bf16[2048,512], index: 3, kind: input, shape index: {}]   ;;  %s7652_s4 = inlined_call_operand.hbm [shape: f32[1,512], index: 4, kind: input, shape index: {}]   ;;  %s7653_s5 = inlined_call_operand.hbm [shape: bf16[512,128], index: 5, kind: input, shape index: {}]   ;;  %s7654_s6 = inlined_call_operand.hbm [shape: f32[1,128], index: 6, kind: input, shape index: {}]   ;;  %s7655_s7 = inlined_call_operand.hbm [shape: f32[16,128], index: 7, kind: output, shape index: {}]  }
   0x1   :  { %13 = vsyncpa [#allocation8], 0 }
   0x2   :  { %14 = vsyncpa [#allocation11], 0 }
   0x3   :  { %15 = vsyncpa [#allocation14], 0 }
   0x4   :  { %16 = vsyncpa [#allocation6], 0  ;;  %s7356_s24 = smov [#allocation7]   ;;  %s7170_s28 = scalar_lea.hbm %s7649_s1, 16384 }
   0x5   :  { %s34_s25 = sshll.u32 %s7356_s24, 4  ;;  %p7171_p0 = scmp.ne.s32.totalorder %s7649_s1, %s7170_s28  ;;  %s35_s25 = int_to_ptr.vmem [resolvable:$true] %s34_s25 }
   0x6   :  { %p7174_p1 = scmp.lt.u32.totalorder %s7170_s28, %s7649_s1 }
   0x8   :  { %p7176_p2 = pnand %p7174_p1, %p7171_p0 }
   0xa   :  { %7179 = shalt.err (!%p7176_p2)
}
   0xb   :  { %s7180_s10 = scalar_lea.vmem %s35_s25, 16384  ;;  %p7185_p4 = scmp.lt.s32.totalorder %s35_s25, %s35_s25 }
   0xc   :  { %p7181_p3 = scmp.ne.s32.totalorder %s35_s25, %s7180_s10  ;;  %p7186_p5 = scmp.lt.s32.totalorder %s7180_s10, %s7180_s10 }
   0xe   :  { %p7187_p6 = por %p7186_p5, %p7185_p4 }
  0x10   :  { %p7188_p7 = pnand %p7187_p6, %p7181_p3 }
  0x12   :  { %7191 = shalt.err (!%p7188_p7)
}
  0x13   :  { %s7357_s11 = smov 1024   ;;  %s7358_s12 = smov 64  }
  0x14   :  { %40 = dma.hbm_to_vmem [thread:$0]  %s7649_s1, 16384, %s35_s25, [#allocation8], %s7357_s11, %s7357_s11, %s7358_s12  }
  0x15   :  { %s7359_s15 = smov [#allocation10]   ;;  %s7192_s19 = scalar_lea.hbm %s7651_s3, 65536 }
  0x16   :  { %s56_s16 = sshll.u32 %s7359_s15, 4  ;;  %p7193_p8 = scmp.ne.s32.totalorder %s7651_s3, %s7192_s19  ;;  %s57_s16 = int_to_ptr.vmem [resolvable:$true] %s56_s16 }
  0x17   :  { %p7196_p9 = scmp.lt.u32.totalorder %s7192_s19, %s7651_s3 }
  0x19   :  { %p7198_p10 = pnand %p7196_p9, %p7193_p8 }
  0x1b   :  { %7201 = shalt.err (!%p7198_p10)
}
  0x1c   :  { %s7202_s24 = scalar_lea.vmem %s57_s16, 65536  ;;  %p7207_p12 = scmp.lt.s32.totalorder %s57_s16, %s57_s16 }
  0x1d   :  { %p7203_p11 = scmp.ne.s32.totalorder %s57_s16, %s7202_s24  ;;  %p7208_p13 = scmp.lt.s32.totalorder %s7202_s24, %s7202_s24 }
  0x1f   :  { %p7209_p0 = por %p7208_p13, %p7207_p12 }
  0x21   :  { %p7210_p1 = pnand %p7209_p0, %p7203_p11 }
  0x23   :  { %7213 = shalt.err (!%p7210_p1)
}
  0x24   :  { %s7360_s1 = smov 256   ;;  %s7361_s25 = smov 16  }
  0x25   :  { %62 = dma.hbm_to_vmem [thread:$0]  %s7651_s3, 65536, %s57_s16, [#allocation11], %s7360_s1, %s7360_s1, %s7361_s25  }
  0x26   :  { %s7362_s28 = smov [#allocation13]   ;;  %s7363_s30 = smov [#allocation4]  }
  0x27   :  { %s78_s29 = sshll.u32 %s7362_s28, 4  ;;  %s22_s8 = sshll.u32 %s7363_s30, 4  ;;  %s79_s29 = int_to_ptr.vmem [resolvable:$true] %s78_s29  ;;  %s23_s8 = int_to_ptr.vmem [resolvable:$true] %s22_s8 }
  0x28   :  { %s7214_s11 = scalar_lea.hbm %s7653_s5, 4096 }
  0x29   :  { %p7215_p2 = scmp.ne.s32.totalorder %s7653_s5, %s7214_s11  ;;  %p7218_p3 = scmp.lt.u32.totalorder %s7214_s11, %s7653_s5 }
  0x2b   :  { %p7220_p4 = pnand %p7218_p3, %p7215_p2 }
  0x2d   :  { %7223 = shalt.err (!%p7220_p4)
}
  0x2e   :  { %s7224_s3 = scalar_lea.vmem %s79_s29, 4096  ;;  %p7229_p6 = scmp.lt.s32.totalorder %s79_s29, %s79_s29 }
  0x2f   :  { %p7225_p5 = scmp.ne.s32.totalorder %s79_s29, %s7224_s3  ;;  %p7230_p7 = scmp.lt.s32.totalorder %s7224_s3, %s7224_s3 }
  0x31   :  { %p7231_p8 = por %p7230_p7, %p7229_p6 }
  0x33   :  { %p7232_p9 = pnand %p7231_p8, %p7225_p5 }
  0x35   :  { %7235 = shalt.err (!%p7232_p9)
}
  0x36   :  { %s7364_s16 = smov 4   ;;  %s7236_s22 = scalar_lea.hbm %s7648_s0, 128 }
  0x37   :  { %84 = dma.hbm_to_vmem [thread:$0]  %s7653_s5, 4096, %s79_s29, [#allocation14], %s7358_s12, %s7358_s12, %s7364_s16  }
  0x38   :  { %p7237_p10 = scmp.ne.s32.totalorder %s7648_s0, %s7236_s22  ;;  %p7240_p11 = scmp.lt.u32.totalorder %s7236_s22, %s7648_s0 }
  0x3a   :  { %p7242_p12 = pnand %p7240_p11, %p7237_p10 }
  0x3c   :  { %7245 = shalt.err (!%p7242_p12)
}
  0x3d   :  { %s7246_s26 = scalar_lea.vmem %s23_s8, 128  ;;  %p7251_p0 = scmp.lt.s32.totalorder %s23_s8, %s23_s8 }
  0x3e   :  { %p7247_p13 = scmp.ne.s32.totalorder %s23_s8, %s7246_s26  ;;  %p7252_p1 = scmp.lt.s32.totalorder %s7246_s26, %s7246_s26 }
  0x40   :  { %p7253_p2 = por %p7252_p1, %p7251_p0 }
  0x42   :  { %p7254_p3 = pnand %p7253_p2, %p7247_p13 }
  0x44   :  { %7257 = shalt.err (!%p7254_p3)
}
  0x45   :  { %28 = dma.hbm_to_vmem [thread:$0]  %s7648_s0, 128, %s23_s8, [#allocation5], %s7358_s12, %s7358_s12, %s7364_s16  }
  0x46   :  { %s7365_s28 = smov [#allocation9]   ;;  %s7366_s30 = smov [#allocation12]  }
  0x47   :  { %s47_s29 = sshll.u32 %s7365_s28, 4  ;;  %s69_s9 = sshll.u32 %s7366_s30, 4  ;;  %s48_s29 = int_to_ptr.vmem [resolvable:$true] %s47_s29  ;;  %s70_s9 = int_to_ptr.vmem [resolvable:$true] %s69_s9 }
  0x48   :  { %s7258_s13 = scalar_lea.hbm %s7650_s2, 256 }
  0x49   :  { %p7259_p4 = scmp.ne.s32.totalorder %s7650_s2, %s7258_s13  ;;  %p7262_p5 = scmp.lt.u32.totalorder %s7258_s13, %s7650_s2 }
  0x4b   :  { %p7264_p6 = pnand %p7262_p5, %p7259_p4 }
  0x4d   :  { %7267 = shalt.err (!%p7264_p6)
}
  0x4e   :  { %s7268_s0 = scalar_lea.vmem %s48_s29, 256  ;;  %p7273_p8 = scmp.lt.s32.totalorder %s48_s29, %s48_s29 }
  0x4f   :  { %p7269_p7 = scmp.ne.s32.totalorder %s48_s29, %s7268_s0  ;;  %p7274_p9 = scmp.lt.s32.totalorder %s7268_s0, %s7268_s0 }
  0x51   :  { %p7275_p10 = por %p7274_p9, %p7273_p8 }
  0x53   :  { %p7276_p11 = pnand %p7275_p10, %p7269_p7 }
  0x55   :  { %7279 = shalt.err (!%p7276_p11)
}
  0x56   :  { %50 = dma.hbm_to_vmem [thread:$0]  %s7650_s2, 256, %s48_s29, [#allocation8]  }
  0x57   :  { %s7280_s19 = scalar_lea.hbm %s7652_s4, 64 }
  0x58   :  { %p7281_p12 = scmp.ne.s32.totalorder %s7652_s4, %s7280_s19  ;;  %p7284_p13 = scmp.lt.u32.totalorder %s7280_s19, %s7652_s4 }
  0x5a   :  { %p7286_p0 = pnand %p7284_p13, %p7281_p12 }
  0x5c   :  { %7289 = shalt.err (!%p7286_p0)
}
  0x5d   :  { %s7290_s24 = scalar_lea.vmem %s70_s9, 64  ;;  %p7295_p2 = scmp.lt.s32.totalorder %s70_s9, %s70_s9 }
  0x5e   :  { %p7291_p1 = scmp.ne.s32.totalorder %s70_s9, %s7290_s24  ;;  %p7296_p3 = scmp.lt.s32.totalorder %s7290_s24, %s7290_s24 }
  0x60   :  { %p7297_p4 = por %p7296_p3, %p7295_p2 }
  0x62   :  { %p7298_p5 = pnand %p7297_p4, %p7291_p1 }
  0x64   :  { %7301 = shalt.err (!%p7298_p5)
}
  0x65   :  { %72 = dma.hbm_to_vmem [thread:$0]  %s7652_s4, 64, %s70_s9, [#allocation11]  }
  0x66   :  { %s7367_s25 = smov [#allocation15]   ;;  %s7302_s28 = scalar_lea.hbm %s7654_s6, 16 }
  0x67   :  { %s91_s26 = sshll.u32 %s7367_s25, 4  ;;  %p7303_p6 = scmp.ne.s32.totalorder %s7654_s6, %s7302_s28  ;;  %s92_s26 = int_to_ptr.vmem [resolvable:$true] %s91_s26 }
  0x68   :  { %p7306_p7 = scmp.lt.u32.totalorder %s7302_s28, %s7654_s6 }
  0x6a   :  { %p7308_p8 = pnand %p7306_p7, %p7303_p6 }
  0x6c   :  { %7311 = shalt.err (!%p7308_p8)
}
  0x6d   :  { %s7312_s13 = scalar_lea.vmem %s92_s26, 16  ;;  %s7316_s4 = scalar_lea.vmem %s92_s26, 32 }
  0x6e   :  { %p7313_p9 = scmp.ne.s32.totalorder %s92_s26, %s7312_s13  ;;  %p7317_p10 = scmp.lt.s32.totalorder %s92_s26, %s92_s26 }
  0x6f   :  { %p7318_p11 = scmp.lt.s32.totalorder %s7316_s4, %s7312_s13 }
  0x71   :  { %p7319_p12 = por %p7318_p11, %p7317_p10 }
  0x73   :  { %p7320_p13 = pnand %p7319_p12, %p7313_p9 }
  0x75   :  { %7323 = shalt.err (!%p7320_p13)
}
  0x76   :  { %94 = dma.hbm_to_vmem [thread:$0]  %s7654_s6, 16, %s92_s26, [#allocation14]  }
  0x77   :  { %7346 = dma.done.wait [#allocation5], 128  }
  0x78   :  { %7347 = vsyncadd [#allocation5], 4294967168 }
  0x79   :  { %7348 = dma.done.wait [#allocation8], 16640  }
  0x7a   :  { %7349 = vsyncadd [#allocation8], 4294950656 }
  0x7b   :  { %7350 = dma.done.wait [#allocation11], 65600  }
  0x7c   :  { %7351 = vsyncadd [#allocation11], 4294901696 }
  0x7d   :  { %7352 = dma.done.wait [#allocation14], 4112  }
  0x7e   :  { %7353 = vsyncadd [#allocation14], 4294963184  ;;  %v7368_v0 = vmov 0   ;;  %v119_v1 = vld [vmem:[#allocation7] sm:$0xff]  ;;  %v120_v14 = vld [vmem:[#allocation7 + $0x8] sm:$0xff]  ;;  %s7369_s6 = smov [#allocation16]  }
  0x7f   :  { %1009 = vmatprep.mubr.bf16.mxu0 %v7368_v0  ;;  %1052 = vmatprep.mubr.bf16.mxu1 %v7368_v0  ;;  %v127_v2 = vld [vmem:[#allocation7 + $0x40] sm:$0xff]  ;;  %v128_v15 = vld [vmem:[#allocation7 + $0x48] sm:$0xff]  ;;  %v121_v58 = vld [vmem:[#allocation7 + $0x10] sm:$0xff]  ;;  %s5555_s15 = sshll.u32 %s7369_s6, 4  ;;  %s5556_s15 = int_to_ptr.vmem [resolvable:$true] %s5555_s15 }
  0x80   :  { %v135_v3 = vld [vmem:[#allocation7 + $0x80] sm:$0xff]  ;;  %v5572_v4 = vcombine.high %v119_v1, %v127_v2  ;;  %v5571_v5 = vcombine.low %v119_v1, %v127_v2  ;;  %v5574_v16 = vcombine.high %v120_v14, %v128_v15  ;;  %v5573_v17 = vcombine.low %v120_v14, %v128_v15  ;;  %v136_v18 = vld [vmem:[#allocation7 + $0x88] sm:$0xff]  ;;  %v129_v59 = vld [vmem:[#allocation7 + $0x50] sm:$0xff]  ;;  %s7324_s17 = scalar_lea.vmem %s5556_s15, 256  ;;  %p7329_p1 = scmp.lt.s32.totalorder %s5556_s15, %s5556_s15 }
  0x81   :  { %v143_v6 = vld [vmem:[#allocation7 + $0xc0] sm:$0xff]  ;;  %v144_v19 = vld [vmem:[#allocation7 + $0xc8] sm:$0xff]  ;;  %v5576_v1 = vcombine.high %v121_v58, %v129_v59  ;;  %p7325_p0 = scmp.ne.s32.totalorder %s5556_s15, %s7324_s17  ;;  %p7330_p2 = scmp.lt.s32.totalorder %s7324_s17, %s7324_s17 }
  0x82   :  { %v5588_v7 = vcombine.high %v135_v3, %v143_v6  ;;  %v151_v8 = vld [vmem:[#allocation7 + $0x100] sm:$0xff]  ;;  %977 = vmatprep.subr.bf16.mxu0 %v5572_v4  ;;  %v5587_v10 = vcombine.low %v135_v3, %v143_v6  ;;  %v5590_v21 = vcombine.high %v136_v18, %v144_v19  ;;  %v152_v22 = vld [vmem:[#allocation7 + $0x108] sm:$0xff]  ;;  %1020 = vmatprep.subr.bf16.mxu1 %v5574_v16  ;;  %v137_v3 = vld [vmem:[#allocation7 + $0x90] sm:$0xff] }
  0x83   :  { %v159_v9 = vld [vmem:[#allocation7 + $0x140] sm:$0xff]  ;;  %978 = vmatpush1.bf16.msra.mxu0 %v5571_v5  ;;  %v160_v23 = vld [vmem:[#allocation7 + $0x148] sm:$0xff]  ;;  %1021 = vmatpush1.bf16.msra.mxu1 %v5573_v17  ;;  %v5589_v27 = vcombine.low %v136_v18, %v144_v19  ;;  %v145_v4 = vld [vmem:[#allocation7 + $0xd0] sm:$0xff]  ;;  %p7331_p3 = por %p7330_p2, %p7329_p1 }
  0x84   :  { %979 = vmatprep.subr.bf16.mxu0 %v5588_v7  ;;  %v5604_v11 = vcombine.high %v151_v8, %v159_v9  ;;  %v167_v12 = vld [vmem:[#allocation7 + $0x180] sm:$0xff]  ;;  %v5603_v20 = vcombine.low %v151_v8, %v159_v9  ;;  %1022 = vmatprep.subr.bf16.mxu1 %v5590_v21  ;;  %v5606_v28 = vcombine.high %v152_v22, %v160_v23  ;;  %v168_v30 = vld [vmem:[#allocation7 + $0x188] sm:$0xff]  ;;  %v7503_v5 = vld [vmem:[#allocation4] sm:$0xff]  }
  0x85   :  { %v175_v13 = vld [vmem:[#allocation7 + $0x1c0] sm:$0xff]  ;;  %v176_v31 = vld [vmem:[#allocation7 + $0x1c8] sm:$0xff]  ;;  %v5605_v35 = vcombine.low %v152_v22, %v160_v23  ;;  %v5575_v7 = vcombine.low %v121_v58, %v129_v59  ;;  %v122_v8 = vld [vmem:[#allocation7 + $0x18] sm:$0xff]  ;;  %v5591_v15 = vcombine.low %v137_v3, %v145_v4  ;;  %p7332_p4 = pnand %p7331_p3, %p7325_p0 }
  0x86   :  { %v5620_v24 = vcombine.high %v167_v12, %v175_v13  ;;  %v183_v25 = vld [vmem:[#allocation7 + $0x200] sm:$0xff]  ;;  %v5619_v29 = vcombine.low %v167_v12, %v175_v13  ;;  %v5622_v36 = vcombine.high %v168_v30, %v176_v31  ;;  %v184_v38 = vld [vmem:[#allocation7 + $0x208] sm:$0xff]  ;;  %v5621_v43 = vcombine.low %v168_v30, %v176_v31  ;;  %v130_v9 = vld [vmem:[#allocation7 + $0x58] sm:$0xff] }
  0x87   :  { %980 = vmatpush1.bf16.msra.mxu0 %v5587_v10  ;;  %v191_v26 = vld [vmem:[#allocation7 + $0x240] sm:$0xff]  ;;  %1023 = vmatpush1.bf16.msra.mxu1 %v5589_v27  ;;  %v192_v39 = vld [vmem:[#allocation7 + $0x248] sm:$0xff]  ;;  %v5592_v10 = vcombine.high %v137_v3, %v145_v4  ;;  %v153_v12 = vld [vmem:[#allocation7 + $0x110] sm:$0xff]  ;;  %v5578_v14 = vcombine.high %v122_v8, %v130_v9  ;;  %v5577_v19 = vcombine.low %v122_v8, %v130_v9 }
  0x88   :  { %981 = vmatprep.subr.bf16.mxu0 %v5604_v11  ;;  %v5636_v32 = vcombine.high %v183_v25, %v191_v26  ;;  %v199_v33 = vld [vmem:[#allocation7 + $0x280] sm:$0xff]  ;;  %1024 = vmatprep.subr.bf16.mxu1 %v5606_v28  ;;  %v5635_v37 = vcombine.low %v183_v25, %v191_v26  ;;  %v5638_v44 = vcombine.high %v184_v38, %v192_v39  ;;  %v200_v46 = vld [vmem:[#allocation7 + $0x288] sm:$0xff]  ;;  %v161_v13 = vld [vmem:[#allocation7 + $0x150] sm:$0xff] }
  0x89   :  { %v207_v34 = vld [vmem:[#allocation7 + $0x2c0] sm:$0xff]  ;;  %v208_v47 = vld [vmem:[#allocation7 + $0x2c8] sm:$0xff]  ;;  %v5637_v51 = vcombine.low %v184_v38, %v192_v39  ;;  %v138_v16 = vld [vmem:[#allocation7 + $0x98] sm:$0xff]  ;;  %v5608_v18 = vcombine.high %v153_v12, %v161_v13  ;;  %v5607_v23 = vcombine.low %v153_v12, %v161_v13 }
  0x8a   :  { %v5652_v40 = vcombine.high %v199_v33, %v207_v34  ;;  %v215_v41 = vld [vmem:[#allocation7 + $0x300] sm:$0xff]  ;;  %v5651_v45 = vcombine.low %v199_v33, %v207_v34  ;;  %v5654_v52 = vcombine.high %v200_v46, %v208_v47  ;;  %v216_v54 = vld [vmem:[#allocation7 + $0x308] sm:$0xff]  ;;  %v5653_v57 = vcombine.low %v200_v46, %v208_v47  ;;  %v146_v17 = vld [vmem:[#allocation7 + $0xd8] sm:$0xff] }
  0x8b   :  { %982 = vmatpush1.bf16.msra.mxu0 %v5603_v20  ;;  %v223_v42 = vld [vmem:[#allocation7 + $0x340] sm:$0xff]  ;;  %1025 = vmatpush1.bf16.msra.mxu1 %v5605_v35  ;;  %v224_v55 = vld [vmem:[#allocation7 + $0x348] sm:$0xff]  ;;  %v169_v20 = vld [vmem:[#allocation7 + $0x190] sm:$0xff]  ;;  %v5594_v22 = vcombine.high %v138_v16, %v146_v17  ;;  %v5593_v27 = vcombine.low %v138_v16, %v146_v17 }
  0x8c   :  { %983 = vmatprep.subr.bf16.mxu0 %v5620_v24  ;;  %1026 = vmatprep.subr.bf16.mxu1 %v5622_v36  ;;  %v5668_v48 = vcombine.high %v215_v41, %v223_v42  ;;  %v231_v49 = vld [vmem:[#allocation7 + $0x380] sm:$0xff]  ;;  %v5667_v53 = vcombine.low %v215_v41, %v223_v42  ;;  %v5670_v60 = vcombine.high %v216_v54, %v224_v55  ;;  %v232_v62 = vld [vmem:[#allocation7 + $0x388] sm:$0xff]  ;;  %v177_v21 = vld [vmem:[#allocation7 + $0x1d0] sm:$0xff] }
  0x8d   :  { %v239_v50 = vld [vmem:[#allocation7 + $0x3c0] sm:$0xff]  ;;  %v240_v63 = vld [vmem:[#allocation7 + $0x3c8] sm:$0xff]  ;;  %v5669_v2 = vcombine.low %v216_v54, %v224_v55  ;;  %v154_v24 = vld [vmem:[#allocation7 + $0x118] sm:$0xff]  ;;  %v5624_v26 = vcombine.high %v169_v20, %v177_v21  ;;  %v5623_v31 = vcombine.low %v169_v20, %v177_v21 }
  0x8e   :  { %v5684_v56 = vcombine.high %v231_v49, %v239_v50  ;;  %v5683_v61 = vcombine.low %v231_v49, %v239_v50  ;;  %v5686_v6 = vcombine.high %v232_v62, %v240_v63  ;;  %v5685_v11 = vcombine.low %v232_v62, %v240_v63  ;;  %v162_v25 = vld [vmem:[#allocation7 + $0x158] sm:$0xff]  ;;  %v185_v28 = vld [vmem:[#allocation7 + $0x210] sm:$0xff]  ;;  %v123_v59 = vld [vmem:[#allocation7 + $0x20] sm:$0xff] }
  0x8f   :  { %984 = vmatpush1.bf16.msra.mxu0 %v5619_v29  ;;  %1027 = vmatpush1.bf16.msra.mxu1 %v5621_v43  ;;  %v193_v29 = vld [vmem:[#allocation7 + $0x250] sm:$0xff]  ;;  %v5610_v30 = vcombine.high %v154_v24, %v162_v25  ;;  %v178_v33 = vld [vmem:[#allocation7 + $0x1d8] sm:$0xff]  ;;  %v5609_v36 = vcombine.low %v154_v24, %v162_v25  ;;  %v139_v4 = vld [vmem:[#allocation7 + $0xa0] sm:$0xff] }
  0x90   :  { %985 = vmatprep.subr.bf16.mxu0 %v5636_v32  ;;  %1028 = vmatprep.subr.bf16.mxu1 %v5638_v44  ;;  %v170_v32 = vld [vmem:[#allocation7 + $0x198] sm:$0xff]  ;;  %v5640_v34 = vcombine.high %v185_v28, %v193_v29  ;;  %v201_v35 = vld [vmem:[#allocation7 + $0x290] sm:$0xff]  ;;  %v5639_v39 = vcombine.low %v185_v28, %v193_v29  ;;  %v155_v13 = vld [vmem:[#allocation7 + $0x120] sm:$0xff] }
  0x91   :  { %v5626_v38 = vcombine.high %v170_v32, %v178_v33  ;;  %v194_v41 = vld [vmem:[#allocation7 + $0x258] sm:$0xff]  ;;  %v217_v43 = vld [vmem:[#allocation7 + $0x310] sm:$0xff]  ;;  %v5625_v44 = vcombine.low %v170_v32, %v178_v33  ;;  %v171_v21 = vld [vmem:[#allocation7 + $0x1a0] sm:$0xff] }
  0x92   :  { %v210_v49 = vld [vmem:[#allocation7 + $0x2d8] sm:$0xff]  ;;  %v187_v29 = vld [vmem:[#allocation7 + $0x220] sm:$0xff] }
  0x93   :  { %986 = vmatpush1.bf16.msra.mxu0 %v5635_v37  ;;  %1029 = vmatpush1.bf16.msra.mxu1 %v5637_v51  ;;  %v209_v37 = vld [vmem:[#allocation7 + $0x2d0] sm:$0xff] }
  0x94   :  { %987 = vmatprep.subr.bf16.mxu0 %v5652_v40  ;;  %1030 = vmatprep.subr.bf16.mxu1 %v5654_v52  ;;  %v186_v40 = vld [vmem:[#allocation7 + $0x218] sm:$0xff]  ;;  %v5656_v42 = vcombine.high %v201_v35, %v209_v37  ;;  %v5655_v47 = vcombine.low %v201_v35, %v209_v37  ;;  %v233_v51 = vld [vmem:[#allocation7 + $0x390] sm:$0xff]  ;;  %v180_v35 = vld [vmem:[#allocation7 + $0x1e8] sm:$0xff] }
  0x95   :  { %v5642_v46 = vcombine.high %v186_v40, %v194_v41  ;;  %v5641_v52 = vcombine.low %v186_v40, %v194_v41  ;;  %v203_v37 = vld [vmem:[#allocation7 + $0x2a0] sm:$0xff]  ;;  %v188_v41 = vld [vmem:[#allocation7 + $0x228] sm:$0xff] }
  0x97   :  { %988 = vmatpush1.bf16.msra.mxu0 %v5651_v45  ;;  %1031 = vmatpush1.bf16.msra.mxu1 %v5653_v57  ;;  %v225_v45 = vld [vmem:[#allocation7 + $0x350] sm:$0xff]  ;;  %v226_v57 = vld [vmem:[#allocation7 + $0x358] sm:$0xff] }
  0x98   :  { %989 = vmatprep.subr.bf16.mxu0 %v5668_v48  ;;  %1032 = vmatprep.subr.bf16.mxu1 %v5670_v60  ;;  %v202_v48 = vld [vmem:[#allocation7 + $0x298] sm:$0xff]  ;;  %v5672_v50 = vcombine.high %v217_v43, %v225_v45  ;;  %v5671_v55 = vcombine.low %v217_v43, %v225_v45  ;;  %v196_v43 = vld [vmem:[#allocation7 + $0x268] sm:$0xff] }
  0x99   :  { %v5658_v54 = vcombine.high %v202_v48, %v210_v49  ;;  %v5657_v60 = vcombine.low %v202_v48, %v210_v49  ;;  %v204_v48 = vld [vmem:[#allocation7 + $0x2a8] sm:$0xff] }
  0x9a   :  { %v212_v49 = vld [vmem:[#allocation7 + $0x2e8] sm:$0xff] }
  0x9b   :  { %990 = vmatpush1.bf16.msra.mxu0 %v5667_v53  ;;  %1033 = vmatpush1.bf16.msra.mxu1 %v5669_v2  ;;  %v241_v53 = vld [vmem:[#allocation7 + $0x3d0] sm:$0xff]  ;;  %v242_v2 = vld [vmem:[#allocation7 + $0x3d8] sm:$0xff] }
  0x9c   :  { %991 = vmatprep.subr.bf16.mxu0 %v5684_v56  ;;  %1034 = vmatprep.subr.bf16.mxu1 %v5686_v6  ;;  %v218_v56 = vld [vmem:[#allocation7 + $0x318] sm:$0xff]  ;;  %v5688_v58 = vcombine.high %v233_v51, %v241_v53  ;;  %v5687_v63 = vcombine.low %v233_v51, %v241_v53  ;;  %v243_v53 = vld [vmem:[#allocation7 + $0x3e0] sm:$0xff] }
  0x9d   :  { %v5674_v62 = vcombine.high %v218_v56, %v226_v57  ;;  %v5673_v6 = vcombine.low %v218_v56, %v226_v57  ;;  %v220_v56 = vld [vmem:[#allocation7 + $0x328] sm:$0xff] }
  0x9e   :  { %v228_v57 = vld [vmem:[#allocation7 + $0x368] sm:$0xff] }
  0x9f   :  { %992 = vmatpush1.bf16.msra.mxu0 %v5683_v61  ;;  %1035 = vmatpush1.bf16.msra.mxu1 %v5685_v11  ;;  %v131_v61 = vld [vmem:[#allocation7 + $0x60] sm:$0xff]  ;;  %v132_v11 = vld [vmem:[#allocation7 + $0x68] sm:$0xff] }
  0xa0   :  { %1063 = vmatprep.subr.bf16.mxu0 %v5576_v1  ;;  %1106 = vmatprep.subr.bf16.mxu1 %v5578_v14  ;;  %v234_v1 = vld [vmem:[#allocation7 + $0x398] sm:$0xff]  ;;  %v5580_v3 = vcombine.high %v123_v59, %v131_v61  ;;  %v5579_v9 = vcombine.low %v123_v59, %v131_v61  ;;  %v133_v61 = vld [vmem:[#allocation7 + $0x70] sm:$0xff] }
  0xa1   :  { %v5690_v8 = vcombine.high %v234_v1, %v242_v2  ;;  %v5689_v14 = vcombine.low %v234_v1, %v242_v2  ;;  %v236_v1 = vld [vmem:[#allocation7 + $0x3a8] sm:$0xff] }
  0xa2   :  { %1010 = vmatmul.mubr.bf16.vlgmr.msra.gmra.mrb[0].mxu0 %v7503_v5  ;;  %1053 = vmatmul.mubr.bf16.vlgmr.msra.gmra.mrb[0].mxu1 %v7503_v5  ;;  %v244_v2 = vld [vmem:[#allocation7 + $0x3e8] sm:$0xff] }
  0xa3   :  { %1064 = vmatpush1.bf16.msra.mxu0 %v5575_v7  ;;  %1095 = vmatprep.mubr.bf16.mxu0 %v7368_v0  ;;  %v147_v7 = vld [vmem:[#allocation7 + $0xe0] sm:$0xff] }
  0xa4   :  { %1065 = vmatprep.subr.bf16.mxu0 %v5592_v10  ;;  %1107 = vmatpush1.bf16.msra.mxu1 %v5577_v19  ;;  %v124_v10 = vld [vmem:[#allocation7 + $0x28] sm:$0xff]  ;;  %v5596_v12 = vcombine.high %v139_v4, %v147_v7  ;;  %v5595_v17 = vcombine.low %v139_v4, %v147_v7  ;;  %v149_v7 = vld [vmem:[#allocation7 + $0xf0] sm:$0xff] }
  0xa5   :  { %1138 = vmatprep.mubr.bf16.mxu1 %v7368_v0  ;;  %1108 = vmatprep.subr.bf16.mxu1 %v5594_v22  ;;  %v5582_v16 = vcombine.high %v124_v10, %v132_v11  ;;  %v148_v19 = vld [vmem:[#allocation7 + $0xe8] sm:$0xff]  ;;  %v5581_v22 = vcombine.low %v124_v10, %v132_v11  ;;  %v126_v10 = vld [vmem:[#allocation7 + $0x38] sm:$0xff] }
  0xa6   :  { %v134_v11 = vld [vmem:[#allocation7 + $0x78] sm:$0xff] }
  0xa7   :  { %1066 = vmatpush1.bf16.msra.mxu0 %v5591_v15  ;;  %v163_v15 = vld [vmem:[#allocation7 + $0x160] sm:$0xff] }
  0xa8   :  { %1067 = vmatprep.subr.bf16.mxu0 %v5608_v18  ;;  %1109 = vmatpush1.bf16.msra.mxu1 %v5593_v27  ;;  %v140_v18 = vld [vmem:[#allocation7 + $0xa8] sm:$0xff]  ;;  %v5612_v20 = vcombine.high %v155_v13, %v163_v15  ;;  %v5611_v25 = vcombine.low %v155_v13, %v163_v15  ;;  %v165_v15 = vld [vmem:[#allocation7 + $0x170] sm:$0xff] }
  0xa9   :  { %1110 = vmatprep.subr.bf16.mxu1 %v5610_v30  ;;  %v5598_v24 = vcombine.high %v140_v18, %v148_v19  ;;  %v164_v27 = vld [vmem:[#allocation7 + $0x168] sm:$0xff]  ;;  %v5597_v30 = vcombine.low %v140_v18, %v148_v19  ;;  %v142_v18 = vld [vmem:[#allocation7 + $0xb8] sm:$0xff] }
  0xaa   :  { %v150_v19 = vld [vmem:[#allocation7 + $0xf8] sm:$0xff] }
  0xab   :  { %1068 = vmatpush1.bf16.msra.mxu0 %v5607_v23  ;;  %v179_v23 = vld [vmem:[#allocation7 + $0x1e0] sm:$0xff] }
  0xac   :  { %1069 = vmatprep.subr.bf16.mxu0 %v5624_v26  ;;  %1111 = vmatpush1.bf16.msra.mxu1 %v5609_v36  ;;  %v156_v26 = vld [vmem:[#allocation7 + $0x128] sm:$0xff]  ;;  %v5628_v28 = vcombine.high %v171_v21, %v179_v23  ;;  %v5627_v33 = vcombine.low %v171_v21, %v179_v23  ;;  %v181_v23 = vld [vmem:[#allocation7 + $0x1f0] sm:$0xff] }
  0xad   :  { %1112 = vmatprep.subr.bf16.mxu1 %v5626_v38  ;;  %v5614_v32 = vcombine.high %v156_v26, %v164_v27  ;;  %v5613_v38 = vcombine.low %v156_v26, %v164_v27  ;;  %v158_v26 = vld [vmem:[#allocation7 + $0x138] sm:$0xff] }
  0xae   :  { %v166_v27 = vld [vmem:[#allocation7 + $0x178] sm:$0xff] }
  0xaf   :  { %1070 = vmatpush1.bf16.msra.mxu0 %v5623_v31  ;;  %v195_v31 = vld [vmem:[#allocation7 + $0x260] sm:$0xff] }
  0xb0   :  { %1071 = vmatprep.subr.bf16.mxu0 %v5640_v34  ;;  %1113 = vmatpush1.bf16.msra.mxu1 %v5625_v44  ;;  %v172_v34 = vld [vmem:[#allocation7 + $0x1a8] sm:$0xff]  ;;  %v5644_v36 = vcombine.high %v187_v29, %v195_v31  ;;  %v219_v44 = vld [vmem:[#allocation7 + $0x320] sm:$0xff] }
  0xb1   :  { %1114 = vmatprep.subr.bf16.mxu1 %v5642_v46  ;;  %v5630_v40 = vcombine.high %v172_v34, %v180_v35  ;;  %v227_v46 = vld [vmem:[#allocation7 + $0x360] sm:$0xff] }
  0xb2   :  { %v5675_v59 = vcombine.low %v219_v44, %v227_v46 }
  0xb3   :  { %1072 = vmatpush1.bf16.msra.mxu0 %v5639_v39  ;;  %v211_v39 = vld [vmem:[#allocation7 + $0x2e0] sm:$0xff] }
  0xb4   :  { %1073 = vmatprep.subr.bf16.mxu0 %v5656_v42  ;;  %1115 = vmatpush1.bf16.msra.mxu1 %v5641_v52  ;;  %v5643_v42 = vcombine.low %v187_v29, %v195_v31  ;;  %v5660_v45 = vcombine.high %v203_v37, %v211_v39  ;;  %v5659_v51 = vcombine.low %v203_v37, %v211_v39  ;;  %v235_v52 = vld [vmem:[#allocation7 + $0x3a0] sm:$0xff]  ;;  %v197_v31 = vld [vmem:[#allocation7 + $0x270] sm:$0xff] }
  0xb5   :  { %1116 = vmatprep.subr.bf16.mxu1 %v5658_v54  ;;  %v5676_v54 = vcombine.high %v219_v44, %v227_v46  ;;  %v5691_v4 = vcombine.low %v235_v52, %v243_v53  ;;  %v213_v39 = vld [vmem:[#allocation7 + $0x2f0] sm:$0xff] }
  0xb6   :  { %v221_v46 = vld [vmem:[#allocation7 + $0x330] sm:$0xff] }
  0xb7   :  { %1074 = vmatpush1.bf16.msra.mxu0 %v5655_v47  ;;  %v5629_v47 = vcombine.low %v172_v34, %v180_v35  ;;  %v174_v34 = vld [vmem:[#allocation7 + $0x1b8] sm:$0xff] }
  0xb8   :  { %1075 = vmatprep.subr.bf16.mxu0 %v5672_v50  ;;  %1117 = vmatpush1.bf16.msra.mxu1 %v5657_v60  ;;  %v5646_v50 = vcombine.high %v188_v41, %v196_v43  ;;  %v125_v60 = vld [vmem:[#allocation7 + $0x30] sm:$0xff]  ;;  %v182_v35 = vld [vmem:[#allocation7 + $0x1f8] sm:$0xff] }
  0xb9   :  { %1118 = vmatprep.subr.bf16.mxu1 %v5674_v62  ;;  %v5692_v62 = vcombine.high %v235_v52, %v243_v53  ;;  %v5583_v13 = vcombine.low %v125_v60, %v133_v61  ;;  %v5634_v44 = vcombine.high %v174_v34, %v182_v35 }
  0xbb   :  { %1076 = vmatpush1.bf16.msra.mxu0 %v5671_v55  ;;  %v5645_v55 = vcombine.low %v188_v41, %v196_v43  ;;  %v5617_v41 = vcombine.low %v158_v26, %v166_v27  ;;  %v198_v43 = vld [vmem:[#allocation7 + $0x278] sm:$0xff] }
  0xbc   :  { %1077 = vmatprep.subr.bf16.mxu0 %v5688_v58  ;;  %1119 = vmatpush1.bf16.msra.mxu1 %v5673_v6  ;;  %v5662_v58 = vcombine.high %v204_v48, %v212_v49  ;;  %v141_v6 = vld [vmem:[#allocation7 + $0xb0] sm:$0xff] }
  0xbd   :  { %1120 = vmatprep.subr.bf16.mxu1 %v5690_v8  ;;  %v5584_v8 = vcombine.high %v125_v60, %v133_v61  ;;  %v5599_v21 = vcombine.low %v141_v6, %v149_v7 }
  0xbf   :  { %1078 = vmatpush1.bf16.msra.mxu0 %v5687_v63  ;;  %v5661_v63 = vcombine.low %v204_v48, %v212_v49  ;;  %v5633_v48 = vcombine.low %v174_v34, %v182_v35  ;;  %v206_v49 = vld [vmem:[#allocation7 + $0x2b8] sm:$0xff] }
  0xc0   :  { %1149 = vmatprep.subr.bf16.mxu0 %v5580_v3  ;;  %1121 = vmatpush1.bf16.msra.mxu1 %v5689_v14  ;;  %v5678_v3 = vcombine.high %v220_v56, %v228_v57  ;;  %v157_v14 = vld [vmem:[#allocation7 + $0x130] sm:$0xff]  ;;  %v6402_v34 = vld [vmem:[#allocation10 + $0xa8] ss:$16 sps:$4 sm:$0xff]   ;;  %v6410_v35 = vld [vmem:[#allocation10 + $0xcc] ss:$16 sps:$4 sm:$0xff]  }
  0xc1   :  { %1192 = vmatprep.subr.bf16.mxu1 %v5582_v16  ;;  %v5600_v16 = vcombine.high %v141_v6, %v149_v7  ;;  %v5615_v29 = vcombine.low %v157_v14, %v165_v15 }
  0xc2   :  { %1096 = vmatmul.mubr.bf16.vlgmr.msra.gmra.mrb[4].mxu0 %v7503_v5 }
  0xc3   :  { %1150 = vmatpush1.bf16.msra.mxu0 %v5579_v9  ;;  %1181 = vmatprep.mubr.bf16.mxu0 %v7368_v0  ;;  %v5677_v9 = vcombine.low %v220_v56, %v228_v57  ;;  %v245_v56 = vld [vmem:[#allocation7 + $0x3f0] sm:$0xff] }
  0xc4   :  { %1151 = vmatprep.subr.bf16.mxu0 %v5596_v12  ;;  %1139 = vmatmul.mubr.bf16.vlgmr.msra.gmra.mrb[4].mxu1 %v7503_v5  ;;  %v5694_v12 = vcombine.high %v236_v1, %v244_v2 }
  0xc5   :  { %1193 = vmatpush1.bf16.msra.mxu1 %v5581_v22  ;;  %1224 = vmatprep.mubr.bf16.mxu1 %v7368_v0  ;;  %v173_v22 = vld [vmem:[#allocation7 + $0x1b0] sm:$0xff] }
  0xc6   :  { %1194 = vmatprep.subr.bf16.mxu1 %v5598_v24  ;;  %v5616_v24 = vcombine.high %v157_v14, %v165_v15  ;;  %v5631_v37 = vcombine.low %v173_v22, %v181_v23  ;;  %v6372_v14 = vld [vmem:[#allocation10 + $0x8] ss:$16 sps:$4 sm:$0xff]   ;;  %v6380_v15 = vld [vmem:[#allocation10 + $0x2c] ss:$16 sps:$4 sm:$0xff]  }
  0xc7   :  { %1152 = vmatpush1.bf16.msra.mxu0 %v5595_v17  ;;  %v5693_v17 = vcombine.low %v236_v1, %v244_v2  ;;  %v246_v2 = vld [vmem:[#allocation7 + $0x3f8] sm:$0xff] }
  0xc8   :  { %1153 = vmatprep.subr.bf16.mxu0 %v5612_v20  ;;  %v5586_v20 = vcombine.high %v126_v10, %v134_v11 }
  0xc9   :  { %1195 = vmatpush1.bf16.msra.mxu1 %v5597_v30  ;;  %v189_v30 = vld [vmem:[#allocation7 + $0x230] sm:$0xff] }
  0xca   :  { %1196 = vmatprep.subr.bf16.mxu1 %v5614_v32  ;;  %v5632_v32 = vcombine.high %v173_v22, %v181_v23  ;;  %v6384_v22 = vld [vmem:[#allocation10 + $0x48] ss:$16 sps:$4 sm:$0xff]   ;;  %v6392_v23 = vld [vmem:[#allocation10 + $0x6c] ss:$16 sps:$4 sm:$0xff]  }
  0xcb   :  { %1154 = vmatpush1.bf16.msra.mxu0 %v5611_v25  ;;  %v5585_v25 = vcombine.low %v126_v10, %v134_v11  ;;  %v6374_v11 = vld [vmem:[#allocation10 + $0xc] ss:$16 sps:$4 sm:$0xff]  }
  0xcc   :  { %1155 = vmatprep.subr.bf16.mxu0 %v5628_v28  ;;  %v5602_v28 = vcombine.high %v142_v18, %v150_v19 }
  0xcd   :  { %1197 = vmatpush1.bf16.msra.mxu1 %v5613_v38  ;;  %v205_v38 = vld [vmem:[#allocation7 + $0x2b0] sm:$0xff] }
  0xce   :  { %1198 = vmatprep.subr.bf16.mxu1 %v5630_v40  ;;  %v5648_v40 = vcombine.high %v189_v30, %v197_v31  ;;  %v5663_v52 = vcombine.low %v205_v38, %v213_v39 }
  0xcf   :  { %1156 = vmatpush1.bf16.msra.mxu0 %v5627_v33  ;;  %v5601_v33 = vcombine.low %v142_v18, %v150_v19  ;;  %v7169_v18 = vld [vmem:[#allocation4] sm:$0xff]  }
  0xd0   :  { %1157 = vmatprep.subr.bf16.mxu0 %v5644_v36  ;;  %v5618_v36 = vcombine.high %v158_v26, %v166_v27  ;;  %v6378_v19 = vld [vmem:[#allocation10 + $0x28] ss:$16 sps:$4 sm:$0xff]   ;;  %v6398_v27 = vld [vmem:[#allocation10 + $0x8c] ss:$16 sps:$4 sm:$0xff]  }
  0xd1   :  { %1199 = vmatpush1.bf16.msra.mxu1 %v5629_v47  ;;  %v229_v47 = vld [vmem:[#allocation7 + $0x370] sm:$0xff]  ;;  %v6390_v26 = vld [vmem:[#allocation10 + $0x68] ss:$16 sps:$4 sm:$0xff]  }
  0xd2   :  { %1200 = vmatprep.subr.bf16.mxu1 %v5646_v50  ;;  %v214_v50 = vld [vmem:[#allocation7 + $0x2f8] sm:$0xff]  ;;  %v5680_v53 = vcombine.high %v221_v46, %v229_v47  ;;  %v5679_v60 = vcombine.low %v221_v46, %v229_v47 }
  0xd3   :  { %1158 = vmatpush1.bf16.msra.mxu0 %v5643_v42  ;;  %v190_v42 = vld [vmem:[#allocation7 + $0x238] sm:$0xff]  ;;  %v5666_v57 = vcombine.high %v206_v49, %v214_v50 }
  0xd4   :  { %1159 = vmatprep.subr.bf16.mxu0 %v5660_v45  ;;  %v5647_v45 = vcombine.low %v189_v30, %v197_v31  ;;  %v6396_v30 = vld [vmem:[#allocation10 + $0x88] ss:$16 sps:$4 sm:$0xff]   ;;  %v6404_v31 = vld [vmem:[#allocation10 + $0xac] ss:$16 sps:$4 sm:$0xff]  }
  0xd5   :  { %1201 = vmatpush1.bf16.msra.mxu1 %v5645_v55  ;;  %v237_v55 = vld [vmem:[#allocation7 + $0x3b0] sm:$0xff]  ;;  %v6420_v46 = vld [vmem:[#allocation10 + $0x108] ss:$16 sps:$4 sm:$0xff]   ;;  %v6428_v47 = vld [vmem:[#allocation10 + $0x12c] ss:$16 sps:$4 sm:$0xff]  }
  0xd6   :  { %1202 = vmatprep.subr.bf16.mxu1 %v5662_v58  ;;  %v222_v58 = vld [vmem:[#allocation7 + $0x338] sm:$0xff]  ;;  %v5696_v61 = vcombine.high %v237_v55, %v245_v56 }
  0xd7   :  { %1160 = vmatpush1.bf16.msra.mxu0 %v5659_v51  ;;  %v5650_v51 = vcombine.high %v190_v42, %v198_v43 }
  0xd8   :  { %1161 = vmatprep.subr.bf16.mxu0 %v5676_v54  ;;  %v5649_v54 = vcombine.low %v190_v42, %v198_v43  ;;  %v6414_v42 = vld [vmem:[#allocation10 + $0xe8] ss:$16 sps:$4 sm:$0xff]   ;;  %v6422_v43 = vld [vmem:[#allocation10 + $0x10c] ss:$16 sps:$4 sm:$0xff]  }
  0xd9   :  { %1203 = vmatpush1.bf16.msra.mxu1 %v5661_v63  ;;  %v238_v63 = vld [vmem:[#allocation7 + $0x3b8] sm:$0xff] }
  0xda   :  { %1204 = vmatprep.subr.bf16.mxu1 %v5678_v3  ;;  %v6371_v3 = vld [vmem:[#allocation10 + $0x4] ss:$16 sps:$4 sm:$0xff]   ;;  %v5698_v7 = vcombine.high %v238_v63, %v246_v2  ;;  %v5697_v10 = vcombine.low %v238_v63, %v246_v2  ;;  %v6453_v63 = vld [vmem:[#allocation10 + $0x1c0] ss:$16 sps:$4 sm:$0xff]   ;;  %v6450_v2 = vld [vmem:[#allocation10 + $0x1a8] ss:$16 sps:$4 sm:$0xff]  }
  0xdb   :  { %1162 = vmatpush1.bf16.msra.mxu0 %v5675_v59  ;;  %v230_v59 = vld [vmem:[#allocation7 + $0x378] sm:$0xff] }
  0xdc   :  { %1163 = vmatprep.subr.bf16.mxu0 %v5692_v62  ;;  %v5665_v62 = vcombine.low %v206_v49, %v214_v50  ;;  %v5682_v1 = vcombine.high %v222_v58, %v230_v59  ;;  %v5681_v6 = vcombine.low %v222_v58, %v230_v59  ;;  %v6426_v49 = vld [vmem:[#allocation10 + $0x128] ss:$16 sps:$4 sm:$0xff]   ;;  %v6434_v50 = vld [vmem:[#allocation10 + $0x14c] ss:$16 sps:$4 sm:$0xff]   ;;  %v6447_v59 = vld [vmem:[#allocation10 + $0x1a0] ss:$16 sps:$4 sm:$0xff]  }
  0xdd   :  { %1205 = vmatpush1.bf16.msra.mxu1 %v5677_v9  ;;  %v6377_v9 = vld [vmem:[#allocation10 + $0x24] ss:$16 sps:$4 sm:$0xff]   ;;  %v6446_v58 = vld [vmem:[#allocation10 + $0x18c] ss:$16 sps:$4 sm:$0xff]  }
  0xde   :  { %1206 = vmatprep.subr.bf16.mxu1 %v5694_v12  ;;  %v6375_v12 = vld [vmem:[#allocation10 + $0x20] ss:$16 sps:$4 sm:$0xff]  }
  0xdf   :  { %1164 = vmatpush1.bf16.msra.mxu0 %v5691_v4  ;;  %v5695_v4 = vcombine.low %v237_v55, %v245_v56  ;;  %v6441_v55 = vld [vmem:[#allocation10 + $0x180] ss:$16 sps:$4 sm:$0xff]   ;;  %v6449_v56 = vld [vmem:[#allocation10 + $0x1a4] ss:$16 sps:$4 sm:$0xff]  }
  0xe0   :  { %1235 = vmatprep.subr.bf16.mxu0 %v5584_v8  ;;  %v6369_v8 = vld [vmem:[#allocation10] ss:$16 sps:$4 sm:$0xff]  }
  0xe1   :  { %1207 = vmatpush1.bf16.msra.mxu1 %v5693_v17  ;;  %v6389_v17 = vld [vmem:[#allocation10 + $0x64] ss:$16 sps:$4 sm:$0xff]  }
  0xe2   :  { %1182 = vmatmul.mubr.bf16.vlgmr.msra.gmra.mrb[8].mxu0 %v7503_v5  ;;  %1278 = vmatprep.subr.bf16.mxu1 %v5586_v20  ;;  %v6386_v20 = vld [vmem:[#allocation10 + $0x4c] ss:$16 sps:$4 sm:$0xff]  }
  0xe3   :  { %1236 = vmatpush1.bf16.msra.mxu0 %v5583_v13  ;;  %1267 = vmatprep.mubr.bf16.mxu0 %v7368_v0  ;;  %v6383_v13 = vld [vmem:[#allocation10 + $0x44] ss:$16 sps:$4 sm:$0xff]  }
  0xe4   :  { %1237 = vmatprep.subr.bf16.mxu0 %v5600_v16  ;;  %1225 = vmatmul.mubr.bf16.vlgmr.msra.gmra.mrb[8].mxu1 %v7503_v5  ;;  %v6381_v16 = vld [vmem:[#allocation10 + $0x40] ss:$16 sps:$4 sm:$0xff]  }
  0xe5   :  { %1279 = vmatpush1.bf16.msra.mxu1 %v5585_v25  ;;  %1310 = vmatprep.mubr.bf16.mxu1 %v7368_v0  ;;  %v5664_v0 = vcombine.high %v205_v38, %v213_v39  ;;  %v6401_v25 = vld [vmem:[#allocation10 + $0xa4] ss:$16 sps:$4 sm:$0xff]   ;;  %v6408_v38 = vld [vmem:[#allocation10 + $0xc8] ss:$16 sps:$4 sm:$0xff]   ;;  %v6416_v39 = vld [vmem:[#allocation10 + $0xec] ss:$16 sps:$4 sm:$0xff]  }
  0xe6   :  { %1280 = vmatprep.subr.bf16.mxu1 %v5602_v28  ;;  %v6399_v28 = vld [vmem:[#allocation10 + $0xa0] ss:$16 sps:$4 sm:$0xff]  }
  0xe7   :  { %1238 = vmatpush1.bf16.msra.mxu0 %v5599_v21  ;;  %v6387_v21 = vld [vmem:[#allocation10 + $0x60] ss:$16 sps:$4 sm:$0xff]  }
  0xe8   :  { %1239 = vmatprep.subr.bf16.mxu0 %v5616_v24  ;;  %v6393_v24 = vld [vmem:[#allocation10 + $0x80] ss:$16 sps:$4 sm:$0xff]  }
  0xe9   :  { %1281 = vmatpush1.bf16.msra.mxu1 %v5601_v33  ;;  %v6413_v33 = vld [vmem:[#allocation10 + $0xe4] ss:$16 sps:$4 sm:$0xff]  }
  0xea   :  { %1282 = vmatprep.subr.bf16.mxu1 %v5618_v36  ;;  %v6411_v36 = vld [vmem:[#allocation10 + $0xe0] ss:$16 sps:$4 sm:$0xff]  }
  0xeb   :  { %1240 = vmatpush1.bf16.msra.mxu0 %v5615_v29  ;;  %v6407_v29 = vld [vmem:[#allocation10 + $0xc4] ss:$16 sps:$4 sm:$0xff]  }
  0xec   :  { %1241 = vmatprep.subr.bf16.mxu0 %v5632_v32  ;;  %v6405_v32 = vld [vmem:[#allocation10 + $0xc0] ss:$16 sps:$4 sm:$0xff]  }
  0xed   :  { %1283 = vmatpush1.bf16.msra.mxu1 %v5617_v41  ;;  %v6425_v41 = vld [vmem:[#allocation10 + $0x124] ss:$16 sps:$4 sm:$0xff]  }
  0xee   :  { %1284 = vmatprep.subr.bf16.mxu1 %v5634_v44  ;;  %v6423_v44 = vld [vmem:[#allocation10 + $0x120] ss:$16 sps:$4 sm:$0xff]  }
  0xef   :  { %1242 = vmatpush1.bf16.msra.mxu0 %v5631_v37  ;;  %v6419_v37 = vld [vmem:[#allocation10 + $0x104] ss:$16 sps:$4 sm:$0xff]  }
  0xf0   :  { %1243 = vmatprep.subr.bf16.mxu0 %v5648_v40  ;;  %v6417_v40 = vld [vmem:[#allocation10 + $0x100] ss:$16 sps:$4 sm:$0xff]  }
  0xf1   :  { %1285 = vmatpush1.bf16.msra.mxu1 %v5633_v48  ;;  %v6437_v48 = vld [vmem:[#allocation10 + $0x164] ss:$16 sps:$4 sm:$0xff]  }
  0xf2   :  { %1286 = vmatprep.subr.bf16.mxu1 %v5650_v51  ;;  %v6435_v51 = vld [vmem:[#allocation10 + $0x160] ss:$16 sps:$4 sm:$0xff]  }
  0xf3   :  { %1244 = vmatpush1.bf16.msra.mxu0 %v5647_v45  ;;  %v6431_v45 = vld [vmem:[#allocation10 + $0x144] ss:$16 sps:$4 sm:$0xff]  }
  0xf4   :  { %1245 = vmatprep.subr.bf16.mxu0 %v5664_v0  ;;  %v6429_v0 = vld [vmem:[#allocation10 + $0x140] ss:$16 sps:$4 sm:$0xff]  }
  0xf5   :  { %1287 = vmatpush1.bf16.msra.mxu1 %v5649_v54  ;;  %v6440_v54 = vld [vmem:[#allocation10 + $0x16c] ss:$16 sps:$4 sm:$0xff]  }
  0xf6   :  { %1288 = vmatprep.subr.bf16.mxu1 %v5666_v57  ;;  %v6438_v57 = vld [vmem:[#allocation10 + $0x168] ss:$16 sps:$4 sm:$0xff]  }
  0xf7   :  { %1246 = vmatpush1.bf16.msra.mxu0 %v5663_v52  ;;  %v6443_v52 = vld [vmem:[#allocation10 + $0x184] ss:$16 sps:$4 sm:$0xff]  }
  0xf8   :  { %1247 = vmatprep.subr.bf16.mxu0 %v5680_v53  ;;  %v6432_v53 = vld [vmem:[#allocation10 + $0x148] ss:$16 sps:$4 sm:$0xff]  }
  0xf9   :  { %1289 = vmatpush1.bf16.msra.mxu1 %v5665_v62  ;;  %v6452_v62 = vld [vmem:[#allocation10 + $0x1ac] ss:$16 sps:$4 sm:$0xff]  }
  0xfa   :  { %1290 = vmatprep.subr.bf16.mxu1 %v5682_v1  ;;  %v6461_v1 = vld [vmem:[#allocation10 + $0x1e4] ss:$16 sps:$4 sm:$0xff]  }
  0xfb   :  { %1248 = vmatpush1.bf16.msra.mxu0 %v5679_v60  ;;  %v6455_v60 = vld [vmem:[#allocation10 + $0x1c4] ss:$16 sps:$4 sm:$0xff]  }
  0xfc   :  { %1249 = vmatprep.subr.bf16.mxu0 %v5696_v61  ;;  %v6444_v61 = vld [vmem:[#allocation10 + $0x188] ss:$16 sps:$4 sm:$0xff]  }
  0xfd   :  { %1291 = vmatpush1.bf16.msra.mxu1 %v5681_v6  ;;  %v6467_v6 = vld [vmem:[#allocation10 + $0x204] ss:$16 sps:$4 sm:$0xff]  }
  0xfe   :  { %1292 = vmatprep.subr.bf16.mxu1 %v5698_v7  ;;  %v6456_v7 = vld [vmem:[#allocation10 + $0x1c8] ss:$16 sps:$4 sm:$0xff]  }
  0xff   :  { %1250 = vmatpush1.bf16.msra.mxu0 %v5695_v4  ;;  %v6459_v4 = vld [vmem:[#allocation10 + $0x1e0] ss:$16 sps:$4 sm:$0xff]  }
 0x100   :  { %4495 = vmatprep.subr.bf16.mxu0 %v6371_v3  ;;  %v6458_v3 = vld [vmem:[#allocation10 + $0x1cc] ss:$16 sps:$4 sm:$0xff]  }
 0x101   :  { %1293 = vmatpush1.bf16.msra.mxu1 %v5697_v10  ;;  %v6470_v10 = vld [vmem:[#allocation10 + $0x20c] ss:$16 sps:$4 sm:$0xff]  }
 0x102   :  { %1268 = vmatmul.mubr.bf16.vlgmr.msra.gmra.mrb[12].mxu0 %v7503_v5  ;;  %4839 = vmatprep.subr.bf16.mxu1 %v6374_v11  ;;  %v6395_v5 = vld [vmem:[#allocation10 + $0x84] ss:$16 sps:$4 sm:$0xff]   ;;  %v251_v11 = vlaneseq }
 0x103   :  { %4496 = vmatpush1.bf16.msra.mxu0 %v6369_v8  ;;  %v6464_v8 = vld [vmem:[#allocation10 + $0x1ec] ss:$16 sps:$4 sm:$0xff]  }
 0x104   :  { %4497 = vmatprep.subr.bf16.mxu0 %v6377_v9  ;;  %1311 = vmatmul.mubr.bf16.vlgmr.msra.gmra.mrb[12].mxu1 %v7169_v18  ;;  %v6462_v9 = vld [vmem:[#allocation10 + $0x1e8] ss:$16 sps:$4 sm:$0xff]  }
 0x105   :  { %4840 = vmatpush1.bf16.msra.mxu1 %v6372_v14 }
 0x106   :  { %4841 = vmatprep.subr.bf16.mxu1 %v6380_v15 }
 0x107   :  { %4498 = vmatpush1.bf16.msra.mxu0 %v6375_v12  ;;  %v7518_v12 = vshrl.u32 %v251_v11, 7 }
 0x108   :  { %4499 = vmatprep.subr.bf16.mxu0 %v6383_v13  ;;  %v7520_v13 = vld [vmem:[#allocation9] sm:$0xff] }
 0x109   :  { %4842 = vmatpush1.bf16.msra.mxu1 %v6378_v19  ;;  %v7523_v14 = vsub.s32 0, %v7518_v12  ;;  %v7526_v15 = vsub.s32 1, %v7518_v12  ;;  %v7533_v18 = vsub.s32 2, %v7518_v12 }
 0x10a   :  { %4843 = vmatprep.subr.bf16.mxu1 %v6386_v20  ;;  %v7536_v20 = vsub.s32 3, %v7518_v12 }
 0x10b   :  { %4500 = vmatpush1.bf16.msra.mxu0 %v6381_v16  ;;  %v254_v16 = vrot.slane %v7520_v13, %v7523_v14 }
 0x10c   :  { %4501 = vmatprep.subr.bf16.mxu0 %v6389_v17  ;;  %v258_v17 = vrot.slane %v7520_v13, %v7526_v15 }
 0x10d   :  { %4844 = vmatpush1.bf16.msra.mxu1 %v6384_v22 }
 0x10e   :  { %4845 = vmatprep.subr.bf16.mxu1 %v6392_v23 }
 0x10f   :  { %4502 = vmatpush1.bf16.msra.mxu0 %v6387_v21 }
 0x110   :  { %4503 = vmatprep.subr.bf16.mxu0 %v6395_v5 }
 0x111   :  { %4846 = vmatpush1.bf16.msra.mxu1 %v6390_v26  ;;  %v262_v26 = vrot.slane %v7520_v13, %v7533_v18 }
 0x112   :  { %4847 = vmatprep.subr.bf16.mxu1 %v6398_v27 }
 0x113   :  { %4504 = vmatpush1.bf16.msra.mxu0 %v6393_v24 }
 0x114   :  { %4505 = vmatprep.subr.bf16.mxu0 %v6401_v25 }
 0x115   :  { %4848 = vmatpush1.bf16.msra.mxu1 %v6396_v30 }
 0x116   :  { %4849 = vmatprep.subr.bf16.mxu1 %v6404_v31 }
 0x117   :  { %4506 = vmatpush1.bf16.msra.mxu0 %v6399_v28  ;;  %v266_v28 = vrot.slane %v7520_v13, %v7536_v20 }
 0x118   :  { %4507 = vmatprep.subr.bf16.mxu0 %v6407_v29 }
 0x119   :  { %4850 = vmatpush1.bf16.msra.mxu1 %v6402_v34  ;;  %v6468_v34 = vld [vmem:[#allocation10 + $0x208] ss:$16 sps:$4 sm:$0xff]  }
 0x11a   :  { %4851 = vmatprep.subr.bf16.mxu1 %v6410_v35 }
 0x11b   :  { %4508 = vmatpush1.bf16.msra.mxu0 %v6405_v32 }
 0x11c   :  { %4509 = vmatprep.subr.bf16.mxu0 %v6413_v33  ;;  %v6465_v33 = vld [vmem:[#allocation10 + $0x200] ss:$16 sps:$4 sm:$0xff]  }
 0x11d   :  { %4852 = vmatpush1.bf16.msra.mxu1 %v6408_v38 }
 0x11e   :  { %4853 = vmatprep.subr.bf16.mxu1 %v6416_v39 }
 0x11f   :  { %4510 = vmatpush1.bf16.msra.mxu0 %v6411_v36 }
 0x120   :  { %4511 = vmatprep.subr.bf16.mxu0 %v6419_v37 }
 0x121   :  { %4854 = vmatpush1.bf16.msra.mxu1 %v6414_v42  ;;  %v6473_v42 = vld [vmem:[#allocation10 + $0x224] ss:$16 sps:$4 sm:$0xff]  }
 0x122   :  { %4855 = vmatprep.subr.bf16.mxu1 %v6422_v43  ;;  %v6476_v43 = vld [vmem:[#allocation10 + $0x22c] ss:$16 sps:$4 sm:$0xff]  }
 0x123   :  { %4512 = vmatpush1.bf16.msra.mxu0 %v6417_v40 }
 0x124   :  { %4513 = vmatprep.subr.bf16.mxu0 %v6425_v41 }
 0x125   :  { %4856 = vmatpush1.bf16.msra.mxu1 %v6420_v46 }
 0x126   :  { %4857 = vmatprep.subr.bf16.mxu1 %v6428_v47  ;;  %v6471_v47 = vld [vmem:[#allocation10 + $0x220] ss:$16 sps:$4 sm:$0xff]  }
 0x127   :  { %4514 = vmatpush1.bf16.msra.mxu0 %v6423_v44 }
 0x128   :  { %4515 = vmatprep.subr.bf16.mxu0 %v6431_v45 }
 0x129   :  { %4858 = vmatpush1.bf16.msra.mxu1 %v6426_v49 }
 0x12a   :  { %4859 = vmatprep.subr.bf16.mxu1 %v6434_v50 }
 0x12b   :  { %4516 = vmatpush1.bf16.msra.mxu0 %v6429_v0  ;;  %v6474_v0 = vld [vmem:[#allocation10 + $0x228] ss:$16 sps:$4 sm:$0xff]  }
 0x12c   :  { %4517 = vmatprep.subr.bf16.mxu0 %v6437_v48 }
 0x12d   :  { %4860 = vmatpush1.bf16.msra.mxu1 %v6432_v53  ;;  %v6482_v53 = vld [vmem:[#allocation10 + $0x24c] ss:$16 sps:$4 sm:$0xff]  }
 0x12e   :  { %4861 = vmatprep.subr.bf16.mxu1 %v6440_v54 }
 0x12f   :  { %4518 = vmatpush1.bf16.msra.mxu0 %v6435_v51 }
 0x130   :  { %4519 = vmatprep.subr.bf16.mxu0 %v6443_v52  ;;  %v6479_v52 = vld [vmem:[#allocation10 + $0x244] ss:$16 sps:$4 sm:$0xff]  }
 0x131   :  { %4862 = vmatpush1.bf16.msra.mxu1 %v6438_v57 }
 0x132   :  { %4863 = vmatprep.subr.bf16.mxu1 %v6446_v58  ;;  %v6485_v58 = vld [vmem:[#allocation10 + $0x264] ss:$16 sps:$4 sm:$0xff]  }
 0x133   :  { %4520 = vmatpush1.bf16.msra.mxu0 %v6441_v55  ;;  %v6477_v55 = vld [vmem:[#allocation10 + $0x240] ss:$16 sps:$4 sm:$0xff]  }
 0x134   :  { %4521 = vmatprep.subr.bf16.mxu0 %v6449_v56  ;;  %v6480_v56 = vld [vmem:[#allocation10 + $0x248] ss:$16 sps:$4 sm:$0xff]  }
 0x135   :  { %4864 = vmatpush1.bf16.msra.mxu1 %v6444_v61  ;;  %v6486_v61 = vld [vmem:[#allocation10 + $0x268] ss:$16 sps:$4 sm:$0xff]  }
 0x136   :  { %4865 = vmatprep.subr.bf16.mxu1 %v6452_v62  ;;  %v6491_v62 = vld [vmem:[#allocation10 + $0x284] ss:$16 sps:$4 sm:$0xff]  }
 0x137   :  { %4522 = vmatpush1.bf16.msra.mxu0 %v6447_v59  ;;  %v6488_v59 = vld [vmem:[#allocation10 + $0x26c] ss:$16 sps:$4 sm:$0xff]  }
 0x138   :  { %4523 = vmatprep.subr.bf16.mxu0 %v6455_v60  ;;  %v6483_v60 = vld [vmem:[#allocation10 + $0x260] ss:$16 sps:$4 sm:$0xff]  }
 0x139   :  { %4866 = vmatpush1.bf16.msra.mxu1 %v6450_v2  ;;  %v6492_v2 = vld [vmem:[#allocation10 + $0x288] ss:$16 sps:$4 sm:$0xff]  }
 0x13a   :  { %4867 = vmatprep.subr.bf16.mxu1 %v6458_v3  ;;  %v269_v3 = vsub.s32 4, %v7518_v12 }
 0x13b   :  { %4524 = vmatpush1.bf16.msra.mxu0 %v6453_v63  ;;  %v6494_v63 = vld [vmem:[#allocation10 + $0x28c] ss:$16 sps:$4 sm:$0xff]  }
 0x13c   :  { %4525 = vmatprep.subr.bf16.mxu0 %v6461_v1  ;;  %v6489_v1 = vld [vmem:[#allocation10 + $0x280] ss:$16 sps:$4 sm:$0xff]  }
 0x13d   :  { %4868 = vmatpush1.bf16.msra.mxu1 %v6456_v7  ;;  %v7545_v7 = vld [vmem:[#allocation9 + $0x8] sm:$0xff] }
 0x13e   :  { %4869 = vmatprep.subr.bf16.mxu1 %v6464_v8  ;;  %v6495_v8 = vld [vmem:[#allocation10 + $0x2a0] ss:$16 sps:$4 sm:$0xff]   ;;  %v7549_v11 = vrot.slane %v7545_v7, %v269_v3 }
 0x13f   :  { %4526 = vmatpush1.bf16.msra.mxu0 %v6459_v4  ;;  %v6497_v4 = vld [vmem:[#allocation10 + $0x2a4] ss:$16 sps:$4 sm:$0xff]  }
 0x140   :  { %4538 = vmatprep.subr.bf16.mxu0 %v6467_v6  ;;  %v6500_v6 = vld [vmem:[#allocation10 + $0x2ac] ss:$16 sps:$4 sm:$0xff]  }
 0x141   :  { %4870 = vmatpush1.bf16.msra.mxu1 %v6462_v9  ;;  %v6498_v9 = vld [vmem:[#allocation10 + $0x2a8] ss:$16 sps:$4 sm:$0xff]  }
 0x142   :  { %4882 = vmatprep.subr.bf16.mxu1 %v6470_v10  ;;  %v273_v10 = vsub.s32 5, %v7518_v12 }
 0x175   :  { %v1011_v19 = vpop.f32.mrb[0].mxu0  ;;  %v1054_v35 = vpop.f32.mrb[0].mxu1 }
 0x176   :  { %v1012_v21 = vadd.f32 %v1011_v19, %v254_v16  ;;  %v1013_v5 = vpop.f32.mrb[1].mxu0  ;;  %v1055_v37 = vadd.f32 %v1054_v35, %v262_v26  ;;  %v1056_v38 = vpop.f32.mrb[1].mxu1  ;;  %v270_v19 = vrot.slane %v7520_v13, %v269_v3  ;;  %v6527_v3 = vld [vmem:[#allocation10 + $0x344] ss:$16 sps:$4 sm:$0xff]  }
 0x177   :  { %v1014_v22 = vadd.f32 %v1013_v5, %v258_v17  ;;  %v1015_v23 = vpop.f32.mrb[2].mxu0  ;;  %v1057_v40 = vadd.f32 %v1056_v38, %v266_v28  ;;  %v1058_v41 = vpop.f32.mrb[2].mxu1  ;;  %v6506_v5 = vld [vmem:[#allocation10 + $0x2cc] ss:$16 sps:$4 sm:$0xff]  }
 0x178   :  { %v1016_v24 = vadd.f32 %v1015_v23, %v254_v16  ;;  %v1017_v25 = vpop.f32.mrb[3].mxu0  ;;  %v1321_v29 = vmax.f32 %v1012_v21, 0.0  ;;  %v1323_v44 = vmax.f32 %v1055_v37, 0.0  ;;  %v1059_v45 = vadd.f32 %v1058_v41, %v262_v26  ;;  %v1060_v46 = vpop.f32.mrb[3].mxu1  ;;  %v6503_v21 = vld [vmem:[#allocation10 + $0x2c4] ss:$16 sps:$4 sm:$0xff]  }
 0x179   :  { %v1018_v27 = vadd.f32 %v1017_v25, %v258_v17  ;;  %v1322_v31 = vmax.f32 %v1014_v22, 0.0  ;;  %v1324_v48 = vmax.f32 %v1057_v40, 0.0  ;;  %v1061_v49 = vadd.f32 %v1060_v46, %v266_v28  ;;  %v6501_v25 = vld [vmem:[#allocation10 + $0x2c0] ss:$16 sps:$4 sm:$0xff]   ;;  %v6504_v26 = vld [vmem:[#allocation10 + $0x2c8] ss:$16 sps:$4 sm:$0xff]  }
 0x17a   :  { %v1337_v30 = vmax.f32 %v1016_v24, 0.0  ;;  %v1339_v50 = vmax.f32 %v1059_v45, 0.0  ;;  %v277_v16 = vsub.s32 6, %v7518_v12  ;;  %v281_v17 = vsub.s32 7, %v7518_v12  ;;  %v6509_v28 = vld [vmem:[#allocation10 + $0x2e4] ss:$16 sps:$4 sm:$0xff]  }
 0x17b   :  { %v1338_v32 = vmax.f32 %v1018_v27, 0.0  ;;  %v1340_v51 = vmax.f32 %v1061_v49, 0.0  ;;  %v7555_v22 = vrot.slane %v7545_v7, %v273_v10  ;;  %v274_v12 = vrot.slane %v7520_v13, %v273_v10  ;;  %v6513_v46 = vld [vmem:[#allocation10 + $0x300] ss:$16 sps:$4 sm:$0xff]  }
 0x17c   :  { %v1353_v36 = vpack.c.bf16 %v1337_v30, %v1321_v29  ;;  %v7542_v54 = vpack.c.bf16 %v1339_v50, %v1323_v44  ;;  %v7558_v23 = vrot.slane %v7545_v7, %v277_v16  ;;  %v7561_v24 = vrot.slane %v7545_v7, %v281_v17  ;;  %v6512_v29 = vld [vmem:[#allocation10 + $0x2ec] ss:$16 sps:$4 sm:$0xff]  }
 0x17d   :  { %v1354_v39 = vpack.c.bf16 %v1338_v32, %v1322_v31  ;;  %v1356_v57 = vpack.c.bf16 %v1340_v51, %v1324_v48  ;;  %v6507_v32 = vld [vmem:[#allocation10 + $0x2e0] ss:$16 sps:$4 sm:$0xff]   ;;  %v278_v38 = vrot.slane %v7520_v13, %v277_v16  ;;  %v6518_v44 = vld [vmem:[#allocation10 + $0x30c] ss:$16 sps:$4 sm:$0xff]   ;;  %v6533_v16 = vld [vmem:[#allocation10 + $0x364] ss:$16 sps:$4 sm:$0xff]  }
 0x17f   :  { %4527 = vmatprep.mubr.bf16.mxu0 %v1354_v39  ;;  %4871 = vmatprep.mubr.bf16.mxu1 %v1354_v39 }
 0x180   :  { %4528 = vmatmul.mubr.bf16.vlgmr.msra.gmra.mrb[16].mxu0 %v1353_v36  ;;  %4872 = vmatmul.mubr.bf16.vlgmr.msra.gmra.mrb[16].mxu1 %v1353_v36 }
 0x181   :  { %4539 = vmatpush1.bf16.msra.mxu0 %v6465_v33  ;;  %4883 = vmatpush1.bf16.msra.mxu1 %v6468_v34  ;;  %v6510_v33 = vld [vmem:[#allocation10 + $0x2e8] ss:$16 sps:$4 sm:$0xff]  }
 0x182   :  { %4540 = vmatprep.subr.bf16.mxu0 %v6473_v42  ;;  %4884 = vmatprep.subr.bf16.mxu1 %v6476_v43  ;;  %v282_v42 = vrot.slane %v7520_v13, %v281_v17  ;;  %v6515_v43 = vld [vmem:[#allocation10 + $0x304] ss:$16 sps:$4 sm:$0xff]   ;;  %v6536_v17 = vld [vmem:[#allocation10 + $0x36c] ss:$16 sps:$4 sm:$0xff]  }
 0x183   :  { %4570 = vmatprep.mubr.bf16.mxu0 %v1356_v57  ;;  %4914 = vmatprep.mubr.bf16.mxu1 %v1356_v57  ;;  %v6521_v13 = vld [vmem:[#allocation10 + $0x324] ss:$16 sps:$4 sm:$0xff]  }
 0x185   :  { %4541 = vmatpush1.bf16.msra.mxu0 %v6471_v47  ;;  %4885 = vmatpush1.bf16.msra.mxu1 %v6474_v0  ;;  %v6516_v47 = vld [vmem:[#allocation10 + $0x308] ss:$16 sps:$4 sm:$0xff]  }
 0x186   :  { %4542 = vmatprep.subr.bf16.mxu0 %v6479_v52  ;;  %4886 = vmatprep.subr.bf16.mxu1 %v6482_v53 }
 0x189   :  { %4543 = vmatpush1.bf16.msra.mxu0 %v6477_v55  ;;  %4887 = vmatpush1.bf16.msra.mxu1 %v6480_v56  ;;  %v6524_v56 = vld [vmem:[#allocation10 + $0x32c] ss:$16 sps:$4 sm:$0xff]  }
 0x18a   :  { %4544 = vmatprep.subr.bf16.mxu0 %v6485_v58  ;;  %4888 = vmatprep.subr.bf16.mxu1 %v6488_v59 }
 0x18d   :  { %4545 = vmatpush1.bf16.msra.mxu0 %v6483_v60  ;;  %4889 = vmatpush1.bf16.msra.mxu1 %v6486_v61  ;;  %v6519_v60 = vld [vmem:[#allocation10 + $0x320] ss:$16 sps:$4 sm:$0xff]   ;;  %v6522_v61 = vld [vmem:[#allocation10 + $0x328] ss:$16 sps:$4 sm:$0xff]  }
 0x18e   :  { %4546 = vmatprep.subr.bf16.mxu0 %v6491_v62  ;;  %4890 = vmatprep.subr.bf16.mxu1 %v6494_v63 }
 0x191   :  { %4547 = vmatpush1.bf16.msra.mxu0 %v6489_v1  ;;  %4891 = vmatpush1.bf16.msra.mxu1 %v6492_v2 }
 0x192   :  { %4548 = vmatprep.subr.bf16.mxu0 %v6497_v4  ;;  %4892 = vmatprep.subr.bf16.mxu1 %v6500_v6  ;;  %v6530_v4 = vld [vmem:[#allocation10 + $0x34c] ss:$16 sps:$4 sm:$0xff]  }
 0x195   :  { %4549 = vmatpush1.bf16.msra.mxu0 %v6495_v8  ;;  %4893 = vmatpush1.bf16.msra.mxu1 %v6498_v9  ;;  %v1097_v27 = vpop.f32.mrb[4].mxu0  ;;  %v6525_v8 = vld [vmem:[#allocation10 + $0x340] ss:$16 sps:$4 sm:$0xff]   ;;  %v6528_v9 = vld [vmem:[#allocation10 + $0x348] ss:$16 sps:$4 sm:$0xff]  }
 0x196   :  { %4550 = vmatprep.subr.bf16.mxu0 %v6503_v21  ;;  %4894 = vmatprep.subr.bf16.mxu1 %v6506_v5  ;;  %v1098_v30 = vadd.f32 %v1097_v27, %v270_v19  ;;  %v1099_v31 = vpop.f32.mrb[5].mxu0  ;;  %v6534_v21 = vld [vmem:[#allocation10 + $0x368] ss:$16 sps:$4 sm:$0xff]   ;;  %v6539_v5 = vld [vmem:[#allocation10 + $0x384] ss:$16 sps:$4 sm:$0xff]  }
 0x197   :  { %v1100_v34 = vadd.f32 %v1099_v31, %v274_v12  ;;  %v1101_v35 = vpop.f32.mrb[6].mxu0  ;;  %v1140_v0 = vpop.f32.mrb[4].mxu1  ;;  %v6545_v27 = vld [vmem:[#allocation10 + $0x3a4] ss:$16 sps:$4 sm:$0xff]  }
 0x198   :  { %v1325_v36 = vmax.f32 %v1098_v30, 0.0  ;;  %v1102_v37 = vadd.f32 %v1101_v35, %v270_v19  ;;  %v1103_v39 = vpop.f32.mrb[7].mxu0  ;;  %v1141_v50 = vadd.f32 %v1140_v0, %v278_v38  ;;  %v1142_v51 = vpop.f32.mrb[5].mxu1  ;;  %v6531_v19 = vld [vmem:[#allocation10 + $0x360] ss:$16 sps:$4 sm:$0xff]   ;;  %v294_v0 = vrot.slane %v7545_v7, %v7533_v18 }
 0x199   :  { %4551 = vmatpush1.bf16.msra.mxu0 %v6501_v25  ;;  %4895 = vmatpush1.bf16.msra.mxu1 %v6504_v26  ;;  %v1326_v40 = vmax.f32 %v1100_v34, 0.0  ;;  %v1104_v41 = vadd.f32 %v1103_v39, %v274_v12  ;;  %v1143_v53 = vadd.f32 %v1142_v51, %v282_v42  ;;  %v1144_v55 = vpop.f32.mrb[6].mxu1  ;;  %v6542_v25 = vld [vmem:[#allocation10 + $0x38c] ss:$16 sps:$4 sm:$0xff]   ;;  %v6537_v26 = vld [vmem:[#allocation10 + $0x380] ss:$16 sps:$4 sm:$0xff]  }
 0x19a   :  { %4552 = vmatprep.subr.bf16.mxu0 %v6509_v28  ;;  %4896 = vmatprep.subr.bf16.mxu1 %v6512_v29  ;;  %v1341_v45 = vmax.f32 %v1102_v37, 0.0  ;;  %v1327_v57 = vmax.f32 %v1141_v50, 0.0  ;;  %v1145_v58 = vadd.f32 %v1144_v55, %v278_v38  ;;  %v1146_v59 = vpop.f32.mrb[7].mxu1  ;;  %v6540_v12 = vld [vmem:[#allocation10 + $0x388] ss:$16 sps:$4 sm:$0xff]  }
 0x19b   :  { %v1342_v48 = vmax.f32 %v1104_v41, 0.0  ;;  %v1328_v62 = vmax.f32 %v1143_v53, 0.0  ;;  %v1147_v63 = vadd.f32 %v1146_v59, %v282_v42  ;;  %v6548_v28 = vld [vmem:[#allocation10 + $0x3ac] ss:$16 sps:$4 sm:$0xff]   ;;  %v6543_v29 = vld [vmem:[#allocation10 + $0x3a0] ss:$16 sps:$4 sm:$0xff]   ;;  %v298_v53 = vrot.slane %v7545_v7, %v7536_v20 }
 0x19c   :  { %v7566_v49 = vpack.c.bf16 %v1341_v45, %v1325_v36  ;;  %v1343_v1 = vmax.f32 %v1145_v58, 0.0  ;;  %v6546_v30 = vld [vmem:[#allocation10 + $0x3a8] ss:$16 sps:$4 sm:$0xff]   ;;  %v6551_v31 = vld [vmem:[#allocation10 + $0x3c4] ss:$16 sps:$4 sm:$0xff]   ;;  %v290_v36 = vrot.slane %v7545_v7, %v7526_v15 }
 0x19d   :  { %4553 = vmatpush1.bf16.msra.mxu0 %v6507_v32  ;;  %4897 = vmatpush1.bf16.msra.mxu1 %v6510_v33  ;;  %v7568_v52 = vpack.c.bf16 %v1342_v48, %v1326_v40  ;;  %v1344_v2 = vmax.f32 %v1147_v63, 0.0  ;;  %v6554_v32 = vld [vmem:[#allocation10 + $0x3cc] ss:$16 sps:$4 sm:$0xff]   ;;  %v286_v33 = vrot.slane %v7545_v7, %v7523_v14  ;;  %v6549_v34 = vld [vmem:[#allocation10 + $0x3c0] ss:$16 sps:$4 sm:$0xff]  }
 0x19e   :  { %4554 = vmatprep.subr.bf16.mxu0 %v6515_v43  ;;  %4898 = vmatprep.subr.bf16.mxu1 %v6518_v44  ;;  %v7570_v6 = vpack.c.bf16 %v1343_v1, %v1327_v57  ;;  %v6552_v35 = vld [vmem:[#allocation10 + $0x3c8] ss:$16 sps:$4 sm:$0xff]   ;;  %v6557_v38 = vld [vmem:[#allocation10 + $0x3e4] ss:$16 sps:$4 sm:$0xff]   ;;  %v6560_v39 = vld [vmem:[#allocation10 + $0x3ec] ss:$16 sps:$4 sm:$0xff]  }
 0x19f   :  { %v7572_v10 = vpack.c.bf16 %v1344_v2, %v1328_v62  ;;  %v6555_v42 = vld [vmem:[#allocation10 + $0x3e0] ss:$16 sps:$4 sm:$0xff]   ;;  %v6558_v43 = vld [vmem:[#allocation10 + $0x3e8] ss:$16 sps:$4 sm:$0xff]   ;;  %v6563_v55 = vld [vmem:[#allocation10 + $0x404] ss:$16 sps:$4 sm:$0xff]  }
 0x1a0   :  { %v6561_v57 = vld [vmem:[#allocation10 + $0x400] ss:$16 sps:$4 sm:$0xff]   ;;  %v6564_v58 = vld [vmem:[#allocation10 + $0x408] ss:$16 sps:$4 sm:$0xff]   ;;  %v6572_v62 = vld [vmem:[#allocation10 + $0x42c] ss:$16 sps:$4 sm:$0xff]  }
 0x1a1   :  { %4555 = vmatpush1.bf16.msra.mxu0 %v6513_v46  ;;  %4899 = vmatpush1.bf16.msra.mxu1 %v6516_v47 }
 0x1a2   :  { %4556 = vmatprep.subr.bf16.mxu0 %v6521_v13  ;;  %4900 = vmatprep.subr.bf16.mxu1 %v6524_v56  ;;  %v6566_v13 = vld [vmem:[#allocation10 + $0x40c] ss:$16 sps:$4 sm:$0xff]  }
 0x1a5   :  { %4557 = vmatpush1.bf16.msra.mxu0 %v6519_v60  ;;  %4901 = vmatpush1.bf16.msra.mxu1 %v6522_v61  ;;  %v6569_v61 = vld [vmem:[#allocation10 + $0x424] ss:$16 sps:$4 sm:$0xff]  }
 0x1a6   :  { %4558 = vmatprep.subr.bf16.mxu0 %v6527_v3  ;;  %4902 = vmatprep.subr.bf16.mxu1 %v6530_v4 }
 0x1a9   :  { %4559 = vmatpush1.bf16.msra.mxu0 %v6525_v8  ;;  %4903 = vmatpush1.bf16.msra.mxu1 %v6528_v9 }
 0x1aa   :  { %4560 = vmatprep.subr.bf16.mxu0 %v6533_v16  ;;  %4904 = vmatprep.subr.bf16.mxu1 %v6536_v17  ;;  %v6567_v17 = vld [vmem:[#allocation10 + $0x420] ss:$16 sps:$4 sm:$0xff]  }
 0x1ad   :  { %4561 = vmatpush1.bf16.msra.mxu0 %v6531_v19  ;;  %4905 = vmatpush1.bf16.msra.mxu1 %v6534_v21  ;;  %v6570_v19 = vld [vmem:[#allocation10 + $0x428] ss:$16 sps:$4 sm:$0xff]  }
 0x1ae   :  { %4562 = vmatprep.subr.bf16.mxu0 %v6539_v5  ;;  %4906 = vmatprep.subr.bf16.mxu1 %v6542_v25  ;;  %v6575_v25 = vld [vmem:[#allocation10 + $0x444] ss:$16 sps:$4 sm:$0xff]  }
 0x1b1   :  { %4563 = vmatpush1.bf16.msra.mxu0 %v6537_v26  ;;  %4907 = vmatpush1.bf16.msra.mxu1 %v6540_v12  ;;  %v6578_v26 = vld [vmem:[#allocation10 + $0x44c] ss:$16 sps:$4 sm:$0xff]  }
 0x1b2   :  { %4564 = vmatprep.subr.bf16.mxu0 %v6545_v27  ;;  %4908 = vmatprep.subr.bf16.mxu1 %v6548_v28 }
 0x1b5   :  { %4565 = vmatpush1.bf16.msra.mxu0 %v6543_v29  ;;  %4909 = vmatpush1.bf16.msra.mxu1 %v6546_v30  ;;  %v1183_v37 = vpop.f32.mrb[8].mxu0  ;;  %v6573_v29 = vld [vmem:[#allocation10 + $0x440] ss:$16 sps:$4 sm:$0xff]  }
 0x1b6   :  { %4566 = vmatprep.subr.bf16.mxu0 %v6551_v31  ;;  %4910 = vmatprep.subr.bf16.mxu1 %v6554_v32  ;;  %v1184_v40 = vadd.f32 %v1183_v37, %v286_v33  ;;  %v1185_v41 = vpop.f32.mrb[9].mxu0  ;;  %v6576_v31 = vld [vmem:[#allocation10 + $0x448] ss:$16 sps:$4 sm:$0xff]   ;;  %v6584_v32 = vld [vmem:[#allocation10 + $0x46c] ss:$16 sps:$4 sm:$0xff]  }
 0x1b7   :  { %v1186_v44 = vadd.f32 %v1185_v41, %v290_v36  ;;  %v1187_v45 = vpop.f32.mrb[10].mxu0  ;;  %v1226_v59 = vpop.f32.mrb[8].mxu1  ;;  %v6588_v37 = vld [vmem:[#allocation10 + $0x488] ss:$16 sps:$4 sm:$0xff]  }
 0x1b8   :  { %v1329_v46 = vmax.f32 %v1184_v40, 0.0  ;;  %v1188_v47 = vadd.f32 %v1187_v45, %v286_v33  ;;  %v1189_v48 = vpop.f32.mrb[11].mxu0  ;;  %v1227_v1 = vadd.f32 %v1226_v59, %v294_v0  ;;  %v1228_v2 = vpop.f32.mrb[9].mxu1  ;;  %v6579_v33 = vld [vmem:[#allocation10 + $0x460] ss:$16 sps:$4 sm:$0xff]  }
 0x1b9   :  { %4567 = vmatpush1.bf16.msra.mxu0 %v6549_v34  ;;  %4911 = vmatpush1.bf16.msra.mxu1 %v6552_v35  ;;  %v1330_v50 = vmax.f32 %v1186_v44, 0.0  ;;  %v1190_v51 = vadd.f32 %v1189_v48, %v290_v36  ;;  %v1229_v7 = vadd.f32 %v1228_v2, %v298_v53  ;;  %v1230_v4 = vpop.f32.mrb[10].mxu1  ;;  %v6582_v34 = vld [vmem:[#allocation10 + $0x468] ss:$16 sps:$4 sm:$0xff]   ;;  %v6587_v35 = vld [vmem:[#allocation10 + $0x484] ss:$16 sps:$4 sm:$0xff]  }
 0x1ba   :  { %4568 = vmatprep.subr.bf16.mxu0 %v6557_v38  ;;  %4912 = vmatprep.subr.bf16.mxu1 %v6560_v39  ;;  %v1345_v56 = vmax.f32 %v1188_v47, 0.0  ;;  %v1331_v8 = vmax.f32 %v1227_v1, 0.0  ;;  %v1231_v9 = vadd.f32 %v1230_v4, %v294_v0  ;;  %v1232_v16 = vpop.f32.mrb[11].mxu1  ;;  %v6590_v36 = vld [vmem:[#allocation10 + $0x48c] ss:$16 sps:$4 sm:$0xff]  }
 0x1bb   :  { %v1346_v60 = vmax.f32 %v1190_v51, 0.0  ;;  %v1332_v21 = vmax.f32 %v1229_v7, 0.0  ;;  %v1233_v5 = vadd.f32 %v1232_v16, %v298_v53  ;;  %v6593_v38 = vld [vmem:[#allocation10 + $0x4a4] ss:$16 sps:$4 sm:$0xff]   ;;  %v6596_v39 = vld [vmem:[#allocation10 + $0x4ac] ss:$16 sps:$4 sm:$0xff]  }
 0x1bc   :  { %v7582_v63 = vpack.c.bf16 %v1345_v56, %v1329_v46  ;;  %v1347_v12 = vmax.f32 %v1231_v9, 0.0  ;;  %v6591_v40 = vld [vmem:[#allocation10 + $0x4a0] ss:$16 sps:$4 sm:$0xff]   ;;  %v6594_v41 = vld [vmem:[#allocation10 + $0x4a8] ss:$16 sps:$4 sm:$0xff]  }
 0x1bd   :  { %4569 = vmatpush1.bf16.msra.mxu0 %v6555_v42  ;;  %4913 = vmatpush1.bf16.msra.mxu1 %v6558_v43  ;;  %v7584_v3 = vpack.c.bf16 %v1346_v60, %v1330_v50  ;;  %v1348_v27 = vmax.f32 %v1233_v5, 0.0  ;;  %v6599_v42 = vld [vmem:[#allocation10 + $0x4c4] ss:$16 sps:$4 sm:$0xff]   ;;  %v6602_v43 = vld [vmem:[#allocation10 + $0x4cc] ss:$16 sps:$4 sm:$0xff]  }
 0x1be   :  { %4581 = vmatprep.subr.bf16.mxu0 %v6563_v55  ;;  %4925 = vmatprep.subr.bf16.mxu1 %v6566_v13  ;;  %v7588_v28 = vpack.c.bf16 %v1347_v12, %v1331_v8  ;;  %v6597_v44 = vld [vmem:[#allocation10 + $0x4c0] ss:$16 sps:$4 sm:$0xff]   ;;  %v6600_v45 = vld [vmem:[#allocation10 + $0x4c8] ss:$16 sps:$4 sm:$0xff]   ;;  %v6605_v47 = vld [vmem:[#allocation10 + $0x4e4] ss:$16 sps:$4 sm:$0xff]  }
 0x1bf   :  { %v7592_v30 = vpack.c.bf16 %v1348_v27, %v1332_v21  ;;  %v6608_v0 = vld [vmem:[#allocation10 + $0x4ec] ss:$16 sps:$4 sm:$0xff]   ;;  %v6609_v9 = vld [vmem:[#allocation10 + $0x500] ss:$16 sps:$4 sm:$0xff]   ;;  %v6612_v16 = vld [vmem:[#allocation10 + $0x508] ss:$16 sps:$4 sm:$0xff]  }
 0x1c0   :  { %4571 = vmatmul.mubr.bf16.vlgmr.msra.gmra.mrb[16].mxu0 %v7542_v54  ;;  %4915 = vmatmul.mubr.bf16.vlgmr.msra.gmra.mrb[16].mxu1 %v7542_v54  ;;  %v6581_v54 = vld [vmem:[#allocation10 + $0x464] ss:$16 sps:$4 sm:$0xff]   ;;  %v6620_v5 = vld [vmem:[#allocation10 + $0x52c] ss:$16 sps:$4 sm:$0xff]  }
 0x1c1   :  { %4582 = vmatpush1.bf16.msra.mxu0 %v6561_v57  ;;  %4926 = vmatpush1.bf16.msra.mxu1 %v6564_v58  ;;  %v6603_v57 = vld [vmem:[#allocation10 + $0x4e0] ss:$16 sps:$4 sm:$0xff]   ;;  %v6606_v58 = vld [vmem:[#allocation10 + $0x4e8] ss:$16 sps:$4 sm:$0xff]   ;;  %v6617_v21 = vld [vmem:[#allocation10 + $0x524] ss:$16 sps:$4 sm:$0xff]  }
 0x1c2   :  { %4583 = vmatprep.subr.bf16.mxu0 %v6569_v61  ;;  %4927 = vmatprep.subr.bf16.mxu1 %v6572_v62  ;;  %v6611_v61 = vld [vmem:[#allocation10 + $0x504] ss:$16 sps:$4 sm:$0xff]   ;;  %v6614_v62 = vld [vmem:[#allocation10 + $0x50c] ss:$16 sps:$4 sm:$0xff]  }
 0x1c3   :  { %4613 = vmatprep.mubr.bf16.mxu0 %v7568_v52  ;;  %4957 = vmatprep.mubr.bf16.mxu1 %v7568_v52  ;;  %v6585_v52 = vld [vmem:[#allocation10 + $0x480] ss:$16 sps:$4 sm:$0xff]  }
 0x1c5   :  { %4584 = vmatpush1.bf16.msra.mxu0 %v6567_v17  ;;  %4928 = vmatpush1.bf16.msra.mxu1 %v6570_v19 }
 0x1c6   :  { %4585 = vmatprep.subr.bf16.mxu0 %v6575_v25  ;;  %4929 = vmatprep.subr.bf16.mxu1 %v6578_v26 }
 0x1c9   :  { %4586 = vmatpush1.bf16.msra.mxu0 %v6573_v29  ;;  %4930 = vmatpush1.bf16.msra.mxu1 %v6576_v31 }
 0x1ca   :  { %4587 = vmatprep.subr.bf16.mxu0 %v6581_v54  ;;  %4931 = vmatprep.subr.bf16.mxu1 %v6584_v32  ;;  %v6615_v54 = vld [vmem:[#allocation10 + $0x520] ss:$16 sps:$4 sm:$0xff]   ;;  %v6618_v32 = vld [vmem:[#allocation10 + $0x528] ss:$16 sps:$4 sm:$0xff]  }
 0x1cd   :  { %4588 = vmatpush1.bf16.msra.mxu0 %v6579_v33  ;;  %4932 = vmatpush1.bf16.msra.mxu1 %v6582_v34  ;;  %v6623_v34 = vld [vmem:[#allocation10 + $0x544] ss:$16 sps:$4 sm:$0xff]  }
 0x1ce   :  { %4589 = vmatprep.subr.bf16.mxu0 %v6587_v35  ;;  %4933 = vmatprep.subr.bf16.mxu1 %v6590_v36  ;;  %v6626_v35 = vld [vmem:[#allocation10 + $0x54c] ss:$16 sps:$4 sm:$0xff]  }
 0x1d1   :  { %4590 = vmatpush1.bf16.msra.mxu0 %v6585_v52  ;;  %4934 = vmatpush1.bf16.msra.mxu1 %v6588_v37  ;;  %v6624_v37 = vld [vmem:[#allocation10 + $0x548] ss:$16 sps:$4 sm:$0xff]  }
 0x1d2   :  { %4591 = vmatprep.subr.bf16.mxu0 %v6593_v38  ;;  %4935 = vmatprep.subr.bf16.mxu1 %v6596_v39  ;;  %v6632_v38 = vld [vmem:[#allocation10 + $0x56c] ss:$16 sps:$4 sm:$0xff]   ;;  %v6627_v39 = vld [vmem:[#allocation10 + $0x560] ss:$16 sps:$4 sm:$0xff]  }
 0x1d5   :  { %4592 = vmatpush1.bf16.msra.mxu0 %v6591_v40  ;;  %4936 = vmatpush1.bf16.msra.mxu1 %v6594_v41  ;;  %v1269_v46 = vpop.f32.mrb[12].mxu0  ;;  %v6630_v40 = vld [vmem:[#allocation10 + $0x568] ss:$16 sps:$4 sm:$0xff]   ;;  %v6635_v41 = vld [vmem:[#allocation10 + $0x584] ss:$16 sps:$4 sm:$0xff]  }
 0x1d6   :  { %4593 = vmatprep.subr.bf16.mxu0 %v6599_v42  ;;  %4937 = vmatprep.subr.bf16.mxu1 %v6602_v43  ;;  %v1270_v48 = vadd.f32 %v1269_v46, %v7549_v11  ;;  %v1271_v50 = vpop.f32.mrb[13].mxu0  ;;  %v6638_v42 = vld [vmem:[#allocation10 + $0x58c] ss:$16 sps:$4 sm:$0xff]   ;;  %v6633_v43 = vld [vmem:[#allocation10 + $0x580] ss:$16 sps:$4 sm:$0xff]  }
 0x1d7   :  { %v1272_v51 = vadd.f32 %v1271_v50, %v7555_v22  ;;  %v1273_v53 = vpop.f32.mrb[14].mxu0  ;;  %v1312_v2 = vpop.f32.mrb[12].mxu1  ;;  %v6644_v46 = vld [vmem:[#allocation10 + $0x5ac] ss:$16 sps:$4 sm:$0xff]  }
 0x1d8   :  { %v1333_v55 = vmax.f32 %v1270_v48, 0.0  ;;  %v1274_v13 = vadd.f32 %v1273_v53, %v7549_v11  ;;  %v1275_v56 = vpop.f32.mrb[15].mxu0  ;;  %v1313_v8 = vadd.f32 %v1312_v2, %v7558_v23  ;;  %v1314_v11 = vpop.f32.mrb[13].mxu1  ;;  %v6647_v48 = vld [vmem:[#allocation10 + $0x5c4] ss:$16 sps:$4 sm:$0xff]  }
 0x1d9   :  { %4594 = vmatpush1.bf16.msra.mxu0 %v6597_v44  ;;  %4938 = vmatpush1.bf16.msra.mxu1 %v6600_v45  ;;  %v1334_v59 = vmax.f32 %v1272_v51, 0.0  ;;  %v1276_v60 = vadd.f32 %v1275_v56, %v7555_v22  ;;  %v1315_v22 = vadd.f32 %v1314_v11, %v7561_v24  ;;  %v1316_v19 = vpop.f32.mrb[14].mxu1  ;;  %v6636_v44 = vld [vmem:[#allocation10 + $0x588] ss:$16 sps:$4 sm:$0xff]   ;;  %v6641_v45 = vld [vmem:[#allocation10 + $0x5a4] ss:$16 sps:$4 sm:$0xff]  }
 0x1da   :  { %4595 = vmatprep.subr.bf16.mxu0 %v6605_v47  ;;  %4939 = vmatprep.subr.bf16.mxu1 %v6608_v0  ;;  %v1349_v1 = vmax.f32 %v1274_v13, 0.0  ;;  %v1335_v25 = vmax.f32 %v1313_v8, 0.0  ;;  %v1317_v26 = vadd.f32 %v1316_v19, %v7558_v23  ;;  %v1318_v12 = vpop.f32.mrb[15].mxu1  ;;  %v6621_v23 = vld [vmem:[#allocation10 + $0x540] ss:$16 sps:$4 sm:$0xff]  }
 0x1db   :  { %v1350_v7 = vmax.f32 %v1276_v60, 0.0  ;;  %v1336_v27 = vmax.f32 %v1315_v22, 0.0  ;;  %v1319_v29 = vadd.f32 %v1318_v12, %v7561_v24  ;;  %v6629_v24 = vld [vmem:[#allocation10 + $0x564] ss:$16 sps:$4 sm:$0xff]   ;;  %v6639_v47 = vld [vmem:[#allocation10 + $0x5a0] ss:$16 sps:$4 sm:$0xff]  }
 0x1dc   :  { %v7598_v4 = vpack.c.bf16 %v1349_v1, %v1333_v55  ;;  %v1351_v31 = vmax.f32 %v1317_v26, 0.0  ;;  %v6642_v0 = vld [vmem:[#allocation10 + $0x5a8] ss:$16 sps:$4 sm:$0xff]   ;;  %v6650_v50 = vld [vmem:[#allocation10 + $0x5cc] ss:$16 sps:$4 sm:$0xff]  }
 0x1dd   :  { %4596 = vmatpush1.bf16.msra.mxu0 %v6603_v57  ;;  %4940 = vmatpush1.bf16.msra.mxu1 %v6606_v58  ;;  %v7601_v17 = vpack.c.bf16 %v1350_v7, %v1334_v59  ;;  %v1352_v33 = vmax.f32 %v1319_v29, 0.0  ;;  %v6645_v51 = vld [vmem:[#allocation10 + $0x5c0] ss:$16 sps:$4 sm:$0xff]   ;;  %v6648_v53 = vld [vmem:[#allocation10 + $0x5c8] ss:$16 sps:$4 sm:$0xff]  }
 0x1de   :  { %4597 = vmatprep.subr.bf16.mxu0 %v6611_v61  ;;  %4941 = vmatprep.subr.bf16.mxu1 %v6614_v62  ;;  %v7606_v36 = vpack.c.bf16 %v1351_v31, %v1335_v25  ;;  %v6653_v55 = vld [vmem:[#allocation10 + $0x5e4] ss:$16 sps:$4 sm:$0xff]   ;;  %v6656_v13 = vld [vmem:[#allocation10 + $0x5ec] ss:$16 sps:$4 sm:$0xff]   ;;  %v6651_v56 = vld [vmem:[#allocation10 + $0x5e0] ss:$16 sps:$4 sm:$0xff]  }
 0x1df   :  { %v7608_v52 = vpack.c.bf16 %v1352_v33, %v1336_v27  ;;  %v6654_v57 = vld [vmem:[#allocation10 + $0x5e8] ss:$16 sps:$4 sm:$0xff]   ;;  %v6659_v58 = vld [vmem:[#allocation10 + $0x604] ss:$16 sps:$4 sm:$0xff]   ;;  %v6662_v59 = vld [vmem:[#allocation10 + $0x60c] ss:$16 sps:$4 sm:$0xff]  }
 0x1e0   :  { %v6657_v60 = vld [vmem:[#allocation10 + $0x600] ss:$16 sps:$4 sm:$0xff]   ;;  %v6660_v61 = vld [vmem:[#allocation10 + $0x608] ss:$16 sps:$4 sm:$0xff]   ;;  %v6665_v62 = vld [vmem:[#allocation10 + $0x624] ss:$16 sps:$4 sm:$0xff]  }
 0x1e1   :  { %4598 = vmatpush1.bf16.msra.mxu0 %v6609_v9  ;;  %4942 = vmatpush1.bf16.msra.mxu1 %v6612_v16  ;;  %v6668_v1 = vld [vmem:[#allocation10 + $0x62c] ss:$16 sps:$4 sm:$0xff]   ;;  %v6663_v2 = vld [vmem:[#allocation10 + $0x620] ss:$16 sps:$4 sm:$0xff]   ;;  %v6666_v7 = vld [vmem:[#allocation10 + $0x628] ss:$16 sps:$4 sm:$0xff]  }
 0x1e2   :  { %4599 = vmatprep.subr.bf16.mxu0 %v6617_v21  ;;  %4943 = vmatprep.subr.bf16.mxu1 %v6620_v5  ;;  %v6671_v8 = vld [vmem:[#allocation10 + $0x644] ss:$16 sps:$4 sm:$0xff]   ;;  %v6674_v11 = vld [vmem:[#allocation10 + $0x64c] ss:$16 sps:$4 sm:$0xff]   ;;  %v6669_v9 = vld [vmem:[#allocation10 + $0x640] ss:$16 sps:$4 sm:$0xff]  }
 0x1e3   :  { %v6672_v16 = vld [vmem:[#allocation10 + $0x648] ss:$16 sps:$4 sm:$0xff]   ;;  %v6677_v22 = vld [vmem:[#allocation10 + $0x664] ss:$16 sps:$4 sm:$0xff]   ;;  %v6675_v19 = vld [vmem:[#allocation10 + $0x660] ss:$16 sps:$4 sm:$0xff]  }
 0x1e4   :  { %v6678_v21 = vld [vmem:[#allocation10 + $0x668] ss:$16 sps:$4 sm:$0xff]   ;;  %v6683_v5 = vld [vmem:[#allocation10 + $0x684] ss:$16 sps:$4 sm:$0xff]   ;;  %v6681_v25 = vld [vmem:[#allocation10 + $0x680] ss:$16 sps:$4 sm:$0xff]  }
 0x1e5   :  { %4600 = vmatpush1.bf16.msra.mxu0 %v6615_v54  ;;  %4944 = vmatpush1.bf16.msra.mxu1 %v6618_v32  ;;  %v6684_v26 = vld [vmem:[#allocation10 + $0x688] ss:$16 sps:$4 sm:$0xff]   ;;  %v6689_v12 = vld [vmem:[#allocation10 + $0x6a4] ss:$16 sps:$4 sm:$0xff]   ;;  %v6692_v27 = vld [vmem:[#allocation10 + $0x6ac] ss:$16 sps:$4 sm:$0xff]  }
 0x1e6   :  { %4601 = vmatprep.subr.bf16.mxu0 %v6623_v34  ;;  %4945 = vmatprep.subr.bf16.mxu1 %v6626_v35  ;;  %v6687_v29 = vld [vmem:[#allocation10 + $0x6a0] ss:$16 sps:$4 sm:$0xff]   ;;  %v6690_v31 = vld [vmem:[#allocation10 + $0x6a8] ss:$16 sps:$4 sm:$0xff]   ;;  %v6695_v54 = vld [vmem:[#allocation10 + $0x6c4] ss:$16 sps:$4 sm:$0xff]  }
 0x1e7   :  { %v6698_v32 = vld [vmem:[#allocation10 + $0x6cc] ss:$16 sps:$4 sm:$0xff]   ;;  %v6693_v33 = vld [vmem:[#allocation10 + $0x6c0] ss:$16 sps:$4 sm:$0xff]   ;;  %v6696_v34 = vld [vmem:[#allocation10 + $0x6c8] ss:$16 sps:$4 sm:$0xff]  }
 0x1e8   :  { %v6701_v35 = vld [vmem:[#allocation10 + $0x6e4] ss:$16 sps:$4 sm:$0xff]  }
 0x1e9   :  { %4602 = vmatpush1.bf16.msra.mxu0 %v6621_v23  ;;  %4946 = vmatpush1.bf16.msra.mxu1 %v6624_v37  ;;  %v6704_v23 = vld [vmem:[#allocation10 + $0x6ec] ss:$16 sps:$4 sm:$0xff]   ;;  %v6699_v37 = vld [vmem:[#allocation10 + $0x6e0] ss:$16 sps:$4 sm:$0xff]  }
 0x1ea   :  { %4603 = vmatprep.subr.bf16.mxu0 %v6629_v24  ;;  %4947 = vmatprep.subr.bf16.mxu1 %v6632_v38  ;;  %v6702_v24 = vld [vmem:[#allocation10 + $0x6e8] ss:$16 sps:$4 sm:$0xff]   ;;  %v6707_v38 = vld [vmem:[#allocation10 + $0x704] ss:$16 sps:$4 sm:$0xff]  }
 0x1ed   :  { %4604 = vmatpush1.bf16.msra.mxu0 %v6627_v39  ;;  %4948 = vmatpush1.bf16.msra.mxu1 %v6630_v40  ;;  %v6710_v39 = vld [vmem:[#allocation10 + $0x70c] ss:$16 sps:$4 sm:$0xff]   ;;  %v6705_v40 = vld [vmem:[#allocation10 + $0x700] ss:$16 sps:$4 sm:$0xff]  }
 0x1ee   :  { %4605 = vmatprep.subr.bf16.mxu0 %v6635_v41  ;;  %4949 = vmatprep.subr.bf16.mxu1 %v6638_v42  ;;  %v6708_v41 = vld [vmem:[#allocation10 + $0x708] ss:$16 sps:$4 sm:$0xff]   ;;  %v6713_v42 = vld [vmem:[#allocation10 + $0x724] ss:$16 sps:$4 sm:$0xff]  }
 0x1f1   :  { %4606 = vmatpush1.bf16.msra.mxu0 %v6633_v43  ;;  %4950 = vmatpush1.bf16.msra.mxu1 %v6636_v44  ;;  %v6716_v43 = vld [vmem:[#allocation10 + $0x72c] ss:$16 sps:$4 sm:$0xff]   ;;  %v6711_v44 = vld [vmem:[#allocation10 + $0x720] ss:$16 sps:$4 sm:$0xff]  }
 0x1f2   :  { %4607 = vmatprep.subr.bf16.mxu0 %v6641_v45  ;;  %4951 = vmatprep.subr.bf16.mxu1 %v6644_v46  ;;  %v6714_v45 = vld [vmem:[#allocation10 + $0x728] ss:$16 sps:$4 sm:$0xff]   ;;  %v6719_v46 = vld [vmem:[#allocation10 + $0x744] ss:$16 sps:$4 sm:$0xff]  }
 0x1f5   :  { %4608 = vmatpush1.bf16.msra.mxu0 %v6639_v47  ;;  %4952 = vmatpush1.bf16.msra.mxu1 %v6642_v0  ;;  %v6722_v47 = vld [vmem:[#allocation10 + $0x74c] ss:$16 sps:$4 sm:$0xff]   ;;  %v6717_v0 = vld [vmem:[#allocation10 + $0x740] ss:$16 sps:$4 sm:$0xff]  }
 0x1f6   :  { %4609 = vmatprep.subr.bf16.mxu0 %v6647_v48  ;;  %4953 = vmatprep.subr.bf16.mxu1 %v6650_v50  ;;  %v6720_v48 = vld [vmem:[#allocation10 + $0x748] ss:$16 sps:$4 sm:$0xff]   ;;  %v6725_v50 = vld [vmem:[#allocation10 + $0x764] ss:$16 sps:$4 sm:$0xff]  }
 0x1f9   :  { %4610 = vmatpush1.bf16.msra.mxu0 %v6645_v51  ;;  %4954 = vmatpush1.bf16.msra.mxu1 %v6648_v53  ;;  %v6728_v51 = vld [vmem:[#allocation10 + $0x76c] ss:$16 sps:$4 sm:$0xff]   ;;  %v6723_v53 = vld [vmem:[#allocation10 + $0x760] ss:$16 sps:$4 sm:$0xff]  }
 0x1fa   :  { %4611 = vmatprep.subr.bf16.mxu0 %v6653_v55  ;;  %4955 = vmatprep.subr.bf16.mxu1 %v6656_v13  ;;  %v6726_v55 = vld [vmem:[#allocation10 + $0x768] ss:$16 sps:$4 sm:$0xff]   ;;  %v6731_v13 = vld [vmem:[#allocation10 + $0x784] ss:$16 sps:$4 sm:$0xff]  }
 0x1fd   :  { %4612 = vmatpush1.bf16.msra.mxu0 %v6651_v56  ;;  %4956 = vmatpush1.bf16.msra.mxu1 %v6654_v57  ;;  %v6734_v56 = vld [vmem:[#allocation10 + $0x78c] ss:$16 sps:$4 sm:$0xff]   ;;  %v6729_v57 = vld [vmem:[#allocation10 + $0x780] ss:$16 sps:$4 sm:$0xff]  }
 0x1fe   :  { %4624 = vmatprep.subr.bf16.mxu0 %v6659_v58  ;;  %4968 = vmatprep.subr.bf16.mxu1 %v6662_v59  ;;  %v6732_v58 = vld [vmem:[#allocation10 + $0x788] ss:$16 sps:$4 sm:$0xff]   ;;  %v6737_v59 = vld [vmem:[#allocation10 + $0x7a4] ss:$16 sps:$4 sm:$0xff]  }
 0x200   :  { %4614 = vmatmul.mubr.bf16.vlgmr.msra.gmra.mrb[16].mxu0 %v7566_v49  ;;  %4958 = vmatmul.mubr.bf16.vlgmr.msra.gmra.mrb[16].mxu1 %v7566_v49  ;;  %v6680_v49 = vld [vmem:[#allocation10 + $0x66c] ss:$16 sps:$4 sm:$0xff]  }
 0x201   :  { %4625 = vmatpush1.bf16.msra.mxu0 %v6657_v60  ;;  %4656 = vmatprep.mubr.bf16.mxu0 %v7572_v10  ;;  %v6740_v60 = vld [vmem:[#allocation10 + $0x7ac] ss:$16 sps:$4 sm:$0xff]  }
 0x202   :  { %4969 = vmatpush1.bf16.msra.mxu1 %v6660_v61  ;;  %5000 = vmatprep.mubr.bf16.mxu1 %v7572_v10  ;;  %v6686_v10 = vld [vmem:[#allocation10 + $0x68c] ss:$16 sps:$4 sm:$0xff]   ;;  %v6735_v61 = vld [vmem:[#allocation10 + $0x7a0] ss:$16 sps:$4 sm:$0xff]  }
 0x203   :  { %4626 = vmatprep.subr.bf16.mxu0 %v6665_v62  ;;  %4970 = vmatprep.subr.bf16.mxu1 %v6668_v1  ;;  %v6738_v62 = vld [vmem:[#allocation10 + $0x7a8] ss:$16 sps:$4 sm:$0xff]   ;;  %v6743_v1 = vld [vmem:[#allocation10 + $0x7c4] ss:$16 sps:$4 sm:$0xff]  }
 0x205   :  { %4627 = vmatpush1.bf16.msra.mxu0 %v6663_v2  ;;  %v6746_v2 = vld [vmem:[#allocation10 + $0x7cc] ss:$16 sps:$4 sm:$0xff]  }
 0x206   :  { %4971 = vmatpush1.bf16.msra.mxu1 %v6666_v7  ;;  %4628 = vmatprep.subr.bf16.mxu0 %v6671_v8  ;;  %v6741_v7 = vld [vmem:[#allocation10 + $0x7c0] ss:$16 sps:$4 sm:$0xff]   ;;  %v6744_v8 = vld [vmem:[#allocation10 + $0x7c8] ss:$16 sps:$4 sm:$0xff]  }
 0x207   :  { %4972 = vmatprep.subr.bf16.mxu1 %v6674_v11  ;;  %v6749_v11 = vld [vmem:[#allocation10 + $0x7e4] ss:$16 sps:$4 sm:$0xff]  }
 0x209   :  { %4629 = vmatpush1.bf16.msra.mxu0 %v6669_v9  ;;  %v6752_v9 = vld [vmem:[#allocation10 + $0x7ec] ss:$16 sps:$4 sm:$0xff]  }
 0x20a   :  { %4973 = vmatpush1.bf16.msra.mxu1 %v6672_v16  ;;  %4630 = vmatprep.subr.bf16.mxu0 %v6677_v22  ;;  %v6747_v16 = vld [vmem:[#allocation10 + $0x7e0] ss:$16 sps:$4 sm:$0xff]   ;;  %v6750_v22 = vld [vmem:[#allocation10 + $0x7e8] ss:$16 sps:$4 sm:$0xff]  }
 0x20b   :  { %4974 = vmatprep.subr.bf16.mxu1 %v6680_v49  ;;  %v6755_v49 = vld [vmem:[#allocation10 + $0x804] ss:$16 sps:$4 sm:$0xff]  }
 0x20d   :  { %4631 = vmatpush1.bf16.msra.mxu0 %v6675_v19  ;;  %v6758_v19 = vld [vmem:[#allocation10 + $0x80c] ss:$16 sps:$4 sm:$0xff]  }
 0x20e   :  { %4975 = vmatpush1.bf16.msra.mxu1 %v6678_v21  ;;  %4632 = vmatprep.subr.bf16.mxu0 %v6683_v5  ;;  %v6753_v21 = vld [vmem:[#allocation10 + $0x800] ss:$16 sps:$4 sm:$0xff]   ;;  %v6756_v5 = vld [vmem:[#allocation10 + $0x808] ss:$16 sps:$4 sm:$0xff]  }
 0x20f   :  { %4976 = vmatprep.subr.bf16.mxu1 %v6686_v10  ;;  %v6761_v10 = vld [vmem:[#allocation10 + $0x824] ss:$16 sps:$4 sm:$0xff]  }
 0x211   :  { %4633 = vmatpush1.bf16.msra.mxu0 %v6681_v25  ;;  %v6764_v25 = vld [vmem:[#allocation10 + $0x82c] ss:$16 sps:$4 sm:$0xff]  }
 0x212   :  { %4977 = vmatpush1.bf16.msra.mxu1 %v6684_v26  ;;  %4634 = vmatprep.subr.bf16.mxu0 %v6689_v12  ;;  %v6759_v26 = vld [vmem:[#allocation10 + $0x820] ss:$16 sps:$4 sm:$0xff]   ;;  %v6762_v12 = vld [vmem:[#allocation10 + $0x828] ss:$16 sps:$4 sm:$0xff]  }
 0x213   :  { %4978 = vmatprep.subr.bf16.mxu1 %v6692_v27  ;;  %v6767_v27 = vld [vmem:[#allocation10 + $0x844] ss:$16 sps:$4 sm:$0xff]  }
 0x215   :  { %4635 = vmatpush1.bf16.msra.mxu0 %v6687_v29  ;;  %v6770_v29 = vld [vmem:[#allocation10 + $0x84c] ss:$16 sps:$4 sm:$0xff]  }
 0x216   :  { %4979 = vmatpush1.bf16.msra.mxu1 %v6690_v31  ;;  %4636 = vmatprep.subr.bf16.mxu0 %v6695_v54  ;;  %v6765_v31 = vld [vmem:[#allocation10 + $0x840] ss:$16 sps:$4 sm:$0xff]   ;;  %v6768_v54 = vld [vmem:[#allocation10 + $0x848] ss:$16 sps:$4 sm:$0xff]  }
 0x217   :  { %4980 = vmatprep.subr.bf16.mxu1 %v6698_v32  ;;  %v6773_v32 = vld [vmem:[#allocation10 + $0x864] ss:$16 sps:$4 sm:$0xff]  }
 0x219   :  { %4637 = vmatpush1.bf16.msra.mxu0 %v6693_v33  ;;  %v6771_v33 = vld [vmem:[#allocation10 + $0x860] ss:$16 sps:$4 sm:$0xff]  }
 0x21a   :  { %4981 = vmatpush1.bf16.msra.mxu1 %v6696_v34  ;;  %4638 = vmatprep.subr.bf16.mxu0 %v6701_v35  ;;  %v6774_v34 = vld [vmem:[#allocation10 + $0x868] ss:$16 sps:$4 sm:$0xff]   ;;  %v6779_v35 = vld [vmem:[#allocation10 + $0x884] ss:$16 sps:$4 sm:$0xff]  }
 0x21b   :  { %4982 = vmatprep.subr.bf16.mxu1 %v6704_v23  ;;  %v6782_v23 = vld [vmem:[#allocation10 + $0x88c] ss:$16 sps:$4 sm:$0xff]  }
 0x21d   :  { %4639 = vmatpush1.bf16.msra.mxu0 %v6699_v37  ;;  %v6780_v37 = vld [vmem:[#allocation10 + $0x888] ss:$16 sps:$4 sm:$0xff]  }
 0x21e   :  { %4983 = vmatpush1.bf16.msra.mxu1 %v6702_v24  ;;  %4640 = vmatprep.subr.bf16.mxu0 %v6707_v38  ;;  %v6785_v24 = vld [vmem:[#allocation10 + $0x8a4] ss:$16 sps:$4 sm:$0xff]   ;;  %v6788_v38 = vld [vmem:[#allocation10 + $0x8ac] ss:$16 sps:$4 sm:$0xff]  }
 0x21f   :  { %4984 = vmatprep.subr.bf16.mxu1 %v6710_v39  ;;  %v6783_v39 = vld [vmem:[#allocation10 + $0x8a0] ss:$16 sps:$4 sm:$0xff]  }
 0x221   :  { %4641 = vmatpush1.bf16.msra.mxu0 %v6705_v40  ;;  %v6786_v40 = vld [vmem:[#allocation10 + $0x8a8] ss:$16 sps:$4 sm:$0xff]  }
 0x222   :  { %4985 = vmatpush1.bf16.msra.mxu1 %v6708_v41  ;;  %4642 = vmatprep.subr.bf16.mxu0 %v6713_v42  ;;  %v6791_v41 = vld [vmem:[#allocation10 + $0x8c4] ss:$16 sps:$4 sm:$0xff]   ;;  %v6794_v42 = vld [vmem:[#allocation10 + $0x8cc] ss:$16 sps:$4 sm:$0xff]  }
 0x223   :  { %4986 = vmatprep.subr.bf16.mxu1 %v6716_v43  ;;  %v6789_v43 = vld [vmem:[#allocation10 + $0x8c0] ss:$16 sps:$4 sm:$0xff]  }
 0x225   :  { %4643 = vmatpush1.bf16.msra.mxu0 %v6711_v44  ;;  %v6792_v44 = vld [vmem:[#allocation10 + $0x8c8] ss:$16 sps:$4 sm:$0xff]  }
 0x226   :  { %4987 = vmatpush1.bf16.msra.mxu1 %v6714_v45  ;;  %4644 = vmatprep.subr.bf16.mxu0 %v6719_v46  ;;  %v6797_v45 = vld [vmem:[#allocation10 + $0x8e4] ss:$16 sps:$4 sm:$0xff]   ;;  %v6800_v46 = vld [vmem:[#allocation10 + $0x8ec] ss:$16 sps:$4 sm:$0xff]  }
 0x227   :  { %4988 = vmatprep.subr.bf16.mxu1 %v6722_v47  ;;  %v6795_v47 = vld [vmem:[#allocation10 + $0x8e0] ss:$16 sps:$4 sm:$0xff]  }
 0x229   :  { %4645 = vmatpush1.bf16.msra.mxu0 %v6717_v0  ;;  %v6798_v0 = vld [vmem:[#allocation10 + $0x8e8] ss:$16 sps:$4 sm:$0xff]  }
 0x22a   :  { %4989 = vmatpush1.bf16.msra.mxu1 %v6720_v48  ;;  %4646 = vmatprep.subr.bf16.mxu0 %v6725_v50  ;;  %v6803_v48 = vld [vmem:[#allocation10 + $0x904] ss:$16 sps:$4 sm:$0xff]   ;;  %v6806_v50 = vld [vmem:[#allocation10 + $0x90c] ss:$16 sps:$4 sm:$0xff]  }
 0x22b   :  { %4990 = vmatprep.subr.bf16.mxu1 %v6728_v51  ;;  %v6801_v51 = vld [vmem:[#allocation10 + $0x900] ss:$16 sps:$4 sm:$0xff]  }
 0x22d   :  { %4647 = vmatpush1.bf16.msra.mxu0 %v6723_v53  ;;  %v6804_v53 = vld [vmem:[#allocation10 + $0x908] ss:$16 sps:$4 sm:$0xff]  }
 0x22e   :  { %4991 = vmatpush1.bf16.msra.mxu1 %v6726_v55  ;;  %4648 = vmatprep.subr.bf16.mxu0 %v6731_v13  ;;  %v6809_v55 = vld [vmem:[#allocation10 + $0x924] ss:$16 sps:$4 sm:$0xff]   ;;  %v6812_v13 = vld [vmem:[#allocation10 + $0x92c] ss:$16 sps:$4 sm:$0xff]  }
 0x22f   :  { %4992 = vmatprep.subr.bf16.mxu1 %v6734_v56  ;;  %v6807_v56 = vld [vmem:[#allocation10 + $0x920] ss:$16 sps:$4 sm:$0xff]  }
 0x231   :  { %4649 = vmatpush1.bf16.msra.mxu0 %v6729_v57  ;;  %v6810_v57 = vld [vmem:[#allocation10 + $0x928] ss:$16 sps:$4 sm:$0xff]  }
 0x232   :  { %4993 = vmatpush1.bf16.msra.mxu1 %v6732_v58  ;;  %4650 = vmatprep.subr.bf16.mxu0 %v6737_v59  ;;  %v6815_v58 = vld [vmem:[#allocation10 + $0x944] ss:$16 sps:$4 sm:$0xff]   ;;  %v6818_v59 = vld [vmem:[#allocation10 + $0x94c] ss:$16 sps:$4 sm:$0xff]  }
 0x233   :  { %4994 = vmatprep.subr.bf16.mxu1 %v6740_v60  ;;  %v6813_v60 = vld [vmem:[#allocation10 + $0x940] ss:$16 sps:$4 sm:$0xff]  }
 0x235   :  { %4651 = vmatpush1.bf16.msra.mxu0 %v6735_v61  ;;  %v6816_v61 = vld [vmem:[#allocation10 + $0x948] ss:$16 sps:$4 sm:$0xff]  }
 0x236   :  { %4995 = vmatpush1.bf16.msra.mxu1 %v6738_v62  ;;  %4652 = vmatprep.subr.bf16.mxu0 %v6743_v1  ;;  %v6821_v62 = vld [vmem:[#allocation10 + $0x964] ss:$16 sps:$4 sm:$0xff]   ;;  %v6824_v1 = vld [vmem:[#allocation10 + $0x96c] ss:$16 sps:$4 sm:$0xff]  }
 0x237   :  { %4996 = vmatprep.subr.bf16.mxu1 %v6746_v2  ;;  %v6819_v2 = vld [vmem:[#allocation10 + $0x960] ss:$16 sps:$4 sm:$0xff]  }
 0x239   :  { %4653 = vmatpush1.bf16.msra.mxu0 %v6741_v7  ;;  %v6822_v7 = vld [vmem:[#allocation10 + $0x968] ss:$16 sps:$4 sm:$0xff]  }
 0x23a   :  { %4997 = vmatpush1.bf16.msra.mxu1 %v6744_v8  ;;  %4654 = vmatprep.subr.bf16.mxu0 %v6749_v11  ;;  %v6827_v8 = vld [vmem:[#allocation10 + $0x984] ss:$16 sps:$4 sm:$0xff]   ;;  %v6830_v11 = vld [vmem:[#allocation10 + $0x98c] ss:$16 sps:$4 sm:$0xff]  }
 0x23b   :  { %4998 = vmatprep.subr.bf16.mxu1 %v6752_v9  ;;  %v6825_v9 = vld [vmem:[#allocation10 + $0x980] ss:$16 sps:$4 sm:$0xff]  }
 0x23d   :  { %4655 = vmatpush1.bf16.msra.mxu0 %v6747_v16  ;;  %v6828_v16 = vld [vmem:[#allocation10 + $0x988] ss:$16 sps:$4 sm:$0xff]  }
 0x23e   :  { %4999 = vmatpush1.bf16.msra.mxu1 %v6750_v22  ;;  %4667 = vmatprep.subr.bf16.mxu0 %v6755_v49  ;;  %v6833_v22 = vld [vmem:[#allocation10 + $0x9a4] ss:$16 sps:$4 sm:$0xff]   ;;  %v6836_v49 = vld [vmem:[#allocation10 + $0x9ac] ss:$16 sps:$4 sm:$0xff]  }
 0x23f   :  { %5011 = vmatprep.subr.bf16.mxu1 %v6758_v19  ;;  %v6831_v19 = vld [vmem:[#allocation10 + $0x9a0] ss:$16 sps:$4 sm:$0xff]  }
 0x240   :  { %4657 = vmatmul.mubr.bf16.vlgmr.msra.gmra.mrb[16].mxu0 %v7570_v6 }
 0x241   :  { %5001 = vmatmul.mubr.bf16.vlgmr.msra.gmra.mrb[16].mxu1 %v7570_v6  ;;  %4668 = vmatpush1.bf16.msra.mxu0 %v6753_v21  ;;  %v6776_v6 = vld [vmem:[#allocation10 + $0x86c] ss:$16 sps:$4 sm:$0xff]   ;;  %v6834_v21 = vld [vmem:[#allocation10 + $0x9a8] ss:$16 sps:$4 sm:$0xff]  }
 0x242   :  { %4699 = vmatprep.mubr.bf16.mxu0 %v7584_v3  ;;  %5012 = vmatpush1.bf16.msra.mxu1 %v6756_v5  ;;  %v6839_v5 = vld [vmem:[#allocation10 + $0x9c4] ss:$16 sps:$4 sm:$0xff]  }
 0x243   :  { %5043 = vmatprep.mubr.bf16.mxu1 %v7584_v3  ;;  %4669 = vmatprep.subr.bf16.mxu0 %v6761_v10  ;;  %v6777_v3 = vld [vmem:[#allocation10 + $0x880] ss:$16 sps:$4 sm:$0xff]   ;;  %v6842_v10 = vld [vmem:[#allocation10 + $0x9cc] ss:$16 sps:$4 sm:$0xff]  }
 0x244   :  { %5013 = vmatprep.subr.bf16.mxu1 %v6764_v25  ;;  %v6837_v25 = vld [vmem:[#allocation10 + $0x9c0] ss:$16 sps:$4 sm:$0xff]  }
 0x245   :  { %4670 = vmatpush1.bf16.msra.mxu0 %v6759_v26  ;;  %v6840_v26 = vld [vmem:[#allocation10 + $0x9c8] ss:$16 sps:$4 sm:$0xff]  }
 0x246   :  { %5014 = vmatpush1.bf16.msra.mxu1 %v6762_v12  ;;  %4671 = vmatprep.subr.bf16.mxu0 %v6767_v27  ;;  %v6845_v12 = vld [vmem:[#allocation10 + $0x9e4] ss:$16 sps:$4 sm:$0xff]   ;;  %v6848_v27 = vld [vmem:[#allocation10 + $0x9ec] ss:$16 sps:$4 sm:$0xff]  }
 0x247   :  { %5015 = vmatprep.subr.bf16.mxu1 %v6770_v29  ;;  %v6843_v29 = vld [vmem:[#allocation10 + $0x9e0] ss:$16 sps:$4 sm:$0xff]  }
 0x249   :  { %4672 = vmatpush1.bf16.msra.mxu0 %v6765_v31  ;;  %v6846_v31 = vld [vmem:[#allocation10 + $0x9e8] ss:$16 sps:$4 sm:$0xff]  }
 0x24a   :  { %5016 = vmatpush1.bf16.msra.mxu1 %v6768_v54  ;;  %4673 = vmatprep.subr.bf16.mxu0 %v6773_v32  ;;  %v6851_v54 = vld [vmem:[#allocation10 + $0xa04] ss:$16 sps:$4 sm:$0xff]   ;;  %v6854_v32 = vld [vmem:[#allocation10 + $0xa0c] ss:$16 sps:$4 sm:$0xff]  }
 0x24b   :  { %5017 = vmatprep.subr.bf16.mxu1 %v6776_v6  ;;  %v6849_v6 = vld [vmem:[#allocation10 + $0xa00] ss:$16 sps:$4 sm:$0xff]  }
 0x24d   :  { %4674 = vmatpush1.bf16.msra.mxu0 %v6771_v33  ;;  %v6852_v33 = vld [vmem:[#allocation10 + $0xa08] ss:$16 sps:$4 sm:$0xff]  }
 0x24e   :  { %5018 = vmatpush1.bf16.msra.mxu1 %v6774_v34  ;;  %4675 = vmatprep.subr.bf16.mxu0 %v6779_v35  ;;  %v6857_v34 = vld [vmem:[#allocation10 + $0xa24] ss:$16 sps:$4 sm:$0xff]   ;;  %v6860_v35 = vld [vmem:[#allocation10 + $0xa2c] ss:$16 sps:$4 sm:$0xff]  }
 0x24f   :  { %5019 = vmatprep.subr.bf16.mxu1 %v6782_v23  ;;  %v6855_v23 = vld [vmem:[#allocation10 + $0xa20] ss:$16 sps:$4 sm:$0xff]  }
 0x251   :  { %4676 = vmatpush1.bf16.msra.mxu0 %v6777_v3  ;;  %v6858_v3 = vld [vmem:[#allocation10 + $0xa28] ss:$16 sps:$4 sm:$0xff]  }
 0x252   :  { %5020 = vmatpush1.bf16.msra.mxu1 %v6780_v37  ;;  %4677 = vmatprep.subr.bf16.mxu0 %v6785_v24  ;;  %v6863_v37 = vld [vmem:[#allocation10 + $0xa44] ss:$16 sps:$4 sm:$0xff]   ;;  %v6866_v24 = vld [vmem:[#allocation10 + $0xa4c] ss:$16 sps:$4 sm:$0xff]  }
 0x253   :  { %5021 = vmatprep.subr.bf16.mxu1 %v6788_v38  ;;  %v6861_v38 = vld [vmem:[#allocation10 + $0xa40] ss:$16 sps:$4 sm:$0xff]  }
 0x255   :  { %4678 = vmatpush1.bf16.msra.mxu0 %v6783_v39  ;;  %v6864_v39 = vld [vmem:[#allocation10 + $0xa48] ss:$16 sps:$4 sm:$0xff]  }
 0x256   :  { %5022 = vmatpush1.bf16.msra.mxu1 %v6786_v40  ;;  %4679 = vmatprep.subr.bf16.mxu0 %v6791_v41  ;;  %v6869_v40 = vld [vmem:[#allocation10 + $0xa64] ss:$16 sps:$4 sm:$0xff]   ;;  %v6867_v41 = vld [vmem:[#allocation10 + $0xa60] ss:$16 sps:$4 sm:$0xff]  }
 0x257   :  { %5023 = vmatprep.subr.bf16.mxu1 %v6794_v42  ;;  %v6870_v42 = vld [vmem:[#allocation10 + $0xa68] ss:$16 sps:$4 sm:$0xff]  }
 0x259   :  { %4680 = vmatpush1.bf16.msra.mxu0 %v6789_v43  ;;  %v6875_v43 = vld [vmem:[#allocation10 + $0xa84] ss:$16 sps:$4 sm:$0xff]  }
 0x25a   :  { %5024 = vmatpush1.bf16.msra.mxu1 %v6792_v44  ;;  %4681 = vmatprep.subr.bf16.mxu0 %v6797_v45  ;;  %v6878_v44 = vld [vmem:[#allocation10 + $0xa8c] ss:$16 sps:$4 sm:$0xff]   ;;  %v6876_v45 = vld [vmem:[#allocation10 + $0xa88] ss:$16 sps:$4 sm:$0xff]  }
 0x25b   :  { %5025 = vmatprep.subr.bf16.mxu1 %v6800_v46  ;;  %v6881_v46 = vld [vmem:[#allocation10 + $0xaa4] ss:$16 sps:$4 sm:$0xff]  }
 0x25d   :  { %4682 = vmatpush1.bf16.msra.mxu0 %v6795_v47  ;;  %v6884_v47 = vld [vmem:[#allocation10 + $0xaac] ss:$16 sps:$4 sm:$0xff]  }
 0x25e   :  { %5026 = vmatpush1.bf16.msra.mxu1 %v6798_v0  ;;  %4683 = vmatprep.subr.bf16.mxu0 %v6803_v48  ;;  %v6879_v0 = vld [vmem:[#allocation10 + $0xaa0] ss:$16 sps:$4 sm:$0xff]   ;;  %v6882_v48 = vld [vmem:[#allocation10 + $0xaa8] ss:$16 sps:$4 sm:$0xff]  }
 0x25f   :  { %5027 = vmatprep.subr.bf16.mxu1 %v6806_v50  ;;  %v6887_v50 = vld [vmem:[#allocation10 + $0xac4] ss:$16 sps:$4 sm:$0xff]  }
 0x261   :  { %4684 = vmatpush1.bf16.msra.mxu0 %v6801_v51  ;;  %v6890_v51 = vld [vmem:[#allocation10 + $0xacc] ss:$16 sps:$4 sm:$0xff]  }
 0x262   :  { %5028 = vmatpush1.bf16.msra.mxu1 %v6804_v53  ;;  %4685 = vmatprep.subr.bf16.mxu0 %v6809_v55  ;;  %v6885_v53 = vld [vmem:[#allocation10 + $0xac0] ss:$16 sps:$4 sm:$0xff]   ;;  %v6888_v55 = vld [vmem:[#allocation10 + $0xac8] ss:$16 sps:$4 sm:$0xff]  }
 0x263   :  { %5029 = vmatprep.subr.bf16.mxu1 %v6812_v13  ;;  %v6893_v13 = vld [vmem:[#allocation10 + $0xae4] ss:$16 sps:$4 sm:$0xff]  }
 0x265   :  { %4686 = vmatpush1.bf16.msra.mxu0 %v6807_v56  ;;  %v6896_v56 = vld [vmem:[#allocation10 + $0xaec] ss:$16 sps:$4 sm:$0xff]  }
 0x266   :  { %5030 = vmatpush1.bf16.msra.mxu1 %v6810_v57  ;;  %4687 = vmatprep.subr.bf16.mxu0 %v6815_v58  ;;  %v6891_v57 = vld [vmem:[#allocation10 + $0xae0] ss:$16 sps:$4 sm:$0xff]   ;;  %v6894_v58 = vld [vmem:[#allocation10 + $0xae8] ss:$16 sps:$4 sm:$0xff]  }
 0x267   :  { %5031 = vmatprep.subr.bf16.mxu1 %v6818_v59  ;;  %v6899_v59 = vld [vmem:[#allocation10 + $0xb04] ss:$16 sps:$4 sm:$0xff]  }
 0x269   :  { %4688 = vmatpush1.bf16.msra.mxu0 %v6813_v60  ;;  %v6902_v60 = vld [vmem:[#allocation10 + $0xb0c] ss:$16 sps:$4 sm:$0xff]  }
 0x26a   :  { %5032 = vmatpush1.bf16.msra.mxu1 %v6816_v61  ;;  %4689 = vmatprep.subr.bf16.mxu0 %v6821_v62  ;;  %v6897_v61 = vld [vmem:[#allocation10 + $0xb00] ss:$16 sps:$4 sm:$0xff]   ;;  %v6900_v62 = vld [vmem:[#allocation10 + $0xb08] ss:$16 sps:$4 sm:$0xff]  }
 0x26b   :  { %5033 = vmatprep.subr.bf16.mxu1 %v6824_v1  ;;  %v6905_v1 = vld [vmem:[#allocation10 + $0xb24] ss:$16 sps:$4 sm:$0xff]  }
 0x26d   :  { %4690 = vmatpush1.bf16.msra.mxu0 %v6819_v2  ;;  %v6908_v2 = vld [vmem:[#allocation10 + $0xb2c] ss:$16 sps:$4 sm:$0xff]  }
 0x26e   :  { %5034 = vmatpush1.bf16.msra.mxu1 %v6822_v7  ;;  %4691 = vmatprep.subr.bf16.mxu0 %v6827_v8  ;;  %v6903_v7 = vld [vmem:[#allocation10 + $0xb20] ss:$16 sps:$4 sm:$0xff]   ;;  %v6906_v8 = vld [vmem:[#allocation10 + $0xb28] ss:$16 sps:$4 sm:$0xff]  }
 0x26f   :  { %5035 = vmatprep.subr.bf16.mxu1 %v6830_v11  ;;  %v6911_v11 = vld [vmem:[#allocation10 + $0xb44] ss:$16 sps:$4 sm:$0xff]  }
 0x271   :  { %4692 = vmatpush1.bf16.msra.mxu0 %v6825_v9  ;;  %v6914_v9 = vld [vmem:[#allocation10 + $0xb4c] ss:$16 sps:$4 sm:$0xff]  }
 0x272   :  { %5036 = vmatpush1.bf16.msra.mxu1 %v6828_v16  ;;  %4693 = vmatprep.subr.bf16.mxu0 %v6833_v22  ;;  %v6909_v16 = vld [vmem:[#allocation10 + $0xb40] ss:$16 sps:$4 sm:$0xff]   ;;  %v6912_v22 = vld [vmem:[#allocation10 + $0xb48] ss:$16 sps:$4 sm:$0xff]  }
 0x273   :  { %5037 = vmatprep.subr.bf16.mxu1 %v6836_v49  ;;  %v6917_v49 = vld [vmem:[#allocation10 + $0xb64] ss:$16 sps:$4 sm:$0xff]  }
 0x275   :  { %4694 = vmatpush1.bf16.msra.mxu0 %v6831_v19  ;;  %v6920_v19 = vld [vmem:[#allocation10 + $0xb6c] ss:$16 sps:$4 sm:$0xff]  }
 0x276   :  { %5038 = vmatpush1.bf16.msra.mxu1 %v6834_v21  ;;  %4695 = vmatprep.subr.bf16.mxu0 %v6839_v5  ;;  %v6915_v21 = vld [vmem:[#allocation10 + $0xb60] ss:$16 sps:$4 sm:$0xff]   ;;  %v6918_v5 = vld [vmem:[#allocation10 + $0xb68] ss:$16 sps:$4 sm:$0xff]  }
 0x277   :  { %5039 = vmatprep.subr.bf16.mxu1 %v6842_v10  ;;  %v6923_v10 = vld [vmem:[#allocation10 + $0xb84] ss:$16 sps:$4 sm:$0xff]  }
 0x279   :  { %4696 = vmatpush1.bf16.msra.mxu0 %v6837_v25  ;;  %v6926_v25 = vld [vmem:[#allocation10 + $0xb8c] ss:$16 sps:$4 sm:$0xff]  }
 0x27a   :  { %5040 = vmatpush1.bf16.msra.mxu1 %v6840_v26  ;;  %4697 = vmatprep.subr.bf16.mxu0 %v6845_v12  ;;  %v6921_v26 = vld [vmem:[#allocation10 + $0xb80] ss:$16 sps:$4 sm:$0xff]   ;;  %v6924_v12 = vld [vmem:[#allocation10 + $0xb88] ss:$16 sps:$4 sm:$0xff]  }
 0x27b   :  { %5041 = vmatprep.subr.bf16.mxu1 %v6848_v27  ;;  %v6929_v27 = vld [vmem:[#allocation10 + $0xba4] ss:$16 sps:$4 sm:$0xff]  }
 0x27d   :  { %4698 = vmatpush1.bf16.msra.mxu0 %v6843_v29  ;;  %v6932_v29 = vld [vmem:[#allocation10 + $0xbac] ss:$16 sps:$4 sm:$0xff]  }
 0x27e   :  { %5042 = vmatpush1.bf16.msra.mxu1 %v6846_v31  ;;  %4710 = vmatprep.subr.bf16.mxu0 %v6851_v54  ;;  %v6927_v31 = vld [vmem:[#allocation10 + $0xba0] ss:$16 sps:$4 sm:$0xff]   ;;  %v6930_v54 = vld [vmem:[#allocation10 + $0xba8] ss:$16 sps:$4 sm:$0xff]  }
 0x27f   :  { %5054 = vmatprep.subr.bf16.mxu1 %v6854_v32  ;;  %v6935_v32 = vld [vmem:[#allocation10 + $0xbc4] ss:$16 sps:$4 sm:$0xff]  }
 0x280   :  { %4700 = vmatmul.mubr.bf16.vlgmr.msra.gmra.mrb[16].mxu0 %v7582_v63 }
 0x281   :  { %5044 = vmatmul.mubr.bf16.vlgmr.msra.gmra.mrb[16].mxu1 %v7582_v63  ;;  %4711 = vmatpush1.bf16.msra.mxu0 %v6849_v6  ;;  %v6872_v63 = vld [vmem:[#allocation10 + $0xa6c] ss:$16 sps:$4 sm:$0xff]  }
 0x282   :  { %4742 = vmatprep.mubr.bf16.mxu0 %v7592_v30  ;;  %5055 = vmatpush1.bf16.msra.mxu1 %v6852_v33  ;;  %v6938_v6 = vld [vmem:[#allocation10 + $0xbcc] ss:$16 sps:$4 sm:$0xff]   ;;  %v6933_v33 = vld [vmem:[#allocation10 + $0xbc0] ss:$16 sps:$4 sm:$0xff]  }
 0x283   :  { %5086 = vmatprep.mubr.bf16.mxu1 %v7592_v30  ;;  %4712 = vmatprep.subr.bf16.mxu0 %v6857_v34  ;;  %v6873_v30 = vld [vmem:[#allocation10 + $0xa80] ss:$16 sps:$4 sm:$0xff]   ;;  %v6936_v34 = vld [vmem:[#allocation10 + $0xbc8] ss:$16 sps:$4 sm:$0xff]  }
 0x284   :  { %5056 = vmatprep.subr.bf16.mxu1 %v6860_v35  ;;  %v6941_v35 = vld [vmem:[#allocation10 + $0xbe4] ss:$16 sps:$4 sm:$0xff]  }
 0x285   :  { %4713 = vmatpush1.bf16.msra.mxu0 %v6855_v23  ;;  %v6944_v23 = vld [vmem:[#allocation10 + $0xbec] ss:$16 sps:$4 sm:$0xff]  }
 0x286   :  { %5057 = vmatpush1.bf16.msra.mxu1 %v6858_v3  ;;  %4714 = vmatprep.subr.bf16.mxu0 %v6863_v37  ;;  %v6939_v3 = vld [vmem:[#allocation10 + $0xbe0] ss:$16 sps:$4 sm:$0xff]   ;;  %v6942_v37 = vld [vmem:[#allocation10 + $0xbe8] ss:$16 sps:$4 sm:$0xff]  }
 0x287   :  { %5058 = vmatprep.subr.bf16.mxu1 %v6866_v24  ;;  %v6947_v24 = vld [vmem:[#allocation10 + $0xc04] ss:$16 sps:$4 sm:$0xff]  }
 0x289   :  { %4715 = vmatpush1.bf16.msra.mxu0 %v6861_v38  ;;  %v6950_v38 = vld [vmem:[#allocation10 + $0xc0c] ss:$16 sps:$4 sm:$0xff]  }
 0x28a   :  { %5059 = vmatpush1.bf16.msra.mxu1 %v6864_v39  ;;  %4716 = vmatprep.subr.bf16.mxu0 %v6869_v40  ;;  %v6945_v39 = vld [vmem:[#allocation10 + $0xc00] ss:$16 sps:$4 sm:$0xff]   ;;  %v6948_v40 = vld [vmem:[#allocation10 + $0xc08] ss:$16 sps:$4 sm:$0xff]  }
 0x28b   :  { %5060 = vmatprep.subr.bf16.mxu1 %v6872_v63  ;;  %v6953_v63 = vld [vmem:[#allocation10 + $0xc24] ss:$16 sps:$4 sm:$0xff]  }
 0x28d   :  { %4717 = vmatpush1.bf16.msra.mxu0 %v6867_v41  ;;  %v6956_v41 = vld [vmem:[#allocation10 + $0xc2c] ss:$16 sps:$4 sm:$0xff]  }
 0x28e   :  { %5061 = vmatpush1.bf16.msra.mxu1 %v6870_v42  ;;  %4718 = vmatprep.subr.bf16.mxu0 %v6875_v43  ;;  %v6951_v42 = vld [vmem:[#allocation10 + $0xc20] ss:$16 sps:$4 sm:$0xff]   ;;  %v6954_v43 = vld [vmem:[#allocation10 + $0xc28] ss:$16 sps:$4 sm:$0xff]  }
 0x28f   :  { %5062 = vmatprep.subr.bf16.mxu1 %v6878_v44  ;;  %v6959_v44 = vld [vmem:[#allocation10 + $0xc44] ss:$16 sps:$4 sm:$0xff]  }
 0x291   :  { %4719 = vmatpush1.bf16.msra.mxu0 %v6873_v30  ;;  %v6962_v30 = vld [vmem:[#allocation10 + $0xc4c] ss:$16 sps:$4 sm:$0xff]  }
 0x292   :  { %5063 = vmatpush1.bf16.msra.mxu1 %v6876_v45  ;;  %4720 = vmatprep.subr.bf16.mxu0 %v6881_v46  ;;  %v6957_v45 = vld [vmem:[#allocation10 + $0xc40] ss:$16 sps:$4 sm:$0xff]   ;;  %v6960_v46 = vld [vmem:[#allocation10 + $0xc48] ss:$16 sps:$4 sm:$0xff]  }
 0x293   :  { %5064 = vmatprep.subr.bf16.mxu1 %v6884_v47  ;;  %v6965_v47 = vld [vmem:[#allocation10 + $0xc64] ss:$16 sps:$4 sm:$0xff]  }
 0x295   :  { %4721 = vmatpush1.bf16.msra.mxu0 %v6879_v0  ;;  %v6963_v0 = vld [vmem:[#allocation10 + $0xc60] ss:$16 sps:$4 sm:$0xff]  }
 0x296   :  { %5065 = vmatpush1.bf16.msra.mxu1 %v6882_v48  ;;  %4722 = vmatprep.subr.bf16.mxu0 %v6887_v50  ;;  %v6966_v48 = vld [vmem:[#allocation10 + $0xc68] ss:$16 sps:$4 sm:$0xff]   ;;  %v6971_v50 = vld [vmem:[#allocation10 + $0xc84] ss:$16 sps:$4 sm:$0xff]  }
 0x297   :  { %5066 = vmatprep.subr.bf16.mxu1 %v6890_v51  ;;  %v6974_v51 = vld [vmem:[#allocation10 + $0xc8c] ss:$16 sps:$4 sm:$0xff]  }
 0x299   :  { %4723 = vmatpush1.bf16.msra.mxu0 %v6885_v53  ;;  %v6972_v53 = vld [vmem:[#allocation10 + $0xc88] ss:$16 sps:$4 sm:$0xff]  }
 0x29a   :  { %5067 = vmatpush1.bf16.msra.mxu1 %v6888_v55  ;;  %4724 = vmatprep.subr.bf16.mxu0 %v6893_v13  ;;  %v6977_v55 = vld [vmem:[#allocation10 + $0xca4] ss:$16 sps:$4 sm:$0xff]   ;;  %v6980_v13 = vld [vmem:[#allocation10 + $0xcac] ss:$16 sps:$4 sm:$0xff]  }
 0x29b   :  { %5068 = vmatprep.subr.bf16.mxu1 %v6896_v56  ;;  %v6975_v56 = vld [vmem:[#allocation10 + $0xca0] ss:$16 sps:$4 sm:$0xff]  }
 0x29d   :  { %4725 = vmatpush1.bf16.msra.mxu0 %v6891_v57  ;;  %v6978_v57 = vld [vmem:[#allocation10 + $0xca8] ss:$16 sps:$4 sm:$0xff]  }
 0x29e   :  { %5069 = vmatpush1.bf16.msra.mxu1 %v6894_v58  ;;  %4726 = vmatprep.subr.bf16.mxu0 %v6899_v59  ;;  %v6983_v58 = vld [vmem:[#allocation10 + $0xcc4] ss:$16 sps:$4 sm:$0xff]   ;;  %v6986_v59 = vld [vmem:[#allocation10 + $0xccc] ss:$16 sps:$4 sm:$0xff]  }
 0x29f   :  { %5070 = vmatprep.subr.bf16.mxu1 %v6902_v60  ;;  %v6981_v60 = vld [vmem:[#allocation10 + $0xcc0] ss:$16 sps:$4 sm:$0xff]  }
 0x2a1   :  { %4727 = vmatpush1.bf16.msra.mxu0 %v6897_v61  ;;  %v6984_v61 = vld [vmem:[#allocation10 + $0xcc8] ss:$16 sps:$4 sm:$0xff]  }
 0x2a2   :  { %5071 = vmatpush1.bf16.msra.mxu1 %v6900_v62  ;;  %4728 = vmatprep.subr.bf16.mxu0 %v6905_v1  ;;  %v6989_v62 = vld [vmem:[#allocation10 + $0xce4] ss:$16 sps:$4 sm:$0xff]   ;;  %v6992_v1 = vld [vmem:[#allocation10 + $0xcec] ss:$16 sps:$4 sm:$0xff]  }
 0x2a3   :  { %5072 = vmatprep.subr.bf16.mxu1 %v6908_v2  ;;  %v6987_v2 = vld [vmem:[#allocation10 + $0xce0] ss:$16 sps:$4 sm:$0xff]  }
 0x2a5   :  { %4729 = vmatpush1.bf16.msra.mxu0 %v6903_v7  ;;  %v6990_v7 = vld [vmem:[#allocation10 + $0xce8] ss:$16 sps:$4 sm:$0xff]  }
 0x2a6   :  { %5073 = vmatpush1.bf16.msra.mxu1 %v6906_v8  ;;  %4730 = vmatprep.subr.bf16.mxu0 %v6911_v11  ;;  %v6995_v8 = vld [vmem:[#allocation10 + $0xd04] ss:$16 sps:$4 sm:$0xff]   ;;  %v6998_v11 = vld [vmem:[#allocation10 + $0xd0c] ss:$16 sps:$4 sm:$0xff]  }
 0x2a7   :  { %5074 = vmatprep.subr.bf16.mxu1 %v6914_v9  ;;  %v6993_v9 = vld [vmem:[#allocation10 + $0xd00] ss:$16 sps:$4 sm:$0xff]  }
 0x2a9   :  { %4731 = vmatpush1.bf16.msra.mxu0 %v6909_v16  ;;  %v6996_v16 = vld [vmem:[#allocation10 + $0xd08] ss:$16 sps:$4 sm:$0xff]  }
 0x2aa   :  { %5075 = vmatpush1.bf16.msra.mxu1 %v6912_v22  ;;  %4732 = vmatprep.subr.bf16.mxu0 %v6917_v49  ;;  %v7001_v22 = vld [vmem:[#allocation10 + $0xd24] ss:$16 sps:$4 sm:$0xff]   ;;  %v7004_v49 = vld [vmem:[#allocation10 + $0xd2c] ss:$16 sps:$4 sm:$0xff]  }
 0x2ab   :  { %5076 = vmatprep.subr.bf16.mxu1 %v6920_v19  ;;  %v6999_v19 = vld [vmem:[#allocation10 + $0xd20] ss:$16 sps:$4 sm:$0xff]  }
 0x2ad   :  { %4733 = vmatpush1.bf16.msra.mxu0 %v6915_v21  ;;  %v7002_v21 = vld [vmem:[#allocation10 + $0xd28] ss:$16 sps:$4 sm:$0xff]  }
 0x2ae   :  { %5077 = vmatpush1.bf16.msra.mxu1 %v6918_v5  ;;  %4734 = vmatprep.subr.bf16.mxu0 %v6923_v10  ;;  %v7007_v5 = vld [vmem:[#allocation10 + $0xd44] ss:$16 sps:$4 sm:$0xff]   ;;  %v7010_v10 = vld [vmem:[#allocation10 + $0xd4c] ss:$16 sps:$4 sm:$0xff]  }
 0x2af   :  { %5078 = vmatprep.subr.bf16.mxu1 %v6926_v25  ;;  %v7005_v25 = vld [vmem:[#allocation10 + $0xd40] ss:$16 sps:$4 sm:$0xff]  }
 0x2b1   :  { %4735 = vmatpush1.bf16.msra.mxu0 %v6921_v26  ;;  %v7008_v26 = vld [vmem:[#allocation10 + $0xd48] ss:$16 sps:$4 sm:$0xff]  }
 0x2b2   :  { %5079 = vmatpush1.bf16.msra.mxu1 %v6924_v12  ;;  %4736 = vmatprep.subr.bf16.mxu0 %v6929_v27  ;;  %v7013_v12 = vld [vmem:[#allocation10 + $0xd64] ss:$16 sps:$4 sm:$0xff]   ;;  %v7016_v27 = vld [vmem:[#allocation10 + $0xd6c] ss:$16 sps:$4 sm:$0xff]  }
 0x2b3   :  { %5080 = vmatprep.subr.bf16.mxu1 %v6932_v29  ;;  %v7011_v29 = vld [vmem:[#allocation10 + $0xd60] ss:$16 sps:$4 sm:$0xff]  }
 0x2b5   :  { %4737 = vmatpush1.bf16.msra.mxu0 %v6927_v31  ;;  %v7014_v31 = vld [vmem:[#allocation10 + $0xd68] ss:$16 sps:$4 sm:$0xff]  }
 0x2b6   :  { %5081 = vmatpush1.bf16.msra.mxu1 %v6930_v54  ;;  %4738 = vmatprep.subr.bf16.mxu0 %v6935_v32  ;;  %v7019_v54 = vld [vmem:[#allocation10 + $0xd84] ss:$16 sps:$4 sm:$0xff]   ;;  %v7022_v32 = vld [vmem:[#allocation10 + $0xd8c] ss:$16 sps:$4 sm:$0xff]  }
 0x2b7   :  { %5082 = vmatprep.subr.bf16.mxu1 %v6938_v6  ;;  %v7017_v6 = vld [vmem:[#allocation10 + $0xd80] ss:$16 sps:$4 sm:$0xff]  }
 0x2b9   :  { %4739 = vmatpush1.bf16.msra.mxu0 %v6933_v33  ;;  %v7020_v33 = vld [vmem:[#allocation10 + $0xd88] ss:$16 sps:$4 sm:$0xff]  }
 0x2ba   :  { %5083 = vmatpush1.bf16.msra.mxu1 %v6936_v34  ;;  %4740 = vmatprep.subr.bf16.mxu0 %v6941_v35  ;;  %v7025_v34 = vld [vmem:[#allocation10 + $0xda4] ss:$16 sps:$4 sm:$0xff]   ;;  %v7028_v35 = vld [vmem:[#allocation10 + $0xdac] ss:$16 sps:$4 sm:$0xff]  }
 0x2bb   :  { %5084 = vmatprep.subr.bf16.mxu1 %v6944_v23  ;;  %v7023_v23 = vld [vmem:[#allocation10 + $0xda0] ss:$16 sps:$4 sm:$0xff]  }
 0x2bd   :  { %4741 = vmatpush1.bf16.msra.mxu0 %v6939_v3  ;;  %v7026_v3 = vld [vmem:[#allocation10 + $0xda8] ss:$16 sps:$4 sm:$0xff]  }
 0x2be   :  { %5085 = vmatpush1.bf16.msra.mxu1 %v6942_v37  ;;  %4753 = vmatprep.subr.bf16.mxu0 %v6947_v24  ;;  %v7031_v37 = vld [vmem:[#allocation10 + $0xdc4] ss:$16 sps:$4 sm:$0xff]   ;;  %v7034_v24 = vld [vmem:[#allocation10 + $0xdcc] ss:$16 sps:$4 sm:$0xff]  }
 0x2bf   :  { %5097 = vmatprep.subr.bf16.mxu1 %v6950_v38  ;;  %v7029_v38 = vld [vmem:[#allocation10 + $0xdc0] ss:$16 sps:$4 sm:$0xff]  }
 0x2c0   :  { %4743 = vmatmul.mubr.bf16.vlgmr.msra.gmra.mrb[16].mxu0 %v7588_v28 }
 0x2c1   :  { %5087 = vmatmul.mubr.bf16.vlgmr.msra.gmra.mrb[16].mxu1 %v7588_v28  ;;  %4754 = vmatpush1.bf16.msra.mxu0 %v6945_v39  ;;  %v6968_v28 = vld [vmem:[#allocation10 + $0xc6c] ss:$16 sps:$4 sm:$0xff]   ;;  %v7032_v39 = vld [vmem:[#allocation10 + $0xdc8] ss:$16 sps:$4 sm:$0xff]  }
 0x2c2   :  { %4785 = vmatprep.mubr.bf16.mxu0 %v7601_v17  ;;  %5098 = vmatpush1.bf16.msra.mxu1 %v6948_v40  ;;  %v7037_v40 = vld [vmem:[#allocation10 + $0xde4] ss:$16 sps:$4 sm:$0xff]  }
 0x2c3   :  { %5129 = vmatprep.mubr.bf16.mxu1 %v7601_v17  ;;  %4755 = vmatprep.subr.bf16.mxu0 %v6953_v63  ;;  %v6969_v17 = vld [vmem:[#allocation10 + $0xc80] ss:$16 sps:$4 sm:$0xff]   ;;  %v7040_v63 = vld [vmem:[#allocation10 + $0xdec] ss:$16 sps:$4 sm:$0xff]  }
 0x2c4   :  { %5099 = vmatprep.subr.bf16.mxu1 %v6956_v41  ;;  %v7035_v41 = vld [vmem:[#allocation10 + $0xde0] ss:$16 sps:$4 sm:$0xff]  }
 0x2c5   :  { %4756 = vmatpush1.bf16.msra.mxu0 %v6951_v42  ;;  %v7038_v42 = vld [vmem:[#allocation10 + $0xde8] ss:$16 sps:$4 sm:$0xff]  }
 0x2c6   :  { %5100 = vmatpush1.bf16.msra.mxu1 %v6954_v43  ;;  %4757 = vmatprep.subr.bf16.mxu0 %v6959_v44  ;;  %v7043_v43 = vld [vmem:[#allocation10 + $0xe04] ss:$16 sps:$4 sm:$0xff]   ;;  %v7046_v44 = vld [vmem:[#allocation10 + $0xe0c] ss:$16 sps:$4 sm:$0xff]  }
 0x2c7   :  { %5101 = vmatprep.subr.bf16.mxu1 %v6962_v30  ;;  %v7041_v30 = vld [vmem:[#allocation10 + $0xe00] ss:$16 sps:$4 sm:$0xff]  }
 0x2c9   :  { %4758 = vmatpush1.bf16.msra.mxu0 %v6957_v45  ;;  %v7044_v45 = vld [vmem:[#allocation10 + $0xe08] ss:$16 sps:$4 sm:$0xff]  }
 0x2ca   :  { %5102 = vmatpush1.bf16.msra.mxu1 %v6960_v46  ;;  %4759 = vmatprep.subr.bf16.mxu0 %v6965_v47  ;;  %v7049_v46 = vld [vmem:[#allocation10 + $0xe24] ss:$16 sps:$4 sm:$0xff]   ;;  %v7052_v47 = vld [vmem:[#allocation10 + $0xe2c] ss:$16 sps:$4 sm:$0xff]  }
 0x2cb   :  { %5103 = vmatprep.subr.bf16.mxu1 %v6968_v28  ;;  %v7047_v28 = vld [vmem:[#allocation10 + $0xe20] ss:$16 sps:$4 sm:$0xff]  }
 0x2cd   :  { %4760 = vmatpush1.bf16.msra.mxu0 %v6963_v0  ;;  %v7050_v0 = vld [vmem:[#allocation10 + $0xe28] ss:$16 sps:$4 sm:$0xff]  }
 0x2ce   :  { %5104 = vmatpush1.bf16.msra.mxu1 %v6966_v48  ;;  %4761 = vmatprep.subr.bf16.mxu0 %v6971_v50  ;;  %v7055_v48 = vld [vmem:[#allocation10 + $0xe44] ss:$16 sps:$4 sm:$0xff]   ;;  %v7058_v50 = vld [vmem:[#allocation10 + $0xe4c] ss:$16 sps:$4 sm:$0xff]  }
 0x2cf   :  { %5105 = vmatprep.subr.bf16.mxu1 %v6974_v51  ;;  %v7053_v51 = vld [vmem:[#allocation10 + $0xe40] ss:$16 sps:$4 sm:$0xff]  }
 0x2d1   :  { %4762 = vmatpush1.bf16.msra.mxu0 %v6969_v17  ;;  %v7056_v17 = vld [vmem:[#allocation10 + $0xe48] ss:$16 sps:$4 sm:$0xff]  }
 0x2d2   :  { %5106 = vmatpush1.bf16.msra.mxu1 %v6972_v53  ;;  %4763 = vmatprep.subr.bf16.mxu0 %v6977_v55  ;;  %v7061_v53 = vld [vmem:[#allocation10 + $0xe64] ss:$16 sps:$4 sm:$0xff]   ;;  %v7059_v55 = vld [vmem:[#allocation10 + $0xe60] ss:$16 sps:$4 sm:$0xff]  }
 0x2d3   :  { %5107 = vmatprep.subr.bf16.mxu1 %v6980_v13  ;;  %v7062_v13 = vld [vmem:[#allocation10 + $0xe68] ss:$16 sps:$4 sm:$0xff]  }
 0x2d5   :  { %4764 = vmatpush1.bf16.msra.mxu0 %v6975_v56  ;;  %v7067_v56 = vld [vmem:[#allocation10 + $0xe84] ss:$16 sps:$4 sm:$0xff]  }
 0x2d6   :  { %5108 = vmatpush1.bf16.msra.mxu1 %v6978_v57  ;;  %4765 = vmatprep.subr.bf16.mxu0 %v6983_v58  ;;  %v7070_v57 = vld [vmem:[#allocation10 + $0xe8c] ss:$16 sps:$4 sm:$0xff]   ;;  %v7068_v58 = vld [vmem:[#allocation10 + $0xe88] ss:$16 sps:$4 sm:$0xff]  }
 0x2d7   :  { %5109 = vmatprep.subr.bf16.mxu1 %v6986_v59  ;;  %v7073_v59 = vld [vmem:[#allocation10 + $0xea4] ss:$16 sps:$4 sm:$0xff]  }
 0x2d9   :  { %4766 = vmatpush1.bf16.msra.mxu0 %v6981_v60  ;;  %v7076_v60 = vld [vmem:[#allocation10 + $0xeac] ss:$16 sps:$4 sm:$0xff]  }
 0x2da   :  { %5110 = vmatpush1.bf16.msra.mxu1 %v6984_v61  ;;  %4767 = vmatprep.subr.bf16.mxu0 %v6989_v62  ;;  %v7071_v61 = vld [vmem:[#allocation10 + $0xea0] ss:$16 sps:$4 sm:$0xff]   ;;  %v7074_v62 = vld [vmem:[#allocation10 + $0xea8] ss:$16 sps:$4 sm:$0xff]  }
 0x2db   :  { %5111 = vmatprep.subr.bf16.mxu1 %v6992_v1  ;;  %v7079_v1 = vld [vmem:[#allocation10 + $0xec4] ss:$16 sps:$4 sm:$0xff]  }
 0x2dd   :  { %4768 = vmatpush1.bf16.msra.mxu0 %v6987_v2  ;;  %v7082_v2 = vld [vmem:[#allocation10 + $0xecc] ss:$16 sps:$4 sm:$0xff]  }
 0x2de   :  { %5112 = vmatpush1.bf16.msra.mxu1 %v6990_v7  ;;  %4769 = vmatprep.subr.bf16.mxu0 %v6995_v8  ;;  %v7077_v7 = vld [vmem:[#allocation10 + $0xec0] ss:$16 sps:$4 sm:$0xff]   ;;  %v7080_v8 = vld [vmem:[#allocation10 + $0xec8] ss:$16 sps:$4 sm:$0xff]  }
 0x2df   :  { %5113 = vmatprep.subr.bf16.mxu1 %v6998_v11  ;;  %v7085_v11 = vld [vmem:[#allocation10 + $0xee4] ss:$16 sps:$4 sm:$0xff]  }
 0x2e1   :  { %4770 = vmatpush1.bf16.msra.mxu0 %v6993_v9  ;;  %v7088_v9 = vld [vmem:[#allocation10 + $0xeec] ss:$16 sps:$4 sm:$0xff]  }
 0x2e2   :  { %5114 = vmatpush1.bf16.msra.mxu1 %v6996_v16  ;;  %4771 = vmatprep.subr.bf16.mxu0 %v7001_v22  ;;  %v7083_v16 = vld [vmem:[#allocation10 + $0xee0] ss:$16 sps:$4 sm:$0xff]   ;;  %v7086_v22 = vld [vmem:[#allocation10 + $0xee8] ss:$16 sps:$4 sm:$0xff]  }
 0x2e3   :  { %5115 = vmatprep.subr.bf16.mxu1 %v7004_v49  ;;  %v7091_v49 = vld [vmem:[#allocation10 + $0xf04] ss:$16 sps:$4 sm:$0xff]  }
 0x2e5   :  { %4772 = vmatpush1.bf16.msra.mxu0 %v6999_v19  ;;  %v7094_v19 = vld [vmem:[#allocation10 + $0xf0c] ss:$16 sps:$4 sm:$0xff]  }
 0x2e6   :  { %5116 = vmatpush1.bf16.msra.mxu1 %v7002_v21  ;;  %4773 = vmatprep.subr.bf16.mxu0 %v7007_v5  ;;  %v7089_v21 = vld [vmem:[#allocation10 + $0xf00] ss:$16 sps:$4 sm:$0xff]   ;;  %v7092_v5 = vld [vmem:[#allocation10 + $0xf08] ss:$16 sps:$4 sm:$0xff]  }
 0x2e7   :  { %5117 = vmatprep.subr.bf16.mxu1 %v7010_v10  ;;  %v7097_v10 = vld [vmem:[#allocation10 + $0xf24] ss:$16 sps:$4 sm:$0xff]  }
 0x2e9   :  { %4774 = vmatpush1.bf16.msra.mxu0 %v7005_v25  ;;  %v7100_v25 = vld [vmem:[#allocation10 + $0xf2c] ss:$16 sps:$4 sm:$0xff]  }
 0x2ea   :  { %5118 = vmatpush1.bf16.msra.mxu1 %v7008_v26  ;;  %4775 = vmatprep.subr.bf16.mxu0 %v7013_v12  ;;  %v7095_v26 = vld [vmem:[#allocation10 + $0xf20] ss:$16 sps:$4 sm:$0xff]   ;;  %v7098_v12 = vld [vmem:[#allocation10 + $0xf28] ss:$16 sps:$4 sm:$0xff]  }
 0x2eb   :  { %5119 = vmatprep.subr.bf16.mxu1 %v7016_v27  ;;  %v7103_v27 = vld [vmem:[#allocation10 + $0xf44] ss:$16 sps:$4 sm:$0xff]  }
 0x2ed   :  { %4776 = vmatpush1.bf16.msra.mxu0 %v7011_v29  ;;  %v7106_v29 = vld [vmem:[#allocation10 + $0xf4c] ss:$16 sps:$4 sm:$0xff]  }
 0x2ee   :  { %5120 = vmatpush1.bf16.msra.mxu1 %v7014_v31  ;;  %4777 = vmatprep.subr.bf16.mxu0 %v7019_v54  ;;  %v7101_v31 = vld [vmem:[#allocation10 + $0xf40] ss:$16 sps:$4 sm:$0xff]   ;;  %v7104_v54 = vld [vmem:[#allocation10 + $0xf48] ss:$16 sps:$4 sm:$0xff]  }
 0x2ef   :  { %5121 = vmatprep.subr.bf16.mxu1 %v7022_v32  ;;  %v7109_v32 = vld [vmem:[#allocation10 + $0xf64] ss:$16 sps:$4 sm:$0xff]  }
 0x2f1   :  { %4778 = vmatpush1.bf16.msra.mxu0 %v7017_v6  ;;  %v7112_v6 = vld [vmem:[#allocation10 + $0xf6c] ss:$16 sps:$4 sm:$0xff]  }
 0x2f2   :  { %5122 = vmatpush1.bf16.msra.mxu1 %v7020_v33  ;;  %4779 = vmatprep.subr.bf16.mxu0 %v7025_v34  ;;  %v7107_v33 = vld [vmem:[#allocation10 + $0xf60] ss:$16 sps:$4 sm:$0xff]   ;;  %v7110_v34 = vld [vmem:[#allocation10 + $0xf68] ss:$16 sps:$4 sm:$0xff]  }
 0x2f3   :  { %5123 = vmatprep.subr.bf16.mxu1 %v7028_v35  ;;  %v7115_v35 = vld [vmem:[#allocation10 + $0xf84] ss:$16 sps:$4 sm:$0xff]  }
 0x2f5   :  { %4780 = vmatpush1.bf16.msra.mxu0 %v7023_v23  ;;  %v7118_v23 = vld [vmem:[#allocation10 + $0xf8c] ss:$16 sps:$4 sm:$0xff]  }
 0x2f6   :  { %5124 = vmatpush1.bf16.msra.mxu1 %v7026_v3  ;;  %4781 = vmatprep.subr.bf16.mxu0 %v7031_v37  ;;  %v7113_v3 = vld [vmem:[#allocation10 + $0xf80] ss:$16 sps:$4 sm:$0xff]   ;;  %v7116_v37 = vld [vmem:[#allocation10 + $0xf88] ss:$16 sps:$4 sm:$0xff]  }
 0x2f7   :  { %5125 = vmatprep.subr.bf16.mxu1 %v7034_v24  ;;  %v7121_v24 = vld [vmem:[#allocation10 + $0xfa4] ss:$16 sps:$4 sm:$0xff]  }
 0x2f9   :  { %4782 = vmatpush1.bf16.msra.mxu0 %v7029_v38  ;;  %v7124_v38 = vld [vmem:[#allocation10 + $0xfac] ss:$16 sps:$4 sm:$0xff]  }
 0x2fa   :  { %5126 = vmatpush1.bf16.msra.mxu1 %v7032_v39  ;;  %4783 = vmatprep.subr.bf16.mxu0 %v7037_v40  ;;  %v7119_v39 = vld [vmem:[#allocation10 + $0xfa0] ss:$16 sps:$4 sm:$0xff]   ;;  %v7122_v40 = vld [vmem:[#allocation10 + $0xfa8] ss:$16 sps:$4 sm:$0xff]  }
 0x2fb   :  { %5127 = vmatprep.subr.bf16.mxu1 %v7040_v63  ;;  %v7127_v63 = vld [vmem:[#allocation10 + $0xfc4] ss:$16 sps:$4 sm:$0xff]  }
 0x2fd   :  { %4784 = vmatpush1.bf16.msra.mxu0 %v7035_v41  ;;  %v7130_v41 = vld [vmem:[#allocation10 + $0xfcc] ss:$16 sps:$4 sm:$0xff]  }
 0x2fe   :  { %5128 = vmatpush1.bf16.msra.mxu1 %v7038_v42  ;;  %4796 = vmatprep.subr.bf16.mxu0 %v7043_v43  ;;  %v7125_v42 = vld [vmem:[#allocation10 + $0xfc0] ss:$16 sps:$4 sm:$0xff]   ;;  %v7128_v43 = vld [vmem:[#allocation10 + $0xfc8] ss:$16 sps:$4 sm:$0xff]  }
 0x2ff   :  { %5140 = vmatprep.subr.bf16.mxu1 %v7046_v44  ;;  %v7133_v44 = vld [vmem:[#allocation10 + $0xfe4] ss:$16 sps:$4 sm:$0xff]  }
 0x300   :  { %4786 = vmatmul.mubr.bf16.vlgmr.msra.gmra.mrb[16].mxu0 %v7598_v4 }
 0x301   :  { %5130 = vmatmul.mubr.bf16.vlgmr.msra.gmra.mrb[16].mxu1 %v7598_v4  ;;  %4797 = vmatpush1.bf16.msra.mxu0 %v7041_v30  ;;  %v7064_v4 = vld [vmem:[#allocation10 + $0xe6c] ss:$16 sps:$4 sm:$0xff]  }
 0x302   :  { %4828 = vmatprep.mubr.bf16.mxu0 %v7608_v52  ;;  %5141 = vmatpush1.bf16.msra.mxu1 %v7044_v45  ;;  %v7136_v30 = vld [vmem:[#allocation10 + $0xfec] ss:$16 sps:$4 sm:$0xff]   ;;  %v7131_v45 = vld [vmem:[#allocation10 + $0xfe0] ss:$16 sps:$4 sm:$0xff]  }
 0x303   :  { %5172 = vmatprep.mubr.bf16.mxu1 %v7608_v52  ;;  %4798 = vmatprep.subr.bf16.mxu0 %v7049_v46  ;;  %v7065_v52 = vld [vmem:[#allocation10 + $0xe80] ss:$16 sps:$4 sm:$0xff]   ;;  %v7134_v46 = vld [vmem:[#allocation10 + $0xfe8] ss:$16 sps:$4 sm:$0xff]  }
 0x304   :  { %5142 = vmatprep.subr.bf16.mxu1 %v7052_v47  ;;  %v7137_v47 = vld [vmem:[#allocation13 + $0x40] sm:$0xff]  }
 0x305   :  { %4799 = vmatpush1.bf16.msra.mxu0 %v7047_v28  ;;  %v7138_v28 = vld [vmem:[#allocation13 + $0xc0] sm:$0xff]  }
 0x306   :  { %5143 = vmatpush1.bf16.msra.mxu1 %v7050_v0  ;;  %4800 = vmatprep.subr.bf16.mxu0 %v7055_v48  ;;  %v7139_v0 = vld [vmem:[#allocation13] sm:$0xff]  }
 0x307   :  { %5144 = vmatprep.subr.bf16.mxu1 %v7058_v50  ;;  %v7140_v48 = vld [vmem:[#allocation13 + $0x80] sm:$0xff]   ;;  %v7141_v50 = vld [vmem:[#allocation13 + $0x48] sm:$0xff]  }
 0x309   :  { %4801 = vmatpush1.bf16.msra.mxu0 %v7053_v51  ;;  %v7142_v51 = vld [vmem:[#allocation13 + $0xc8] sm:$0xff]  }
 0x30a   :  { %5145 = vmatpush1.bf16.msra.mxu1 %v7056_v17  ;;  %4802 = vmatprep.subr.bf16.mxu0 %v7061_v53  ;;  %v7143_v17 = vld [vmem:[#allocation13 + $0x8] sm:$0xff]  }
 0x30b   :  { %5146 = vmatprep.subr.bf16.mxu1 %v7064_v4  ;;  %v7144_v53 = vld [vmem:[#allocation13 + $0x88] sm:$0xff]   ;;  %v7145_v4 = vld [vmem:[#allocation13 + $0x50] sm:$0xff]  }
 0x30d   :  { %4803 = vmatpush1.bf16.msra.mxu0 %v7059_v55  ;;  %v7146_v55 = vld [vmem:[#allocation13 + $0xd0] sm:$0xff]  }
 0x30e   :  { %5147 = vmatpush1.bf16.msra.mxu1 %v7062_v13  ;;  %4804 = vmatprep.subr.bf16.mxu0 %v7067_v56  ;;  %v7147_v13 = vld [vmem:[#allocation13 + $0x10] sm:$0xff]  }
 0x30f   :  { %5148 = vmatprep.subr.bf16.mxu1 %v7070_v57  ;;  %v7148_v56 = vld [vmem:[#allocation13 + $0x90] sm:$0xff]   ;;  %v7149_v57 = vld [vmem:[#allocation13 + $0x58] sm:$0xff]  }
 0x311   :  { %4805 = vmatpush1.bf16.msra.mxu0 %v7065_v52  ;;  %v7150_v52 = vld [vmem:[#allocation13 + $0xd8] sm:$0xff]  }
 0x312   :  { %5149 = vmatpush1.bf16.msra.mxu1 %v7068_v58  ;;  %4806 = vmatprep.subr.bf16.mxu0 %v7073_v59  ;;  %v7151_v58 = vld [vmem:[#allocation13 + $0x18] sm:$0xff]   ;;  %v7153_v59 = vld [vmem:[#allocation13 + $0x60] sm:$0xff]  }
 0x313   :  { %5150 = vmatprep.subr.bf16.mxu1 %v7076_v60  ;;  %v7154_v60 = vld [vmem:[#allocation13 + $0xe0] sm:$0xff]  }
 0x315   :  { %4807 = vmatpush1.bf16.msra.mxu0 %v7071_v61  ;;  %v7155_v61 = vld [vmem:[#allocation13 + $0x20] sm:$0xff]  }
 0x316   :  { %5151 = vmatpush1.bf16.msra.mxu1 %v7074_v62  ;;  %4808 = vmatprep.subr.bf16.mxu0 %v7079_v1  ;;  %v7156_v62 = vld [vmem:[#allocation13 + $0xa0] sm:$0xff]   ;;  %v7157_v1 = vld [vmem:[#allocation13 + $0x68] sm:$0xff]  }
 0x317   :  { %5152 = vmatprep.subr.bf16.mxu1 %v7082_v2  ;;  %v7158_v2 = vld [vmem:[#allocation13 + $0xe8] sm:$0xff]  }
 0x319   :  { %4809 = vmatpush1.bf16.msra.mxu0 %v7077_v7  ;;  %v7159_v7 = vld [vmem:[#allocation13 + $0x28] sm:$0xff]  }
 0x31a   :  { %5153 = vmatpush1.bf16.msra.mxu1 %v7080_v8  ;;  %4810 = vmatprep.subr.bf16.mxu0 %v7085_v11  ;;  %v7160_v8 = vld [vmem:[#allocation13 + $0xa8] sm:$0xff]   ;;  %v7161_v11 = vld [vmem:[#allocation13 + $0x70] sm:$0xff]  }
 0x31b   :  { %5154 = vmatprep.subr.bf16.mxu1 %v7088_v9  ;;  %v7162_v9 = vld [vmem:[#allocation13 + $0xf0] sm:$0xff]  }
 0x31d   :  { %4811 = vmatpush1.bf16.msra.mxu0 %v7083_v16  ;;  %v7163_v16 = vld [vmem:[#allocation13 + $0x30] sm:$0xff]  }
 0x31e   :  { %5155 = vmatpush1.bf16.msra.mxu1 %v7086_v22  ;;  %4812 = vmatprep.subr.bf16.mxu0 %v7091_v49  ;;  %v7164_v22 = vld [vmem:[#allocation13 + $0xb0] sm:$0xff]   ;;  %v7165_v49 = vld [vmem:[#allocation13 + $0x78] sm:$0xff]  }
 0x31f   :  { %5156 = vmatprep.subr.bf16.mxu1 %v7094_v19  ;;  %v7166_v19 = vld [vmem:[#allocation13 + $0xf8] sm:$0xff]  }
 0x321   :  { %4813 = vmatpush1.bf16.msra.mxu0 %v7089_v21  ;;  %v7167_v21 = vld [vmem:[#allocation13 + $0x38] sm:$0xff]  }
 0x322   :  { %5157 = vmatpush1.bf16.msra.mxu1 %v7092_v5  ;;  %4814 = vmatprep.subr.bf16.mxu0 %v7097_v10  ;;  %v7168_v5 = vld [vmem:[#allocation13 + $0xb8] sm:$0xff]  }
 0x323   :  { %5158 = vmatprep.subr.bf16.mxu1 %v7100_v25  ;;  %v1913_v10 = vld [vmem:[#allocation12] sm:$0xf] }
 0x324   :  { %v1918_v25 = vrot.slane %v1913_v10, %v7523_v14 }
 0x325   :  { %4815 = vmatpush1.bf16.msra.mxu0 %v7095_v26  ;;  %v1926_v26 = vrot.slane %v1913_v10, %v7533_v18 }
 0x326   :  { %5159 = vmatpush1.bf16.msra.mxu1 %v7098_v12  ;;  %4816 = vmatprep.subr.bf16.mxu0 %v7103_v27  ;;  %v1922_v12 = vrot.slane %v1913_v10, %v7526_v15  ;;  %v1930_v27 = vrot.slane %v1913_v10, %v7536_v20 }
 0x327   :  { %5160 = vmatprep.subr.bf16.mxu1 %v7106_v29 }
 0x329   :  { %4817 = vmatpush1.bf16.msra.mxu0 %v7101_v31 }
 0x32a   :  { %5161 = vmatpush1.bf16.msra.mxu1 %v7104_v54  ;;  %4818 = vmatprep.subr.bf16.mxu0 %v7109_v32 }
 0x32b   :  { %5162 = vmatprep.subr.bf16.mxu1 %v7112_v6 }
 0x32d   :  { %4819 = vmatpush1.bf16.msra.mxu0 %v7107_v33 }
 0x32e   :  { %5163 = vmatpush1.bf16.msra.mxu1 %v7110_v34  ;;  %4820 = vmatprep.subr.bf16.mxu0 %v7115_v35 }
 0x32f   :  { %5164 = vmatprep.subr.bf16.mxu1 %v7118_v23 }
 0x331   :  { %4821 = vmatpush1.bf16.msra.mxu0 %v7113_v3 }
 0x332   :  { %5165 = vmatpush1.bf16.msra.mxu1 %v7116_v37  ;;  %4822 = vmatprep.subr.bf16.mxu0 %v7121_v24 }
 0x333   :  { %5166 = vmatprep.subr.bf16.mxu1 %v7124_v38 }
 0x335   :  { %4823 = vmatpush1.bf16.msra.mxu0 %v7119_v39 }
 0x336   :  { %5167 = vmatpush1.bf16.msra.mxu1 %v7122_v40  ;;  %4824 = vmatprep.subr.bf16.mxu0 %v7127_v63 }
 0x337   :  { %5168 = vmatprep.subr.bf16.mxu1 %v7130_v41 }
 0x339   :  { %4825 = vmatpush1.bf16.msra.mxu0 %v7125_v42 }
 0x33a   :  { %5169 = vmatpush1.bf16.msra.mxu1 %v7128_v43  ;;  %4826 = vmatprep.subr.bf16.mxu0 %v7133_v44 }
 0x33b   :  { %5170 = vmatprep.subr.bf16.mxu1 %v7136_v30 }
 0x33d   :  { %4827 = vmatpush1.bf16.msra.mxu0 %v7131_v45 }
 0x33e   :  { %5171 = vmatpush1.bf16.msra.mxu1 %v7134_v46  ;;  %6244 = vmatprep.subr.bf16.mxu0 %v7137_v47 }
 0x33f   :  { %6266 = vmatprep.subr.bf16.mxu1 %v7138_v28 }
 0x340   :  { %4829 = vmatmul.mubr.bf16.vlgmr.msra.gmra.mrb[16].mxu0 %v7606_v36 }
 0x341   :  { %5173 = vmatmul.mubr.bf16.vlgmr.msra.gmra.mrb[16].mxu1 %v7606_v36  ;;  %6245 = vmatpush3.bf16.msra.mxu0 %v7139_v0  ;;  %v7152_v36 = vld [vmem:[#allocation13 + $0x98] sm:$0xff]  }
 0x342   :  { %6267 = vmatpush3.bf16.msra.mxu1 %v7140_v48  ;;  %6246 = vmatprep.subr.bf16.mxu0 %v7141_v50  ;;  %v6211_v48 = vld [vmem:[#allocation15] ss:$0 sm:$0xff] }
 0x343   :  { %6268 = vmatprep.subr.bf16.mxu1 %v7142_v51 }
 0x345   :  { %6247 = vmatpush3.bf16.msra.mxu0 %v7143_v17 }
 0x346   :  { %6269 = vmatpush3.bf16.msra.mxu1 %v7144_v53  ;;  %6248 = vmatprep.subr.bf16.mxu0 %v7145_v4 }
 0x347   :  { %6270 = vmatprep.subr.bf16.mxu1 %v7146_v55 }
 0x349   :  { %6249 = vmatpush3.bf16.msra.mxu0 %v7147_v13 }
 0x34a   :  { %6271 = vmatpush3.bf16.msra.mxu1 %v7148_v56  ;;  %6250 = vmatprep.subr.bf16.mxu0 %v7149_v57 }
 0x34b   :  { %6272 = vmatprep.subr.bf16.mxu1 %v7150_v52 }
 0x34d   :  { %6251 = vmatpush3.bf16.msra.mxu0 %v7151_v58 }
 0x34e   :  { %6273 = vmatpush3.bf16.msra.mxu1 %v7152_v36  ;;  %6252 = vmatprep.subr.bf16.mxu0 %v7153_v59 }
 0x34f   :  { %6274 = vmatprep.subr.bf16.mxu1 %v7154_v60 }
 0x351   :  { %6253 = vmatpush3.bf16.msra.mxu0 %v7155_v61 }
 0x352   :  { %6275 = vmatpush3.bf16.msra.mxu1 %v7156_v62  ;;  %6254 = vmatprep.subr.bf16.mxu0 %v7157_v1 }
 0x353   :  { %6276 = vmatprep.subr.bf16.mxu1 %v7158_v2 }
 0x355   :  { %6255 = vmatpush3.bf16.msra.mxu0 %v7159_v7 }
 0x356   :  { %6277 = vmatpush3.bf16.msra.mxu1 %v7160_v8  ;;  %6256 = vmatprep.subr.bf16.mxu0 %v7161_v11 }
 0x357   :  { %6278 = vmatprep.subr.bf16.mxu1 %v7162_v9 }
 0x359   :  { %6257 = vmatpush3.bf16.msra.mxu0 %v7163_v16 }
 0x35a   :  { %6279 = vmatpush3.bf16.msra.mxu1 %v7164_v22  ;;  %6258 = vmatprep.subr.bf16.mxu0 %v7165_v49 }
 0x35b   :  { %6280 = vmatprep.subr.bf16.mxu1 %v7166_v19 }
 0x35d   :  { %6259 = vmatpush3.bf16.msra.mxu0 %v7167_v21 }
 0x35e   :  { %6281 = vmatpush3.bf16.msra.mxu1 %v7168_v5 }
 0x413   :  { %v4830_v29 = vpop.f32.mrb[16].mxu0 }
 0x414   :  { %v6288_v31 = vadd.f32 %v4830_v29, %v1918_v25  ;;  %v5174_v54 = vpop.f32.mrb[16].mxu1  ;;  %v4832_v32 = vpop.f32.mrb[17].mxu0 }
 0x415   :  { %v6292_v6 = vadd.f32 %v5174_v54, %v1926_v26  ;;  %v6289_v33 = vadd.f32 %v4832_v32, %v1922_v12  ;;  %v5176_v34 = vpop.f32.mrb[17].mxu1  ;;  %v4834_v35 = vpop.f32.mrb[18].mxu0 }
 0x416   :  { %v6293_v23 = vadd.f32 %v5176_v34, %v1930_v27  ;;  %v6290_v3 = vadd.f32 %v4834_v35, %v1918_v25  ;;  %v5178_v37 = vpop.f32.mrb[18].mxu1  ;;  %v4836_v24 = vpop.f32.mrb[19].mxu0  ;;  %v5183_v18 = vmax.f32 %v6288_v31, 0.0 }
 0x417   :  { %v6294_v38 = vadd.f32 %v5178_v37, %v1926_v26  ;;  %v6291_v14 = vadd.f32 %v4836_v24, %v1922_v12  ;;  %v5180_v39 = vpop.f32.mrb[19].mxu1  ;;  %v5185_v63 = vmax.f32 %v6292_v6, 0.0  ;;  %v5184_v20 = vmax.f32 %v6289_v33, 0.0 }
 0x418   :  { %v5187_v40 = vmax.f32 %v6290_v3, 0.0  ;;  %v6295_v15 = vadd.f32 %v5180_v39, %v1930_v27  ;;  %v5186_v43 = vmax.f32 %v6293_v23, 0.0 }
 0x419   :  { %v5189_v41 = vmax.f32 %v6294_v38, 0.0  ;;  %v5188_v42 = vmax.f32 %v6291_v14, 0.0 }
 0x41a   :  { %v5191_v44 = vpack.c.bf16 %v5187_v40, %v5183_v18  ;;  %v5190_v30 = vmax.f32 %v6295_v15, 0.0 }
 0x41b   :  { %v5193_v45 = vpack.c.bf16 %v5189_v41, %v5185_v63  ;;  %v5192_v46 = vpack.c.bf16 %v5188_v42, %v5184_v20 }
 0x41c   :  { %v5194_v47 = vpack.c.bf16 %v5190_v30, %v5186_v43 }
 0x41d   :  { %5498 = vmatprep.mubr.bf16.mxu0 %v5192_v46 }
 0x41e   :  { %5539 = vmatprep.mubr.bf16.mxu1 %v5194_v47  ;;  %5499 = vmatmul.mubr.bf16.vlgmr.msra.gmra.mrb[20].mxu0 %v5191_v44 }
 0x41f   :  { %5540 = vmatmul.mubr.bf16.vlgmr.msra.gmra.mrb[20].mxu1 %v5193_v45 }
 0x4f1   :  { %v6260_v28 = vpop.f32.mrb[20].mxu0 }
 0x4f2   :  { %v6282_v0 = vpop.f32.mrb[20].mxu1  ;;  %v6261_v50 = vpop.f32.mrb[21].mxu0 }
 0x4f3   :  { %v6262_v51 = vadd.f32 %v6261_v50, %v6260_v28  ;;  %v6283_v17 = vpop.f32.mrb[21].mxu1  ;;  %v6263_v53 = vpop.f32.mrb[22].mxu0 }
 0x4f4   :  { %v6284_v4 = vadd.f32 %v6283_v17, %v6282_v0  ;;  %v6285_v55 = vpop.f32.mrb[22].mxu1  ;;  %v6264_v13 = vpop.f32.mrb[23].mxu0 }
 0x4f5   :  { %v5501_v56 = vadd.f32 %v6262_v51, %v6211_v48  ;;  %v6265_v57 = vadd.f32 %v6264_v13, %v6263_v53  ;;  %v6286_v52 = vpop.f32.mrb[23].mxu1 }
 0x4f6   :  { %v6287_v58 = vadd.f32 %v6286_v52, %v6285_v55 }
 0x4f7   :  { %v5542_v36 = vadd.f32 %v6284_v4, %v5501_v56  ;;  %v5504_v59 = vadd.f32 %v6265_v57, %v6211_v48 }
 0x4f9   :  { %5548 = vst [vmem:[#allocation16] sm:$0xff] %v5542_v36  ;;  %v5545_v60 = vadd.f32 %v6287_v58, %v5504_v59 }
 0x4fb   :  { %5549 = vst [vmem:[#allocation16 + $0x8] sm:$0xff] %v5545_v60 }
 0x4fc   :  { %7335 = shalt.err (!%p7332_p4)
}
 0x4fd   :  { %s7336_s12 = scalar_lea.hbm %s7655_s7, 256 }
 0x4fe   :  { %p7337_p5 = scmp.ne.s32.totalorder %s7655_s7, %s7336_s12  ;;  %p7340_p6 = scmp.lt.u32.totalorder %s7336_s12, %s7655_s7 }
 0x500   :  { %p7342_p7 = pnand %p7340_p6, %p7337_p5 }
 0x502   :  { %7345 = shalt.err (!%p7342_p7)
}
 0x503   :  { %s7370_s20 = smov 128   ;;  %s7371_s21 = smov 8  }
 0x504   :  { %5561 = dma.vmem_to_hbm [thread:$0]  %s5556_s15, 256, %s7655_s7, [#allocation6], %s7370_s20, %s7370_s20, %s7371_s21  }
 0x505   :  { %7354 = dma.done.wait [#allocation6], 256  }
 0x506   :  { %7355 = vsyncadd [#allocation6], 4294967040 }
 0x507   :  { %5565 = vsyncpa [#allocation5], 1 }
 0x508   :  { %5566 = vsyncpa [#allocation8], 1 }
 0x509   :  { %5567 = vsyncpa [#allocation11], 1 }
 0x50a   :  { %5568 = vsyncpa [#allocation14], 1 }
 0x50b   :  { %5569 = vsyncpa [#allocation6], 1 }

</bundles_post_ra>
